<compile_context>
chip_gen: v7x
topology: tpu7x:2x2x1
jax: 0.10.0
libtpu: 0.0.40
codegen_flags: <defaults>
</compile_context>

<pallas_src>
import jax
import jax.numpy as jnp
from jax import lax
from jax.experimental import pallas as pl
from jax.experimental.pallas import tpu as pltpu


def _fold_taps(v):
    """(D, H, W, C) -> (D, H, W, 9C) with
    out[d, h, w, (kh*3 + kw)*C + c] = v[d, h+kh-1, w+kw-1, c],
    zero outside the valid H/W range (the conv's spatial zero padding is folded
    into the matmul K axis, so no padded scratch is needed)."""
    D, H, W, C = v.shape
    zw = jnp.zeros((D, H, 1, C), v.dtype)
    wm1 = jnp.concatenate([zw, v[:, :, :W - 1, :]], axis=2)    # v[..., w-1, :]
    wp1 = jnp.concatenate([v[:, :, 1:, :], zw], axis=2)        # v[..., w+1, :]
    row = jnp.concatenate([wm1, v, wp1], axis=-1)              # (D,H,W,3C), kw-major
    zh = jnp.zeros((D, 1, W, 3 * C), v.dtype)
    hm1 = jnp.concatenate([zh, row[:, :H - 1]], axis=1)        # row[:, h-1]
    hp1 = jnp.concatenate([row[:, 1:], zh], axis=1)            # row[:, h+1]
    return jnp.concatenate([hm1, row, hp1], axis=-1)           # (D,H,W,9C), kh-major


def _split_lanes(p, c):
    """(..., W*C) -> (..., W, C): move the packed w index off the lane axis."""
    w = p.shape[-1] // c
    return jnp.stack([p[..., i * c:(i + 1) * c] for i in range(w)], axis=-2)


def _merge_lanes(v):
    """(..., W, C) -> (..., W*C): lane-dense repack for the output store."""
    w = v.shape[-2]
    return jnp.concatenate([v[..., i, :] for i in range(w)], axis=-1)


def resblock_kernel(x_ref, w1_ref, b1_ref, w2_ref, b2_ref, o_ref):
    # x_ref / o_ref : (1, D, H, W*C)  one batch element, lane-dense channels-last
    # w*_ref        : (9*Cin, 3*Cout) rows = (kh, kw, cin) fold, cols = kd-major x Cout
    # b*_ref        : (1, Cout)
    _, D, H, WC = x_ref.shape
    C = b1_ref.shape[-1]
    W = WC // C
    HW = H * W
    M = D * HW
    cdt = x_ref.dtype

    x_packed = x_ref[0]                                    # (D, H, W*C)
    x = _split_lanes(x_packed, C)                          # (D, H, W, C)

    def conv3x3x3(vol, w_ref, b_ref):
        """3x3x3 conv (stride 1, pad 1) + bias over the full volume -> (M, Cout) f32."""
        cin = vol.shape[-1]
        cout = b_ref.shape[-1]
        lhs = _fold_taps(vol).reshape(M, 9 * cin)          # im2col, K = 9*cin
        r = jnp.dot(lhs, w_ref[...],                       # ONE MXU matmul, N = 3*cout
                    preferred_element_type=jnp.float32)    # (M, 3*cout) f32 acc
        # kd reduction: zero D-halo plane on each side, then 3 shifted VPU adds
        # (sublane offsets HW / 2*HW are 8-aligned; column blocks pick the kd tap).
        zplane = jnp.zeros((HW, 3 * cout), jnp.float32)
        rp = jnp.concatenate([zplane, r, zplane], axis=0)  # ((D+2)*HW, 3*cout)
        out = (rp[:M, :cout]
               + rp[HW:HW + M, cout:2 * cout]
               + rp[2 * HW:2 * HW + M, 2 * cout:])
        return out + b_ref[...].astype(jnp.float32)        # hoisted single bias add

    y = jnp.maximum(conv3x3x3(x, w1_ref, b1_ref), 0.0)     # conv1 + b1, ReLU   (M, C)
    y = conv3x3x3(y.astype(cdt).reshape(D, H, W, C),       # conv2 + b2         (M, C)
                  w2_ref, b2_ref)
    # Residual add in the packed lane-dense layout, then one dense (unmasked) store.
    res = _merge_lanes(y.reshape(D, H, W, C)) + x_packed.astype(jnp.float32)
    o_ref[0] = res.astype(o_ref.dtype)


@jax.jit
def resblock_forward(x_ncdhw, w1, b1, w2, b2):
    """x_ncdhw: (N, C, D, H, W); w*: (3, 3, 3, Cin, Cout) (DHWIO); b*: (Cout,).
    Returns (N, C, D, H, W)."""
    N, C, D, H, W = x_ncdhw.shape
    Cout = w1.shape[-1]

    # Lane-dense NDHWC presentation: last dim W*C (=512 here) -> full (8,128) DMA
    # tiles and unmasked output stores.  (The free reshape keeps row-major order,
    # so the in-kernel lane (un)packing round-trips exactly.)
    x = jnp.transpose(x_ncdhw, (0, 2, 3, 4, 1)).reshape(N, D, H, W * C)

    # Weight slabs with kd folded into the matmul N dimension:
    #   wcat[(kh*3 + kw)*Cin + ci, kd*Cout + co] = w[kd, kh, kw, ci, co]
    w1c = jnp.transpose(w1.reshape(3, 9 * C, Cout), (1, 0, 2)).reshape(9 * C, 3 * Cout)
    w2c = jnp.transpose(w2.reshape(3, 9 * Cout, Cout), (1, 0, 2)).reshape(9 * Cout, 3 * Cout)
    b1r = b1.reshape(1, Cout)
    b2r = b2.reshape(1, Cout)

    out = pl.pallas_call(
        resblock_kernel,
        out_shape=jax.ShapeDtypeStruct((N, D, H, W * Cout), x.dtype),
        grid_spec=pltpu.PrefetchScalarGridSpec(
            num_scalar_prefetch=0,
            grid=(N,),
            in_specs=[
                pl.BlockSpec((1, D, H, W * C), lambda n: (n, 0, 0, 0)),
                # Grid-invariant weight/bias blocks (small at C=64; pl.Buffered(1)
                # would halve their VMEM footprint for large C / v7x).
                pl.BlockSpec((9 * C, 3 * Cout), lambda n: (0, 0)),
                pl.BlockSpec((1, Cout), lambda n: (0, 0)),
                pl.BlockSpec((9 * Cout, 3 * Cout), lambda n: (0, 0)),
                pl.BlockSpec((1, Cout), lambda n: (0, 0)),
            ],
            out_specs=pl.BlockSpec((1, D, H, W * Cout), lambda n: (n, 0, 0, 0)),
        ),
        compiler_params=pltpu.CompilerParams(
            dimension_semantics=("parallel",),
        ),
    )(x, w1c, b1r, w2c, b2r)

    out = out.reshape(N, D, H, W, Cout)
    return jnp.transpose(out, (0, 4, 1, 2, 3))             # back to NCDHW


def ref_forward(x_ncdhw, w1, b1, w2, b2):
    """Pure-JAX reference (lax.conv_general_dilated), NDHWC internally."""
    x = jnp.transpose(x_ncdhw, (0, 2, 3, 4, 1))
    dn = ("NDHWC", "DHWIO", "NDHWC")
    pad = [(1, 1)] * 3
    y = lax.conv_general_dilated(x, w1, (1, 1, 1), pad, dimension_numbers=dn,
                                 precision=lax.Precision.HIGHEST) + b1
    y = jnp.maximum(y, 0.0)
    y = lax.conv_general_dilated(y, w2, (1, 1, 1), pad, dimension_numbers=dn,
                                 precision=lax.Precision.HIGHEST) + b2
    out = x + y
    return jnp.transpose(out, (0, 4, 1, 2, 3))


if __name__ == "__main__":
    # Module defaults: nn.Conv3d(64, 64, 3, 1, 1) -> in_channels == out_channels == 64.
    N, C, D, H, W = 2, 64, 4, 8, 8
    key = jax.random.PRNGKey(0)
    kx, kw1, kb1, kw2, kb2 = jax.random.split(key, 5)

    x = jax.random.normal(kx, (N, C, D, H, W), jnp.float32)
    w1 = 0.05 * jax.random.normal(kw1, (3, 3, 3, C, C), jnp.float32)   # DHWIO
    b1 = 0.05 * jax.random.normal(kb1, (C,), jnp.float32)
    w2 = 0.05 * jax.random.normal(kw2, (3, 3, 3, C, C), jnp.float32)
    b2 = 0.05 * jax.random.normal(kb2, (C,), jnp.float32)

    out = jax.block_until_ready(resblock_forward(x, w1, b1, w2, b2))
    ref = ref_forward(x, w1, b1, w2, b2)

    assert out.shape == (N, C, D, H, W)
    max_err = jnp.max(jnp.abs(out - ref))
    assert jnp.allclose(out, ref, atol=2e-3, rtol=2e-3), f"mismatch vs reference: {max_err}"

    print("KERNEL_OK")
</pallas_src>

<mosaic_0001>
module attributes {stable_mosaic.version = 11 : i64} {
  func.func @resblock_kernel(%arg0: i32, %arg1: memref<1x4x8x512xf32, #tpu.memory_space<vmem>>, %arg2: memref<576x192xf32, #tpu.memory_space<vmem>>, %arg3: memref<1x64xf32, #tpu.memory_space<vmem>>, %arg4: memref<576x192xf32, #tpu.memory_space<vmem>>, %arg5: memref<1x64xf32, #tpu.memory_space<vmem>>, %arg6: memref<1x4x8x512xf32, #tpu.memory_space<vmem>>) attributes {dimension_semantics = [#tpu.dimension_semantics<parallel>], iteration_bounds = array<i64: 2>, scalar_prefetch = 0 : i64, scratch_operands = 0 : i64, tpu.core_type = #tpu.core_type<tc>, window_params = [{transform_indices = @transform_0, window_bounds = array<i64: 1, 4, 8, 512>}, {pipeline_mode = #tpu.pipeline_mode<synchronous>, transform_indices = @transform_1, window_bounds = array<i64: 576, 192>}, {pipeline_mode = #tpu.pipeline_mode<synchronous>, transform_indices = @transform_2, window_bounds = array<i64: 1, 64>}, {pipeline_mode = #tpu.pipeline_mode<synchronous>, transform_indices = @transform_3, window_bounds = array<i64: 576, 192>}, {pipeline_mode = #tpu.pipeline_mode<synchronous>, transform_indices = @transform_4, window_bounds = array<i64: 1, 64>}, {transform_indices = @transform_5, window_bounds = array<i64: 1, 4, 8, 512>}]} {
    %c0 = arith.constant 0 : index
    %c0_0 = arith.constant 0 : index
    %c0_1 = arith.constant 0 : index
    %c0_2 = arith.constant 0 : index
    %0 = vector.load %arg1[%c0, %c0_0, %c0_1, %c0_2] : memref<1x4x8x512xf32, #tpu.memory_space<vmem>>, vector<1x4x8x512xf32>
    %1 = vector.shape_cast %0 : vector<1x4x8x512xf32> to vector<4x8x512xf32>
    %2 = vector.extract_strided_slice %1 {offsets = [0, 0, 0], sizes = [4, 8, 64], strides = [1, 1, 1]} : vector<4x8x512xf32> to vector<4x8x64xf32>
    %3 = vector.extract_strided_slice %1 {offsets = [0, 0, 64], sizes = [4, 8, 64], strides = [1, 1, 1]} : vector<4x8x512xf32> to vector<4x8x64xf32>
    %4 = vector.extract_strided_slice %1 {offsets = [0, 0, 128], sizes = [4, 8, 64], strides = [1, 1, 1]} : vector<4x8x512xf32> to vector<4x8x64xf32>
    %5 = vector.extract_strided_slice %1 {offsets = [0, 0, 192], sizes = [4, 8, 64], strides = [1, 1, 1]} : vector<4x8x512xf32> to vector<4x8x64xf32>
    %6 = vector.extract_strided_slice %1 {offsets = [0, 0, 256], sizes = [4, 8, 64], strides = [1, 1, 1]} : vector<4x8x512xf32> to vector<4x8x64xf32>
    %7 = vector.extract_strided_slice %1 {offsets = [0, 0, 320], sizes = [4, 8, 64], strides = [1, 1, 1]} : vector<4x8x512xf32> to vector<4x8x64xf32>
    %8 = vector.extract_strided_slice %1 {offsets = [0, 0, 384], sizes = [4, 8, 64], strides = [1, 1, 1]} : vector<4x8x512xf32> to vector<4x8x64xf32>
    %9 = vector.extract_strided_slice %1 {offsets = [0, 0, 448], sizes = [4, 8, 64], strides = [1, 1, 1]} : vector<4x8x512xf32> to vector<4x8x64xf32>
    %10 = vector.shape_cast %2 : vector<4x8x64xf32> to vector<4x8x1x64xf32>
    %11 = vector.shape_cast %3 : vector<4x8x64xf32> to vector<4x8x1x64xf32>
    %12 = vector.shape_cast %4 : vector<4x8x64xf32> to vector<4x8x1x64xf32>
    %13 = vector.shape_cast %5 : vector<4x8x64xf32> to vector<4x8x1x64xf32>
    %14 = vector.shape_cast %6 : vector<4x8x64xf32> to vector<4x8x1x64xf32>
    %15 = vector.shape_cast %7 : vector<4x8x64xf32> to vector<4x8x1x64xf32>
    %16 = vector.shape_cast %8 : vector<4x8x64xf32> to vector<4x8x1x64xf32>
    %17 = vector.shape_cast %9 : vector<4x8x64xf32> to vector<4x8x1x64xf32>
    %18 = tpu.concatenate %10, %11, %12, %13, %14, %15, %16, %17 in 2 : vector<4x8x1x64xf32>, vector<4x8x1x64xf32>, vector<4x8x1x64xf32>, vector<4x8x1x64xf32>, vector<4x8x1x64xf32>, vector<4x8x1x64xf32>, vector<4x8x1x64xf32>, vector<4x8x1x64xf32> -> vector<4x8x8x64xf32>
    %cst = arith.constant 0.000000e+00 : f32
    %19 = vector.broadcast %cst : f32 to vector<4x8x1x64xf32>
    %20 = vector.extract_strided_slice %18 {offsets = [0, 0, 0, 0], sizes = [4, 8, 7, 64], strides = [1, 1, 1, 1]} : vector<4x8x8x64xf32> to vector<4x8x7x64xf32>
    %21 = tpu.concatenate %19, %20 in 2 : vector<4x8x1x64xf32>, vector<4x8x7x64xf32> -> vector<4x8x8x64xf32>
    %22 = vector.extract_strided_slice %18 {offsets = [0, 0, 1, 0], sizes = [4, 8, 7, 64], strides = [1, 1, 1, 1]} : vector<4x8x8x64xf32> to vector<4x8x7x64xf32>
    %23 = tpu.concatenate %22, %19 in 2 : vector<4x8x7x64xf32>, vector<4x8x1x64xf32> -> vector<4x8x8x64xf32>
    %24 = tpu.concatenate %21, %18, %23 in 3 : vector<4x8x8x64xf32>, vector<4x8x8x64xf32>, vector<4x8x8x64xf32> -> vector<4x8x8x192xf32>
    %cst_3 = arith.constant 0.000000e+00 : f32
    %25 = vector.broadcast %cst_3 : f32 to vector<4x1x8x192xf32>
    %26 = vector.extract_strided_slice %24 {offsets = [0, 0, 0, 0], sizes = [4, 7, 8, 192], strides = [1, 1, 1, 1]} : vector<4x8x8x192xf32> to vector<4x7x8x192xf32>
    %27 = tpu.concatenate %25, %26 in 1 : vector<4x1x8x192xf32>, vector<4x7x8x192xf32> -> vector<4x8x8x192xf32>
    %28 = vector.extract_strided_slice %24 {offsets = [0, 1, 0, 0], sizes = [4, 7, 8, 192], strides = [1, 1, 1, 1]} : vector<4x8x8x192xf32> to vector<4x7x8x192xf32>
    %29 = tpu.concatenate %28, %25 in 1 : vector<4x7x8x192xf32>, vector<4x1x8x192xf32> -> vector<4x8x8x192xf32>
    %30 = tpu.concatenate %27, %24, %29 in 3 : vector<4x8x8x192xf32>, vector<4x8x8x192xf32>, vector<4x8x8x192xf32> -> vector<4x8x8x576xf32>
    %31 = vector.shape_cast %30 : vector<4x8x8x576xf32> to vector<256x576xf32>
    %c0_4 = arith.constant 0 : index
    %c0_5 = arith.constant 0 : index
    %32 = vector.load %arg2[%c0_4, %c0_5] : memref<576x192xf32, #tpu.memory_space<vmem>>, vector<576x192xf32>
    %cst_6 = arith.constant dense<0.000000e+00> : vector<256x192xf32>
    %33 = tpu.matmul %31, %32, %cst_6 {dimension_numbers = #tpu.dot_dimension_numbers<[1], [0], [0], [1], [0, 0, 1, 1], [], []>} : vector<256x576xf32>, vector<576x192xf32>, vector<256x192xf32> -> vector<256x192xf32>
    %cst_7 = arith.constant 0.000000e+00 : f32
    %34 = vector.broadcast %cst_7 : f32 to vector<64x192xf32>
    %35 = tpu.concatenate %34, %33, %34 in 0 : vector<64x192xf32>, vector<256x192xf32>, vector<64x192xf32> -> vector<384x192xf32>
    %36 = vector.extract_strided_slice %35 {offsets = [0, 0], sizes = [256, 64], strides = [1, 1]} : vector<384x192xf32> to vector<256x64xf32>
    %37 = vector.extract_strided_slice %35 {offsets = [64, 64], sizes = [256, 64], strides = [1, 1]} : vector<384x192xf32> to vector<256x64xf32>
    %38 = arith.addf %36, %37 : vector<256x64xf32>
    %39 = vector.extract_strided_slice %35 {offsets = [128, 128], sizes = [256, 64], strides = [1, 1]} : vector<384x192xf32> to vector<256x64xf32>
    %40 = arith.addf %38, %39 : vector<256x64xf32>
    %c0_8 = arith.constant 0 : index
    %c0_9 = arith.constant 0 : index
    %41 = vector.load %arg3[%c0_8, %c0_9] : memref<1x64xf32, #tpu.memory_space<vmem>>, vector<1x64xf32>
    %42 = vector.broadcast %41 : vector<1x64xf32> to vector<256x64xf32>
    %43 = arith.addf %40, %42 : vector<256x64xf32>
    %cst_10 = arith.constant 0.000000e+00 : f32
    %44 = vector.broadcast %cst_10 : f32 to vector<256x64xf32>
    %45 = arith.maximumf %43, %44 : vector<256x64xf32>
    %46 = vector.shape_cast %45 : vector<256x64xf32> to vector<4x8x8x64xf32>
    %cst_11 = arith.constant 0.000000e+00 : f32
    %47 = vector.broadcast %cst_11 : f32 to vector<4x8x1x64xf32>
    %48 = vector.extract_strided_slice %46 {offsets = [0, 0, 0, 0], sizes = [4, 8, 7, 64], strides = [1, 1, 1, 1]} : vector<4x8x8x64xf32> to vector<4x8x7x64xf32>
    %49 = tpu.concatenate %47, %48 in 2 : vector<4x8x1x64xf32>, vector<4x8x7x64xf32> -> vector<4x8x8x64xf32>
    %50 = vector.extract_strided_slice %46 {offsets = [0, 0, 1, 0], sizes = [4, 8, 7, 64], strides = [1, 1, 1, 1]} : vector<4x8x8x64xf32> to vector<4x8x7x64xf32>
    %51 = tpu.concatenate %50, %47 in 2 : vector<4x8x7x64xf32>, vector<4x8x1x64xf32> -> vector<4x8x8x64xf32>
    %52 = tpu.concatenate %49, %46, %51 in 3 : vector<4x8x8x64xf32>, vector<4x8x8x64xf32>, vector<4x8x8x64xf32> -> vector<4x8x8x192xf32>
    %cst_12 = arith.constant 0.000000e+00 : f32
    %53 = vector.broadcast %cst_12 : f32 to vector<4x1x8x192xf32>
    %54 = vector.extract_strided_slice %52 {offsets = [0, 0, 0, 0], sizes = [4, 7, 8, 192], strides = [1, 1, 1, 1]} : vector<4x8x8x192xf32> to vector<4x7x8x192xf32>
    %55 = tpu.concatenate %53, %54 in 1 : vector<4x1x8x192xf32>, vector<4x7x8x192xf32> -> vector<4x8x8x192xf32>
    %56 = vector.extract_strided_slice %52 {offsets = [0, 1, 0, 0], sizes = [4, 7, 8, 192], strides = [1, 1, 1, 1]} : vector<4x8x8x192xf32> to vector<4x7x8x192xf32>
    %57 = tpu.concatenate %56, %53 in 1 : vector<4x7x8x192xf32>, vector<4x1x8x192xf32> -> vector<4x8x8x192xf32>
    %58 = tpu.concatenate %55, %52, %57 in 3 : vector<4x8x8x192xf32>, vector<4x8x8x192xf32>, vector<4x8x8x192xf32> -> vector<4x8x8x576xf32>
    %59 = vector.shape_cast %58 : vector<4x8x8x576xf32> to vector<256x576xf32>
    %c0_13 = arith.constant 0 : index
    %c0_14 = arith.constant 0 : index
    %60 = vector.load %arg4[%c0_13, %c0_14] : memref<576x192xf32, #tpu.memory_space<vmem>>, vector<576x192xf32>
    %cst_15 = arith.constant dense<0.000000e+00> : vector<256x192xf32>
    %61 = tpu.matmul %59, %60, %cst_15 {dimension_numbers = #tpu.dot_dimension_numbers<[1], [0], [0], [1], [0, 0, 1, 1], [], []>} : vector<256x576xf32>, vector<576x192xf32>, vector<256x192xf32> -> vector<256x192xf32>
    %cst_16 = arith.constant 0.000000e+00 : f32
    %62 = vector.broadcast %cst_16 : f32 to vector<64x192xf32>
    %63 = tpu.concatenate %62, %61, %62 in 0 : vector<64x192xf32>, vector<256x192xf32>, vector<64x192xf32> -> vector<384x192xf32>
    %64 = vector.extract_strided_slice %63 {offsets = [0, 0], sizes = [256, 64], strides = [1, 1]} : vector<384x192xf32> to vector<256x64xf32>
    %65 = vector.extract_strided_slice %63 {offsets = [64, 64], sizes = [256, 64], strides = [1, 1]} : vector<384x192xf32> to vector<256x64xf32>
    %66 = arith.addf %64, %65 : vector<256x64xf32>
    %67 = vector.extract_strided_slice %63 {offsets = [128, 128], sizes = [256, 64], strides = [1, 1]} : vector<384x192xf32> to vector<256x64xf32>
    %68 = arith.addf %66, %67 : vector<256x64xf32>
    %c0_17 = arith.constant 0 : index
    %c0_18 = arith.constant 0 : index
    %69 = vector.load %arg5[%c0_17, %c0_18] : memref<1x64xf32, #tpu.memory_space<vmem>>, vector<1x64xf32>
    %70 = vector.broadcast %69 : vector<1x64xf32> to vector<256x64xf32>
    %71 = arith.addf %68, %70 : vector<256x64xf32>
    %72 = vector.shape_cast %71 : vector<256x64xf32> to vector<4x8x8x64xf32>
    %73 = vector.extract_strided_slice %72 {offsets = [0, 0, 0, 0], sizes = [4, 8, 1, 64], strides = [1, 1, 1, 1]} : vector<4x8x8x64xf32> to vector<4x8x1x64xf32>
    %74 = vector.shape_cast %73 : vector<4x8x1x64xf32> to vector<4x8x64xf32>
    %75 = vector.extract_strided_slice %72 {offsets = [0, 0, 1, 0], sizes = [4, 8, 1, 64], strides = [1, 1, 1, 1]} : vector<4x8x8x64xf32> to vector<4x8x1x64xf32>
    %76 = vector.shape_cast %75 : vector<4x8x1x64xf32> to vector<4x8x64xf32>
    %77 = vector.extract_strided_slice %72 {offsets = [0, 0, 2, 0], sizes = [4, 8, 1, 64], strides = [1, 1, 1, 1]} : vector<4x8x8x64xf32> to vector<4x8x1x64xf32>
    %78 = vector.shape_cast %77 : vector<4x8x1x64xf32> to vector<4x8x64xf32>
    %79 = vector.extract_strided_slice %72 {offsets = [0, 0, 3, 0], sizes = [4, 8, 1, 64], strides = [1, 1, 1, 1]} : vector<4x8x8x64xf32> to vector<4x8x1x64xf32>
    %80 = vector.shape_cast %79 : vector<4x8x1x64xf32> to vector<4x8x64xf32>
    %81 = vector.extract_strided_slice %72 {offsets = [0, 0, 4, 0], sizes = [4, 8, 1, 64], strides = [1, 1, 1, 1]} : vector<4x8x8x64xf32> to vector<4x8x1x64xf32>
    %82 = vector.shape_cast %81 : vector<4x8x1x64xf32> to vector<4x8x64xf32>
    %83 = vector.extract_strided_slice %72 {offsets = [0, 0, 5, 0], sizes = [4, 8, 1, 64], strides = [1, 1, 1, 1]} : vector<4x8x8x64xf32> to vector<4x8x1x64xf32>
    %84 = vector.shape_cast %83 : vector<4x8x1x64xf32> to vector<4x8x64xf32>
    %85 = vector.extract_strided_slice %72 {offsets = [0, 0, 6, 0], sizes = [4, 8, 1, 64], strides = [1, 1, 1, 1]} : vector<4x8x8x64xf32> to vector<4x8x1x64xf32>
    %86 = vector.shape_cast %85 : vector<4x8x1x64xf32> to vector<4x8x64xf32>
    %87 = vector.extract_strided_slice %72 {offsets = [0, 0, 7, 0], sizes = [4, 8, 1, 64], strides = [1, 1, 1, 1]} : vector<4x8x8x64xf32> to vector<4x8x1x64xf32>
    %88 = vector.shape_cast %87 : vector<4x8x1x64xf32> to vector<4x8x64xf32>
    %89 = tpu.concatenate %74, %76, %78, %80, %82, %84, %86, %88 in 2 : vector<4x8x64xf32>, vector<4x8x64xf32>, vector<4x8x64xf32>, vector<4x8x64xf32>, vector<4x8x64xf32>, vector<4x8x64xf32>, vector<4x8x64xf32>, vector<4x8x64xf32> -> vector<4x8x512xf32>
    %90 = arith.addf %89, %1 : vector<4x8x512xf32>
    %c0_19 = arith.constant 0 : index
    %c0_20 = arith.constant 0 : index
    %c0_21 = arith.constant 0 : index
    %c0_22 = arith.constant 0 : index
    %91 = vector.load %arg6[%c0_19, %c0_20, %c0_21, %c0_22] : memref<1x4x8x512xf32, #tpu.memory_space<vmem>>, vector<1x4x8x512xf32>
    %92 = vector.shape_cast %91 : vector<1x4x8x512xf32> to vector<4x8x512xf32>
    %93 = vector.shape_cast %90 : vector<4x8x512xf32> to vector<1x4x8x512xf32>
    tpu.vector_store %arg6[%c0_19, %c0_20, %c0_21, %c0_22], %93 {strides = array<i32>} : memref<1x4x8x512xf32, #tpu.memory_space<vmem>>, vector<1x4x8x512xf32>,
    return
  }
  func.func @transform_0(%arg0: i32) -> (i32, i32, i32, i32) {
    %c0_i32 = arith.constant 0 : i32
    %c0_i32_0 = arith.constant 0 : i32
    %c0_i32_1 = arith.constant 0 : i32
    %c0_i32_2 = arith.constant 0 : i32
    return %arg0, %c0_i32, %c0_i32_0, %c0_i32_1 : i32, i32, i32, i32
  }
  func.func @transform_1(%arg0: i32) -> (i32, i32) {
    %c0_i32 = arith.constant 0 : i32
    %c0_i32_0 = arith.constant 0 : i32
    %c0_i32_1 = arith.constant 0 : i32
    return %c0_i32, %c0_i32_0 : i32, i32
  }
  func.func @transform_2(%arg0: i32) -> (i32, i32) {
    %c0_i32 = arith.constant 0 : i32
    %c0_i32_0 = arith.constant 0 : i32
    %c0_i32_1 = arith.constant 0 : i32
    return %c0_i32, %c0_i32_0 : i32, i32
  }
  func.func @transform_3(%arg0: i32) -> (i32, i32) {
    %c0_i32 = arith.constant 0 : i32
    %c0_i32_0 = arith.constant 0 : i32
    %c0_i32_1 = arith.constant 0 : i32
    return %c0_i32, %c0_i32_0 : i32, i32
  }
  func.func @transform_4(%arg0: i32) -> (i32, i32) {
    %c0_i32 = arith.constant 0 : i32
    %c0_i32_0 = arith.constant 0 : i32
    %c0_i32_1 = arith.constant 0 : i32
    return %c0_i32, %c0_i32_0 : i32, i32
  }
  func.func @transform_5(%arg0: i32) -> (i32, i32, i32, i32) {
    %c0_i32 = arith.constant 0 : i32
    %c0_i32_0 = arith.constant 0 : i32
    %c0_i32_1 = arith.constant 0 : i32
    %c0_i32_2 = arith.constant 0 : i32
    return %arg0, %c0_i32, %c0_i32_0, %c0_i32_1 : i32, i32, i32, i32
  }
}

</mosaic_0001>

<bundles_post_ra>
// kernel: resblock_forward.1
= control target key start
LH: loop header
LB: loop body
LE: loop exit
PB: predicated region body
PF: predicated region fallthrough
CT: control target
= control target key end

     0   :  { %s7556_s18 = smov 0   ;;  %s12904_s0 = inlined_call_operand.vmem [shape: f32[2,4,8,512], index: 0, kind: input, shape index: {}]   ;;  %s12905_s1 = inlined_call_operand.vmem [shape: f32[576,192], index: 1, kind: input, shape index: {}]   ;;  %s12906_s2 = inlined_call_operand.vmem [shape: f32[1,64], index: 2, kind: input, shape index: {}]   ;;  %s12907_s3 = inlined_call_operand.vmem [shape: f32[576,192], index: 3, kind: input, shape index: {}]   ;;  %s12908_s4 = inlined_call_operand.vmem [shape: f32[1,64], index: 4, kind: input, shape index: {}]   ;;  %s12909_s5 = inlined_call_operand.vmem [shape: f32[2,4,8,512], index: 5, kind: output, shape index: {}]  }
   0x1 LB: > { %s6686_s19 = sadd.s32 4294967295, %s7521_s18   ;;  %p6690_p0 = scmp.ge.s32.totalorder %s7521_s18, 1  ;;  %s7521_s18 = sphi %s7556_s18, %s15_s18  }
   0x2   : > { %p187_p1 = scmp.lt.s32.totalorder %s7521_s18, 3 }
   0x4   : > { %p188_p2 = pnand %p6690_p0, %p187_p1 }
   0x6   : > { %191 = sbr.rel (%p188_p2) target bundleno = 2262 (0x8d6), region = 40 }
   0xd   : > { %p215_p3 = scmp.lt.s32.totalorder %s6686_s19, 1  ;;  %v249_v0 = vlaneseq  ;;  %v7523_v1 = vmov 1966171168   ;;  %s7524_s24 = smov 64   ;;  %vm2065_vm0 = vcmask 1040384   ;;  %vm2098_vm1 = vcmask 1041408  }
   0xe   : > { %v247_v2 = vunpack.c.l.s4 %v7523_v1  ;;  %vm2131_vm2 = vcmask 1042432   ;;  %vm2164_vm3 = vcmask 1043456   ;;  %vm2197_vm4 = vcmask 1044480  }
   0xf   : > { %s13440_s19 = smov (!%p215_p3, %s6686_s19), 1  ;;  %v250_v3 = vshrl.u32 %v249_v0, 7  ;;  %vm2230_vm5 = vcmask 1045504   ;;  %vm2263_vm6 = vcmask 1046528   ;;  %vm2616_vm7 = vcmask 523264  }
  0x10   : > { %v248_v4 = vunpack.c.0.s8 %v247_v2  ;;  %s6771_s20 = sshll.u32 %s13440_s19, 7  ;;  %vm9371_vm8 = vmneg %vm2616_vm7  ;;  %vm6065_vm9 = vcmask 1041409   ;;  %vm6068_vm10 = vcmask 1042434   ;;  %vm6071_vm11 = vcmask 1043459  }
  0x11   : > { %s7572_s23 = scalar_lea.vmem %s12904_s0, %s6771_s20  ;;  %v7585_v10 = vsub.s32 0, %v250_v3  ;;  %vm6074_vm12 = vcmask 1044484   ;;  %vm6077_vm13 = vcmask 1045509   ;;  %vm6080_vm14 = vcmask 1046534   ;;  %s12835_s26 = scalar_lea.vmem %s12909_s5, %s6771_s20 }
  0x12   : > { %v7574_v5 = vsub.s32 %v248_v4, %v250_v3  ;;  %v7577_v6 = vld [vmem:[%s7572_s23 + $0x10] sm:$0xff]  ;;  %v225_v7 = vld [vmem:[%s7572_s23] sm:$0xff]  ;;  %v7581_v8 = vld [vmem:[%s7572_s23 + $0x18] sm:$0xff]  ;;  %vm6083_vm15 = vcmask 1047559  }
  0x13   : > { %v226_v13 = vld [vmem:[%s7572_s23 + $0x8] sm:$0xff]  ;;  %v245_v38 = vcombine.high %v225_v7, %v225_v7  ;;  %v677_v50 = vcombine.high %v7577_v6, %v7577_v6  ;;  %v877_v57 = vcombine.high %v7581_v8, %v7581_v8 }
  0x14   : > { %v684_v9 = vrot.slane %v7577_v6, %v7574_v5  ;;  %v252_v11 = vrot.slane %v225_v7, %v7574_v5  ;;  %v884_v12 = vrot.slane %v7581_v8, %v7574_v5  ;;  %v484_v14 = vrot.slane %v226_v13, %v7574_v5 }
  0x15   : > { %v477_v44 = vcombine.high %v226_v13, %v226_v13  ;;  %v259_v47 = vrot.slane %v245_v38, %v7574_v5  ;;  %v691_v56 = vrot.slane %v677_v50, %v7574_v5  ;;  %v891_v62 = vrot.slane %v877_v57, %v7574_v5 }
  0x16   : > { %v700_v15 = vrot.slane %v684_v9, %v7574_v5  ;;  %v7594_v16 = vrot.slane %v252_v11, %v7574_v5  ;;  %v260_v17 = vcombine.high %v252_v11, %v252_v11  ;;  %v900_v18 = vrot.slane %v884_v12, %v7574_v5 }
  0x17   : > { %v500_v19 = vrot.slane %v484_v14, %v7574_v5  ;;  %v492_v20 = vcombine.high %v484_v14, %v484_v14  ;;  %v692_v23 = vcombine.high %v684_v9, %v684_v9  ;;  %v892_v29 = vcombine.high %v884_v12, %v884_v12 }
  0x18   : > { %v7599_v21 = vrot.slane %v700_v15, %v7585_v10  ;;  %v1076_v22 = vrot.slane %v7594_v16, %v7585_v10  ;;  %v7604_v24 = vrot.slane %v260_v17, %v7574_v5  ;;  %v7610_v25 = vrot.slane %v900_v18, %v7585_v10 }
  0x19   : > { %v7613_v26 = vrot.slane %v500_v19, %v7585_v10  ;;  %v514_v27 = vrot.slane %v492_v20, %v7574_v5  ;;  %v7618_v28 = vcombine.high %v7594_v16, %v7594_v16  ;;  %v714_v32 = vrot.slane %v692_v23, %v7574_v5 }
  0x1a   : > { %1713 = vrot.lane.b32.xlu1 %v7599_v21, %s7524_s24  ;;  %1201 = vrot.lane.b32.xlu0 %v1076_v22, %s7524_s24  ;;  %v1080_v31 = vrot.slane %v7604_v24, %v7585_v10  ;;  %v522_v33 = vcombine.high %v500_v19, %v500_v19  ;;  %v914_v36 = vrot.slane %v892_v29, %v7574_v5  ;;  %v7753_v29 = vld [vmem:[%s7572_s23 + $0x20] sm:$0xff] }
  0x1b   : > { %v7625_v30 = vrot.slane %v514_v27, %v7585_v10  ;;  %v1084_v34 = vrot.slane %v7618_v28, %v7585_v10  ;;  %v7636_v35 = vrot.slane %v714_v32, %v7585_v10  ;;  %v722_v37 = vcombine.high %v700_v15, %v700_v15 }
  0x1c   : > { %v7643_v39 = vrot.slane %v522_v33, %v7585_v10  ;;  %v7646_v40 = vrot.slane %v914_v36, %v7585_v10  ;;  %v7650_v41 = vcombine.high %v7604_v24, %v7604_v24  ;;  %v922_v43 = vcombine.high %v900_v18, %v900_v18 }
  0x1d   : > { %v7653_v42 = vrot.slane %v722_v37, %v7585_v10  ;;  %v524_v46 = vcombine.high %v514_v27, %v514_v27  ;;  %v724_v49 = vcombine.high %v714_v32, %v714_v32  ;;  %v7674_v52 = vrot.slane %v259_v47, %v7574_v5  ;;  %v7767_v37 = vld [vmem:[%s7572_s23 + $0x28] sm:$0xff] }
  0x1e   : > { %1969 = vrot.lane.b32.xlu1 %v7610_v25, %s7524_s24  ;;  %1457 = vrot.lane.b32.xlu0 %v7613_v26, %s7524_s24  ;;  %v1088_v45 = vrot.slane %v7650_v41, %v7585_v10  ;;  %v7663_v48 = vrot.slane %v922_v43, %v7585_v10  ;;  %v491_v53 = vrot.slane %v477_v44, %v7574_v5 }
  0x1f   : > { %v7671_v51 = vrot.slane %v524_v46, %v7585_v10  ;;  %v7678_v54 = vrot.slane %v724_v49, %v7585_v10  ;;  %v924_v55 = vcombine.high %v914_v36, %v914_v36  ;;  %v1092_v58 = vrot.slane %v7674_v52, %v7585_v10 }
  0x20   : > { %v507_v59 = vrot.slane %v491_v53, %v7574_v5  ;;  %v261_v60 = vcombine.high %v259_v47, %v259_v47  ;;  %v493_v63 = vcombine.high %v491_v53, %v491_v53  ;;  %v707_v1 = vrot.slane %v691_v56, %v7574_v5  ;;  %v7784_v47 = vld [vmem:[%s7572_s23 + $0x30] sm:$0xff] }
  0x21   : > { %v7691_v61 = vrot.slane %v924_v55, %v7585_v10  ;;  %v907_v3 = vrot.slane %v891_v62, %v7574_v5  ;;  %v693_v8 = vcombine.high %v691_v56, %v691_v56  ;;  %v7720_v11 = vcombine.high %v7674_v52, %v7674_v52 }
  0x22   : > { %1459 = vrot.lane.b32.xlu0 %v7625_v30, %s7524_s24  ;;  %1203 = vrot.lane.b32.xlu1 %v1080_v31, %s7524_s24  ;;  %v7698_v0 = vrot.slane %v507_v59, %v7585_v10  ;;  %v7702_v2 = vrot.slane %v261_v60, %v7574_v5  ;;  %v521_v4 = vrot.slane %v493_v63, %v7574_v5 }
  0x23   : > { %v7711_v6 = vrot.slane %v707_v1, %v7585_v10  ;;  %v7716_v9 = vrot.slane %v907_v3, %v7585_v10  ;;  %v721_v13 = vrot.slane %v693_v8, %v7574_v5  ;;  %v893_v14 = vcombine.high %v891_v62, %v891_v62 }
  0x24   : > { %v1096_v7 = vrot.slane %v7702_v2, %v7585_v10  ;;  %v7726_v12 = vrot.slane %v521_v4, %v7585_v10  ;;  %v1100_v15 = vrot.slane %v7720_v11, %v7585_v10  ;;  %v523_v19 = vcombine.high %v507_v59, %v507_v59 }
  0x25   : > { %v7736_v17 = vrot.slane %v721_v13, %v7585_v10  ;;  %v921_v18 = vrot.slane %v893_v14, %v7574_v5  ;;  %v723_v20 = vcombine.high %v707_v1, %v707_v1  ;;  %v7750_v27 = vcombine.high %v7702_v2, %v7702_v2 }
  0x26   : > { %1205 = vrot.lane.b32.xlu0 %v1084_v34, %s7524_s24  ;;  %1715 = vrot.lane.b32.xlu1 %v7636_v35, %s7524_s24  ;;  %v7746_v23 = vrot.slane %v523_v19, %v7585_v10  ;;  %v923_v31 = vcombine.high %v907_v3, %v907_v3  ;;  %v525_v32 = vcombine.high %v521_v4, %v521_v4 }
  0x27   : > { %v7743_v22 = vrot.slane %v921_v18, %v7585_v10  ;;  %v7760_v33 = vrot.slane %v723_v20, %v7585_v10  ;;  %v1104_v34 = vrot.slane %v7750_v27, %v7585_v10  ;;  %v301_v36 = vrot.slane %v7753_v29, %v7574_v5 }
  0x28   : > { %v7770_v38 = vrot.slane %v923_v31, %v7585_v10  ;;  %v7773_v43 = vrot.slane %v525_v32, %v7585_v10  ;;  %v533_v46 = vrot.slane %v7767_v37, %v7574_v5  ;;  %v925_v49 = vcombine.high %v921_v18, %v921_v18 }
  0x29   : > { %v7779_v44 = vrot.slane %v301_v36, %v7574_v5  ;;  %v733_v50 = vrot.slane %v7784_v47, %v7574_v5  ;;  %v309_v53 = vcombine.high %v301_v36, %v301_v36 }
  0x2a   : > { %1461 = vrot.lane.b32.xlu0 %v7643_v39, %s7524_s24  ;;  %1971 = vrot.lane.b32.xlu1 %v7646_v40, %s7524_s24  ;;  %v549_v57 = vrot.slane %v533_v46, %v7574_v5  ;;  %v7802_v59 = vrot.slane %v925_v49, %v7585_v10  ;;  %v541_v3 = vcombine.high %v533_v46, %v533_v46 }
  0x2b   : > { %v1108_v55 = vrot.slane %v7779_v44, %v7585_v10  ;;  %v749_v60 = vrot.slane %v733_v50, %v7574_v5  ;;  %v7814_v1 = vrot.slane %v309_v53, %v7574_v5  ;;  %v7832_v18 = vcombine.high %v7779_v44, %v7779_v44 }
  0x2c   : > { %v7811_v63 = vrot.slane %v549_v57, %v7585_v10  ;;  %v563_v14 = vrot.slane %v541_v3, %v7574_v5 }
  0x2d   : > { %v7822_v8 = vrot.slane %v749_v60, %v7585_v10  ;;  %v1116_v32 = vrot.slane %v7832_v18, %v7585_v10  ;;  %v771_v46 = vcombine.high %v749_v60, %v749_v60  ;;  %v7853_v49 = vcombine.high %v7814_v1, %v7814_v1 }
  0x2e   : > { %1717 = vrot.lane.b32.xlu1 %v7653_v42, %s7524_s24  ;;  %1207 = vrot.lane.b32.xlu0 %v1088_v45, %s7524_s24  ;;  %v725_v45 = vcombine.high %v721_v13, %v721_v13  ;;  %v1112_v13 = vrot.slane %v7814_v1, %v7585_v10  ;;  %v7838_v19 = vrot.slane %v563_v14, %v7585_v10 }
  0x2f   : > { %v1120_v3 = vrot.slane %v7853_v49, %v7585_v10 }
  0x30   : > { %v7795_v56 = vrot.slane %v725_v45, %v7585_v10  ;;  %v571_v45 = vcombine.high %v549_v57, %v549_v57  ;;  %v7867_v57 = vrot.slane %v771_v46, %v7585_v10 }
  0x32   : > { %1973 = vrot.lane.b32.xlu1 %v7663_v48, %s7524_s24  ;;  %1463 = vrot.lane.b32.xlu0 %v7671_v51, %s7524_s24  ;;  %v7862_v53 = vrot.slane %v571_v45, %v7585_v10  ;;  %13100 = vst [vmem:[#allocation4_spill] sm:$0xff] %v7867_v57 }
  0x34   : > { %13099 = vst [vmem:[#allocation3_spill] sm:$0xff] %v7862_v53 }
  0x36   : > { %1719 = vrot.lane.b32.xlu1 %v7678_v54, %s7524_s24  ;;  %1209 = vrot.lane.b32.xlu0 %v1092_v58, %s7524_s24  ;;  %v7799_v58 = vld [vmem:[%s7572_s23 + $0x38] sm:$0xff] }
  0x37   : > { %v933_v62 = vrot.slane %v7799_v58, %v7574_v5 }
  0x39   : > { %v949_v4 = vrot.slane %v933_v62, %v7574_v5  ;;  %v941_v31 = vcombine.high %v933_v62, %v933_v62  ;;  %v573_v62 = vcombine.high %v563_v14, %v563_v14 }
  0x3a   : > { %1975 = vrot.lane.b32.xlu1 %v7691_v61, %s7524_s24  ;;  %1465 = vrot.lane.b32.xlu0 %v7698_v0, %s7524_s24 }
  0x3b   : > { %v963_v36 = vrot.slane %v941_v31, %v7574_v5  ;;  %v971_v60 = vcombine.high %v949_v4, %v949_v4  ;;  %v7887_v14 = vrot.slane %v573_v62, %v7585_v10 }
  0x3e   : > { %1721 = vrot.lane.b32.xlu1 %v7711_v6, %s7524_s24  ;;  %1211 = vrot.lane.b32.xlu0 %v1096_v7, %s7524_s24  ;;  %v741_v7 = vcombine.high %v733_v50, %v733_v50  ;;  %v7859_v50 = vrot.slane %v963_v36, %v7585_v10 }
  0x40   : > { %v763_v20 = vrot.slane %v741_v7, %v7574_v5 }
  0x42   : > { %1977 = vrot.lane.b32.xlu1 %v7716_v9, %s7524_s24  ;;  %1467 = vrot.lane.b32.xlu0 %v7726_v12, %s7524_s24  ;;  %v773_v31 = vcombine.high %v763_v20, %v763_v20 }
  0x44   : > { %v7894_v45 = vrot.slane %v773_v31, %v7585_v10 }
  0x46   : > { %1723 = vrot.lane.b32.xlu1 %v7736_v17, %s7524_s24  ;;  %1213 = vrot.lane.b32.xlu0 %v1100_v15, %s7524_s24  ;;  %v7828_v15 = vrot.slane %v949_v4, %v7585_v10  ;;  %v726_v4 = vcombine.high %v7784_v47, %v7784_v47  ;;  %13103 = vst [vmem:[#allocation7_spill] sm:$0xff] %v7894_v45 }
  0x47   : > { %v926_v47 = vcombine.high %v7799_v58, %v7799_v58 }
  0x48   : > { %13098 = vst [vmem:[#allocation2_spill] sm:$0xff] %v7828_v15  ;;  %v740_v46 = vrot.slane %v726_v4, %v7574_v5 }
  0x4a   : > { %1979 = vrot.lane.b32.xlu1 %v7743_v22, %s7524_s24  ;;  %1469 = vrot.lane.b32.xlu0 %v7746_v23, %s7524_s24  ;;  %v756_v31 = vrot.slane %v740_v46, %v7574_v5 }
  0x4e   : > { %1725 = vrot.lane.b32.xlu1 %v7760_v33, %s7524_s24  ;;  %1215 = vrot.lane.b32.xlu0 %v1104_v34, %s7524_s24  ;;  %v7848_v34 = vrot.slane %v763_v20, %v7585_v10  ;;  %v973_v20 = vcombine.high %v963_v36, %v963_v36  ;;  %v940_v36 = vrot.slane %v926_v47, %v7574_v5 }
  0x52   : > { %1981 = vrot.lane.b32.xlu1 %v7770_v38, %s7524_s24  ;;  %1471 = vrot.lane.b32.xlu0 %v7773_v43, %s7524_s24 }
  0x56   : > { %1217 = vrot.lane.b32.xlu1 %v1108_v55, %s7524_s24  ;;  %1727 = vrot.lane.b32.xlu0 %v7795_v56, %s7524_s24  ;;  %v294_v55 = vcombine.high %v7753_v29, %v7753_v29  ;;  %v7879_v29 = vrot.slane %v971_v60, %v7585_v10 }
  0x58   : > { %v308_v7 = vrot.slane %v294_v55, %v7574_v5  ;;  %13101 = vst [vmem:[#allocation5_spill] sm:$0xff] %v7879_v29 }
  0x5a   : > { %1473 = vrot.lane.b32.xlu1 %v7811_v63, %s7524_s24  ;;  %1983 = vrot.lane.b32.xlu0 %v7802_v59, %s7524_s24  ;;  %v310_v62 = vcombine.high %v308_v7, %v308_v7 }
  0x5c   : > { %v7918_v4 = vrot.slane %v310_v62, %v7574_v5 }
  0x5e   : > { %1729 = vrot.lane.b32.xlu1 %v7822_v8, %s7524_s24  ;;  %1219 = vrot.lane.b32.xlu0 %v1112_v13, %s7524_s24  ;;  %v526_v13 = vcombine.high %v7767_v37, %v7767_v37  ;;  %13106 = vst [vmem:[#allocation10_spill] sm:$0xff] %v7918_v4  ;;  %v1128_v47 = vrot.slane %v7918_v4, %v7585_v10 }
  0x60   : > { %v540_v37 = vrot.slane %v526_v13, %v7574_v5 }
  0x62   : > { %1985 = vrot.lane.b32.xlu1 %v7828_v15, %s7524_s24  ;;  %1475 = vrot.lane.b32.xlu0 %v7838_v19, %s7524_s24  ;;  %v556_v60 = vrot.slane %v540_v37, %v7574_v5  ;;  %v542_v13 = vcombine.high %v540_v37, %v540_v37  ;;  %v7926_v37 = vrot.slane %v756_v31, %v7585_v10 }
  0x64   : > { %v7914_v58 = vrot.slane %v556_v60, %v7585_v10  ;;  %13107 = vst [vmem:[#allocation11_spill] sm:$0xff] %v7926_v37 }
  0x66   : > { %1731 = vrot.lane.b32.xlu1 %v7848_v34, %s7524_s24  ;;  %1221 = vrot.lane.b32.xlu0 %v1116_v32, %s7524_s24  ;;  %v7890_v32 = vrot.slane %v308_v7, %v7574_v5  ;;  %13105 = vst [vmem:[#allocation9_spill] sm:$0xff] %v7914_v58  ;;  %v956_v7 = vrot.slane %v940_v36, %v7574_v5 }
  0x68   : > { %13102 = vst [vmem:[#allocation6_spill] sm:$0xff] %v7890_v32  ;;  %v1124_v55 = vrot.slane %v7890_v32, %v7585_v10  ;;  %v7932_v62 = vrot.slane %v956_v7, %v7585_v10 }
  0x6a   : > { %1987 = vrot.lane.b32.xlu1 %v7859_v50, %s7524_s24  ;;  %1477 = vrot.lane.b32.xlu0 %v7862_v53, %s7524_s24  ;;  %13108 = vst [vmem:[#allocation12_spill] sm:$0xff] %v7932_v62 }
  0x6e   : > { %1733 = vrot.lane.b32.xlu1 %v7867_v57, %s7524_s24  ;;  %1223 = vrot.lane.b32.xlu0 %v1120_v3, %s7524_s24  ;;  %v7907_v3 = vrot.slane %v973_v20, %v7585_v10  ;;  %v742_v20 = vcombine.high %v740_v46, %v740_v46 }
  0x70   : > { %13104 = vst [vmem:[#allocation8_spill] sm:$0xff] %v7907_v3 }
  0x72   : > { %1989 = vrot.lane.b32.xlu1 %v7879_v29, %s7524_s24  ;;  %1479 = vrot.lane.b32.xlu0 %v7887_v14, %s7524_s24  ;;  %v942_v29 = vcombine.high %v940_v36, %v940_v36 }
  0x76   : > { %1735 = vrot.lane.b32.xlu1 %v7894_v45, %s7524_s24  ;;  %1225 = vrot.lane.b32.xlu0 %v1124_v55, %s7524_s24  ;;  %v570_v55 = vrot.slane %v542_v13, %v7574_v5  ;;  %v970_v13 = vrot.slane %v942_v29, %v7574_v5 }
  0x78   : > { %v7938_v46 = vrot.slane %v570_v55, %v7585_v10  ;;  %v7959_v29 = vrot.slane %v970_v13, %v7585_v10 }
  0x7a   : > { %1991 = vrot.lane.b32.xlu1 %v7907_v3, %s7524_s24  ;;  %1481 = vrot.lane.b32.xlu0 %v7914_v58, %s7524_s24  ;;  %13109 = vst [vmem:[#allocation13_spill] sm:$0xff] %v7938_v46  ;;  %v770_v58 = vrot.slane %v742_v20, %v7574_v5  ;;  %v7943_v3 = vcombine.high %v7890_v32, %v7890_v32  ;;  %13112 = vst [vmem:[#allocation16_spill] sm:$0xff] %v7959_v29  ;;  %v7969_v32 = vld [vmem:[%s7572_s23 + $0x40] sm:$0xff] }
  0x7b   : > { %v772_v20 = vcombine.high %v756_v31, %v756_v31  ;;  %v350_v31 = vrot.slane %v7969_v32, %v7574_v5 }
  0x7c   : > { %13110 = vst [vmem:[#allocation14_spill] sm:$0xff] %v7943_v3  ;;  %v7951_v36 = vrot.slane %v770_v58, %v7585_v10 }
  0x7d   : > { %v7985_v57 = vrot.slane %v350_v31, %v7574_v5  ;;  %v358_v45 = vcombine.high %v350_v31, %v350_v31 }
  0x7e   : > { %1737 = vrot.lane.b32.xlu1 %v7926_v37, %s7524_s24  ;;  %1227 = vrot.lane.b32.xlu0 %v1128_v47, %s7524_s24  ;;  %13111 = vst [vmem:[#allocation15_spill] sm:$0xff] %v7951_v36  ;;  %v1132_v47 = vrot.slane %v7943_v3, %v7585_v10  ;;  %v572_v37 = vcombine.high %v556_v60, %v556_v60 }
  0x7f   : > { %v7972_v60 = vrot.slane %v772_v20, %v7585_v10  ;;  %v574_v3 = vcombine.high %v570_v55, %v570_v55 }
  0x81   : > { %13115 = vst [vmem:[#allocation19_spill] sm:$0xff] %v7972_v60 }
  0x82   : > { %1993 = vrot.lane.b32.xlu1 %v7932_v62, %s7524_s24  ;;  %1483 = vrot.lane.b32.xlu0 %v7938_v46, %s7524_s24  ;;  %v7962_v62 = vrot.slane %v572_v37, %v7585_v10  ;;  %v7966_v46 = vcombine.high %v7918_v4, %v7918_v4 }
  0x84   : > { %13113 = vst [vmem:[#allocation17_spill] sm:$0xff] %v7962_v62  ;;  %13114 = vst [vmem:[#allocation18_spill] sm:$0xff] %v7966_v46  ;;  %v1136_v37 = vrot.slane %v7966_v46, %v7585_v10 }
  0x86   : > { %1739 = vrot.lane.b32.xlu1 %v7951_v36, %s7524_s24  ;;  %1229 = vrot.lane.b32.xlu0 %v1132_v47, %s7524_s24  ;;  %v972_v47 = vcombine.high %v956_v7, %v956_v7 }
  0x88   : > { %v7993_v55 = vrot.slane %v972_v47, %v7585_v10  ;;  %v974_v47 = vcombine.high %v970_v13, %v970_v13 }
  0x8a   : > { %1995 = vrot.lane.b32.xlu1 %v7959_v29, %s7524_s24  ;;  %1485 = vrot.lane.b32.xlu0 %v7962_v62, %s7524_s24  ;;  %v774_v29 = vcombine.high %v770_v58, %v770_v58  ;;  %13116 = vst [vmem:[#allocation20_spill] sm:$0xff] %v7993_v55 }
  0x8c   : > { %v1714_v36 = vpop.permute.xlu1 %1713  ;;  %v1202_v20 = vpop.permute.xlu0 %1201 }
  0x8d   : > { %v2066_v4 = vsel %vm2065_vm0, %v7594_v16, %v1202_v20  ;;  %v7996_v16 = vrot.slane %v574_v3, %v7585_v10  ;;  %v7999_v20 = vld [vmem:[%s7572_s23 + $0x48] sm:$0xff]  ;;  %v8011_v3 = vrot.slane %v774_v29, %v7585_v10 }
  0x8e   : > { %1741 = vrot.lane.b32.xlu1 %v7972_v60, %s7524_s24  ;;  %1231 = vrot.lane.b32.xlu0 %v1136_v37, %s7524_s24  ;;  %v2099_v7 = vsel %vm2098_vm1, %v2066_v4, %v7613_v26  ;;  %v1140_v37 = vrot.slane %v7985_v57, %v7585_v10  ;;  %v582_v26 = vrot.slane %v7999_v20, %v7574_v5 }
  0x8f   : > { %13117 = vst [vmem:[#allocation21_spill] sm:$0xff] %v7996_v16  ;;  %13118 = vst [vmem:[#allocation22_spill] sm:$0xff] %v8011_v3  ;;  %v8014_v4 = vrot.slane %v358_v45, %v7574_v5  ;;  %v8034_v45 = vrot.slane %v974_v47, %v7585_v10 }
  0x90   : > { %v1970_v58 = vpop.permute.xlu1 %1969  ;;  %v1458_v31 = vpop.permute.xlu0 %1457 }
  0x91   : > { %v2132_v60 = vsel %vm2131_vm2, %v2099_v7, %v1458_v31  ;;  %v8017_v7 = vld [vmem:[%s7572_s23 + $0x50] sm:$0xff]  ;;  %13119 = vst [vmem:[#allocation23_spill] sm:$0xff] %v8034_v45 }
  0x92   : > { %1997 = vrot.lane.b32.xlu1 %v7993_v55, %s7524_s24  ;;  %1487 = vrot.lane.b32.xlu0 %v7996_v16, %s7524_s24  ;;  %v2165_v31 = vsel %vm2164_vm3, %v2132_v60, %v7599_v21  ;;  %v8024_v16 = vrot.slane %v582_v26, %v7574_v5  ;;  %v782_v29 = vrot.slane %v8017_v7, %v7574_v5 }
  0x93   : > { %v1144_v21 = vrot.slane %v8014_v4, %v7585_v10 }
  0x94   : > { %v1460_v62 = vpop.permute.xlu0 %1459  ;;  %v1204_v46 = vpop.permute.xlu1 %1203  ;;  %v8046_v53 = vrot.slane %v782_v29, %v7574_v5 }
  0x95   : > { %v2067_v55 = vsel %vm2065_vm0, %v7604_v24, %v1204_v46  ;;  %v2198_v24 = vsel %vm2197_vm4, %v2165_v31, %v1714_v36 }
  0x96   : > { %1233 = vrot.lane.b32.xlu1 %v1140_v37, %s7524_s24  ;;  %1743 = vrot.lane.b32.xlu0 %v8011_v3, %s7524_s24  ;;  %v2100_v46 = vsel %vm2098_vm1, %v2067_v55, %v7625_v30  ;;  %v8043_v3 = vrot.slane %v8024_v16, %v7585_v10  ;;  %v2231_v36 = vsel %vm2230_vm5, %v2198_v24, %v7610_v25 }
  0x97   : > { %v2133_v55 = vsel %vm2131_vm2, %v2100_v46, %v1460_v62  ;;  %v8058_v15 = vsel %vm2263_vm6, %v2231_v36, %v1970_v58 }
  0x98   : > { %v1206_v13 = vpop.permute.xlu0 %1205  ;;  %v1716_v60 = vpop.permute.xlu1 %1715  ;;  %13120 = vst [vmem:[#allocation24_spill] sm:$0xff] %v8058_v15 }
  0x99   : > { %v2068_v37 = vsel %vm2065_vm0, %v7618_v28, %v1206_v13  ;;  %v590_v28 = vcombine.high %v582_v26, %v582_v26 }
  0x9a   : > { %1235 = vrot.lane.b32.xlu1 %v1144_v21, %s7524_s24  ;;  %1999 = vrot.lane.b32.xlu0 %v8034_v45, %s7524_s24  ;;  %v2101_v30 = vsel %vm2098_vm1, %v2068_v37, %v7643_v39  ;;  %v8062_v21 = vrot.slane %v8046_v53, %v7585_v10  ;;  %v8065_v45 = vld [vmem:[%s7572_s23 + $0x58] sm:$0xff]  ;;  %v2166_v39 = vsel %vm2164_vm3, %v2133_v55, %v7636_v35 }
  0x9b   : > { %v8076_v62 = vrot.slane %v590_v28, %v7574_v5  ;;  %v982_v24 = vrot.slane %v8065_v45, %v7574_v5  ;;  %v2199_v46 = vsel %vm2197_vm4, %v2166_v39, %v1716_v60 }
  0x9c   : > { %v1462_v47 = vpop.permute.xlu0 %1461  ;;  %v1972_v31 = vpop.permute.xlu1 %1971 }
  0x9d   : > { %v2134_v13 = vsel %vm2131_vm2, %v2101_v30, %v1462_v47  ;;  %v8086_v37 = vrot.slane %v8076_v62, %v7585_v10  ;;  %v2232_v30 = vsel %vm2230_vm5, %v2199_v46, %v7646_v40  ;;  %v998_v55 = vrot.slane %v982_v24, %v7574_v5 }
  0x9e   : > { %2520 = vrot.lane.b32.xlu1 %v8058_v15, %s7524_s24  ;;  %1489 = vrot.lane.b32.xlu0 %v8043_v3, %s7524_s24  ;;  %v2167_v25 = vsel %vm2164_vm3, %v2134_v13, %v7653_v42  ;;  %v8090_v42 = vcombine.high %v7985_v57, %v7985_v57  ;;  %v790_v47 = vcombine.high %v782_v29, %v782_v29 }
  0x9f   : > { %v8098_v13 = vsel %vm2263_vm6, %v2232_v30, %v1972_v31  ;;  %v620_v29 = vcombine.high %v8024_v16, %v8024_v16  ;;  %v8130_v16 = vcombine.high %v8014_v4, %v8014_v4 }
  0xa0   : > { %v1718_v58 = vpop.permute.xlu1 %1717  ;;  %v1208_v26 = vpop.permute.xlu0 %1207  ;;  %v812_v46 = vrot.slane %v790_v47, %v7574_v5 }
  0xa1   : > { %v2200_v35 = vsel %vm2197_vm4, %v2167_v25, %v1718_v58  ;;  %v2069_v39 = vsel %vm2065_vm0, %v7650_v41, %v1208_v26  ;;  %v8117_v26 = vrot.slane %v998_v55, %v7585_v10 }
  0xa2   : > { %1745 = vrot.lane.b32.xlu0 %v8062_v21, %s7524_s24  ;;  %v2233_v36 = vsel %vm2230_vm5, %v2200_v35, %v7663_v48  ;;  %v1148_v48 = vrot.slane %v8090_v42, %v7585_v10  ;;  %v2102_v31 = vsel %vm2098_vm1, %v2069_v39, %v7671_v51  ;;  %v990_v35 = vcombine.high %v982_v24, %v982_v24 }
  0xa3   : > { %v8126_v51 = vrot.slane %v620_v29, %v7585_v10 }
  0xa4   : > { %v1974_v60 = vpop.permute.xlu1 %1973  ;;  %v1464_v28 = vpop.permute.xlu0 %1463 }
  0xa5   : > { %v8103_v25 = vsel %vm2263_vm6, %v2233_v36, %v1974_v60  ;;  %v2135_v60 = vsel %vm2131_vm2, %v2102_v31, %v1464_v28  ;;  %v1152_v28 = vrot.slane %v8130_v16, %v7585_v10 }
  0xa6   : > { %1491 = vrot.lane.b32.xlu0 %v8086_v37, %s7524_s24  ;;  %v7328_v40 = vpack.i.bf16 %v8103_v25, %v8098_v13 }
  0xa8   : > { %7329 = vrot.lane.b32.xlu1 %v7328_v40, %s7524_s24  ;;  %v1720_v41 = vpop.permute.xlu1 %1719  ;;  %v1210_v58 = vpop.permute.xlu0 %1209  ;;  %v2168_v40 = vsel %vm2164_vm3, %v2135_v60, %v7678_v54  ;;  %v820_v54 = vcombine.high %v8046_v53, %v8046_v53  ;;  %v1020_v60 = vcombine.high %v998_v55, %v998_v55 }
  0xa9   : > { %v2070_v30 = vsel %vm2065_vm0, %v7674_v52, %v1210_v58  ;;  %v8136_v52 = vrot.slane %v812_v46, %v7585_v10 }
  0xaa   : > { %v2103_v36 = vsel %vm2098_vm1, %v2070_v30, %v7698_v0  ;;  %1237 = vrot.lane.b32.xlu0 %v1148_v48, %s7524_s24  ;;  %v1012_v0 = vrot.slane %v990_v35, %v7574_v5  ;;  %v2201_v35 = vsel %vm2197_vm4, %v2168_v40, %v1720_v41  ;;  %v8171_v40 = vrot.slane %v820_v54, %v7585_v10 }
  0xac   : > { %2001 = vrot.lane.b32.xlu1 %v8117_v26, %s7524_s24  ;;  %v1976_v24 = vpop.permute.xlu1 %1975  ;;  %v1466_v47 = vpop.permute.xlu0 %1465  ;;  %v8151_v58 = vrot.slane %v1012_v0, %v7585_v10 }
  0xad   : > { %v2136_v39 = vsel %vm2131_vm2, %v2103_v36, %v1466_v47  ;;  %v622_v36 = vcombine.high %v8076_v62, %v8076_v62  ;;  %v575_v47 = vcombine.high %v7999_v20, %v7999_v20 }
  0xae   : > { %v2169_v48 = vsel %vm2164_vm3, %v2136_v39, %v7711_v6  ;;  %1493 = vrot.lane.b32.xlu0 %v8126_v51, %s7524_s24  ;;  %v343_v6 = vcombine.high %v7969_v32, %v7969_v32  ;;  %v2234_v39 = vsel %vm2230_vm5, %v2201_v35, %v7691_v61  ;;  %v775_v35 = vcombine.high %v8017_v7, %v8017_v7 }
  0xaf   : > { %v8175_v55 = vsel %vm2263_vm6, %v2234_v39, %v1976_v24  ;;  %v8190_v24 = vrot.slane %v1020_v60, %v7585_v10  ;;  %v1022_v39 = vcombine.high %v1012_v0, %v1012_v0  ;;  %v975_v0 = vcombine.high %v8065_v45, %v8065_v45 }
  0xb0   : > { %1747 = vrot.lane.b32.xlu1 %v8136_v52, %s7524_s24  ;;  %v1722_v29 = vpop.permute.xlu1 %1721  ;;  %v1212_v31 = vpop.permute.xlu0 %1211  ;;  %v357_v62 = vrot.slane %v343_v6, %v7574_v5 }
  0xb1   : > { %v2202_v30 = vsel %vm2197_vm4, %v2169_v48, %v1722_v29  ;;  %v8183_v48 = vrot.slane %v622_v36, %v7585_v10 }
  0xb2   : > { %1239 = vrot.lane.b32.xlu0 %v1152_v28, %s7524_s24  ;;  %v2235_v32 = vsel %vm2230_vm5, %v2202_v30, %v7716_v9  ;;  %v822_v28 = vcombine.high %v812_v46, %v812_v46  ;;  %v589_v9 = vrot.slane %v575_v47, %v7574_v5  ;;  %v8193_v6 = vrot.slane %v357_v62, %v7574_v5 }
  0xb3   : > { %v2071_v46 = vsel %vm2065_vm0, %v7702_v2, %v1212_v31 }
  0xb4   : > { %2003 = vrot.lane.b32.xlu1 %v8151_v58, %s7524_s24  ;;  %v1978_v53 = vpop.permute.xlu1 %1977  ;;  %v1468_v41 = vpop.permute.xlu0 %1467  ;;  %v8204_v47 = vrot.slane %v822_v28, %v7585_v10  ;;  %v605_v60 = vrot.slane %v589_v9, %v7574_v5  ;;  %v591_v28 = vcombine.high %v589_v9, %v589_v9 }
  0xb5   : > { %v8178_v20 = vsel %vm2263_vm6, %v2235_v32, %v1978_v53  ;;  %v359_v53 = vcombine.high %v357_v62, %v357_v62  ;;  %v2104_v32 = vsel %vm2098_vm1, %v2071_v46, %v7726_v12 }
  0xb6   : > { %v7333_v61 = vpack.i.bf16 %v8178_v20, %v8175_v55  ;;  %v2137_v12 = vsel %vm2131_vm2, %v2104_v32, %v1468_v41  ;;  %v8221_v62 = vrot.slane %v605_v60, %v7585_v10 }
  0xb7   : > { %v8232_v45 = vrot.slane %v359_v53, %v7574_v5 }
  0xb8   : > { %1749 = vrot.lane.b32.xlu1 %v8171_v40, %s7524_s24  ;;  %v1724_v29 = vpop.permute.xlu1 %1723  ;;  %v1214_v54 = vpop.permute.xlu0 %1213  ;;  %7334 = vrot.lane.b32.xlu0 %v7333_v61, %s7524_s24  ;;  %v8224_v61 = vrot.slane %v1022_v39, %v7585_v10 }
  0xb9   : > { %v2072_v30 = vsel %vm2065_vm0, %v7720_v11, %v1214_v54  ;;  %v1156_v11 = vrot.slane %v8193_v6, %v7585_v10  ;;  %v1160_v53 = vrot.slane %v8232_v45, %v7585_v10 }
  0xba   : > { %v2105_v36 = vsel %vm2098_vm1, %v2072_v30, %v7746_v23  ;;  %v789_v23 = vrot.slane %v775_v35, %v7574_v5  ;;  %v2170_v30 = vsel %vm2164_vm3, %v2137_v12, %v7736_v17  ;;  %v8249_v17 = vrot.slane %v591_v28, %v7574_v5 }
  0xbc   : > { %1495 = vrot.lane.b32.xlu1 %v8183_v48, %s7524_s24  ;;  %v1980_v2 = vpop.permute.xlu1 %1979  ;;  %v1470_v7 = vpop.permute.xlu0 %1469  ;;  %2005 = vrot.lane.b32.xlu0 %v8190_v24, %s7524_s24  ;;  %v805_v41 = vrot.slane %v789_v23, %v7574_v5  ;;  %v791_v12 = vcombine.high %v789_v23, %v789_v23 }
  0xbd   : > { %v2138_v31 = vsel %vm2131_vm2, %v2105_v36, %v1470_v7  ;;  %v989_v36 = vrot.slane %v975_v0, %v7574_v5  ;;  %v2203_v7 = vsel %vm2197_vm4, %v2170_v30, %v1724_v29  ;;  %v8259_v0 = vcombine.high %v8193_v6, %v8193_v6 }
  0xbe   : > { %v2171_v35 = vsel %vm2164_vm3, %v2138_v31, %v7760_v33  ;;  %v8246_v32 = vrot.slane %v805_v41, %v7585_v10  ;;  %v819_v30 = vrot.slane %v791_v12, %v7574_v5 }
  0xbf   : > { %13122 = vst [vmem:[#allocation26_spill] sm:$0xff] %v8259_v0 }
  0xc0   : > { %1241 = vrot.lane.b32.xlu1 %v1156_v11, %s7524_s24  ;;  %v1726_v54 = vpop.permute.xlu1 %1725  ;;  %1751 = vrot.lane.b32.xlu0 %v8204_v47, %s7524_s24  ;;  %v1216_v46 = vpop.permute.xlu0 %1215 }
  0xc1   : > { %v2204_v9 = vsel %vm2197_vm4, %v2171_v35, %v1726_v54  ;;  %v2236_v54 = vsel %vm2230_vm5, %v2203_v7, %v7743_v22  ;;  %v8273_v35 = vrot.slane %v989_v36, %v7574_v5  ;;  %v2073_v12 = vsel %vm2065_vm0, %v7750_v27, %v1216_v46 }
  0xc2   : > { %v2237_v11 = vsel %vm2230_vm5, %v2204_v9, %v7770_v38  ;;  %v8270_v38 = vrot.slane %v8249_v17, %v7585_v10  ;;  %v8276_v23 = vsel %vm2263_vm6, %v2236_v54, %v1980_v2  ;;  %v621_v9 = vcombine.high %v605_v60, %v605_v60 }
  0xc3   : > { %v8288_v7 = vrot.slane %v8273_v35, %v7585_v10  ;;  %v1164_v2 = vrot.slane %v8259_v0, %v7585_v10  ;;  %v8295_v60 = vrot.slane %v819_v30, %v7585_v10  ;;  %v8312_v27 = vcombine.high %v8232_v45, %v8232_v45 }
  0xc4   : > { %1497 = vrot.lane.b32.xlu1 %v8221_v62, %s7524_s24  ;;  %v1982_v33 = vpop.permute.xlu1 %1981  ;;  %2007 = vrot.lane.b32.xlu0 %v8224_v61, %s7524_s24  ;;  %v1472_v39 = vpop.permute.xlu0 %1471  ;;  %13123 = vst [vmem:[#allocation27_spill] sm:$0xff] %v8270_v38  ;;  %v8298_v54 = vrot.slane %v621_v9, %v7585_v10 }
  0xc5   : > { %v8255_v31 = vsel %vm2263_vm6, %v2237_v11, %v1982_v33  ;;  %v991_v11 = vcombine.high %v989_v36, %v989_v36  ;;  %13124 = vst [vmem:[#allocation28_spill] sm:$0xff] %v8295_v60  ;;  %13126 = vst [vmem:[#allocation30_spill] sm:$0xff] %v8312_v27 }
  0xc6   : > { %13121 = vst [vmem:[#allocation25_spill] sm:$0xff] %v8255_v31  ;;  %v7338_v22 = vpack.i.bf16 %v8255_v31, %v8276_v23  ;;  %13125 = vst [vmem:[#allocation29_spill] sm:$0xff] %v8298_v54 }
  0xc7   : > { %v8308_v36 = vrot.slane %v991_v11, %v7574_v5 }
  0xc8   : > { %1243 = vrot.lane.b32.xlu1 %v1160_v53, %s7524_s24  ;;  %v8264_v28 = vpop.permute.xlu1 %1217  ;;  %1753 = vrot.lane.b32.xlu0 %v8246_v32, %s7524_s24  ;;  %v1728_v29 = vpop.permute.xlu0 %1727 }
  0xc9   : > { %v8327_v11 = vrot.slane %v8308_v36, %v7585_v10 }
  0xcb   : > { %13127 = vst [vmem:[#allocation31_spill] sm:$0xff] %v8327_v11 }
  0xcc   : > { %v8281_v33 = vpop.permute.xlu1 %1473  ;;  %7339 = vrot.lane.b32.xlu1 %v7338_v22, %s7524_s24  ;;  %1499 = vrot.lane.b32.xlu0 %v8270_v38, %s7524_s24  ;;  %v1984_v53 = vpop.permute.xlu0 %1983  ;;  %v2106_v22 = vsel %vm2098_vm1, %v2073_v12, %v7773_v43 }
  0xcd   : > { %v2139_v9 = vsel %vm2131_vm2, %v2106_v22, %v1472_v39 }
  0xd0   : > { %v8302_v31 = vpop.permute.xlu1 %1729  ;;  %2009 = vrot.lane.b32.xlu1 %v8288_v7, %s7524_s24  ;;  %v1220_v38 = vpop.permute.xlu0 %1219  ;;  %1245 = vrot.lane.b32.xlu0 %v1164_v2, %s7524_s24 }
  0xd1   : > { %v2075_v46 = vsel %vm2065_vm0, %v7814_v1, %v1220_v38  ;;  %v821_v1 = vcombine.high %v805_v41, %v805_v41  ;;  %v2172_v38 = vsel %vm2164_vm3, %v2139_v9, %v7795_v56  ;;  %v8349_v9 = vld [vmem:[%s7572_s23 + $0x60] sm:$0xff] }
  0xd2   : > { %v2108_v43 = vsel %vm2098_vm1, %v2075_v46, %v7838_v19  ;;  %v1168_v19 = vrot.slane %v8312_v27, %v7585_v10  ;;  %v8354_v27 = vld [vmem:[%s7572_s23 + $0x68] sm:$0xff] }
  0xd3   : > { %v8341_v41 = vrot.slane %v821_v1, %v7585_v10 }
  0xd4   : > { %v8319_v12 = vpop.permute.xlu1 %1985  ;;  %1755 = vrot.lane.b32.xlu1 %v8295_v60, %s7524_s24  ;;  %v1476_v2 = vpop.permute.xlu0 %1475  ;;  %1501 = vrot.lane.b32.xlu0 %v8298_v54, %s7524_s24 }
  0xd5   : > { %v2141_v39 = vsel %vm2131_vm2, %v2108_v43, %v1476_v2  ;;  %13128 = vst [vmem:[#allocation32_spill] sm:$0xff] %v8341_v41  ;;  %v623_v43 = vcombine.high %v8249_v17, %v8249_v17  ;;  %v2205_v2 = vsel %vm2197_vm4, %v2172_v38, %v1728_v29 }
  0xd6   : > { %v2174_v22 = vsel %vm2164_vm3, %v2141_v39, %v7848_v34  ;;  %v1021_v34 = vcombine.high %v8273_v35, %v8273_v35  ;;  %v823_v39 = vcombine.high %v819_v30, %v819_v30  ;;  %v2238_v1 = vsel %vm2230_vm5, %v2205_v2, %v7802_v59 }
  0xd7   : > { %v8365_v38 = vrot.slane %v623_v43, %v7585_v10  ;;  %v399_v35 = vrot.slane %v8349_v9, %v7574_v5  ;;  %v8370_v30 = vsel %vm2263_vm6, %v2238_v1, %v1984_v53  ;;  %v2972_v43 = vld [vmem:[%s12905_s1 + $0x18] sm:$0xff]  ;;  %v2074_v53 = vsel %vm2065_vm0, %v7779_v44, %v8264_v28  ;;  %v8396_v1 = vld [vmem:[%s7572_s23 + $0x70] sm:$0xff] }
  0xd8   : > { %v1732_v46 = vpop.permute.xlu1 %1731  ;;  %2011 = vrot.lane.b32.xlu1 %v8327_v11, %s7524_s24  ;;  %v8338_v54 = vpop.permute.xlu0 %1221  ;;  %1247 = vrot.lane.b32.xlu0 %v1168_v19, %s7524_s24  ;;  %13130 = vst [vmem:[#allocation34_spill] sm:$0xff] %v8370_v30  ;;  %v1023_v2 = vcombine.high %v8308_v36, %v8308_v36  ;;  %v8410_v28 = vrot.slane %v1021_v34, %v7585_v10  ;;  %v2974_v34 = vld [vmem:[%s12905_s1 + $0x28] sm:$0xff] }
  0xd9   : > { %v2207_v56 = vsel %vm2197_vm4, %v2174_v22, %v1732_v46  ;;  %13129 = vst [vmem:[#allocation33_spill] sm:$0xff] %v8365_v38  ;;  %v8379_v22 = vrot.slane %v8354_v27, %v7574_v5  ;;  %v2970_v46 = vld [vmem:[%s12905_s1 + $0x8] sm:$0xff]  ;;  %v8413_v36 = vrot.slane %v399_v35, %v7574_v5 }
  0xda   : > { %v2240_v17 = vsel %vm2230_vm5, %v2207_v56, %v7859_v50  ;;  %v8393_v56 = vrot.slane %v823_v39, %v7585_v10  ;;  %13133 = vst [vmem:[#allocation37_spill] sm:$0xff] %v8410_v28 }
  0xdb   : > { %13134 = vst [vmem:[#allocation38_spill] sm:$0xff] %v8413_v36 }
  0xdc   : > { %v1988_v19 = vpop.permute.xlu1 %1987  ;;  %1757 = vrot.lane.b32.xlu1 %v8341_v41, %s7524_s24  ;;  %v8362_v29 = vpop.permute.xlu0 %1477  ;;  %13132 = vst [vmem:[#allocation36_spill] sm:$0xff] %v8393_v56 }
  0xdd   : > { %v8373_v59 = vsel %vm2263_vm6, %v2240_v17, %v1988_v19  ;;  %v6773_v19 = vpack.c.bf16 %v2972_v43, %v2970_v46  ;;  %v2969_v17 = vld [vmem:[%s12905_s1] sm:$0xff]  ;;  %v2107_v46 = vsel %vm2098_vm1, %v2074_v53, %v7811_v63  ;;  %v8419_v43 = vrot.slane %v8379_v22, %v7574_v5  ;;  %v8434_v53 = vld [vmem:[%s7572_s23 + $0x78] sm:$0xff] }
  0xde   : > { %13131 = vst [vmem:[#allocation35_spill] sm:$0xff] %v8373_v59  ;;  %v7343_v50 = vpack.i.bf16 %v8373_v59, %v8370_v30  ;;  %v2971_v59 = vld [vmem:[%s12905_s1 + $0x10] sm:$0xff]  ;;  %v2140_v63 = vsel %vm2131_vm2, %v2107_v46, %v8281_v33  ;;  %v1172_v46 = vrot.slane %v8413_v36, %v7585_v10 }
  0xdf   : > { %v6775_v39 = vpack.c.bf16 %v2971_v59, %v2969_v17  ;;  %6774 = vmatprep.subr.bf16.mxu0 %v6773_v19  ;;  %v2976_v59 = vld [vmem:[%s12905_s1 + $0x38] sm:$0xff]  ;;  %v2973_v17 = vld [vmem:[%s12905_s1 + $0x20] sm:$0xff]  ;;  %v2173_v11 = vsel %vm2164_vm3, %v2140_v63, %v7822_v8  ;;  %v2076_v63 = vsel %vm2065_vm0, %v7832_v18, %v8338_v54  ;;  %v639_v54 = vcombine.high %v8379_v22, %v8379_v22  ;;  %v2982_v22 = vld [vmem:[%s12905_s1 + $0x68] sm:$0xff] }
  0xe0   : > { %v8404_v41 = vpop.permute.xlu1 %1733  ;;  %1503 = vrot.lane.b32.xlu1 %v8365_v38, %s7524_s24  ;;  %7344 = vrot.lane.b32.xlu0 %v7343_v50, %s7524_s24  ;;  %v1224_v44 = vpop.permute.xlu0 %1223  ;;  %v8423_v38 = vrot.slane %v8396_v1, %v7574_v5  ;;  %v407_v50 = vcombine.high %v399_v35, %v399_v35  ;;  %v6777_v19 = vpack.c.bf16 %v2976_v59, %v2974_v34  ;;  %v2980_v8 = vld [vmem:[%s12905_s1 + $0x58] sm:$0xff] }
  0xe1   : > { %6776 = vmatpush1.bf16.msra.mxu0 %v6775_v39  ;;  %v2975_v39 = vld [vmem:[%s12905_s1 + $0x30] sm:$0xff]  ;;  %v8449_v35 = vrot.slane %v1023_v2, %v7585_v10  ;;  %v2077_v59 = vsel %vm2065_vm0, %v7853_v49, %v1224_v44  ;;  %v8467_v2 = vrot.slane %v8434_v53, %v7574_v5  ;;  %v2978_v49 = vld [vmem:[%s12905_s1 + $0x48] sm:$0xff]  ;;  %v2206_v44 = vsel %vm2197_vm4, %v2173_v11, %v8302_v31 }
  0xe2   : > { %v6779_v34 = vpack.c.bf16 %v2975_v39, %v2973_v17  ;;  %6778 = vmatprep.subr.bf16.mxu0 %v6777_v19  ;;  %v8481_v19 = vrot.slane %v407_v50, %v7574_v5  ;;  %v6781_v17 = vpack.c.bf16 %v2980_v8, %v2978_v49  ;;  %v2977_v39 = vld [vmem:[%s12905_s1 + $0x40] sm:$0xff]  ;;  %v2110_v0 = vsel %vm2098_vm1, %v2077_v59, %v7887_v14  ;;  %v13138_v8 = vld [vmem:[#allocation3_spill] sm:$0xff]  ;;  %v2984_v59 = vld [vmem:[%s12905_s1 + $0x78] sm:$0xff] }
  0xe3   : > { %13135 = vst [vmem:[#allocation39_spill] sm:$0xff] %v8449_v35  ;;  %v13137_v50 = vld [vmem:[#allocation2_spill] sm:$0xff]  ;;  %v2109_v60 = vsel %vm2098_vm1, %v2076_v63, %v13138_v8  ;;  %v13141_v8 = vld [vmem:[#allocation7_spill] sm:$0xff] }
  0xe4   : > { %v8442_v30 = vpop.permute.xlu1 %1989  ;;  %1759 = vrot.lane.b32.xlu1 %v8393_v56, %s7524_s24  ;;  %2013 = vrot.lane.b32.xlu0 %v8410_v28, %s7524_s24  ;;  %v1480_v33 = vpop.permute.xlu0 %1479  ;;  %v8459_v56 = vrot.slane %v8419_v43, %v7585_v10  ;;  %v8463_v28 = vrot.slane %v8423_v38, %v7574_v5  ;;  %v2239_v49 = vsel %vm2230_vm5, %v2206_v44, %v13137_v50 }
  0xe5   : > { %6780 = vmatpush1.bf16.msra.mxu0 %v6779_v34  ;;  %v2979_v34 = vld [vmem:[%s12905_s1 + $0x50] sm:$0xff]  ;;  %v8518_v44 = vsel %vm2263_vm6, %v2239_v49, %v8319_v12  ;;  %v2143_v63 = vsel %vm2131_vm2, %v2110_v0, %v1480_v33  ;;  %v1176_v12 = vrot.slane %v8481_v19, %v7585_v10  ;;  %v2142_v49 = vsel %vm2131_vm2, %v2109_v60, %v8362_v29 }
  0xe6   : > { %13136 = vst [vmem:[#allocation40_spill] sm:$0xff] %v8459_v56  ;;  %v6783_v11 = vpack.c.bf16 %v2979_v34, %v2977_v39  ;;  %6782 = vmatprep.subr.bf16.mxu0 %v6781_v17  ;;  %v8504_v14 = vrot.slane %v8463_v28, %v7585_v10  ;;  %13140 = vst [vmem:[#allocation3_spill] sm:$0xff] %v8518_v44  ;;  %v839_v17 = vcombine.high %v8423_v38, %v8423_v38  ;;  %v2981_v34 = vld [vmem:[%s12905_s1 + $0x60] sm:$0xff] }
  0xe7   : > { %v6785_v39 = vpack.c.bf16 %v2984_v59, %v2982_v22  ;;  %v8538_v38 = vrot.slane %v639_v54, %v7574_v5  ;;  %v2176_v22 = vsel %vm2164_vm3, %v2143_v63, %v13141_v8  ;;  %v2986_v59 = vld [vmem:[%s12905_s1 + $0x88] sm:$0xff]  ;;  %v8559_v60 = vcombine.high %v8413_v36, %v8413_v36  ;;  %v2985_v63 = vld [vmem:[%s12905_s1 + $0x80] sm:$0xff] }
  0xe8   : > { %v1736_v31 = vpop.permute.xlu1 %1735  ;;  %2015 = vrot.lane.b32.xlu1 %v8449_v35, %s7524_s24  ;;  %1249 = vrot.lane.b32.xlu0 %v1172_v46, %s7524_s24  ;;  %v8494_v18 = vpop.permute.xlu0 %1225  ;;  %13139 = vst [vmem:[#allocation2_spill] sm:$0xff] %v8504_v14  ;;  %v8508_v46 = vrot.slane %v8467_v2, %v7574_v5  ;;  %v669_v35 = vcombine.high %v8419_v43, %v8419_v43 }
  0xe9   : > { %6784 = vmatpush1.bf16.msra.mxu0 %v6783_v11  ;;  %v2983_v11 = vld [vmem:[%s12905_s1 + $0x70] sm:$0xff]  ;;  %13143 = vst [vmem:[#allocation41_spill] sm:$0xff] %v8559_v60  ;;  %v2209_v36 = vsel %vm2197_vm4, %v2176_v22, %v1736_v31  ;;  %v1180_v31 = vrot.slane %v8559_v60, %v7585_v10  ;;  %v2989_v22 = vld [vmem:[%s12905_s1 + $0xa0] sm:$0xff] }
  0xea   : > { %v6787_v33 = vpack.c.bf16 %v2983_v11, %v2981_v34  ;;  %6786 = vmatprep.subr.bf16.mxu0 %v6785_v39  ;;  %v8552_v54 = vrot.slane %v8508_v46, %v7585_v10  ;;  %v8555_v34 = vrot.slane %v839_v17, %v7574_v5  ;;  %v2987_v39 = vld [vmem:[%s12905_s1 + $0x90] sm:$0xff]  ;;  %v13147_v60 = vld [vmem:[#allocation10_spill] sm:$0xff] }
  0xeb   : > { %v13144_v11 = vld [vmem:[#allocation4_spill] sm:$0xff] }
  0xec   : > { %v1992_v50 = vpop.permute.xlu1 %1991  ;;  %1505 = vrot.lane.b32.xlu1 %v8459_v56, %s7524_s24  ;;  %2536 = vrot.lane.b32.xlu0 %v8518_v44, %s7524_s24  ;;  %v8533_v0 = vpop.permute.xlu0 %1481  ;;  %v2988_v56 = vld [vmem:[%s12905_s1 + $0x98] sm:$0xff]  ;;  %13142 = vst [vmem:[#allocation7_spill] sm:$0xff] %v8552_v54 }
  0xed   : > { %6788 = vmatpush1.bf16.msra.mxu0 %v6787_v33  ;;  %v6789_v29 = vpack.c.bf16 %v2988_v56, %v2986_v59  ;;  %v2175_v33 = vsel %vm2164_vm3, %v2142_v49, %v13144_v11  ;;  %v8576_v56 = vrot.slane %v8538_v38, %v7585_v10  ;;  %v6791_v59 = vpack.c.bf16 %v2987_v39, %v2985_v63  ;;  %v2990_v49 = vld [vmem:[%s12905_s1 + $0xa8] sm:$0xff]  ;;  %v13146_v39 = vld [vmem:[#allocation8_spill] sm:$0xff]  ;;  %v13148_v44 = vld [vmem:[#allocation5_spill] sm:$0xff] }
  0xee   : > { %v2208_v11 = vsel %vm2197_vm4, %v2175_v33, %v8404_v41  ;;  %v8591_v63 = vrot.slane %v8555_v34, %v7585_v10 }
  0xef   : > { %13145 = vst [vmem:[#allocation4_spill] sm:$0xff] %v8576_v56  ;;  %6790 = vmatprep.subr.bf16.mxu0 %v6789_v29  ;;  %v2991_v29 = vld [vmem:[%s12905_s1 + $0xb0] sm:$0xff] }
  0xf0   : > { %v8569_v8 = vpop.permute.xlu1 %1737  ;;  %1761 = vrot.lane.b32.xlu1 %v8504_v14, %s7524_s24  ;;  %1251 = vrot.lane.b32.xlu0 %v1176_v12, %s7524_s24  ;;  %v1228_v17 = vpop.permute.xlu0 %1227  ;;  %v2992_v12 = vld [vmem:[%s12905_s1 + $0xb8] sm:$0xff] }
  0xf1   : > { %6792 = vmatpush1.bf16.msra.mxu0 %v6791_v59  ;;  %v6793_v43 = vpack.c.bf16 %v2992_v12, %v2990_v49  ;;  %v2242_v59 = vsel %vm2230_vm5, %v2209_v36, %v13146_v39  ;;  %v1039_v49 = vcombine.high %v8467_v2, %v8467_v2  ;;  %v6795_v12 = vpack.c.bf16 %v2991_v29, %v2989_v22  ;;  %v2996_v2 = vld [vmem:[%s12905_s1 + $0xd8] sm:$0xff] }
  0xf2   : > { %v2079_v14 = vsel %vm2065_vm0, %v13147_v60, %v1228_v17  ;;  %v2241_v36 = vsel %vm2230_vm5, %v2208_v11, %v13148_v44  ;;  %v8616_v39 = vrot.slane %v669_v35, %v7585_v10  ;;  %v13149_v60 = vld [vmem:[#allocation6_spill] sm:$0xff]  ;;  %v8630_v44 = vsel %vm2263_vm6, %v2242_v59, %v1992_v50  ;;  %v13152_v22 = vld [vmem:[#allocation13_spill] sm:$0xff] }
  0xf3   : > { %6794 = vmatprep.subr.bf16.mxu0 %v6793_v43  ;;  %v2078_v17 = vsel %vm2065_vm0, %v13149_v60, %v8494_v18  ;;  %13150 = vst [vmem:[#allocation8_spill] sm:$0xff] %v8630_v44  ;;  %v8634_v35 = vcombine.high %v8481_v19, %v8481_v19  ;;  %v2993_v11 = vld [vmem:[%s12905_s1 + $0xc0] sm:$0xff]  ;;  %v2995_v43 = vld [vmem:[%s12905_s1 + $0xd0] sm:$0xff]  ;;  %v2112_v29 = vsel %vm2098_vm1, %v2079_v14, %v13152_v22 }
  0xf4   : > { %v8603_v41 = vpop.permute.xlu1 %1993  ;;  %2017 = vrot.lane.b32.xlu1 %v8552_v54, %s7524_s24  ;;  %1507 = vrot.lane.b32.xlu0 %v8576_v56, %s7524_s24  ;;  %v1484_v33 = vpop.permute.xlu0 %1483  ;;  %v392_v54 = vcombine.high %v8349_v9, %v8349_v9  ;;  %v2994_v56 = vld [vmem:[%s12905_s1 + $0xc8] sm:$0xff]  ;;  %v6799_v59 = vpack.c.bf16 %v2995_v43, %v2993_v11  ;;  %v2999_v11 = vld [vmem:[%s12905_s1 + $0xf0] sm:$0xff] }
  0xf5   : > { %6796 = vmatpush1.bf16.msra.mxu0 %v6795_v12  ;;  %13151 = vst [vmem:[#allocation10_spill] sm:$0xff] %v8634_v35  ;;  %v6797_v9 = vpack.c.bf16 %v2996_v2, %v2994_v56  ;;  %v8650_v56 = vrot.slane %v1039_v49, %v7574_v5  ;;  %v8654_v12 = vsel %vm2263_vm6, %v2241_v36, %v8442_v30  ;;  %v13153_v2 = vld [vmem:[#allocation9_spill] sm:$0xff] }
  0xf6   : > { %v7348_v14 = vpack.i.bf16 %v8630_v44, %v8654_v12  ;;  %v2111_v60 = vsel %vm2098_vm1, %v2078_v17, %v13153_v2  ;;  %v8661_v22 = vrot.slane %v392_v54, %v7574_v5  ;;  %v3000_v30 = vld [vmem:[%s12905_s1 + $0xf8] sm:$0xff]  ;;  %v2145_v49 = vsel %vm2131_vm2, %v2112_v29, %v1484_v33  ;;  %v2997_v54 = vld [vmem:[%s12905_s1 + $0xe0] sm:$0xff] }
  0xf7   : > { %6798 = vmatprep.subr.bf16.mxu0 %v6797_v9  ;;  %v1184_v36 = vrot.slane %v8634_v35, %v7585_v10  ;;  %v671_v17 = vcombine.high %v8538_v38, %v8538_v38  ;;  %v8687_v38 = vrot.slane %v8650_v56, %v7585_v10  ;;  %v869_v29 = vcombine.high %v8463_v28, %v8463_v28  ;;  %v3002_v28 = vld [vmem:[%s12905_s1 + $0x108] sm:$0xff] }
  0xf8   : > { %v1740_v18 = vpop.permute.xlu1 %1739  ;;  %1763 = vrot.lane.b32.xlu1 %v8591_v63, %s7524_s24  ;;  %1253 = vrot.lane.b32.xlu0 %v1180_v31, %s7524_s24  ;;  %v8647_v50 = vpop.permute.xlu0 %1229  ;;  %v2998_v31 = vld [vmem:[%s12905_s1 + $0xe8] sm:$0xff]  ;;  %v2144_v2 = vsel %vm2131_vm2, %v2111_v60, %v8533_v0  ;;  %v624_v35 = vcombine.high %v8354_v27, %v8354_v27  ;;  %v3004_v0 = vld [vmem:[%s12905_s1 + $0x118] sm:$0xff] }
  0xf9   : > { %6800 = vmatpush1.bf16.msra.mxu0 %v6799_v59  ;;  %v6801_v9 = vpack.c.bf16 %v3000_v30, %v2998_v31  ;;  %13154 = vst [vmem:[#allocation5_spill] sm:$0xff] %v8687_v38  ;;  %v6803_v59 = vpack.c.bf16 %v2999_v11, %v2997_v54  ;;  %v13155_v31 = vld [vmem:[#allocation15_spill] sm:$0xff]  ;;  %v8708_v60 = vrot.slane %v671_v17, %v7585_v10  ;;  %v3001_v27 = vld [vmem:[%s12905_s1 + $0x100] sm:$0xff]  ;;  %v3003_v54 = vld [vmem:[%s12905_s1 + $0x110] sm:$0xff] }
  0xfa   : > { %v2178_v30 = vsel %vm2164_vm3, %v2145_v49, %v13155_v31  ;;  %v1069_v49 = vcombine.high %v8508_v46, %v8508_v46  ;;  %v13158_v11 = vld [vmem:[#allocation11_spill] sm:$0xff]  ;;  %v8726_v17 = vrot.slane %v869_v29, %v7585_v10  ;;  %v3008_v29 = vld [vmem:[%s12905_s1 + $0x138] sm:$0xff] }
  0xfb   : > { %6802 = vmatprep.subr.bf16.mxu0 %v6801_v9  ;;  %13157 = vst [vmem:[#allocation13_spill] sm:$0xff] %v8708_v60  ;;  %v6805_v9 = vpack.c.bf16 %v3004_v0, %v3002_v28  ;;  %v6807_v28 = vpack.c.bf16 %v3003_v54, %v3001_v27  ;;  %v2211_v0 = vsel %vm2197_vm4, %v2178_v30, %v1740_v18  ;;  %v3007_v54 = vld [vmem:[%s12905_s1 + $0x130] sm:$0xff] }
  0xfc   : > { %v1996_v43 = vpop.permute.xlu1 %1995  ;;  %1509 = vrot.lane.b32.xlu1 %v8616_v39, %s7524_s24  ;;  %7349 = vrot.lane.b32.xlu0 %v7348_v14, %s7524_s24  ;;  %v8683_v33 = vpop.permute.xlu0 %1485  ;;  %v8697_v14 = vrot.slane %v8661_v22, %v7574_v5  ;;  %13159 = vst [vmem:[#allocation9_spill] sm:$0xff] %v8726_v17  ;;  %v8743_v18 = vrot.slane %v1069_v49, %v7585_v10 }
  0xfd   : > { %6804 = vmatpush1.bf16.msra.mxu0 %v6803_v59  ;;  %v2177_v59 = vsel %vm2164_vm3, %v2144_v2, %v13158_v11  ;;  %v8732_v2 = vrot.slane %v624_v35, %v7574_v5  ;;  %v824_v30 = vcombine.high %v8396_v1, %v8396_v1  ;;  %v13161_v11 = vld [vmem:[#allocation16_spill] sm:$0xff] }
  0xfe   : > { %13156 = vst [vmem:[#allocation6_spill] sm:$0xff] %v8697_v14  ;;  %6806 = vmatprep.subr.bf16.mxu0 %v6805_v9  ;;  %v1188_v44 = vrot.slane %v8697_v14, %v7585_v10  ;;  %v2210_v27 = vsel %vm2197_vm4, %v2177_v59, %v8569_v8  ;;  %13160 = vst [vmem:[#allocation15_spill] sm:$0xff] %v8743_v18  ;;  %v3005_v9 = vld [vmem:[%s12905_s1 + $0x120] sm:$0xff]  ;;  %v871_v8 = vcombine.high %v8555_v34, %v8555_v34  ;;  %v13162_v59 = vld [vmem:[#allocation12_spill] sm:$0xff] }
  0xff   : > { %v6811_v49 = vpack.c.bf16 %v3007_v54, %v3005_v9  ;;  %v3010_v34 = vld [vmem:[%s12905_s1 + $0x148] sm:$0xff]  ;;  %v838_v9 = vrot.slane %v824_v30, %v7574_v5  ;;  %v1024_v30 = vcombine.high %v8434_v53, %v8434_v53 }
 0x100   : > { %v8720_v31 = vpop.permute.xlu1 %1741  ;;  %1255 = vrot.lane.b32.xlu1 %v1184_v36, %s7524_s24  ;;  %2019 = vrot.lane.b32.xlu0 %v8687_v38, %s7524_s24  ;;  %v1232_v46 = vpop.permute.xlu0 %1231  ;;  %v3006_v36 = vld [vmem:[%s12905_s1 + $0x128] sm:$0xff] }
 0x101   : > { %6808 = vmatpush1.bf16.msra.mxu0 %v6807_v28  ;;  %v6809_v35 = vpack.c.bf16 %v3008_v29, %v3006_v36  ;;  %v2244_v28 = vsel %vm2230_vm5, %v2211_v0, %v13161_v11  ;;  %v2243_v36 = vsel %vm2230_vm5, %v2210_v27, %v13162_v59  ;;  %v8767_v0 = vrot.slane %v8732_v2, %v7574_v5 }
 0x102   : > { %v1071_v29 = vcombine.high %v8650_v56, %v8650_v56  ;;  %v408_v11 = vcombine.high %v8661_v22, %v8661_v22  ;;  %v8780_v27 = vsel %vm2263_vm6, %v2244_v28, %v1996_v43  ;;  %v3009_v56 = vld [vmem:[%s12905_s1 + $0x140] sm:$0xff]  ;;  %v3011_v22 = vld [vmem:[%s12905_s1 + $0x150] sm:$0xff]  ;;  %v8795_v43 = vrot.slane %v871_v8, %v7585_v10 }
 0x103   : > { %6810 = vmatprep.subr.bf16.mxu0 %v6809_v35  ;;  %v3012_v35 = vld [vmem:[%s12905_s1 + $0x158] sm:$0xff]  ;;  %13163 = vst [vmem:[#allocation11_spill] sm:$0xff] %v8780_v27  ;;  %v6815_v28 = vpack.c.bf16 %v3011_v22, %v3009_v56  ;;  %v8801_v59 = vsel %vm2263_vm6, %v2243_v36, %v8603_v41  ;;  %v8811_v8 = vrot.slane %v8767_v0, %v7585_v10  ;;  %v3014_v41 = vld [vmem:[%s12905_s1 + $0x168] sm:$0xff]  ;;  %v13169_v36 = vld [vmem:[#allocation14_spill] sm:$0xff] }
 0x104   : > { %v8755_v38 = vpop.permute.xlu1 %1997  ;;  %1511 = vrot.lane.b32.xlu1 %v8708_v60, %s7524_s24  ;;  %1765 = vrot.lane.b32.xlu0 %v8726_v17, %s7524_s24  ;;  %v1488_v1 = vpop.permute.xlu0 %1487  ;;  %v6813_v54 = vpack.c.bf16 %v3012_v35, %v3010_v34  ;;  %13164 = vst [vmem:[#allocation16_spill] sm:$0xff] %v8795_v43  ;;  %13165 = vst [vmem:[#allocation12_spill] sm:$0xff] %v8801_v59  ;;  %v13166_v34 = vld [vmem:[#allocation18_spill] sm:$0xff]  ;;  %v8814_v53 = vrot.slane %v1071_v29, %v7585_v10 }
 0x105   : > { %6812 = vmatpush1.bf16.msra.mxu0 %v6811_v49  ;;  %v2081_v35 = vsel %vm2065_vm0, %v13166_v34, %v1232_v46  ;;  %13167 = vst [vmem:[#allocation18_spill] sm:$0xff] %v8811_v8  ;;  %v8817_v56 = vrot.slane %v408_v11, %v7574_v5  ;;  %v3016_v46 = vld [vmem:[%s12905_s1 + $0x178] sm:$0xff]  ;;  %v8829_v22 = vrot.slane %v838_v9, %v7574_v5  ;;  %v3015_v34 = vld [vmem:[%s12905_s1 + $0x170] sm:$0xff] }
 0x106   : > { %6814 = vmatprep.subr.bf16.mxu0 %v6813_v54  ;;  %13168 = vst [vmem:[#allocation42_spill] sm:$0xff] %v8814_v53  ;;  %v2080_v54 = vsel %vm2065_vm0, %v13169_v36, %v8647_v50  ;;  %v640_v29 = vcombine.high %v8732_v2, %v8732_v2  ;;  %v6817_v11 = vpack.c.bf16 %v3016_v46, %v3014_v41  ;;  %v13171_v46 = vld [vmem:[#allocation17_spill] sm:$0xff] }
 0x107   : > { %v8847_v2 = vrot.slane %v1024_v30, %v7574_v5  ;;  %v2113_v36 = vsel %vm2098_vm1, %v2080_v54, %v13171_v46  ;;  %v1192_v60 = vrot.slane %v8817_v56, %v7585_v10  ;;  %v3017_v54 = vld [vmem:[%s12905_s1 + $0x180] sm:$0xff] }
 0x108   : > { %1257 = vrot.lane.b32.xlu1 %v1188_v44, %s7524_s24  ;;  %2021 = vrot.lane.b32.xlu0 %v8743_v18, %s7524_s24  ;;  %v8792_v49 = vpop.permute.xlu0 %1743  ;;  %v7353_v44 = vpack.i.bf16 %v8780_v27, %v8801_v59  ;;  %v8807_v18 = vpop.permute.xlu1 %1233  ;;  %v13170_v27 = vld [vmem:[#allocation21_spill] sm:$0xff]  ;;  %v2146_v46 = vsel %vm2131_vm2, %v2113_v36, %v8683_v33 }
 0x109   : > { %6816 = vmatpush1.bf16.msra.mxu0 %v6815_v28  ;;  %v3013_v28 = vld [vmem:[%s12905_s1 + $0x160] sm:$0xff]  ;;  %v2114_v59 = vsel %vm2098_vm1, %v2081_v35, %v13170_v27  ;;  %v3018_v27 = vld [vmem:[%s12905_s1 + $0x188] sm:$0xff]  ;;  %v3020_v35 = vld [vmem:[%s12905_s1 + $0x198] sm:$0xff] }
 0x10a   : > { %v6819_v41 = vpack.c.bf16 %v3015_v34, %v3013_v28  ;;  %6818 = vmatprep.subr.bf16.mxu0 %v6817_v11  ;;  %v2147_v30 = vsel %vm2131_vm2, %v2114_v59, %v1488_v1  ;;  %v840_v11 = vcombine.high %v838_v9, %v838_v9  ;;  %v6821_v28 = vpack.c.bf16 %v3020_v35, %v3018_v27  ;;  %v3019_v34 = vld [vmem:[%s12905_s1 + $0x190] sm:$0xff]  ;;  %v13173_v27 = vld [vmem:[#allocation22_spill] sm:$0xff] }
 0x10b   : > { %v8879_v9 = vrot.slane %v8829_v22, %v7585_v10  ;;  %v8883_v59 = vrot.slane %v8847_v2, %v7574_v5  ;;  %v2180_v35 = vsel %vm2164_vm3, %v2147_v30, %v13173_v27 }
 0x10c   : > { %1767 = vrot.lane.b32.xlu0 %v8795_v43, %s7524_s24  ;;  %7354 = vrot.lane.b32.xlu1 %v7353_v44, %s7524_s24  ;;  %v8844_v50 = vpop.permute.xlu0 %1999  ;;  %v8861_v44 = vrot.slane %v640_v29, %v7574_v5  ;;  %v6823_v29 = vpack.c.bf16 %v3019_v34, %v3017_v54  ;;  %v3024_v54 = vld [vmem:[%s12905_s1 + $0x1b8] sm:$0xff]  ;;  %v8904_v36 = vrot.slane %v840_v11, %v7574_v5  ;;  %v3023_v34 = vld [vmem:[%s12905_s1 + $0x1b0] sm:$0xff] }
 0x10d   : > { %6820 = vmatpush1.bf16.msra.mxu0 %v6819_v41  ;;  %v8869_v41 = vpop.permute.xlu1 %1235  ;;  %13172 = vst [vmem:[#allocation14_spill] sm:$0xff] %v8879_v9 }
 0x10e   : > { %6822 = vmatprep.subr.bf16.mxu0 %v6821_v28  ;;  %v8901_v33 = vrot.slane %v8861_v44, %v7585_v10  ;;  %v3021_v28 = vld [vmem:[%s12905_s1 + $0x1a0] sm:$0xff] }
 0x10f   : > { %v6827_v11 = vpack.c.bf16 %v3023_v34, %v3021_v28  ;;  %v3025_v34 = vld [vmem:[%s12905_s1 + $0x1c0] sm:$0xff] }
 0x110   : > { %1513 = vrot.lane.b32.xlu0 %v8811_v8, %s7524_s24  ;;  %2023 = vrot.lane.b32.xlu1 %v8814_v53, %s7524_s24  ;;  %v8875_v1 = vpop.permute.xlu0 %1489  ;;  %v8891_v8 = vcombine.high %v8697_v14, %v8697_v14  ;;  %v3022_v53 = vld [vmem:[%s12905_s1 + $0x1a8] sm:$0xff]  ;;  %13175 = vst [vmem:[#allocation17_spill] sm:$0xff] %v8901_v33 }
 0x111   : > { %6824 = vmatpush1.bf16.msra.mxu0 %v6823_v29  ;;  %v6825_v30 = vpack.c.bf16 %v3024_v54, %v3022_v53  ;;  %v13176_v29 = vld [vmem:[#allocation19_spill] sm:$0xff]  ;;  %v8921_v53 = vrot.slane %v8883_v59, %v7585_v10  ;;  %v2213_v54 = vsel %vm2197_vm4, %v2180_v35, %v8792_v49  ;;  %v2521_v43 = vpop.permute.xlu1 %2520  ;;  %v8937_v49 = vrot.slane %v8904_v36, %v7585_v10 }
 0x112   : > { %13174 = vst [vmem:[#allocation21_spill] sm:$0xff] %v8891_v8  ;;  %v2179_v27 = vsel %vm2164_vm3, %v2146_v46, %v13176_v29  ;;  %v1196_v46 = vrot.slane %v8891_v8, %v7585_v10  ;;  %v3028_v29 = vld [vmem:[%s12905_s1 + $0x1d8] sm:$0xff]  ;;  %v670_v35 = vcombine.high %v8767_v0, %v8767_v0  ;;  %v13177_v8 = vld [vmem:[#allocation23_spill] sm:$0xff]  ;;  %v1040_v0 = vcombine.high %v8847_v2, %v8847_v2 }
 0x113   : > { %6826 = vmatprep.subr.bf16.mxu0 %v6825_v30  ;;  %v2212_v28 = vsel %vm2197_vm4, %v2179_v27, %v8720_v31 }
 0x114   : > { %1259 = vrot.lane.b32.xlu0 %v1192_v60, %s7524_s24  ;;  %1769 = vrot.lane.b32.xlu1 %v8879_v9, %s7524_s24  ;;  %v8917_v14 = vpop.permute.xlu0 %1745  ;;  %v3026_v60 = vld [vmem:[%s12905_s1 + $0x1c8] sm:$0xff]  ;;  %v2246_v9 = vsel %vm2230_vm5, %v2213_v54, %v13177_v8  ;;  %v3032_v54 = vld [vmem:[%s12905_s1 + $0x1f8] sm:$0xff]  ;;  %v8970_v2 = vrot.slane %v670_v35, %v7585_v10 }
 0x115   : > { %6828 = vmatpush1.bf16.msra.mxu0 %v6827_v11  ;;  %v6829_v30 = vpack.c.bf16 %v3028_v29, %v3026_v60  ;;  %v3027_v11 = vld [vmem:[%s12905_s1 + $0x1d0] sm:$0xff]  ;;  %v3030_v8 = vld [vmem:[%s12905_s1 + $0x1e8] sm:$0xff] }
 0x116   : > { %v6831_v27 = vpack.c.bf16 %v3027_v11, %v3025_v34  ;;  %v13178_v60 = vld [vmem:[#allocation20_spill] sm:$0xff] }
 0x117   : > { %6830 = vmatprep.subr.bf16.mxu0 %v6829_v30  ;;  %v2245_v29 = vsel %vm2230_vm5, %v2212_v28, %v13178_v60  ;;  %v6833_v30 = vpack.c.bf16 %v3032_v54, %v3030_v8  ;;  %v3029_v28 = vld [vmem:[%s12905_s1 + $0x1e0] sm:$0xff]  ;;  %v3031_v34 = vld [vmem:[%s12905_s1 + $0x1f0] sm:$0xff] }
 0x118   : > { %1515 = vrot.lane.b32.xlu0 %v8901_v33, %s7524_s24  ;;  %2025 = vrot.lane.b32.xlu1 %v8921_v53, %s7524_s24  ;;  %v1492_v31 = vpop.permute.xlu0 %1491  ;;  %v8967_v33 = vsel %vm2263_vm6, %v2246_v9, %v8844_v50  ;;  %v8983_v50 = vcombine.high %v8817_v56, %v8817_v56  ;;  %v8986_v9 = vrot.slane %v1040_v0, %v7574_v5 }
 0x119   : > { %6832 = vmatpush1.bf16.msra.mxu0 %v6831_v27  ;;  %v6835_v35 = vpack.c.bf16 %v3031_v34, %v3029_v28  ;;  %v8990_v27 = vsel %vm2263_vm6, %v2245_v29, %v8755_v38  ;;  %v870_v0 = vcombine.high %v8829_v22, %v8829_v22  ;;  %v2328_v29 = vrot.slane %v8058_v15, 7 }
 0x11a   : > { %v8957_v17 = vpop.permute.xlu1 %7329  ;;  %13179 = vst [vmem:[#allocation22_spill] sm:$0xff] %v8990_v27  ;;  %6834 = vmatprep.subr.bf16.mxu0 %v6833_v30  ;;  %v1200_v5 = vrot.slane %v8983_v50, %v7585_v10  ;;  %v9003_v38 = vrot.slane %v8986_v9, %v7585_v10  ;;  %v1070_v30 = vcombine.high %v8883_v59, %v8883_v59 }
 0x11b   : > { %v2082_v28 = vsel %vm2065_vm0, %v7985_v57, %v8807_v18  ;;  %v672_v22 = vcombine.high %v8861_v44, %v8861_v44  ;;  %v2083_v57 = vsel %vm2065_vm0, %v8014_v4, %v8869_v41 }
 0x11c   : > { %1261 = vrot.lane.b32.xlu0 %v1196_v46, %s7524_s24  ;;  %1771 = vrot.lane.b32.xlu1 %v8937_v49, %s7524_s24  ;;  %v1238_v11 = vpop.permute.xlu0 %1237  ;;  %v7358_v46 = vpack.i.bf16 %v8967_v33, %v8990_v27 }
 0x11d   : > { %6836 = vmatpush1.bf16.msra.mxu0 %v6835_v35  ;;  %v9017_v35 = vrot.slane %v870_v0, %v7585_v10  ;;  %v2084_v59 = vsel %vm2065_vm0, %v8090_v42, %v1238_v11  ;;  %v9033_v0 = vrot.slane %v1070_v30, %v7585_v10  ;;  %v9042_v4 = vrot.slane %v672_v22, %v7585_v10 }
 0x11e   : > { %v8994_v60 = vpop.permute.xlu1 %2001  ;;  %v2117_v44 = vsel %vm2098_vm1, %v2084_v59, %v8126_v51  ;;  %v872_v42 = vcombine.high %v8904_v36, %v8904_v36  ;;  %v2116_v51 = vsel %vm2098_vm1, %v2083_v57, %v8086_v37  ;;  %v7331_v30 = vunpack.i.l.bf16 %v8957_v17 }
 0x11f   : > { %v1072_v37 = vcombine.high %v8986_v9, %v8986_v9 }
 0x120   : > { %1517 = vrot.lane.b32.xlu1 %v8970_v2, %s7524_s24  ;;  %7359 = vrot.lane.b32.xlu0 %v7358_v46, %s7524_s24  ;;  %v1494_v8 = vpop.permute.xlu0 %1493  ;;  %v2392_v46 = vsel %vm2065_vm0, 0.0, %v2328_v29  ;;  %v2149_v29 = vsel %vm2131_vm2, %v2116_v51, %v1492_v31 }
 0x121   : > { %v9028_v18 = vsel %vm2616_vm7, %v2392_v46, %v2521_v43 }
 0x122   : > { %v1748_v54 = vpop.permute.xlu1 %1747 }
 0x124   : > { %1263 = vrot.lane.b32.xlu1 %v1200_v5, %s7524_s24  ;;  %2027 = vrot.lane.b32.xlu0 %v9003_v38, %s7524_s24  ;;  %v1240_v34 = vpop.permute.xlu0 %1239  ;;  %v2115_v5 = vsel %vm2098_vm1, %v2082_v28, %v8043_v3  ;;  %v2329_v3 = vrot.slane %v8098_v13, 7  ;;  %v2150_v28 = vsel %vm2131_vm2, %v2117_v44, %v1494_v8  ;;  %v2182_v8 = vsel %vm2164_vm3, %v2149_v29, %v8136_v52 }
 0x125   : > { %v2148_v43 = vsel %vm2131_vm2, %v2115_v5, %v8875_v1  ;;  %v2085_v22 = vsel %vm2065_vm0, %v8130_v16, %v1240_v34  ;;  %v9061_v1 = vrot.slane %v872_v42, %v7585_v10  ;;  %v2183_v34 = vsel %vm2164_vm3, %v2150_v28, %v8171_v40 }
 0x126   : > { %v2004_v15 = vpop.permute.xlu1 %2003  ;;  %v2181_v36 = vsel %vm2164_vm3, %v2148_v43, %v8062_v21  ;;  %v2393_v31 = vsel %vm2065_vm0, 0.0, %v2329_v3  ;;  %v2118_v46 = vsel %vm2098_vm1, %v2085_v22, %v8183_v48  ;;  %v2215_v9 = vsel %vm2197_vm4, %v2182_v8, %v1748_v54 }
 0x127   : > { %v2214_v16 = vsel %vm2197_vm4, %v2181_v36, %v8917_v14  ;;  %v9080_v44 = vsel %vm2616_vm7, %v2393_v31, %v7331_v30  ;;  %v2330_v14 = vrot.slane %v8103_v25, 7  ;;  %v2331_v52 = vrot.slane %v8175_v55, 7 }
 0x128   : > { %2713 = vrot.lane.b32.xlu1 %v9028_v18, %s7524_s24  ;;  %1773 = vrot.lane.b32.xlu0 %v9017_v35, %s7524_s24  ;;  %v9089_v40 = vrot.slane %v1072_v37, %v7585_v10  ;;  %v7332_v48 = vunpack.i.h.bf16 %v8957_v17  ;;  %v2247_v42 = vsel %vm2230_vm5, %v2214_v16, %v8117_v26  ;;  %v2248_v3 = vsel %vm2230_vm5, %v2215_v9, %v8151_v58 }
 0x129   : > { %v9102_v10 = vsel %vm2263_vm6, %v2247_v42, %v8994_v60  ;;  %v9105_v17 = vsel %vm2263_vm6, %v2248_v3, %v2004_v15  ;;  %v2394_v30 = vsel %vm2065_vm0, 0.0, %v2330_v14  ;;  %v2332_v28 = vrot.slane %v8178_v20, 7  ;;  %v13181_v3 = vld [vmem:[#allocation27_spill] sm:$0xff] }
 0x12a   : > { %v1750_v41 = vpop.permute.xlu1 %1749  ;;  %v7335_v11 = vpop.permute.xlu0 %7334  ;;  %v9119_v15 = vsel %vm2616_vm7, %v2394_v30, %v7332_v48 }
 0x12b   : > { %v2216_v21 = vsel %vm2197_vm4, %v2183_v34, %v1750_v41  ;;  %v7336_v54 = vunpack.i.l.bf16 %v7335_v11  ;;  %v7363_v22 = vpack.i.bf16 %v9105_v17, %v9119_v15 }
 0x12c   : > { %2029 = vrot.lane.b32.xlu1 %v9033_v0, %s7524_s24  ;;  %1519 = vrot.lane.b32.xlu0 %v9042_v4, %s7524_s24  ;;  %v2249_v43 = vsel %vm2230_vm5, %v2216_v21, %v8190_v24  ;;  %v2395_v24 = vsel %vm2065_vm0, 0.0, %v2331_v52  ;;  %v2333_v21 = vrot.slane %v8276_v23, 7 }
 0x12d   : > { %v9122_v60 = vsel %vm2616_vm7, %v2395_v24, %v7336_v54  ;;  %v13183_v24 = vld [vmem:[#allocation25_spill] sm:$0xff] }
 0x12e   : > { %v1496_v59 = vpop.permute.xlu1 %1495  ;;  %v2006_v57 = vpop.permute.xlu0 %2005  ;;  %v2397_v42 = vsel %vm2065_vm0, 0.0, %v2333_v21  ;;  %v13188_v21 = vld [vmem:[#allocation29_spill] sm:$0xff] }
 0x12f   : > { %v2151_v5 = vsel %vm2131_vm2, %v2118_v46, %v1496_v59  ;;  %v9108_v26 = vsel %vm2263_vm6, %v2249_v43, %v2006_v57 }
 0x130   : > { %2717 = vrot.lane.b32.xlu1 %v9080_v44, %s7524_s24  ;;  %1775 = vrot.lane.b32.xlu0 %v9061_v1, %s7524_s24  ;;  %v2184_v41 = vsel %vm2164_vm3, %v2151_v5, %v8204_v47  ;;  %v7337_v47 = vunpack.i.h.bf16 %v7335_v11  ;;  %v7368_v37 = vpack.i.bf16 %v9108_v26, %v9122_v60  ;;  %v2396_v11 = vsel %vm2065_vm0, 0.0, %v2332_v28 }
 0x131   : > { %v2334_v28 = vrot.slane %v13183_v24, 7 }
 0x132   : > { %v1242_v51 = vpop.permute.xlu1 %1241  ;;  %v1752_v29 = vpop.permute.xlu0 %1751  ;;  %v9139_v59 = vsel %vm2616_vm7, %v2396_v11, %v7337_v47 }
 0x133   : > { %v2217_v58 = vsel %vm2197_vm4, %v2184_v41, %v1752_v29  ;;  %v2086_v8 = vsel %vm2065_vm0, %v8193_v6, %v1242_v51  ;;  %13180 = vst [vmem:[#allocation19_spill] sm:$0xff] %v9139_v59  ;;  %v2398_v11 = vsel %vm2065_vm0, 0.0, %v2334_v28 }
 0x134   : > { %2031 = vrot.lane.b32.xlu0 %v9089_v40, %s7524_s24  ;;  %2552 = vrot.lane.b32.xlu1 %v9102_v10, %s7524_s24  ;;  %v2250_v31 = vsel %vm2230_vm5, %v2217_v58, %v8224_v61  ;;  %v2119_v46 = vsel %vm2098_vm1, %v2086_v8, %v8221_v62 }
 0x136   : > { %v1498_v36 = vpop.permute.xlu1 %1497  ;;  %v2008_v16 = vpop.permute.xlu0 %2007 }
 0x137   : > { %v9133_v34 = vsel %vm2263_vm6, %v2250_v31, %v2008_v16  ;;  %v2152_v9 = vsel %vm2131_vm2, %v2119_v46, %v1498_v36  ;;  %v13185_v16 = vld [vmem:[#allocation26_spill] sm:$0xff] }
 0x138   : > { %7364 = vrot.lane.b32.xlu0 %v7363_v22, %s7524_s24  ;;  %7369 = vrot.lane.b32.xlu1 %v7368_v37, %s7524_s24  ;;  %v7373_v61 = vpack.i.bf16 %v9133_v34, %v9139_v59  ;;  %v2185_v5 = vsel %vm2164_vm3, %v2152_v9, %v8246_v32  ;;  %v13184_v22 = vld [vmem:[#allocation28_spill] sm:$0xff] }
 0x13a   : > { %v1244_v57 = vpop.permute.xlu1 %1243  ;;  %v1754_v6 = vpop.permute.xlu0 %1753 }
 0x13b   : > { %v2087_v48 = vsel %vm2065_vm0, %v8232_v45, %v1244_v57  ;;  %v2218_v62 = vsel %vm2197_vm4, %v2185_v5, %v1754_v6 }
 0x13c   : > { %7374 = vrot.lane.b32.xlu0 %v7373_v61, %s7524_s24  ;;  %v2120_v43 = vsel %vm2098_vm1, %v2087_v48, %v13181_v3  ;;  %v2251_v41 = vsel %vm2230_vm5, %v2218_v62, %v8288_v7  ;;  %v13186_v61 = vld [vmem:[#allocation31_spill] sm:$0xff]  ;;  %v13190_v3 = vld [vmem:[#allocation34_spill] sm:$0xff] }
 0x13e   : > { %v7340_v14 = vpop.permute.xlu1 %7339  ;;  %v1500_v52 = vpop.permute.xlu0 %1499 }
 0x13f   : > { %v7341_v54 = vunpack.i.l.bf16 %v7340_v14  ;;  %v2153_v32 = vsel %vm2131_vm2, %v2120_v43, %v1500_v52  ;;  %v7342_v7 = vunpack.i.h.bf16 %v7340_v14  ;;  %v2335_v43 = vrot.slane %v13190_v3, 7 }
 0x140   : > { %v2186_v37 = vsel %vm2164_vm3, %v2153_v32, %v13184_v22  ;;  %v13192_v32 = vld [vmem:[#allocation33_spill] sm:$0xff] }
 0x141   : > { %v9163_v45 = vsel %vm2616_vm7, %v2397_v42, %v7341_v54  ;;  %v9181_v9 = vsel %vm2616_vm7, %v2398_v11, %v7342_v7  ;;  %v13189_v54 = vld [vmem:[#allocation30_spill] sm:$0xff]  ;;  %v2399_v7 = vsel %vm2065_vm0, 0.0, %v2335_v43 }
 0x142   : > { %v2010_v51 = vpop.permute.xlu1 %2009  ;;  %v1246_v29 = vpop.permute.xlu0 %1245  ;;  %13182 = vst [vmem:[#allocation23_spill] sm:$0xff] %v9163_v45  ;;  %13187 = vst [vmem:[#allocation20_spill] sm:$0xff] %v9181_v9 }
 0x143   : > { %v9160_v58 = vsel %vm2263_vm6, %v2251_v41, %v2010_v51  ;;  %v2088_v8 = vsel %vm2065_vm0, %v13185_v16, %v1246_v29  ;;  %v13191_v51 = vld [vmem:[#allocation32_spill] sm:$0xff] }
 0x144   : > { %v7378_v30 = vpack.i.bf16 %v9160_v58, %v9163_v45  ;;  %v2121_v5 = vsel %vm2098_vm1, %v2088_v8, %v13188_v21  ;;  %v13194_v8 = vld [vmem:[#allocation37_spill] sm:$0xff] }
 0x146   : > { %v1756_v47 = vpop.permute.xlu1 %1755  ;;  %7379 = vrot.lane.b32.xlu1 %v7378_v30, %s7524_s24  ;;  %v1502_v31 = vpop.permute.xlu0 %1501 }
 0x147   : > { %v2219_v36 = vsel %vm2197_vm4, %v2186_v37, %v1756_v47  ;;  %v2154_v62 = vsel %vm2131_vm2, %v2121_v5, %v1502_v31  ;;  %v13193_v31 = vld [vmem:[#allocation36_spill] sm:$0xff] }
 0x148   : > { %v2252_v57 = vsel %vm2230_vm5, %v2219_v36, %v13186_v61  ;;  %v2187_v41 = vsel %vm2164_vm3, %v2154_v62, %v13191_v51 }
 0x14a   : > { %v2012_v46 = vpop.permute.xlu1 %2011  ;;  %v1248_v52 = vpop.permute.xlu0 %1247 }
 0x14b   : > { %v9178_v6 = vsel %vm2263_vm6, %v2252_v57, %v2012_v46  ;;  %v2089_v42 = vsel %vm2065_vm0, %v13189_v54, %v1248_v52 }
 0x14c   : > { %v7383_v14 = vpack.i.bf16 %v9178_v6, %v9181_v9  ;;  %v2122_v30 = vsel %vm2098_vm1, %v2089_v42, %v13192_v32  ;;  %v13198_v42 = vld [vmem:[#allocation39_spill] sm:$0xff]  ;;  %v13199_v32 = vld [vmem:[#allocation38_spill] sm:$0xff] }
 0x14e   : > { %v1758_v48 = vpop.permute.xlu1 %1757  ;;  %7384 = vrot.lane.b32.xlu0 %v7383_v14, %s7524_s24  ;;  %v13196_v14 = vld [vmem:[#allocation3_spill] sm:$0xff] }
 0x14f   : > { %v2220_v47 = vsel %vm2197_vm4, %v2187_v41, %v1758_v48  ;;  %v2336_v52 = vrot.slane %v13196_v14, 7  ;;  %v13197_v48 = vld [vmem:[#allocation35_spill] sm:$0xff] }
 0x150   : > { %v2253_v11 = vsel %vm2230_vm5, %v2220_v47, %v13194_v8  ;;  %v2337_v62 = vrot.slane %v13197_v48, 7 }
 0x152   : > { %v1504_v29 = vpop.permute.xlu1 %1503  ;;  %v7345_v28 = vpop.permute.xlu0 %7344 }
 0x153   : > { %v2155_v22 = vsel %vm2131_vm2, %v2122_v30, %v1504_v29  ;;  %v7346_v37 = vunpack.i.l.bf16 %v7345_v28  ;;  %v7347_v41 = vunpack.i.h.bf16 %v7345_v28 }
 0x154   : > { %v2188_v16 = vsel %vm2164_vm3, %v2155_v22, %v13193_v31  ;;  %v13200_v22 = vld [vmem:[#allocation40_spill] sm:$0xff]  ;;  %v2401_v31 = vsel %vm2065_vm0, 0.0, %v2337_v62 }
 0x155   : > { %v9208_v21 = vsel %vm2616_vm7, %v2399_v7, %v7346_v37  ;;  %v2400_v7 = vsel %vm2065_vm0, 0.0, %v2336_v52  ;;  %v9233_v8 = vsel %vm2616_vm7, %v2401_v31, %v7347_v41 }
 0x156   : > { %v1760_v36 = vpop.permute.xlu1 %1759  ;;  %v2014_v46 = vpop.permute.xlu0 %2013  ;;  %13195 = vst [vmem:[#allocation27_spill] sm:$0xff] %v9208_v21  ;;  %13201 = vst [vmem:[#allocation25_spill] sm:$0xff] %v9233_v8 }
 0x157   : > { %v2221_v61 = vsel %vm2197_vm4, %v2188_v16, %v1760_v36  ;;  %v9205_v57 = vsel %vm2263_vm6, %v2253_v11, %v2014_v46  ;;  %v13202_v46 = vld [vmem:[#allocation2_spill] sm:$0xff] }
 0x158   : > { %v7388_v5 = vpack.i.bf16 %v9205_v57, %v9208_v21  ;;  %v2254_v43 = vsel %vm2230_vm5, %v2221_v61, %v13198_v42 }
 0x15a   : > { %v2016_v54 = vpop.permute.xlu1 %2015  ;;  %v1250_v51 = vpop.permute.xlu0 %1249  ;;  %7389 = vrot.lane.b32.xlu1 %v7388_v5, %s7524_s24 }
 0x15b   : > { %v9218_v29 = vsel %vm2263_vm6, %v2254_v43, %v2016_v54  ;;  %v2090_v30 = vsel %vm2065_vm0, %v13199_v32, %v1250_v51  ;;  %v13203_v54 = vld [vmem:[#allocation7_spill] sm:$0xff]  ;;  %v13204_v32 = vld [vmem:[#allocation4_spill] sm:$0xff] }
 0x15c   : > { %2566 = vrot.lane.b32.xlu0 %v9218_v29, %s7524_s24  ;;  %v2123_v37 = vsel %vm2098_vm1, %v2090_v30, %v13200_v22 }
 0x15e   : > { %v1506_v47 = vpop.permute.xlu1 %1505  ;;  %v2537_v36 = vpop.permute.xlu0 %2536 }
 0x15f   : > { %v2156_v28 = vsel %vm2131_vm2, %v2123_v37, %v1506_v47  ;;  %v9230_v16 = vsel %vm2616_vm7, %v2400_v7, %v2537_v36  ;;  %v2338_v7 = vrot.slane %v8654_v12, 7 }
 0x160   : > { %2749 = vrot.lane.b32.xlu0 %v9233_v8, %s7524_s24  ;;  %2745 = vrot.lane.b32.xlu1 %v9230_v16, %s7524_s24  ;;  %v2189_v61 = vsel %vm2164_vm3, %v2156_v28, %v13202_v46 }
 0x162   : > { %v1762_v11 = vpop.permute.xlu1 %1761  ;;  %v1252_v5 = vpop.permute.xlu0 %1251 }
 0x163   : > { %v2222_v52 = vsel %vm2197_vm4, %v2189_v61, %v1762_v11  ;;  %v2091_v51 = vsel %vm2065_vm0, %v8481_v19, %v1252_v5  ;;  %v13205_v11 = vld [vmem:[#allocation41_spill] sm:$0xff]  ;;  %v2402_v5 = vsel %vm2065_vm0, 0.0, %v2338_v7 }
 0x164   : > { %v2255_v42 = vsel %vm2230_vm5, %v2222_v52, %v13203_v54  ;;  %v2124_v30 = vsel %vm2098_vm1, %v2091_v51, %v13204_v32  ;;  %v13206_v54 = vld [vmem:[#allocation5_spill] sm:$0xff] }
 0x166   : > { %v2018_v62 = vpop.permute.xlu1 %2017  ;;  %v1508_v43 = vpop.permute.xlu0 %1507 }
 0x167   : > { %v9247_v41 = vsel %vm2263_vm6, %v2255_v42, %v2018_v62  ;;  %v2157_v37 = vsel %vm2131_vm2, %v2124_v30, %v1508_v43 }
 0x168   : > { %2568 = vrot.lane.b32.xlu1 %v9247_v41, %s7524_s24  ;;  %v2190_v36 = vsel %vm2164_vm3, %v2157_v37, %v8591_v63 }
 0x16a   : > { %v1764_v47 = vpop.permute.xlu1 %1763  ;;  %v1254_v22 = vpop.permute.xlu0 %1253 }
 0x16b   : > { %v2223_v28 = vsel %vm2197_vm4, %v2190_v36, %v1764_v47  ;;  %v2092_v46 = vsel %vm2065_vm0, %v13205_v11, %v1254_v22  ;;  %v13208_v47 = vld [vmem:[#allocation8_spill] sm:$0xff] }
 0x16c   : > { %v2125_v52 = vsel %vm2098_vm1, %v2092_v46, %v8616_v39  ;;  %v2256_v42 = vsel %vm2230_vm5, %v2223_v28, %v13206_v54  ;;  %v2339_v22 = vrot.slane %v13208_v47, 7  ;;  %v13209_v39 = vld [vmem:[#allocation9_spill] sm:$0xff] }
 0x16e   : > { %v1510_v31 = vpop.permute.xlu1 %1509  ;;  %v7350_v19 = vpop.permute.xlu0 %7349 }
 0x16f   : > { %v7351_v61 = vunpack.i.l.bf16 %v7350_v19  ;;  %v2158_v63 = vsel %vm2131_vm2, %v2125_v52, %v1510_v31  ;;  %v7352_v28 = vunpack.i.h.bf16 %v7350_v19  ;;  %v13210_v31 = vld [vmem:[#allocation10_spill] sm:$0xff] }
 0x170   : > { %v2191_v7 = vsel %vm2164_vm3, %v2158_v63, %v13209_v39 }
 0x171   : > { %v9270_v32 = vsel %vm2616_vm7, %v2402_v5, %v7351_v61  ;;  %v2403_v61 = vsel %vm2065_vm0, 0.0, %v2339_v22  ;;  %v13211_v5 = vld [vmem:[#allocation13_spill] sm:$0xff]  ;;  %v13214_v22 = vld [vmem:[#allocation12_spill] sm:$0xff] }
 0x172   : > { %v1256_v62 = vpop.permute.xlu1 %1255  ;;  %v2020_v43 = vpop.permute.xlu0 %2019  ;;  %13207 = vst [vmem:[#allocation28_spill] sm:$0xff] %v9270_v32  ;;  %v9291_v19 = vsel %vm2616_vm7, %v2403_v61, %v7352_v28  ;;  %v2340_v39 = vrot.slane %v13214_v22, 7 }
 0x173   : > { %v9267_v51 = vsel %vm2263_vm6, %v2256_v42, %v2020_v43  ;;  %v2093_v11 = vsel %vm2065_vm0, %v13210_v31, %v1256_v62  ;;  %v13212_v42 = vld [vmem:[#allocation15_spill] sm:$0xff]  ;;  %13213 = vst [vmem:[#allocation26_spill] sm:$0xff] %v9291_v19 }
 0x174   : > { %v7393_v30 = vpack.i.bf16 %v9267_v51, %v9270_v32  ;;  %v2126_v52 = vsel %vm2098_vm1, %v2093_v11, %v13211_v5  ;;  %v2404_v28 = vsel %vm2065_vm0, 0.0, %v2340_v39  ;;  %v13220_v39 = vld [vmem:[#allocation11_spill] sm:$0xff] }
 0x176   : > { %v1512_v37 = vpop.permute.xlu1 %1511  ;;  %v1766_v36 = vpop.permute.xlu0 %1765  ;;  %7394 = vrot.lane.b32.xlu0 %v7393_v30, %s7524_s24 }
 0x177   : > { %v2224_v46 = vsel %vm2197_vm4, %v2191_v7, %v1766_v36  ;;  %v2159_v63 = vsel %vm2131_vm2, %v2126_v52, %v1512_v37  ;;  %v13215_v36 = vld [vmem:[#allocation16_spill] sm:$0xff]  ;;  %v13217_v52 = vld [vmem:[#allocation42_spill] sm:$0xff] }
 0x178   : > { %v2257_v43 = vsel %vm2230_vm5, %v2224_v46, %v13212_v42  ;;  %v2192_v31 = vsel %vm2164_vm3, %v2159_v63, %v13215_v36  ;;  %v13216_v46 = vld [vmem:[#allocation6_spill] sm:$0xff] }
 0x17a   : > { %v1258_v54 = vpop.permute.xlu1 %1257  ;;  %v2022_v21 = vpop.permute.xlu0 %2021 }
 0x17b   : > { %v9288_v30 = vsel %vm2263_vm6, %v2257_v43, %v2022_v21  ;;  %v2094_v37 = vsel %vm2065_vm0, %v13216_v46, %v1258_v54  ;;  %v13218_v43 = vld [vmem:[#allocation18_spill] sm:$0xff] }
 0x17c   : > { %v7398_v62 = vpack.i.bf16 %v9288_v30, %v9291_v19  ;;  %v2127_v3 = vsel %vm2098_vm1, %v2094_v37, %v13218_v43  ;;  %v13221_v46 = vld [vmem:[#allocation14_spill] sm:$0xff] }
 0x17e   : > { %v7355_v7 = vpop.permute.xlu1 %7354  ;;  %v1768_v11 = vpop.permute.xlu0 %1767  ;;  %7399 = vrot.lane.b32.xlu1 %v7398_v62, %s7524_s24 }
 0x17f   : > { %v7356_v21 = vunpack.i.l.bf16 %v7355_v7  ;;  %v2225_v5 = vsel %vm2197_vm4, %v2192_v31, %v1768_v11  ;;  %v2341_v31 = vrot.slane %v13220_v39, 7  ;;  %v7357_v37 = vunpack.i.h.bf16 %v7355_v7 }
 0x180   : > { %v2258_v42 = vsel %vm2230_vm5, %v2225_v5, %v13217_v52 }
 0x181   : > { %v9311_v62 = vsel %vm2616_vm7, %v2404_v28, %v7356_v21  ;;  %v2405_v21 = vsel %vm2065_vm0, 0.0, %v2341_v31 }
 0x182   : > { %v2024_v61 = vpop.permute.xlu1 %2023  ;;  %v1514_v22 = vpop.permute.xlu0 %1513  ;;  %13219 = vst [vmem:[#allocation31_spill] sm:$0xff] %v9311_v62 }
 0x183   : > { %v9308_v63 = vsel %vm2263_vm6, %v2258_v42, %v2024_v61  ;;  %v2160_v54 = vsel %vm2131_vm2, %v2127_v3, %v1514_v22 }
 0x184   : > { %v7403_v36 = vpack.i.bf16 %v9308_v63, %v9311_v62  ;;  %v2193_v5 = vsel %vm2164_vm3, %v2160_v54, %v13221_v46  ;;  %v9330_v54 = vsel %vm2616_vm7, %v2405_v21, %v7357_v37 }
 0x185   : > { %13222 = vst [vmem:[#allocation29_spill] sm:$0xff] %v9330_v54 }
 0x186   : > { %v1770_v11 = vpop.permute.xlu1 %1769  ;;  %v1260_v52 = vpop.permute.xlu0 %1259  ;;  %7404 = vrot.lane.b32.xlu0 %v7403_v36, %s7524_s24  ;;  %v13223_v36 = vld [vmem:[#allocation17_spill] sm:$0xff] }
 0x187   : > { %v2226_v61 = vsel %vm2197_vm4, %v2193_v5, %v1770_v11  ;;  %v2095_v42 = vsel %vm2065_vm0, %v8817_v56, %v1260_v52  ;;  %v3034_v56 = vld [vmem:[%s12905_s1 + $0x208] sm:$0xff]  ;;  %v3036_v5 = vld [vmem:[%s12905_s1 + $0x218] sm:$0xff]  ;;  %v2342_v52 = vrot.slane %v8990_v27, 7 }
 0x188   : > { %v2259_v3 = vsel %vm2230_vm5, %v2226_v61, %v8921_v53  ;;  %v2128_v31 = vsel %vm2098_vm1, %v2095_v42, %v13223_v36  ;;  %v13224_v42 = vld [vmem:[#allocation21_spill] sm:$0xff] }
 0x189   : > { %v2406_v36 = vsel %vm2065_vm0, 0.0, %v2342_v52 }
 0x18a   : > { %v2026_v28 = vpop.permute.xlu1 %2025  ;;  %v1516_v22 = vpop.permute.xlu0 %1515 }
 0x18b   : > { %v9327_v43 = vsel %vm2263_vm6, %v2259_v3, %v2026_v28  ;;  %v2161_v53 = vsel %vm2131_vm2, %v2128_v31, %v1516_v22  ;;  %v6837_v28 = vpack.c.bf16 %v3036_v5, %v3034_v56  ;;  %v13225_v5 = vmov 0 }
 0x18c   : > { %v7408_v7 = vpack.i.bf16 %v9327_v43, %v9330_v54  ;;  %v2194_v37 = vsel %vm2164_vm3, %v2161_v53, %v8937_v49  ;;  %v3033_v53 = vld [vmem:[%s12905_s1 + $0x200] sm:$0xff]  ;;  %v13226_v5 = vsel %vm9371_vm8, 4294967295, %v13225_v5 }
 0x18d   : > { %6838 = vmatprep.subr.bf16.mxu0 %v6837_v28  ;;  %13227 = vst [vmem:[#allocation30_spill] sm:$0xff] %v13226_v5 }
 0x18e   : > { %v1772_v11 = vpop.permute.xlu1 %1771  ;;  %v1262_v46 = vpop.permute.xlu0 %1261  ;;  %7409 = vrot.lane.b32.xlu1 %v7408_v7, %s7524_s24 }
 0x18f   : > { %v2227_v3 = vsel %vm2197_vm4, %v2194_v37, %v1772_v11  ;;  %v2096_v22 = vsel %vm2065_vm0, %v13224_v42, %v1262_v46  ;;  %v3035_v11 = vld [vmem:[%s12905_s1 + $0x210] sm:$0xff]  ;;  %v2343_v37 = vrot.slane %v8967_v33, 7 }
 0x190   : > { %v2129_v31 = vsel %vm2098_vm1, %v2096_v22, %v8970_v2  ;;  %v2260_v27 = vsel %vm2230_vm5, %v2227_v3, %v9003_v38  ;;  %v6839_v52 = vpack.c.bf16 %v3035_v11, %v3033_v53 }
 0x191   : > { %v2407_v11 = vsel %vm2065_vm0, 0.0, %v2343_v37 }
 0x192   : > { %v1518_v61 = vpop.permute.xlu1 %1517  ;;  %v7360_v21 = vpop.permute.xlu0 %7359 }
 0x193   : > { %v7361_v7 = vunpack.i.l.bf16 %v7360_v21  ;;  %v2162_v46 = vsel %vm2131_vm2, %v2129_v31, %v1518_v61  ;;  %v7362_v3 = vunpack.i.h.bf16 %v7360_v21 }
 0x195   : > { %v9366_v2 = vsel %vm2616_vm7, %v2406_v36, %v7361_v7  ;;  %v3038_v7 = vld [vmem:[%s12905_s1 + $0x228] sm:$0xff]  ;;  %v12980_v36 = vmov 0.0  }
 0x196   : > { %v1264_v54 = vpop.permute.xlu1 %1263  ;;  %v2028_v49 = vpop.permute.xlu0 %2027 }
 0x197   : > { %v9363_v56 = vsel %vm2263_vm6, %v2260_v27, %v2028_v49  ;;  %v2195_v27 = vsel %vm2164_vm3, %v2162_v46, %v9017_v35  ;;  %v2097_v42 = vsel %vm2065_vm0, %v8983_v50, %v1264_v54  ;;  %v3040_v35 = vld [vmem:[%s12905_s1 + $0x238] sm:$0xff]  ;;  %v3037_v50 = vld [vmem:[%s12905_s1 + $0x220] sm:$0xff]  ;;  %v3039_v54 = vld [vmem:[%s12905_s1 + $0x230] sm:$0xff] }
 0x198   : > { %v7413_v38 = vpack.i.bf16 %v9363_v56, %v9366_v2  ;;  %v6841_v21 = vpack.c.bf16 %v3040_v35, %v3038_v7  ;;  %v6843_v31 = vpack.c.bf16 %v3039_v54, %v3037_v50  ;;  %v13228_v49 = vld [vmem:[#allocation24_spill] sm:$0xff]  ;;  %v9410_v35 = vsel %vm2616_vm7, %v2407_v11, %v7362_v3  ;;  %v3042_v54 = vld [vmem:[%s12905_s1 + $0x248] sm:$0xff] }
 0x199   : > { %v2424_v53 = vrot.slane %v13228_v49, 1  ;;  %13229 = vst [vmem:[#allocation32_spill] sm:$0xff] %v9410_v35  ;;  %v2344_v50 = vrot.slane %v9102_v10, 7  ;;  %v3041_v49 = vld [vmem:[%s12905_s1 + $0x240] sm:$0xff]  ;;  %v2425_v11 = vrot.slane %v8098_v13, 1  ;;  %v2426_v13 = vrot.slane %v8103_v25, 1 }
 0x19a   : > { %v9376_v28 = vpop.permute.xlu1 %2713  ;;  %v1774_v61 = vpop.permute.xlu0 %1773  ;;  %7414 = vrot.lane.b32.xlu0 %v7413_v38, %s7524_s24  ;;  %v3048_v25 = vld [vmem:[%s12905_s1 + $0x278] sm:$0xff] }
 0x19b   : > { %v2228_v22 = vsel %vm2197_vm4, %v2195_v27, %v1774_v61  ;;  %6696 = vmatprep.mubr.msk.f32.mxu0 %vm9371_vm8, %v9376_v28  ;;  %v2130_v27 = vsel %vm2098_vm1, %v2097_v42, %v9042_v4 }
 0x19c   : > { %3237 = vmatmul.mubr.f32.vlgmr.msra.gmra.mrb[0].mxu0 %v12980_v36  ;;  %v2261_v38 = vsel %vm2230_vm5, %v2228_v22, %v9033_v0  ;;  %v9422_v22 = vsel %vm2263_vm6, %v2424_v53, 0.0  ;;  %v3043_v53 = vld [vmem:[%s12905_s1 + $0x250] sm:$0xff] }
 0x19d   : > { %6840 = vmatpush1.bf16.msra.mxu0 %v6839_v52 }
 0x19e   : > { %v2030_v46 = vpop.permute.xlu1 %2029  ;;  %v1520_v61 = vpop.permute.xlu0 %1519  ;;  %6842 = vmatprep.subr.bf16.mxu0 %v6841_v21 }
 0x19f   : > { %v9407_v7 = vsel %vm2263_vm6, %v2261_v38, %v2030_v46  ;;  %v2163_v52 = vsel %vm2131_vm2, %v2130_v27, %v1520_v61  ;;  %v2408_v38 = vsel %vm2065_vm0, 0.0, %v2344_v50 }
 0x1a0   : > { %v7418_v37 = vpack.i.bf16 %v9407_v7, %v9410_v35  ;;  %v2196_v4 = vsel %vm2164_vm3, %v2163_v52, %v9061_v1  ;;  %v3044_v1 = vld [vmem:[%s12905_s1 + $0x258] sm:$0xff]  ;;  %v6847_v52 = vpack.c.bf16 %v3043_v53, %v3041_v49  ;;  %v3046_v49 = vld [vmem:[%s12905_s1 + $0x268] sm:$0xff]  ;;  %v2347_v53 = vrot.slane %v9133_v34, 7 }
 0x1a1   : > { %6844 = vmatpush1.bf16.msra.mxu0 %v6843_v31  ;;  %v6845_v31 = vpack.c.bf16 %v3044_v1, %v3042_v54 }
 0x1a2   : > { %v9416_v0 = vpop.permute.xlu1 %2717  ;;  %v1776_v42 = vpop.permute.xlu0 %1775  ;;  %7419 = vrot.lane.b32.xlu1 %v7418_v37, %s7524_s24 }
 0x1a3   : > { %v2229_v3 = vsel %vm2197_vm4, %v2196_v4, %v1776_v42  ;;  %v2938_v21 = vsel %vm2616_vm7, %v9422_v22, %v9416_v0  ;;  %6846 = vmatprep.subr.bf16.mxu0 %v6845_v31  ;;  %v2345_v4 = vrot.slane %v9105_v17, 7  ;;  %v2346_v42 = vrot.slane %v9108_v26, 7 }
 0x1a4   : > { %3241 = vmatprep.mubr.f32.mxu0 %v2938_v21  ;;  %v2262_v27 = vsel %vm2230_vm5, %v2229_v3, %v9089_v40  ;;  %v9463_v3 = vsel %vm2263_vm6, %v2425_v11, 0.0 }
 0x1a5   : > { %3242 = vmatmul.mubr.f32.gmra.mrb[2].mxu0 %v9028_v18  ;;  %v2409_v11 = vsel %vm2065_vm0, 0.0, %v2345_v4 }
 0x1a6   : > { %v2553_v46 = vpop.permute.xlu1 %2552  ;;  %v2032_v61 = vpop.permute.xlu0 %2031  ;;  %6848 = vmatpush1.bf16.msra.mxu0 %v6847_v52 }
 0x1a7   : > { %v9446_v18 = vsel %vm2616_vm7, %v2408_v38, %v2553_v46  ;;  %v9449_v37 = vsel %vm2263_vm6, %v2262_v27, %v2032_v61  ;;  %v2410_v46 = vsel %vm2065_vm0, 0.0, %v2346_v42  ;;  %v6849_v38 = vpack.c.bf16 %v3048_v25, %v3046_v49  ;;  %v3045_v27 = vld [vmem:[%s12905_s1 + $0x260] sm:$0xff]  ;;  %v3047_v61 = vld [vmem:[%s12905_s1 + $0x270] sm:$0xff] }
 0x1a8   : > { %2582 = vrot.lane.b32.xlu0 %v9449_v37, %s7524_s24  ;;  %2777 = vrot.lane.b32.xlu1 %v9446_v18, %s7524_s24  ;;  %v2427_v42 = vrot.slane %v8175_v55, 1  ;;  %v9500_v25 = vsel %vm2263_vm6, %v2426_v13, 0.0  ;;  %v6851_v31 = vpack.c.bf16 %v3047_v61, %v3045_v27  ;;  %v3050_v27 = vld [vmem:[%s12905_s1 + $0x288] sm:$0xff]  ;;  %v3052_v61 = vld [vmem:[%s12905_s1 + $0x298] sm:$0xff] }
 0x1a9   : > { %6850 = vmatprep.subr.bf16.mxu0 %v6849_v38  ;;  %v3051_v38 = vld [vmem:[%s12905_s1 + $0x290] sm:$0xff] }
 0x1aa   : > { %v9458_v40 = vpop.permute.xlu0 %7364  ;;  %v9460_v50 = vpop.permute.xlu1 %7369  ;;  %6852 = vmatpush1.bf16.msra.mxu0 %v6851_v31  ;;  %v6853_v31 = vpack.c.bf16 %v3052_v61, %v3050_v27 }
 0x1ab   : > { %13230 = vst [vmem:[#allocation33_spill] sm:$0xff] %v9458_v40  ;;  %13231 = vst [vmem:[#allocation36_spill] sm:$0xff] %v9460_v50  ;;  %v7367_v21 = vunpack.i.h.bf16 %v9458_v40  ;;  %v12982_v54 = vunpack.i.l.bf16 %v9458_v40  ;;  %v7372_v1 = vunpack.i.h.bf16 %v9460_v50  ;;  %v13233_v55 = vunpack.i.l.bf16 %v9460_v50 }
 0x1ac   : > { %6854 = vmatprep.subr.bf16.mxu0 %v6853_v31  ;;  %v3056_v31 = vld [vmem:[%s12905_s1 + $0x2b8] sm:$0xff] }
 0x1ad   : > { %v2939_v52 = vsel %vm2616_vm7, %v9463_v3, %v12982_v54  ;;  %v9489_v36 = vsel %vm2616_vm7, %v2409_v11, %v7367_v21  ;;  %v9492_v4 = vsel %vm2616_vm7, %v2410_v46, %v7372_v1  ;;  %v2940_v1 = vsel %vm2616_vm7, %v9500_v25, %v13233_v55 }
 0x1ae   : > { %3246 = vmatprep.mubr.f32.mxu0 %v2939_v52  ;;  %2781 = vrot.lane.b32.xlu0 %v9489_v36, %s7524_s24  ;;  %v9497_v49 = vpop.permute.xlu0 %7374  ;;  %v2411_v11 = vsel %vm2065_vm0, 0.0, %v2347_v53  ;;  %v9518_v46 = vsel %vm2263_vm6, %v2427_v42, 0.0  ;;  %v3049_v53 = vld [vmem:[%s12905_s1 + $0x280] sm:$0xff]  ;;  %v2428_v42 = vrot.slane %v8178_v20, 1  ;;  %v2348_v55 = vrot.slane %v9160_v58, 7  ;;  %v3054_v20 = vld [vmem:[%s12905_s1 + $0x2a8] sm:$0xff] }
 0x1af   : > { %13232 = vst [vmem:[#allocation37_spill] sm:$0xff] %v9497_v49  ;;  %v7377_v54 = vunpack.i.h.bf16 %v9497_v49  ;;  %v12984_v21 = vunpack.i.l.bf16 %v9497_v49  ;;  %2785 = vrot.lane.b32.xlu1 %v9492_v4, %s7524_s24  ;;  %3247 = vmatmul.mubr.f32.gmra.mrb[4].mxu0 %v9080_v44  ;;  %v6855_v52 = vpack.c.bf16 %v3051_v38, %v3049_v53 }
 0x1b0   : > { %3251 = vmatprep.mubr.f32.mxu0 %v2940_v1  ;;  %v2412_v61 = vsel %vm2065_vm0, 0.0, %v2348_v55  ;;  %v3055_v55 = vld [vmem:[%s12905_s1 + $0x2b0] sm:$0xff] }
 0x1b1   : > { %v9513_v13 = vsel %vm2616_vm7, %v2411_v11, %v7377_v54  ;;  %v2941_v54 = vsel %vm2616_vm7, %v9518_v46, %v12984_v21  ;;  %6856 = vmatpush1.bf16.msra.mxu0 %v6855_v52  ;;  %v6857_v52 = vpack.c.bf16 %v3056_v31, %v3054_v20  ;;  %v2349_v20 = vrot.slane %v9178_v6, 7 }
 0x1b2   : > { %2789 = vrot.lane.b32.xlu0 %v9513_v13, %s7524_s24 }
 0x1b3   : > { %3252 = vmatmul.mubr.f32.gmra.mrb[6].mxu0 %v9119_v15  ;;  %6858 = vmatprep.subr.bf16.mxu0 %v6857_v52  ;;  %v2413_v21 = vsel %vm2065_vm0, 0.0, %v2349_v20  ;;  %v3058_v52 = vld [vmem:[%s12905_s1 + $0x2c8] sm:$0xff] }
 0x1b4   : > { %3256 = vmatprep.mubr.f32.mxu0 %v2941_v54  ;;  %v9546_v54 = vsel %vm2263_vm6, %v2428_v42, 0.0  ;;  %v3053_v42 = vld [vmem:[%s12905_s1 + $0x2a0] sm:$0xff] }
 0x1b7   : > { %3257 = vmatmul.mubr.f32.gmra.mrb[8].mxu0 %v9122_v60 }
 0x1b8   : > { %v9540_v1 = vpop.permute.xlu1 %7379 }
 0x1b9   : > { %13234 = vst [vmem:[#allocation3_spill] sm:$0xff] %v9540_v1  ;;  %v7382_v11 = vunpack.i.h.bf16 %v9540_v1  ;;  %v12983_v27 = vunpack.i.l.bf16 %v9540_v1 }
 0x1bb   : > { %v9555_v53 = vsel %vm2616_vm7, %v2412_v61, %v7382_v11  ;;  %v2942_v38 = vsel %vm2616_vm7, %v9546_v54, %v12983_v27  ;;  %v6859_v11 = vpack.c.bf16 %v3055_v55, %v3053_v42  ;;  %v2429_v61 = vrot.slane %v8276_v23, 1  ;;  %v3060_v23 = vld [vmem:[%s12905_s1 + $0x2d8] sm:$0xff] }
 0x1bc   : > { %2793 = vrot.lane.b32.xlu1 %v9555_v53, %s7524_s24  ;;  %3261 = vmatprep.mubr.f32.mxu0 %v2942_v38 }
 0x1bd   : > { %3262 = vmatmul.mubr.f32.gmra.mrb[10].mxu0 %v9139_v59  ;;  %v9578_v35 = vsel %vm2263_vm6, %v2429_v61, 0.0  ;;  %v3057_v61 = vld [vmem:[%s12905_s1 + $0x2c0] sm:$0xff] }
 0x1be   : > { %6860 = vmatpush1.bf16.msra.mxu0 %v6859_v11  ;;  %v6861_v11 = vpack.c.bf16 %v3060_v23, %v3058_v52  ;;  %v2350_v52 = vrot.slane %v9205_v57, 7  ;;  %v2351_v23 = vrot.slane %v9218_v29, 7 }
 0x1c0   : > { %v9572_v31 = vpop.permute.xlu0 %7384  ;;  %6862 = vmatprep.subr.bf16.mxu0 %v6861_v11  ;;  %v3064_v11 = vld [vmem:[%s12905_s1 + $0x2f8] sm:$0xff]  ;;  %v2415_v49 = vsel %vm2065_vm0, 0.0, %v2351_v23 }
 0x1c1   : > { %13235 = vst [vmem:[#allocation35_spill] sm:$0xff] %v9572_v31  ;;  %v7387_v38 = vunpack.i.h.bf16 %v9572_v31  ;;  %v12986_v27 = vunpack.i.l.bf16 %v9572_v31 }
 0x1c3   : > { %v9587_v42 = vsel %vm2616_vm7, %v2413_v21, %v7387_v38  ;;  %v2943_v55 = vsel %vm2616_vm7, %v9578_v35, %v12986_v27  ;;  %v3059_v21 = vld [vmem:[%s12905_s1 + $0x2d0] sm:$0xff]  ;;  %v2430_v38 = vrot.slane %v13183_v24, 1 }
 0x1c4   : > { %2797 = vrot.lane.b32.xlu0 %v9587_v42, %s7524_s24  ;;  %3266 = vmatprep.mubr.f32.mxu0 %v2943_v55  ;;  %v6863_v20 = vpack.c.bf16 %v3059_v21, %v3057_v61  ;;  %v3062_v55 = vld [vmem:[%s12905_s1 + $0x2e8] sm:$0xff]  ;;  %v3061_v61 = vld [vmem:[%s12905_s1 + $0x2e0] sm:$0xff]  ;;  %v3063_v24 = vld [vmem:[%s12905_s1 + $0x2f0] sm:$0xff] }
 0x1c5   : > { %3267 = vmatmul.mubr.f32.gmra.mrb[12].mxu0 %v9163_v45  ;;  %v6865_v27 = vpack.c.bf16 %v3064_v11, %v3062_v55  ;;  %v6867_v1 = vpack.c.bf16 %v3063_v24, %v3061_v61  ;;  %v2414_v55 = vsel %vm2065_vm0, 0.0, %v2350_v52  ;;  %v9624_v11 = vsel %vm2263_vm6, %v2430_v38, 0.0  ;;  %v3065_v61 = vld [vmem:[%s12905_s1 + $0x300] sm:$0xff] }
 0x1c6   : > { %6864 = vmatpush1.bf16.msra.mxu0 %v6863_v20  ;;  %v2432_v38 = vrot.slane %v13196_v14, 1  ;;  %v3067_v14 = vld [vmem:[%s12905_s1 + $0x310] sm:$0xff] }
 0x1c7   : > { %6866 = vmatprep.subr.bf16.mxu0 %v6865_v27 }
 0x1c8   : > { %v9662_v24 = vsel %vm2263_vm6, %v2432_v38, 0.0  ;;  %v3072_v38 = vld [vmem:[%s12905_s1 + $0x338] sm:$0xff] }
 0x1ca   : > { %6868 = vmatpush1.bf16.msra.mxu0 %v6867_v1 }
 0x1cc   : > { %v9611_v31 = vpop.permute.xlu1 %7389 }
 0x1cd   : > { %13236 = vst [vmem:[#allocation39_spill] sm:$0xff] %v9611_v31  ;;  %v7392_v21 = vunpack.i.h.bf16 %v9611_v31  ;;  %v12993_v20 = vunpack.i.l.bf16 %v9611_v31 }
 0x1ce   : > { %v2567_v45 = vpop.permute.xlu0 %2566 }
 0x1cf   : > { %v9627_v50 = vsel %vm2616_vm7, %v2415_v49, %v2567_v45  ;;  %v9630_v59 = vsel %vm2616_vm7, %v2414_v55, %v7392_v21  ;;  %v2944_v27 = vsel %vm2616_vm7, %v9624_v11, %v12993_v20  ;;  %v3066_v45 = vld [vmem:[%s12905_s1 + $0x308] sm:$0xff]  ;;  %v3068_v49 = vld [vmem:[%s12905_s1 + $0x318] sm:$0xff]  ;;  %v6871_v21 = vpack.c.bf16 %v3067_v14, %v3065_v61 }
 0x1d0   : > { %13237 = vst [vmem:[#allocation38_spill] sm:$0xff] %v9627_v50  ;;  %2805 = vrot.lane.b32.xlu0 %v9627_v50, %s7524_s24  ;;  %2801 = vrot.lane.b32.xlu1 %v9630_v59, %s7524_s24  ;;  %v6869_v52 = vpack.c.bf16 %v3068_v49, %v3066_v45  ;;  %v2352_v55 = vrot.slane %v9247_v41, 7  ;;  %v3070_v49 = vld [vmem:[%s12905_s1 + $0x328] sm:$0xff] }
 0x1d1   : > { %3271 = vmatprep.mubr.f32.mxu0 %v2944_v27  ;;  %v13240_v27 = vmov 0.0  }
 0x1d2   : > { %3272 = vmatmul.mubr.f32.gmra.mrb[14].mxu0 %v9181_v9  ;;  %v9648_v1 = vpop.permute.xlu1 %2745  ;;  %v9650_v23 = vpop.permute.xlu0 %2749  ;;  %6870 = vmatprep.subr.bf16.mxu0 %v6869_v52  ;;  %v6873_v52 = vpack.c.bf16 %v3072_v38, %v3070_v49  ;;  %v2416_v61 = vsel %vm2065_vm0, 0.0, %v2352_v55  ;;  %v3076_v55 = vld [vmem:[%s12905_s1 + $0x358] sm:$0xff]  ;;  %v3073_v38 = vld [vmem:[%s12905_s1 + $0x340] sm:$0xff] }
 0x1d3   : > { %13238 = vst [vmem:[#allocation40_spill] sm:$0xff] %v9648_v1  ;;  %13239 = vst [vmem:[#allocation2_spill] sm:$0xff] %v9650_v23  ;;  %6698 = vmatprep.mubr.msk.f32.mxu0 %vm9371_vm8, %v9648_v1  ;;  %v2946_v45 = vsel %vm2616_vm7, %v9662_v24, %v9650_v23  ;;  %6872 = vmatpush1.bf16.msra.mxu0 %v6871_v21  ;;  %v3069_v21 = vld [vmem:[%s12905_s1 + $0x320] sm:$0xff] }
 0x1d4   : > { %6874 = vmatprep.subr.bf16.mxu0 %v6873_v52 }
 0x1d6   : > { %3277 = vmatmul.mubr.f32.gmra.mrb[16].mxu0 %v13240_v27 }
 0x1d7   : > { %3282 = vmatprep.mubr.f32.mxu0 %v2946_v45  ;;  %v3071_v45 = vld [vmem:[%s12905_s1 + $0x330] sm:$0xff] }
 0x1d8   : > { %v6875_v49 = vpack.c.bf16 %v3071_v45, %v3069_v21  ;;  %v2433_v21 = vrot.slane %v13197_v48, 1  ;;  %v2353_v45 = vrot.slane %v9267_v51, 7  ;;  %v3077_v48 = vld [vmem:[%s12905_s1 + $0x360] sm:$0xff] }
 0x1da   : > { %3283 = vmatmul.mubr.f32.gmra.mrb[18].mxu0 %v9230_v16  ;;  %v2569_v14 = vpop.permute.xlu1 %2568  ;;  %v3074_v16 = vld [vmem:[%s12905_s1 + $0x348] sm:$0xff] }
 0x1db   : > { %v9678_v20 = vsel %vm2616_vm7, %v2416_v61, %v2569_v14  ;;  %6876 = vmatpush1.bf16.msra.mxu0 %v6875_v49  ;;  %v6877_v52 = vpack.c.bf16 %v3076_v55, %v3074_v16  ;;  %v3075_v61 = vld [vmem:[%s12905_s1 + $0x350] sm:$0xff]  ;;  %v3078_v16 = vld [vmem:[%s12905_s1 + $0x368] sm:$0xff]  ;;  %v3080_v55 = vld [vmem:[%s12905_s1 + $0x378] sm:$0xff] }
 0x1dc   : > { %2809 = vrot.lane.b32.xlu1 %v9678_v20, %s7524_s24  ;;  %v6879_v14 = vpack.c.bf16 %v3075_v61, %v3073_v38  ;;  %v2417_v38 = vsel %vm2065_vm0, 0.0, %v2353_v45  ;;  %v6881_v61 = vpack.c.bf16 %v3080_v55, %v3078_v16  ;;  %v2354_v45 = vrot.slane %v9288_v30, 7 }
 0x1dd   : > { %6878 = vmatprep.subr.bf16.mxu0 %v6877_v52  ;;  %v9717_v52 = vsel %vm2263_vm6, %v2433_v21, 0.0  ;;  %v2434_v21 = vrot.slane %v8654_v12, 1  ;;  %v3081_v12 = vld [vmem:[%s12905_s1 + $0x380] sm:$0xff] }
 0x1df   : > { %6880 = vmatpush1.bf16.msra.mxu0 %v6879_v14  ;;  %v3079_v14 = vld [vmem:[%s12905_s1 + $0x370] sm:$0xff] }
 0x1e0   : > { %v6883_v9 = vpack.c.bf16 %v3079_v14, %v3077_v48  ;;  %6882 = vmatprep.subr.bf16.mxu0 %v6881_v61  ;;  %v9749_v48 = vsel %vm2263_vm6, %v2434_v21, 0.0  ;;  %v3083_v61 = vld [vmem:[%s12905_s1 + $0x390] sm:$0xff]  ;;  %v2435_v21 = vrot.slane %v13208_v47, 1  ;;  %v3085_v47 = vld [vmem:[%s12905_s1 + $0x3a0] sm:$0xff] }
 0x1e3   : > { %6884 = vmatpush1.bf16.msra.mxu0 %v6883_v9  ;;  %v2418_v9 = vsel %vm2065_vm0, 0.0, %v2354_v45  ;;  %v2355_v45 = vrot.slane %v9308_v63, 7 }
 0x1e8   : > { %v9702_v49 = vpop.permute.xlu0 %7394 }
 0x1e9   : > { %13241 = vst [vmem:[#allocation7_spill] sm:$0xff] %v9702_v49  ;;  %v7397_v50 = vunpack.i.h.bf16 %v9702_v49  ;;  %v13242_v1 = vunpack.i.l.bf16 %v9702_v49 }
 0x1eb   : > { %v9723_v23 = vsel %vm2616_vm7, %v2417_v38, %v7397_v50  ;;  %v2947_v31 = vsel %vm2616_vm7, %v9717_v52, %v13242_v1  ;;  %v3082_v1 = vld [vmem:[%s12905_s1 + $0x388] sm:$0xff] }
 0x1ec   : > { %2813 = vrot.lane.b32.xlu0 %v9723_v23, %s7524_s24  ;;  %3288 = vmatprep.mubr.f32.mxu0 %v2947_v31  ;;  %v3084_v31 = vld [vmem:[%s12905_s1 + $0x398] sm:$0xff] }
 0x1ed   : > { %3289 = vmatmul.mubr.f32.gmra.mrb[20].mxu0 %v9233_v8  ;;  %v6885_v38 = vpack.c.bf16 %v3084_v31, %v3082_v1  ;;  %v6887_v8 = vpack.c.bf16 %v3083_v61, %v3081_v12  ;;  %v3086_v12 = vld [vmem:[%s12905_s1 + $0x3a8] sm:$0xff]  ;;  %v3087_v61 = vld [vmem:[%s12905_s1 + $0x3b0] sm:$0xff] }
 0x1ef   : > { %6886 = vmatprep.subr.bf16.mxu0 %v6885_v38 }
 0x1f0   : > { %v9734_v50 = vpop.permute.xlu1 %7399  ;;  %6888 = vmatpush1.bf16.msra.mxu0 %v6887_v8  ;;  %v2419_v8 = vsel %vm2065_vm0, 0.0, %v2355_v45 }
 0x1f1   : > { %13243 = vst [vmem:[#allocation4_spill] sm:$0xff] %v9734_v50  ;;  %v7402_v16 = vunpack.i.h.bf16 %v9734_v50  ;;  %v13001_v55 = vunpack.i.l.bf16 %v9734_v50 }
 0x1f3   : > { %v9755_v14 = vsel %vm2616_vm7, %v2418_v9, %v7402_v16  ;;  %v2948_v49 = vsel %vm2616_vm7, %v9749_v48, %v13001_v55  ;;  %v9781_v9 = vsel %vm2263_vm6, %v2435_v21, 0.0  ;;  %v13245_v21 = vld [vmem:[#allocation12_spill] sm:$0xff] }
 0x1f4   : > { %2817 = vrot.lane.b32.xlu1 %v9755_v14, %s7524_s24  ;;  %3294 = vmatprep.mubr.f32.mxu0 %v2948_v49  ;;  %v3088_v49 = vld [vmem:[%s12905_s1 + $0x3b8] sm:$0xff]  ;;  %v2436_v45 = vrot.slane %v13245_v21, 1 }
 0x1f5   : > { %3295 = vmatmul.mubr.f32.gmra.mrb[22].mxu0 %v9270_v32  ;;  %v6889_v38 = vpack.c.bf16 %v3088_v49, %v3086_v12  ;;  %v6891_v32 = vpack.c.bf16 %v3087_v61, %v3085_v47  ;;  %v2356_v12 = vrot.slane %v9327_v43, 7  ;;  %v3092_v21 = vld [vmem:[%s12905_s1 + $0x3d8] sm:$0xff] }
 0x1f6   : > { %v9804_v61 = vsel %vm2263_vm6, %v2436_v45, 0.0 }
 0x1f7   : > { %6890 = vmatprep.subr.bf16.mxu0 %v6889_v38  ;;  %v2420_v47 = vsel %vm2065_vm0, 0.0, %v2356_v12  ;;  %v3089_v12 = vld [vmem:[%s12905_s1 + $0x3c0] sm:$0xff] }
 0x1f8   : > { %v9766_v16 = vpop.permute.xlu0 %7404  ;;  %6892 = vmatpush1.bf16.msra.mxu0 %v6891_v32  ;;  %v3090_v32 = vld [vmem:[%s12905_s1 + $0x3c8] sm:$0xff] }
 0x1f9   : > { %13244 = vst [vmem:[#allocation41_spill] sm:$0xff] %v9766_v16  ;;  %v7407_v1 = vunpack.i.h.bf16 %v9766_v16  ;;  %v13005_v31 = vunpack.i.l.bf16 %v9766_v16  ;;  %v6893_v45 = vpack.c.bf16 %v3092_v21, %v3090_v32  ;;  %v3094_v32 = vld [vmem:[%s12905_s1 + $0x3e8] sm:$0xff]  ;;  %v3096_v21 = vld [vmem:[%s12905_s1 + $0x3f8] sm:$0xff] }
 0x1fb   : > { %v9787_v55 = vsel %vm2616_vm7, %v2419_v8, %v7407_v1  ;;  %v2949_v50 = vsel %vm2616_vm7, %v9781_v9, %v13005_v31  ;;  %6894 = vmatprep.subr.bf16.mxu0 %v6893_v45  ;;  %v6897_v45 = vpack.c.bf16 %v3096_v21, %v3094_v32  ;;  %v13248_v21 = vld [vmem:[#allocation29_spill] sm:$0xff] }
 0x1fc   : > { %2821 = vrot.lane.b32.xlu0 %v9787_v55, %s7524_s24  ;;  %3300 = vmatprep.mubr.f32.mxu0 %v2949_v50 }
 0x1fd   : > { %3301 = vmatmul.mubr.f32.gmra.mrb[24].mxu0 %v9291_v19 }
 0x200   : > { %v9798_v1 = vpop.permute.xlu1 %7409 }
 0x201   : > { %13246 = vst [vmem:[#allocation5_spill] sm:$0xff] %v9798_v1  ;;  %v7412_v49 = vunpack.i.h.bf16 %v9798_v1  ;;  %v13004_v8 = vunpack.i.l.bf16 %v9798_v1 }
 0x203   : > { %v9807_v50 = vsel %vm2616_vm7, %v2420_v47, %v7412_v49  ;;  %v2950_v38 = vsel %vm2616_vm7, %v9804_v61, %v13004_v8  ;;  %v3091_v49 = vld [vmem:[%s12905_s1 + $0x3d0] sm:$0xff]  ;;  %v2357_v8 = vrot.slane %v9363_v56, 7 }
 0x204   : > { %2825 = vrot.lane.b32.xlu1 %v9807_v50, %s7524_s24  ;;  %3306 = vmatprep.mubr.f32.mxu0 %v2950_v38  ;;  %v6895_v47 = vpack.c.bf16 %v3091_v49, %v3089_v12  ;;  %v2437_v38 = vrot.slane %v13220_v39, 1  ;;  %v3093_v39 = vld [vmem:[%s12905_s1 + $0x3e0] sm:$0xff]  ;;  %v3095_v49 = vld [vmem:[%s12905_s1 + $0x3f0] sm:$0xff] }
 0x205   : > { %3307 = vmatmul.mubr.f32.gmra.mrb[26].mxu0 %v9311_v62  ;;  %v6899_v62 = vpack.c.bf16 %v3095_v49, %v3093_v39  ;;  %v3100_v39 = vld [vmem:[%s12905_s1 + $0x418] sm:$0xff] }
 0x206   : > { %6896 = vmatpush1.bf16.msra.mxu0 %v6895_v47  ;;  %v2421_v47 = vsel %vm2065_vm0, 0.0, %v2357_v8  ;;  %v9848_v16 = vsel %vm2263_vm6, %v2437_v38, 0.0  ;;  %v13249_v8 = vld [vmem:[#allocation22_spill] sm:$0xff]  ;;  %v2358_v38 = vrot.slane %v9407_v7, 7 }
 0x207   : > { %6898 = vmatprep.subr.bf16.mxu0 %v6897_v45  ;;  %v2438_v40 = vrot.slane %v13249_v8, 1  ;;  %v2359_v8 = vrot.slane %v9449_v37, 7 }
 0x20a   : > { %6900 = vmatpush1.bf16.msra.mxu0 %v6899_v62  ;;  %v2422_v62 = vsel %vm2065_vm0, 0.0, %v2358_v38 }
 0x20c   : > { %v9830_v31 = vpop.permute.xlu0 %7414 }
 0x20d   : > { %13247 = vst [vmem:[#allocation8_spill] sm:$0xff] %v9830_v31  ;;  %v7417_v1 = vunpack.i.h.bf16 %v9830_v31  ;;  %v13011_v12 = vunpack.i.l.bf16 %v9830_v31 }
 0x20f   : > { %v9851_v19 = vsel %vm2616_vm7, %v2421_v47, %v7417_v1  ;;  %v2951_v32 = vsel %vm2616_vm7, %v9848_v16, %v13011_v12  ;;  %v3098_v1 = vld [vmem:[%s12905_s1 + $0x408] sm:$0xff]  ;;  %v9875_v12 = vsel %vm2263_vm6, %v2438_v40, 0.0 }
 0x210   : > { %2829 = vrot.lane.b32.xlu0 %v9851_v19, %s7524_s24  ;;  %3312 = vmatprep.mubr.f32.mxu0 %v2951_v32  ;;  %v6901_v45 = vpack.c.bf16 %v3100_v39, %v3098_v1  ;;  %13250 = vst [vmem:[#allocation9_spill] sm:$0xff] %v9875_v12  ;;  %v2423_v39 = vsel %vm2065_vm0, 0.0, %v2359_v8  ;;  %v2441_v8 = vrot.slane %v9105_v17, 1 }
 0x211   : > { %3313 = vmatmul.mubr.f32.gmra.mrb[28].mxu0 %v13248_v21 }
 0x212   : > { %6902 = vmatprep.subr.bf16.mxu0 %v6901_v45  ;;  %v9917_v17 = vsel %vm2263_vm6, %v2441_v8, 0.0 }
 0x214   : > { %v9868_v49 = vpop.permute.xlu1 %7419 }
 0x215   : > { %v7422_v47 = vunpack.i.h.bf16 %v9868_v49  ;;  %v13013_v32 = vunpack.i.l.bf16 %v9868_v49 }
 0x217   : > { %v9878_v31 = vsel %vm2616_vm7, %v2422_v62, %v7422_v47  ;;  %v2952_v1 = vsel %vm2616_vm7, %v9875_v12, %v13013_v32  ;;  %v2440_v47 = vrot.slane %v9102_v10, 1 }
 0x218   : > { %2833 = vrot.lane.b32.xlu1 %v9878_v31, %s7524_s24  ;;  %3318 = vmatprep.mubr.f32.mxu0 %v2952_v1 }
 0x219   : > { %3319 = vmatmul.mubr.f32.gmra.mrb[30].mxu0 %v9366_v2  ;;  %v2504_v10 = vsel %vm2263_vm6, %v2440_v47, 0.0 }
 0x21a   : > { %v2583_v38 = vpop.permute.xlu0 %2582  ;;  %v9888_v45 = vpop.permute.xlu1 %2777 }
 0x21b   : > { %v9891_v40 = vsel %vm2616_vm7, %v2423_v39, %v2583_v38  ;;  %6700 = vmatprep.mubr.msk.f32.mxu0 %vm9371_vm8, %v9888_v45 }
 0x21c   : > { %2837 = vrot.lane.b32.xlu0 %v9891_v40, %s7524_s24  ;;  %2715 = vrot.lane.b32.xlu1 %v9422_v22, %s7524_s24  ;;  %v2442_v22 = vrot.slane %v9108_v26, 1 }
 0x21d   : > { %3325 = vmatmul.mubr.f32.gmra.mrb[32].mxu0 %v13240_v27 }
 0x220   : > { %v9903_v62 = vpop.permute.xlu0 %2781  ;;  %2719 = vrot.lane.b32.xlu0 %v9463_v3, %s7524_s24  ;;  %2723 = vrot.lane.b32.xlu1 %v9500_v25, %s7524_s24 }
 0x221   : > { %v9910_v1 = vpop.permute.xlu1 %2785  ;;  %v2954_v39 = vsel %vm2616_vm7, %v2504_v10, %v9903_v62 }
 0x222   : > { %3330 = vmatprep.mubr.f32.mxu0 %v2954_v39  ;;  %v2955_v38 = vsel %vm2616_vm7, %v9917_v17, %v9910_v1  ;;  %v13251_v39 = vld [vmem:[#allocation34_spill] sm:$0xff] }
 0x223   : > { %3331 = vmatmul.mubr.f32.gmra.mrb[34].mxu0 %v9446_v18  ;;  %v2431_v26 = vrot.slane %v13251_v39, 1  ;;  %v9931_v18 = vsel %vm2263_vm6, %v2442_v22, 0.0 }
 0x224   : > { %2727 = vrot.lane.b32.xlu0 %v9518_v46, %s7524_s24  ;;  %2731 = vrot.lane.b32.xlu1 %v9546_v54, %s7524_s24  ;;  %v9926_v47 = vpop.permute.xlu0 %2789  ;;  %13252 = vst [vmem:[#allocation10_spill] sm:$0xff] %v9931_v18 }
 0x225   : > { %3336 = vmatprep.mubr.f32.mxu0 %v2955_v38  ;;  %v2956_v8 = vsel %vm2616_vm7, %v9931_v18, %v9926_v47  ;;  %v2443_v38 = vrot.slane %v9133_v34, 1  ;;  %v9943_v39 = vsel %vm2263_vm6, %v2431_v26, 0.0  ;;  %v2444_v26 = vrot.slane %v9160_v58, 1 }
 0x227   : > { %3337 = vmatmul.mubr.f32.gmra.mrb[36].mxu0 %v9489_v36  ;;  %v9952_v32 = vsel %vm2263_vm6, %v2443_v38, 0.0  ;;  %v2439_v38 = vrot.slane %v8967_v33, 1  ;;  %v2445_v33 = vrot.slane %v9178_v6, 1 }
 0x228   : > { %2735 = vrot.lane.b32.xlu0 %v9578_v35, %s7524_s24  ;;  %2739 = vrot.lane.b32.xlu1 %v9624_v11, %s7524_s24  ;;  %13253 = vst [vmem:[#allocation13_spill] sm:$0xff] %v9952_v32 }
 0x229   : > { %3342 = vmatprep.mubr.f32.mxu0 %v2956_v8  ;;  %v9970_v8 = vsel %vm2263_vm6, %v2444_v26, 0.0  ;;  %v9982_v58 = vsel %vm2263_vm6, %v2439_v38, 0.0  ;;  %v2446_v26 = vrot.slane %v9205_v57, 1  ;;  %v9996_v38 = vsel %vm2263_vm6, %v2445_v33, 0.0 }
 0x22a   : > { %13254 = vst [vmem:[#allocation15_spill] sm:$0xff] %v9970_v8  ;;  %13255 = vst [vmem:[#allocation16_spill] sm:$0xff] %v9996_v38  ;;  %v2447_v33 = vrot.slane %v9218_v29, 1 }
 0x22b   : > { %3343 = vmatmul.mubr.f32.gmra.mrb[38].mxu0 %v9492_v4  ;;  %v10008_v6 = vsel %vm2263_vm6, %v2446_v26, 0.0  ;;  %v2449_v26 = vrot.slane %v9267_v51, 1 }
 0x22c   : > { %2743 = vrot.lane.b32.xlu0 %v9943_v39, %s7524_s24  ;;  %2747 = vrot.lane.b32.xlu1 %v9662_v24, %s7524_s24  ;;  %13256 = vst [vmem:[#allocation6_spill] sm:$0xff] %v10008_v6 }
 0x22d   : > { %v10038_v51 = vsel %vm2263_vm6, %v2449_v26, 0.0  ;;  %v2455_v26 = vrot.slane %v9449_v37, 1 }
 0x22e   : > { %v9949_v22 = vpop.permute.xlu1 %2793  ;;  %13258 = vst [vmem:[#allocation18_spill] sm:$0xff] %v10038_v51 }
 0x22f   : > { %v2957_v34 = vsel %vm2616_vm7, %v9952_v32, %v9949_v22 }
 0x230   : > { %2751 = vrot.lane.b32.xlu0 %v9717_v52, %s7524_s24  ;;  %2755 = vrot.lane.b32.xlu1 %v9749_v48, %s7524_s24 }
 0x231   : > { %3348 = vmatprep.mubr.f32.mxu0 %v2957_v34 }
 0x232   : > { %3349 = vmatmul.mubr.f32.gmra.mrb[40].mxu0 %v9513_v13 }
 0x234   : > { %2759 = vrot.lane.b32.xlu0 %v9781_v9, %s7524_s24  ;;  %2763 = vrot.lane.b32.xlu1 %v9804_v61, %s7524_s24 }
 0x236   : > { %v9967_v24 = vpop.permute.xlu0 %2797 }
 0x237   : > { %v2958_v34 = vsel %vm2616_vm7, %v9970_v8, %v9967_v24 }
 0x238   : > { %2767 = vrot.lane.b32.xlu0 %v9848_v16, %s7524_s24  ;;  %2771 = vrot.lane.b32.xlu1 %v9875_v12, %s7524_s24 }
 0x239   : > { %3354 = vmatprep.mubr.f32.mxu0 %v2958_v34 }
 0x23a   : > { %3355 = vmatmul.mubr.f32.gmra.mrb[42].mxu0 %v9555_v53 }
 0x23c   : > { %2775 = vrot.lane.b32.xlu0 %v9982_v58, %s7524_s24  ;;  %2779 = vrot.lane.b32.xlu1 %v2504_v10, %s7524_s24 }
 0x240   : > { %2783 = vrot.lane.b32.xlu0 %v9917_v17, %s7524_s24  ;;  %2787 = vrot.lane.b32.xlu1 %v9931_v18, %s7524_s24  ;;  %v2448_v18 = vrot.slane %v9247_v41, 1 }
 0x242   : > { %v9993_v34 = vpop.permute.xlu1 %2801  ;;  %v9998_v12 = vpop.permute.xlu0 %2805  ;;  %v2512_v29 = vsel %vm2263_vm6, %v2448_v18, 0.0 }
 0x243   : > { %v2959_v10 = vsel %vm2616_vm7, %v9996_v38, %v9993_v34  ;;  %v2960_v57 = vsel %vm2616_vm7, %v10008_v6, %v9998_v12 }
 0x244   : > { %2791 = vrot.lane.b32.xlu0 %v9952_v32, %s7524_s24  ;;  %2795 = vrot.lane.b32.xlu1 %v9970_v8, %s7524_s24  ;;  %v10024_v8 = vsel %vm2263_vm6, %v2447_v33, 0.0 }
 0x245   : > { %3360 = vmatprep.mubr.f32.mxu0 %v2959_v10  ;;  %v2450_v10 = vrot.slane %v9288_v30, 1  ;;  %13257 = vst [vmem:[#allocation42_spill] sm:$0xff] %v10024_v8 }
 0x246   : > { %3361 = vmatmul.mubr.f32.gmra.mrb[44].mxu0 %v9587_v42 }
 0x247   : > { %3366 = vmatprep.mubr.f32.mxu0 %v2960_v57  ;;  %v2451_v57 = vrot.slane %v9308_v63, 1  ;;  %v10041_v30 = vsel %vm2263_vm6, %v2450_v10, 0.0  ;;  %v2453_v63 = vrot.slane %v9363_v56, 1 }
 0x248   : > { %2799 = vrot.lane.b32.xlu0 %v9996_v38, %s7524_s24  ;;  %2803 = vrot.lane.b32.xlu1 %v10008_v6, %s7524_s24  ;;  %v2452_v6 = vrot.slane %v9327_v43, 1  ;;  %13259 = vst [vmem:[#allocation11_spill] sm:$0xff] %v10041_v30  ;;  %v2454_v43 = vrot.slane %v9407_v7, 1  ;;  %v10072_v7 = vsel %vm2263_vm6, %v2455_v26, 0.0  ;;  %v3106_v38 = vld [vmem:[%s12905_s1 + $0x448] sm:$0xff] }
 0x249   : > { %v10051_v18 = vsel %vm2263_vm6, %v2451_v57, 0.0  ;;  %v10062_v10 = vsel %vm2263_vm6, %v2453_v63, 0.0  ;;  %13264 = vst [vmem:[#allocation12_spill] sm:$0xff] %v10072_v7 }
 0x24a   : > { %3367 = vmatmul.mubr.f32.gmra.mrb[46].mxu0 %v9630_v59  ;;  %13260 = vst [vmem:[#allocation14_spill] sm:$0xff] %v10051_v18  ;;  %v10054_v33 = vsel %vm2263_vm6, %v2452_v6, 0.0  ;;  %13262 = vst [vmem:[#allocation21_spill] sm:$0xff] %v10062_v10  ;;  %v10065_v56 = vsel %vm2263_vm6, %v2454_v43, 0.0 }
 0x24b   : > { %13261 = vst [vmem:[#allocation17_spill] sm:$0xff] %v10054_v33  ;;  %13263 = vst [vmem:[#allocation24_spill] sm:$0xff] %v10065_v56 }
 0x24c   : > { %2807 = vrot.lane.b32.xlu0 %v10024_v8, %s7524_s24  ;;  %2811 = vrot.lane.b32.xlu1 %v2512_v29, %s7524_s24 }
 0x24e   : > { %v10030_v41 = vpop.permute.xlu1 %2809 }
 0x24f   : > { %6702 = vmatprep.mubr.msk.f32.mxu0 %vm9371_vm8, %v10030_v41 }
 0x250   : > { %2815 = vrot.lane.b32.xlu0 %v10038_v51, %s7524_s24  ;;  %2819 = vrot.lane.b32.xlu1 %v10041_v30, %s7524_s24 }
 0x251   : > { %3373 = vmatmul.mubr.f32.gmra.mrb[48].mxu0 %v13240_v27 }
 0x254   : > { %2823 = vrot.lane.b32.xlu0 %v10051_v18, %s7524_s24  ;;  %2827 = vrot.lane.b32.xlu1 %v10054_v33, %s7524_s24 }
 0x258   : > { %2831 = vrot.lane.b32.xlu0 %v10062_v10, %s7524_s24  ;;  %2835 = vrot.lane.b32.xlu1 %v10065_v56, %s7524_s24 }
 0x25c   : > { %2839 = vrot.lane.b32.xlu0 %v10072_v7, %s7524_s24 }
 0x25e   : > { %v10076_v6 = vpop.permute.xlu0 %2813 }
 0x25f   : > { %v2962_v37 = vsel %vm2616_vm7, %v2512_v29, %v10076_v6 }
 0x260   : > { %3378 = vmatprep.mubr.f32.mxu0 %v2962_v37 }
 0x261   : > { %3379 = vmatmul.mubr.f32.gmra.mrb[50].mxu0 %v9678_v20 }
 0x266   : > { %v10081_v57 = vpop.permute.xlu1 %2817 }
 0x267   : > { %v2963_v63 = vsel %vm2616_vm7, %v10038_v51, %v10081_v57  ;;  %v3101_v51 = vld [vmem:[%s12905_s1 + $0x420] sm:$0xff] }
 0x268   : > { %3384 = vmatprep.mubr.f32.mxu0 %v2963_v63 }
 0x269   : > { %3385 = vmatmul.mubr.f32.gmra.mrb[52].mxu0 %v9723_v23 }
 0x26e   : > { %v10087_v43 = vpop.permute.xlu0 %2821 }
 0x26f   : > { %v2964_v26 = vsel %vm2616_vm7, %v10041_v30, %v10087_v43 }
 0x270   : > { %3390 = vmatprep.mubr.f32.mxu0 %v2964_v26 }
 0x271   : > { %3391 = vmatmul.mubr.f32.gmra.mrb[54].mxu0 %v9755_v14 }
 0x276   : > { %v10093_v29 = vpop.permute.xlu1 %2825 }
 0x277   : > { %v2965_v20 = vsel %vm2616_vm7, %v10051_v18, %v10093_v29 }
 0x278   : > { %3396 = vmatprep.mubr.f32.mxu0 %v2965_v20 }
 0x279   : > { %3397 = vmatmul.mubr.f32.gmra.mrb[56].mxu0 %v9787_v55 }
 0x282   : > { %v10099_v37 = vpop.permute.xlu0 %2829 }
 0x283   : > { %v2966_v63 = vsel %vm2616_vm7, %v10054_v33, %v10099_v37  ;;  %v3099_v33 = vld [vmem:[%s12905_s1 + $0x410] sm:$0xff] }
 0x284   : > { %3402 = vmatprep.mubr.f32.mxu0 %v2966_v63  ;;  %v3097_v63 = vld [vmem:[%s12905_s1 + $0x400] sm:$0xff] }
 0x285   : > { %3403 = vmatmul.mubr.f32.gmra.mrb[58].mxu0 %v9807_v50 }
 0x28a   : > { %v10105_v26 = vpop.permute.xlu1 %2833 }
 0x28b   : > { %v2967_v5 = vsel %vm2616_vm7, %v10062_v10, %v10105_v26  ;;  %v3104_v10 = vld [vmem:[%s12905_s1 + $0x438] sm:$0xff] }
 0x28c   : > { %3408 = vmatprep.mubr.f32.mxu0 %v2967_v5  ;;  %v3102_v5 = vld [vmem:[%s12905_s1 + $0x428] sm:$0xff] }
 0x28d   : > { %3409 = vmatmul.mubr.f32.gmra.mrb[60].mxu0 %v9851_v19  ;;  %v6905_v30 = vpack.c.bf16 %v3104_v10, %v3102_v5 }
 0x28e   : > { %v10111_v20 = vpop.permute.xlu0 %2837  ;;  %v2716_v18 = vpop.permute.xlu1 %2715 }
 0x28f   : > { %v2968_v7 = vsel %vm2616_vm7, %v10065_v56, %v10111_v20  ;;  %v6903_v56 = vpack.c.bf16 %v3099_v33, %v3097_v63  ;;  %v2841_v8 = vsel %vm2616_vm7, %v9376_v28, %v2716_v18  ;;  %v3105_v28 = vld [vmem:[%s12905_s1 + $0x440] sm:$0xff]  ;;  %v3107_v18 = vld [vmem:[%s12905_s1 + $0x450] sm:$0xff] }
 0x290   : > { %3414 = vmatprep.mubr.f32.mxu0 %v2968_v7  ;;  %v3103_v7 = vld [vmem:[%s12905_s1 + $0x430] sm:$0xff] }
 0x291   : > { %3415 = vmatmul.mubr.f32.gmra.mrb[62].mxu0 %v9878_v31  ;;  %v6907_v10 = vpack.c.bf16 %v3103_v7, %v3101_v51  ;;  %v6911_v51 = vpack.c.bf16 %v3107_v18, %v3105_v28  ;;  %v13265_v7 = vld [vmem:[#allocation33_spill] sm:$0xff] }
 0x292   : > { %3485 = vmatprep.mubr.f32.mxu0 %v9080_v44  ;;  %v3108_v44 = vld [vmem:[%s12905_s1 + $0x458] sm:$0xff]  ;;  %v2720_v33 = vpop.permute.xlu0 %2719 }
 0x293   : > { %v6909_v63 = vpack.c.bf16 %v3108_v44, %v3106_v38  ;;  %v2842_v5 = vsel %vm2616_vm7, %v9416_v0, %v2720_v33  ;;  %v2724_v38 = vpop.permute.xlu1 %2723  ;;  %v3109_v0 = vld [vmem:[%s12905_s1 + $0x460] sm:$0xff]  ;;  %v13266_v44 = vunpack.i.l.bf16 %v13265_v7 }
 0x295   : > { %3486 = vmatmul.mubr.f32.vlgmr.msra.gmra.mrb[0].mxu0 %v2841_v8  ;;  %v3110_v8 = vld [vmem:[%s12905_s1 + $0x468] sm:$0xff]  ;;  %v2843_v33 = vsel %vm2616_vm7, %v13266_v44, %v2724_v38 }
 0x296   : > { %6904 = vmatpush1.bf16.msra.mxu0 %v6903_v56  ;;  %3490 = vmatprep.mubr.f32.mxu0 %v9119_v15  ;;  %v3112_v15 = vld [vmem:[%s12905_s1 + $0x478] sm:$0xff]  ;;  %v3111_v56 = vld [vmem:[%s12905_s1 + $0x470] sm:$0xff]  ;;  %v2728_v32 = vpop.permute.xlu0 %2727 }
 0x297   : > { %6906 = vmatprep.subr.bf16.mxu0 %v6905_v30  ;;  %v6913_v30 = vpack.c.bf16 %v3112_v15, %v3110_v8  ;;  %v2732_v18 = vpop.permute.xlu1 %2731  ;;  %v13270_v8 = vld [vmem:[#allocation23_spill] sm:$0xff]  ;;  %v13271_v15 = vld [vmem:[#allocation37_spill] sm:$0xff] }
 0x298   : > { %v13272_v7 = vunpack.i.l.bf16 %v13271_v15 }
 0x299   : > { %3491 = vmatmul.mubr.f32.gmra.mrb[2].mxu0 %v2842_v5  ;;  %v13267_v5 = vld [vmem:[#allocation19_spill] sm:$0xff] }
 0x29a   : > { %3495 = vmatprep.mubr.f32.mxu0 %v9122_v60  ;;  %6908 = vmatpush1.bf16.msra.mxu0 %v6907_v10  ;;  %v6915_v60 = vpack.c.bf16 %v3111_v56, %v3109_v0  ;;  %v13268_v10 = vld [vmem:[#allocation36_spill] sm:$0xff]  ;;  %v2845_v38 = vsel %vm2616_vm7, %v13272_v7, %v2732_v18  ;;  %v2736_v44 = vpop.permute.xlu0 %2735  ;;  %v13281_v7 = vld [vmem:[#allocation25_spill] sm:$0xff] }
 0x29b   : > { %6910 = vmatprep.subr.bf16.mxu0 %v6909_v63  ;;  %v13269_v63 = vunpack.i.l.bf16 %v13268_v10  ;;  %v2740_v56 = vpop.permute.xlu1 %2739 }
 0x29d   : > { %3496 = vmatmul.mubr.f32.gmra.mrb[4].mxu0 %v2843_v33  ;;  %v2844_v28 = vsel %vm2616_vm7, %v13269_v63, %v2728_v32  ;;  %v13273_v33 = vld [vmem:[#allocation20_spill] sm:$0xff]  ;;  %v13276_v32 = vld [vmem:[#allocation27_spill] sm:$0xff] }
 0x29e   : > { %3500 = vmatprep.mubr.f32.mxu0 %v13267_v5  ;;  %6912 = vmatpush1.bf16.msra.mxu0 %v6911_v51  ;;  %v13274_v51 = vld [vmem:[#allocation3_spill] sm:$0xff]  ;;  %v2744_v63 = vpop.permute.xlu0 %2743 }
 0x29f   : > { %6914 = vmatprep.subr.bf16.mxu0 %v6913_v30  ;;  %v13275_v0 = vunpack.i.l.bf16 %v13274_v51  ;;  %v13277_v5 = vld [vmem:[#allocation35_spill] sm:$0xff]  ;;  %v2748_v15 = vpop.permute.xlu1 %2747  ;;  %v13283_v51 = vld [vmem:[#allocation28_spill] sm:$0xff] }
 0x2a0   : > { %v13278_v10 = vunpack.i.l.bf16 %v13277_v5  ;;  %v13286_v5 = vld [vmem:[#allocation7_spill] sm:$0xff] }
 0x2a1   : > { %3501 = vmatmul.mubr.f32.gmra.mrb[6].mxu0 %v2844_v28  ;;  %v2846_v30 = vsel %vm2616_vm7, %v13275_v0, %v2736_v44  ;;  %v13279_v28 = vld [vmem:[#allocation39_spill] sm:$0xff]  ;;  %v13284_v0 = vld [vmem:[#allocation2_spill] sm:$0xff] }
 0x2a2   : > { %3505 = vmatprep.mubr.f32.mxu0 %v13270_v8  ;;  %6916 = vmatpush1.bf16.msra.mxu0 %v6915_v60  ;;  %v2847_v60 = vsel %vm2616_vm7, %v13278_v10, %v2740_v56  ;;  %v13280_v18 = vunpack.i.l.bf16 %v13279_v28  ;;  %v13287_v10 = vunpack.i.l.bf16 %v13286_v5  ;;  %v13288_v28 = vld [vmem:[#allocation31_spill] sm:$0xff]  ;;  %v13295_v5 = vld [vmem:[#allocation32_spill] sm:$0xff] }
 0x2a3   : > { %v2756_v56 = vpop.permute.xlu1 %2755 }
 0x2a4   : > { %v2848_v8 = vsel %vm2616_vm7, %v13280_v18, %v2744_v63  ;;  %v13289_v18 = vld [vmem:[#allocation4_spill] sm:$0xff] }
 0x2a5   : > { %3506 = vmatmul.mubr.f32.gmra.mrb[8].mxu0 %v2845_v38  ;;  %v13282_v38 = vld [vmem:[#allocation40_spill] sm:$0xff] }
 0x2a6   : > { %3510 = vmatprep.mubr.f32.mxu0 %v13273_v33  ;;  %v2849_v44 = vsel %vm2616_vm7, %v13282_v38, %v2748_v15  ;;  %v2752_v33 = vpop.permute.xlu0 %2751  ;;  %v13291_v38 = vld [vmem:[#allocation41_spill] sm:$0xff] }
 0x2a9   : > { %3511 = vmatmul.mubr.f32.gmra.mrb[10].mxu0 %v2846_v30  ;;  %v2850_v30 = vsel %vm2616_vm7, %v13284_v0, %v2752_v33  ;;  %v13293_v0 = vld [vmem:[#allocation5_spill] sm:$0xff] }
 0x2aa   : > { %3515 = vmatprep.mubr.f32.mxu0 %v13276_v32  ;;  %v13285_v32 = vld [vmem:[#allocation26_spill] sm:$0xff]  ;;  %v2760_v63 = vpop.permute.xlu0 %2759 }
 0x2ad   : > { %3516 = vmatmul.mubr.f32.gmra.mrb[12].mxu0 %v2847_v60  ;;  %v2851_v60 = vsel %vm2616_vm7, %v13287_v10, %v2756_v56  ;;  %v13296_v10 = vld [vmem:[#allocation8_spill] sm:$0xff] }
 0x2ae   : > { %3520 = vmatprep.mubr.f32.mxu0 %v13240_v27 }
 0x2b1   : > { %3521 = vmatmul.mubr.f32.gmra.mrb[14].mxu0 %v2848_v8  ;;  %v13290_v8 = vunpack.i.l.bf16 %v13289_v18 }
 0x2b2   : > { %3525 = vmatprep.mubr.f32.mxu0 %v13281_v7  ;;  %v2764_v7 = vpop.permute.xlu1 %2763 }
 0x2b3   : > { %v2852_v15 = vsel %vm2616_vm7, %v13290_v8, %v2760_v63 }
 0x2b5   : > { %3526 = vmatmul.mubr.f32.gmra.mrb[16].mxu0 %v2849_v44  ;;  %v13292_v44 = vunpack.i.l.bf16 %v13291_v38 }
 0x2b6   : > { %3531 = vmatprep.mubr.f32.mxu0 %v13283_v51  ;;  %v2768_v51 = vpop.permute.xlu0 %2767 }
 0x2b7   : > { %v2853_v33 = vsel %vm2616_vm7, %v13292_v44, %v2764_v7 }
 0x2b9   : > { %3532 = vmatmul.mubr.f32.gmra.mrb[18].mxu0 %v2850_v30  ;;  %v13294_v30 = vunpack.i.l.bf16 %v13293_v0 }
 0x2ba   : > { %3537 = vmatprep.mubr.f32.mxu0 %v13285_v32  ;;  %v2772_v32 = vpop.permute.xlu1 %2771  ;;  %v2776_v63 = vpop.permute.xlu0 %2775 }
 0x2bb   : > { %v2854_v56 = vsel %vm2616_vm7, %v13294_v30, %v2768_v51 }
 0x2bd   : > { %3538 = vmatmul.mubr.f32.gmra.mrb[20].mxu0 %v2851_v60  ;;  %v13297_v60 = vunpack.i.l.bf16 %v13296_v10 }
 0x2be   : > { %3543 = vmatprep.mubr.f32.mxu0 %v13288_v28  ;;  %v13298_v28 = vunpack.i.l.bf16 %v9868_v49  ;;  %v2780_v18 = vpop.permute.xlu1 %2779 }
 0x2bf   : > { %v2857_v8 = vsel %vm2616_vm7, %v9888_v45, %v2780_v18 }
 0x2c1   : > { %3544 = vmatmul.mubr.f32.gmra.mrb[22].mxu0 %v2852_v15  ;;  %v2784_v15 = vpop.permute.xlu0 %2783 }
 0x2c2   : > { %3549 = vmatprep.mubr.f32.mxu0 %v13248_v21  ;;  %v2855_v21 = vsel %vm2616_vm7, %v13297_v60, %v2772_v32  ;;  %v2858_v7 = vsel %vm2616_vm7, %v9903_v62, %v2784_v15  ;;  %v2788_v38 = vpop.permute.xlu1 %2787 }
 0x2c3   : > { %v2859_v49 = vsel %vm2616_vm7, %v9910_v1, %v2788_v38 }
 0x2c5   : > { %3550 = vmatmul.mubr.f32.gmra.mrb[24].mxu0 %v2853_v33  ;;  %v2792_v44 = vpop.permute.xlu0 %2791 }
 0x2c6   : > { %3555 = vmatprep.mubr.f32.mxu0 %v9366_v2  ;;  %v2856_v2 = vsel %vm2616_vm7, %v13298_v28, %v2776_v63  ;;  %v2796_v45 = vpop.permute.xlu1 %2795 }
 0x2c9   : > { %3556 = vmatmul.mubr.f32.gmra.mrb[26].mxu0 %v2854_v56  ;;  %v2800_v62 = vpop.permute.xlu0 %2799 }
 0x2ca   : > { %3561 = vmatprep.mubr.f32.mxu0 %v13295_v5  ;;  %v2804_v1 = vpop.permute.xlu1 %2803 }
 0x2cd   : > { %3562 = vmatmul.mubr.f32.gmra.mrb[28].mxu0 %v2855_v21  ;;  %v2808_v33 = vpop.permute.xlu0 %2807 }
 0x2ce   : > { %3567 = vmatprep.mubr.f32.mxu0 %v13240_v27 }
 0x2d1   : > { %3568 = vmatmul.mubr.f32.gmra.mrb[30].mxu0 %v2856_v2 }
 0x2d2   : > { %3573 = vmatprep.mubr.f32.mxu0 %v9489_v36  ;;  %v2860_v36 = vsel %vm2616_vm7, %v9926_v47, %v2792_v44  ;;  %v2863_v47 = vsel %vm2616_vm7, %v9993_v34, %v2804_v1 }
 0x2d5   : > { %3574 = vmatmul.mubr.f32.gmra.mrb[32].mxu0 %v2857_v8 }
 0x2d6   : > { %3579 = vmatprep.mubr.f32.mxu0 %v9492_v4  ;;  %v2861_v4 = vsel %vm2616_vm7, %v9949_v22, %v2796_v45  ;;  %v2812_v22 = vpop.permute.xlu1 %2811 }
 0x2d9   : > { %3580 = vmatmul.mubr.f32.gmra.mrb[34].mxu0 %v2858_v7 }
 0x2da   : > { %3585 = vmatprep.mubr.f32.mxu0 %v9513_v13  ;;  %v2862_v13 = vsel %vm2616_vm7, %v9967_v24, %v2800_v62  ;;  %v2816_v24 = vpop.permute.xlu0 %2815  ;;  %v2820_v51 = vpop.permute.xlu1 %2819 }
 0x2db   : > { %v2866_v34 = vsel %vm2616_vm7, %v10076_v6, %v2816_v24 }
 0x2dd   : > { %3586 = vmatmul.mubr.f32.gmra.mrb[36].mxu0 %v2859_v49 }
 0x2de   : > { %3591 = vmatprep.mubr.f32.mxu0 %v9555_v53  ;;  %v13299_v53 = vld [vmem:[#allocation38_spill] sm:$0xff]  ;;  %v2824_v0 = vpop.permute.xlu0 %2823 }
 0x2e1   : > { %3592 = vmatmul.mubr.f32.gmra.mrb[38].mxu0 %v2860_v36 }
 0x2e2   : > { %3597 = vmatprep.mubr.f32.mxu0 %v9587_v42  ;;  %v2864_v42 = vsel %vm2616_vm7, %v9998_v12, %v2808_v33  ;;  %v2867_v12 = vsel %vm2616_vm7, %v10081_v57, %v2820_v51  ;;  %v2832_v6 = vpop.permute.xlu0 %2831 }
 0x2e5   : > { %3598 = vmatmul.mubr.f32.gmra.mrb[40].mxu0 %v2861_v4 }
 0x2e6   : > { %3603 = vmatprep.mubr.f32.mxu0 %v9630_v59  ;;  %v2865_v59 = vsel %vm2616_vm7, %v10030_v41, %v2812_v22  ;;  %v2828_v41 = vpop.permute.xlu1 %2827 }
 0x2e9   : > { %3604 = vmatmul.mubr.f32.gmra.mrb[42].mxu0 %v2862_v13 }
 0x2ea   : > { %3609 = vmatprep.mubr.f32.mxu0 %v13299_v53  ;;  %v2836_v57 = vpop.permute.xlu1 %2835 }
 0x2ed   : > { %3610 = vmatmul.mubr.f32.gmra.mrb[44].mxu0 %v2863_v47 }
 0x2ee   : > { %3615 = vmatprep.mubr.f32.mxu0 %v13240_v27 }
 0x2f1   : > { %3616 = vmatmul.mubr.f32.gmra.mrb[46].mxu0 %v2864_v42 }
 0x2f2   : > { %3621 = vmatprep.mubr.f32.mxu0 %v9723_v23  ;;  %v2868_v23 = vsel %vm2616_vm7, %v10087_v43, %v2824_v0  ;;  %v2840_v43 = vpop.permute.xlu0 %2839 }
 0x2f5   : > { %3622 = vmatmul.mubr.f32.gmra.mrb[48].mxu0 %v2865_v59 }
 0x2f6   : > { %3627 = vmatprep.mubr.f32.mxu0 %v9755_v14  ;;  %v2869_v14 = vsel %vm2616_vm7, %v10093_v29, %v2828_v41 }
 0x2f9   : > { %3628 = vmatmul.mubr.f32.gmra.mrb[50].mxu0 %v2866_v34 }
 0x2fa   : > { %3633 = vmatprep.mubr.f32.mxu0 %v9787_v55  ;;  %v2870_v55 = vsel %vm2616_vm7, %v10099_v37, %v2832_v6 }
 0x2fd   : > { %3634 = vmatmul.mubr.f32.gmra.mrb[52].mxu0 %v2867_v12 }
 0x2fe   : > { %3639 = vmatprep.mubr.f32.mxu0 %v9807_v50  ;;  %v2871_v50 = vsel %vm2616_vm7, %v10105_v26, %v2836_v57 }
 0x301   : > { %3640 = vmatmul.mubr.f32.gmra.mrb[54].mxu0 %v2868_v23 }
 0x302   : > { %3645 = vmatprep.mubr.f32.mxu0 %v9851_v19  ;;  %v2872_v19 = vsel %vm2616_vm7, %v10111_v20, %v2840_v43 }
 0x305   : > { %3646 = vmatmul.mubr.f32.gmra.mrb[56].mxu0 %v2869_v14 }
 0x306   : > { %3651 = vmatprep.mubr.f32.mxu0 %v9878_v31  ;;  %v13309_v31 = vld [vmem:[#allocation14_spill] sm:$0xff] }
 0x309   : > { %3652 = vmatmul.mubr.f32.gmra.mrb[58].mxu0 %v2870_v55 }
 0x30a   : > { %3657 = vmatprep.mubr.f32.mxu0 %v9891_v40  ;;  %v13312_v40 = vld [vmem:[#allocation24_spill] sm:$0xff] }
 0x30d   : > { %3658 = vmatmul.mubr.f32.gmra.mrb[60].mxu0 %v2871_v50 }
 0x30e   : > { %3663 = vmatprep.mubr.f32.mxu0 %v13240_v27 }
 0x311   : > { %3664 = vmatmul.mubr.f32.gmra.mrb[62].mxu0 %v2872_v19 }
 0x312   : > { %3734 = vmatprep.mubr.f32.mxu0 %v13240_v27 }
 0x315   : > { %6703 = vmatmul.mubr.msk.f32.vlgmr.msra.gmra.mrb[0].mxu0 %vm2616_vm7, %v9463_v3  ;;  %v13301_v3 = vld [vmem:[#allocation10_spill] sm:$0xff] }
 0x316   : > { %3739 = vmatprep.mubr.f32.mxu0 %v13240_v27 }
 0x319   : > { %6704 = vmatmul.mubr.msk.f32.gmra.mrb[2].mxu0 %vm2616_vm7, %v9500_v25  ;;  %v13302_v25 = vld [vmem:[#allocation13_spill] sm:$0xff] }
 0x31a   : > { %3744 = vmatprep.mubr.f32.mxu0 %v13240_v27 }
 0x31d   : > { %6705 = vmatmul.mubr.msk.f32.gmra.mrb[4].mxu0 %vm2616_vm7, %v9518_v46  ;;  %v13303_v46 = vld [vmem:[#allocation15_spill] sm:$0xff] }
 0x31e   : > { %3749 = vmatprep.mubr.f32.mxu0 %v13240_v27 }
 0x321   : > { %6706 = vmatmul.mubr.msk.f32.gmra.mrb[6].mxu0 %vm2616_vm7, %v9546_v54  ;;  %v13304_v54 = vld [vmem:[#allocation16_spill] sm:$0xff] }
 0x322   : > { %3754 = vmatprep.mubr.f32.mxu0 %v13240_v27 }
 0x325   : > { %6707 = vmatmul.mubr.msk.f32.gmra.mrb[8].mxu0 %vm2616_vm7, %v9578_v35  ;;  %v13300_v35 = vld [vmem:[#allocation9_spill] sm:$0xff] }
 0x326   : > { %3759 = vmatprep.mubr.f32.mxu0 %v13240_v27 }
 0x329   : > { %6708 = vmatmul.mubr.msk.f32.gmra.mrb[10].mxu0 %vm2616_vm7, %v9624_v11  ;;  %v13305_v11 = vld [vmem:[#allocation6_spill] sm:$0xff] }
 0x32a   : > { %3764 = vmatprep.mubr.f32.mxu0 %v13240_v27 }
 0x32d   : > { %6709 = vmatmul.mubr.msk.f32.gmra.mrb[12].mxu0 %vm2616_vm7, %v9943_v39 }
 0x32e   : > { %3769 = vmatprep.mubr.f32.mxu0 %v13240_v27 }
 0x331   : > { %3770 = vmatmul.mubr.f32.gmra.mrb[14].mxu0 %v13240_v27 }
 0x332   : > { %3774 = vmatprep.mubr.f32.mxu0 %v13240_v27 }
 0x335   : > { %6710 = vmatmul.mubr.msk.f32.gmra.mrb[16].mxu0 %vm2616_vm7, %v9717_v52  ;;  %v13306_v52 = vld [vmem:[#allocation42_spill] sm:$0xff] }
 0x336   : > { %3780 = vmatprep.mubr.f32.mxu0 %v13240_v27 }
 0x339   : > { %6711 = vmatmul.mubr.msk.f32.gmra.mrb[18].mxu0 %vm2616_vm7, %v9749_v48  ;;  %v13307_v48 = vld [vmem:[#allocation18_spill] sm:$0xff] }
 0x33a   : > { %3786 = vmatprep.mubr.f32.mxu0 %v13240_v27 }
 0x33d   : > { %6712 = vmatmul.mubr.msk.f32.gmra.mrb[20].mxu0 %vm2616_vm7, %v9781_v9  ;;  %v13310_v9 = vld [vmem:[#allocation17_spill] sm:$0xff] }
 0x33e   : > { %3792 = vmatprep.mubr.f32.mxu0 %v13240_v27 }
 0x341   : > { %6713 = vmatmul.mubr.msk.f32.gmra.mrb[22].mxu0 %vm2616_vm7, %v9804_v61  ;;  %v13311_v61 = vld [vmem:[#allocation21_spill] sm:$0xff] }
 0x342   : > { %3798 = vmatprep.mubr.f32.mxu0 %v13240_v27 }
 0x345   : > { %6714 = vmatmul.mubr.msk.f32.gmra.mrb[24].mxu0 %vm2616_vm7, %v9848_v16  ;;  %v13308_v16 = vld [vmem:[#allocation11_spill] sm:$0xff] }
 0x346   : > { %3804 = vmatprep.mubr.f32.mxu0 %v13240_v27 }
 0x349   : > { %6715 = vmatmul.mubr.msk.f32.gmra.mrb[26].mxu0 %vm2616_vm7, %v13300_v35 }
 0x34a   : > { %3810 = vmatprep.mubr.f32.mxu0 %v13240_v27 }
 0x34d   : > { %6716 = vmatmul.mubr.msk.f32.gmra.mrb[28].mxu0 %vm2616_vm7, %v9982_v58 }
 0x34e   : > { %3816 = vmatprep.mubr.f32.mxu0 %v13240_v27 }
 0x351   : > { %3817 = vmatmul.mubr.f32.gmra.mrb[30].mxu0 %v13240_v27 }
 0x352   : > { %3822 = vmatprep.mubr.f32.mxu0 %v13240_v27 }
 0x355   : > { %6717 = vmatmul.mubr.msk.f32.gmra.mrb[32].mxu0 %vm2616_vm7, %v9917_v17  ;;  %v13313_v17 = vld [vmem:[#allocation12_spill] sm:$0xff] }
 0x356   : > { %3828 = vmatprep.mubr.f32.mxu0 %v13240_v27 }
 0x359   : > { %6718 = vmatmul.mubr.msk.f32.gmra.mrb[34].mxu0 %vm2616_vm7, %v13301_v3 }
 0x35a   : > { %3834 = vmatprep.mubr.f32.mxu0 %v13240_v27 }
 0x35d   : > { %6719 = vmatmul.mubr.msk.f32.gmra.mrb[36].mxu0 %vm2616_vm7, %v13302_v25 }
 0x35e   : > { %3840 = vmatprep.mubr.f32.mxu0 %v13240_v27 }
 0x361   : > { %6720 = vmatmul.mubr.msk.f32.gmra.mrb[38].mxu0 %vm2616_vm7, %v13303_v46 }
 0x362   : > { %3846 = vmatprep.mubr.f32.mxu0 %v13240_v27 }
 0x365   : > { %6721 = vmatmul.mubr.msk.f32.gmra.mrb[40].mxu0 %vm2616_vm7, %v13304_v54 }
 0x366   : > { %3852 = vmatprep.mubr.f32.mxu0 %v13240_v27 }
 0x369   : > { %6722 = vmatmul.mubr.msk.f32.gmra.mrb[42].mxu0 %vm2616_vm7, %v13305_v11 }
 0x36a   : > { %3858 = vmatprep.mubr.f32.mxu0 %v13240_v27 }
 0x36d   : > { %6723 = vmatmul.mubr.msk.f32.gmra.mrb[44].mxu0 %vm2616_vm7, %v13306_v52 }
 0x36e   : > { %3864 = vmatprep.mubr.f32.mxu0 %v13240_v27 }
 0x371   : > { %3865 = vmatmul.mubr.f32.gmra.mrb[46].mxu0 %v13240_v27 }
 0x372   : > { %3870 = vmatprep.mubr.f32.mxu0 %v13240_v27 }
 0x375   : > { %6724 = vmatmul.mubr.msk.f32.gmra.mrb[48].mxu0 %vm2616_vm7, %v13307_v48 }
 0x376   : > { %3876 = vmatprep.mubr.f32.mxu0 %v13240_v27 }
 0x379   : > { %6725 = vmatmul.mubr.msk.f32.gmra.mrb[50].mxu0 %vm2616_vm7, %v13308_v16 }
 0x37a   : > { %3882 = vmatprep.mubr.f32.mxu0 %v13240_v27 }
 0x37d   : > { %6726 = vmatmul.mubr.msk.f32.gmra.mrb[52].mxu0 %vm2616_vm7, %v13309_v31  ;;  %v10505_v31 = vld [vmem:[%s12906_s2] ss:$0 sm:$0xff] }
 0x37e   : > { %3888 = vmatprep.mubr.f32.mxu0 %v13240_v27 }
 0x381   : > { %6727 = vmatmul.mubr.msk.f32.gmra.mrb[54].mxu0 %vm2616_vm7, %v13310_v9 }
 0x382   : > { %3894 = vmatprep.mubr.f32.mxu0 %v13240_v27 }
 0x385   : > { %6728 = vmatmul.mubr.msk.f32.gmra.mrb[56].mxu0 %vm2616_vm7, %v13311_v61 }
 0x386   : > { %3900 = vmatprep.mubr.f32.mxu0 %v13240_v27 }
 0x389   : > { %6729 = vmatmul.mubr.msk.f32.gmra.mrb[58].mxu0 %vm2616_vm7, %v13312_v40 }
 0x38a   : > { %3906 = vmatprep.mubr.f32.mxu0 %v13240_v27 }
 0x38d   : > { %6730 = vmatmul.mubr.msk.f32.gmra.mrb[60].mxu0 %vm2616_vm7, %v13313_v17 }
 0x38e   : > { %3912 = vmatprep.mubr.f32.mxu0 %v13240_v27 }
 0x391   : > { %3913 = vmatmul.mubr.f32.gmra.mrb[62].mxu0 %v13240_v27 }
 0x3e8   : > { %v10359_v39 = vpop.f32.mrb[0].mxu0 }
 0x3e9   : > { %3951 = vrot.lane.b32.xlu1 %v10359_v39, %s7524_s24  ;;  %v3738_v58 = vpop.f32.mrb[1].mxu0 }
 0x3ec   : > { %v10363_v29 = vpop.f32.mrb[2].mxu0 }
 0x3ed   : > { %3953 = vrot.lane.b32.xlu0 %v10363_v29, %s7524_s24  ;;  %v3743_v37 = vpop.f32.mrb[3].mxu0 }
 0x3f0   : > { %v10367_v26 = vpop.f32.mrb[4].mxu0 }
 0x3f1   : > { %3955 = vrot.lane.b32.xlu1 %v10367_v26, %s7524_s24  ;;  %v3748_v20 = vpop.f32.mrb[5].mxu0 }
 0x3f4   : > { %v10371_v30 = vpop.f32.mrb[6].mxu0 }
 0x3f5   : > { %3957 = vrot.lane.b32.xlu0 %v10371_v30, %s7524_s24  ;;  %v3753_v56 = vpop.f32.mrb[7].mxu0 }
 0x3f8   : > { %v10375_v32 = vpop.f32.mrb[8].mxu0 }
 0x3f9   : > { %3959 = vrot.lane.b32.xlu1 %v10375_v32, %s7524_s24  ;;  %v3758_v5 = vpop.f32.mrb[9].mxu0 }
 0x3fc   : > { %v10379_v10 = vpop.f32.mrb[10].mxu0 }
 0x3fd   : > { %3961 = vrot.lane.b32.xlu0 %v10379_v10, %s7524_s24  ;;  %v3763_v60 = vpop.f32.mrb[11].mxu0 }
 0x400   : > { %v10383_v21 = vpop.f32.mrb[12].mxu0 }
 0x401   : > { %3963 = vrot.lane.b32.xlu1 %v10383_v21, %s7524_s24  ;;  %v3768_v63 = vpop.f32.mrb[13].mxu0 }
 0x404   : > { %v10387_v28 = vpop.f32.mrb[14].mxu0 }
 0x405   : > { %3965 = vrot.lane.b32.xlu0 %v10387_v28, %s7524_s24  ;;  %v3773_v2 = vpop.f32.mrb[15].mxu0 }
 0x408   : > { %v10391_v18 = vpop.f32.mrb[16].mxu0 }
 0x409   : > { %3967 = vrot.lane.b32.xlu1 %v10391_v18, %s7524_s24  ;;  %v10395_v8 = vpop.f32.mrb[17].mxu0 }
 0x40c   : > { %v10397_v15 = vpop.f32.mrb[18].mxu0 }
 0x40d   : > { %3969 = vrot.lane.b32.xlu0 %v10397_v15, %s7524_s24  ;;  %v10401_v7 = vpop.f32.mrb[19].mxu0 }
 0x410   : > { %v10403_v38 = vpop.f32.mrb[20].mxu0 }
 0x411   : > { %3971 = vrot.lane.b32.xlu1 %v10403_v38, %s7524_s24  ;;  %v10407_v49 = vpop.f32.mrb[21].mxu0 }
 0x414   : > { %v10409_v44 = vpop.f32.mrb[22].mxu0 }
 0x415   : > { %3973 = vrot.lane.b32.xlu0 %v10409_v44, %s7524_s24  ;;  %v10413_v36 = vpop.f32.mrb[23].mxu0 }
 0x418   : > { %v10415_v45 = vpop.f32.mrb[24].mxu0 }
 0x419   : > { %3975 = vrot.lane.b32.xlu1 %v10415_v45, %s7524_s24  ;;  %v10419_v4 = vpop.f32.mrb[25].mxu0 }
 0x41c   : > { %v10421_v62 = vpop.f32.mrb[26].mxu0 }
 0x41d   : > { %3977 = vrot.lane.b32.xlu0 %v10421_v62, %s7524_s24  ;;  %v10425_v13 = vpop.f32.mrb[27].mxu0 }
 0x420   : > { %v10427_v1 = vpop.f32.mrb[28].mxu0 }
 0x421   : > { %3979 = vrot.lane.b32.xlu1 %v10427_v1, %s7524_s24  ;;  %v10431_v53 = vpop.f32.mrb[29].mxu0 }
 0x424   : > { %v10433_v47 = vpop.f32.mrb[30].mxu0 }
 0x425   : > { %3981 = vrot.lane.b32.xlu0 %v10433_v47, %s7524_s24  ;;  %v10437_v33 = vpop.f32.mrb[31].mxu0 }
 0x428   : > { %v10439_v42 = vpop.f32.mrb[32].mxu0 }
 0x429   : > { %3983 = vrot.lane.b32.xlu1 %v10439_v42, %s7524_s24  ;;  %v10443_v22 = vpop.f32.mrb[33].mxu0 }
 0x42c   : > { %v10445_v59 = vpop.f32.mrb[34].mxu0 }
 0x42d   : > { %3985 = vrot.lane.b32.xlu1 %v10445_v59, %s7524_s24  ;;  %v10449_v24 = vpop.f32.mrb[35].mxu0 }
 0x430   : > { %v10451_v34 = vpop.f32.mrb[36].mxu0 }
 0x431   : > { %3987 = vrot.lane.b32.xlu1 %v10451_v34, %s7524_s24  ;;  %v10455_v51 = vpop.f32.mrb[37].mxu0 }
 0x434   : > { %v10457_v12 = vpop.f32.mrb[38].mxu0 }
 0x435   : > { %3989 = vrot.lane.b32.xlu1 %v10457_v12, %s7524_s24  ;;  %v10461_v0 = vpop.f32.mrb[39].mxu0 }
 0x438   : > { %v10463_v23 = vpop.f32.mrb[40].mxu0 }
 0x439   : > { %3991 = vrot.lane.b32.xlu1 %v10463_v23, %s7524_s24  ;;  %v10467_v41 = vpop.f32.mrb[41].mxu0 }
 0x43c   : > { %v10469_v14 = vpop.f32.mrb[42].mxu0 }
 0x43d   : > { %3993 = vrot.lane.b32.xlu1 %v10469_v14, %s7524_s24  ;;  %v10473_v6 = vpop.f32.mrb[43].mxu0 }
 0x440   : > { %v10475_v55 = vpop.f32.mrb[44].mxu0 }
 0x441   : > { %3995 = vrot.lane.b32.xlu1 %v10475_v55, %s7524_s24  ;;  %v10479_v57 = vpop.f32.mrb[45].mxu0 }
 0x444   : > { %v10481_v50 = vpop.f32.mrb[46].mxu0 }
 0x445   : > { %3997 = vrot.lane.b32.xlu1 %v10481_v50, %s7524_s24  ;;  %v10485_v43 = vpop.f32.mrb[47].mxu0 }
 0x448   : > { %v3872_v19 = vpop.f32.mrb[48].mxu0 }
 0x449   : > { %3999 = vrot.lane.b32.xlu1 %v3872_v19, %s7524_s24  ;;  %v10488_v35 = vpop.f32.mrb[49].mxu0 }
 0x44c   : > { %v3878_v3 = vpop.f32.mrb[50].mxu0 }
 0x44d   : > { %4001 = vrot.lane.b32.xlu1 %v3878_v3, %s7524_s24  ;;  %v10491_v25 = vpop.f32.mrb[51].mxu0 }
 0x450   : > { %v3884_v46 = vpop.f32.mrb[52].mxu0 }
 0x451   : > { %4003 = vrot.lane.b32.xlu1 %v3884_v46, %s7524_s24  ;;  %v10494_v54 = vpop.f32.mrb[53].mxu0 }
 0x454   : > { %v3890_v11 = vpop.f32.mrb[54].mxu0 }
 0x455   : > { %4005 = vrot.lane.b32.xlu1 %v3890_v11, %s7524_s24  ;;  %v10497_v52 = vpop.f32.mrb[55].mxu0 }
 0x458   : > { %v3896_v48 = vpop.f32.mrb[56].mxu0 }
 0x459   : > { %4007 = vrot.lane.b32.xlu1 %v3896_v48, %s7524_s24  ;;  %v10500_v16 = vpop.f32.mrb[57].mxu0 }
 0x45b   : > { %v3952_v9 = vpop.permute.xlu1 %3951 }
 0x45c   : > { %v4079_v61 = vadd.f32 %v3952_v9, %v10395_v8  ;;  %v3902_v40 = vpop.f32.mrb[58].mxu0 }
 0x45d   : > { %4009 = vrot.lane.b32.xlu1 %v3902_v40, %s7524_s24  ;;  %v10509_v17 = vpop.f32.mrb[59].mxu0 }
 0x45e   : > { %v4118_v58 = vadd.f32 %v10505_v31, %v4079_v61 }
 0x45f   : > { %v3954_v37 = vpop.permute.xlu0 %3953 }
 0x460   : > { %v10512_v20 = vmax.f32 %v4118_v58, 0.0  ;;  %v4080_v56 = vadd.f32 %v3954_v37, %v10401_v7  ;;  %v3908_v5 = vpop.f32.mrb[60].mxu0 }
 0x461   : > { %4011 = vrot.lane.b32.xlu1 %v3908_v5, %s7524_s24  ;;  %v10516_v60 = vpop.f32.mrb[61].mxu0 }
 0x462   : > { %v4119_v63 = vadd.f32 %v10505_v31, %v4080_v56  ;;  %4406 = vrot.lane.b32.xlu0 %v10512_v20, %s7524_s24 }
 0x463   : > { %v3956_v2 = vpop.permute.xlu1 %3955 }
 0x464   : > { %v10521_v8 = vmax.f32 %v4119_v63, 0.0  ;;  %v4081_v19 = vadd.f32 %v3956_v2, %v10407_v49  ;;  %v3914_v3 = vpop.f32.mrb[62].mxu0 }
 0x465   : > { %4013 = vrot.lane.b32.xlu1 %v3914_v3, %s7524_s24  ;;  %v10525_v46 = vpop.f32.mrb[63].mxu0 }
 0x466   : > { %v4120_v7 = vadd.f32 %v10505_v31, %v4081_v19  ;;  %4408 = vrot.lane.b32.xlu0 %v10521_v8, %s7524_s24 }
 0x467   : > { %v3958_v11 = vpop.permute.xlu0 %3957 }
 0x468   : > { %v10530_v48 = vmax.f32 %v4120_v7, 0.0  ;;  %v4082_v9 = vadd.f32 %v3958_v11, %v10413_v36 }
 0x46a   : > { %v4121_v61 = vadd.f32 %v10505_v31, %v4082_v9  ;;  %4410 = vrot.lane.b32.xlu0 %v10530_v48, %s7524_s24 }
 0x46b   : > { %v3960_v49 = vpop.permute.xlu1 %3959 }
 0x46c   : > { %v10536_v40 = vmax.f32 %v4121_v61, 0.0  ;;  %v4083_v58 = vadd.f32 %v3960_v49, %v10419_v4 }
 0x46e   : > { %v4122_v37 = vadd.f32 %v10505_v31, %v4083_v58  ;;  %4412 = vrot.lane.b32.xlu0 %v10536_v40, %s7524_s24 }
 0x46f   : > { %v3962_v56 = vpop.permute.xlu0 %3961 }
 0x470   : > { %v10542_v5 = vmax.f32 %v4122_v37, 0.0  ;;  %v4084_v36 = vadd.f32 %v3962_v56, %v10425_v13 }
 0x472   : > { %v4123_v63 = vadd.f32 %v10505_v31, %v4084_v36  ;;  %4414 = vrot.lane.b32.xlu0 %v10542_v5, %s7524_s24 }
 0x473   : > { %v3964_v2 = vpop.permute.xlu1 %3963 }
 0x474   : > { %v10548_v19 = vmax.f32 %v4123_v63, 0.0  ;;  %v4085_v4 = vadd.f32 %v3964_v2, %v10431_v53 }
 0x476   : > { %v4124_v3 = vadd.f32 %v10505_v31, %v4085_v4  ;;  %4416 = vrot.lane.b32.xlu0 %v10548_v19, %s7524_s24 }
 0x477   : > { %v3966_v7 = vpop.permute.xlu0 %3965 }
 0x478   : > { %v10554_v11 = vmax.f32 %v4124_v3, 0.0  ;;  %v4086_v13 = vadd.f32 %v3966_v7, %v10437_v33 }
 0x47a   : > { %v4125_v9 = vadd.f32 %v10505_v31, %v4086_v13  ;;  %4418 = vrot.lane.b32.xlu0 %v10554_v11, %s7524_s24 }
 0x47b   : > { %v3968_v61 = vpop.permute.xlu1 %3967 }
 0x47c   : > { %v10560_v49 = vmax.f32 %v4125_v9, 0.0  ;;  %v4055_v53 = vadd.f32 %v3968_v61, %v10359_v39 }
 0x47e   : > { %v4087_v58 = vadd.f32 %v4055_v53, %v10443_v22  ;;  %4420 = vrot.lane.b32.xlu0 %v10560_v49, %s7524_s24  ;;  %v4856_v53 = vld [vmem:[%s12907_s3 + $0x10] sm:$0xff] }
 0x47f   : > { %v3970_v37 = vpop.permute.xlu0 %3969 }
 0x480   : > { %v4126_v56 = vadd.f32 %v10505_v31, %v4087_v58  ;;  %v4056_v33 = vadd.f32 %v3970_v37, %v10363_v29 }
 0x482   : > { %v10568_v36 = vmax.f32 %v4126_v56, 0.0  ;;  %v4088_v63 = vadd.f32 %v4056_v33, %v10449_v24  ;;  %v4855_v24 = vld [vmem:[%s12907_s3 + $0x8] sm:$0xff] }
 0x483   : > { %v3972_v2 = vpop.permute.xlu1 %3971 }
 0x484   : > { %v4127_v4 = vadd.f32 %v10505_v31, %v4088_v63  ;;  %v4057_v3 = vadd.f32 %v3972_v2, %v10367_v26  ;;  %4422 = vrot.lane.b32.xlu0 %v10568_v36, %s7524_s24  ;;  %v4857_v26 = vld [vmem:[%s12907_s3 + $0x18] sm:$0xff] }
 0x485   : > { %v6917_v61 = vpack.c.bf16 %v4857_v26, %v4855_v24  ;;  %v4861_v63 = vld [vmem:[%s12907_s3 + $0x38] sm:$0xff] }
 0x486   : > { %v10575_v39 = vmax.f32 %v4127_v4, 0.0  ;;  %v4089_v22 = vadd.f32 %v4057_v3, %v10455_v51  ;;  %v4865_v26 = vld [vmem:[%s12907_s3 + $0x58] sm:$0xff] }
 0x487   : > { %v3974_v7 = vpop.permute.xlu0 %3973  ;;  %6918 = vmatprep.subr.bf16.mxu1 %v6917_v61 }
 0x488   : > { %v4128_v13 = vadd.f32 %v10505_v31, %v4089_v22  ;;  %v4058_v29 = vadd.f32 %v3974_v7, %v10371_v30  ;;  %4424 = vrot.lane.b32.xlu0 %v10575_v39, %s7524_s24  ;;  %v4854_v30 = vld [vmem:[%s12907_s3] sm:$0xff]  ;;  %v4860_v22 = vld [vmem:[%s12907_s3 + $0x30] sm:$0xff] }
 0x489   : > { %v6919_v37 = vpack.c.bf16 %v4856_v53, %v4854_v30  ;;  %v4864_v53 = vld [vmem:[%s12907_s3 + $0x50] sm:$0xff] }
 0x48a   : > { %v10588_v9 = vmax.f32 %v4128_v13, 0.0  ;;  %v4090_v51 = vadd.f32 %v4058_v29, %v10461_v0  ;;  %v4859_v0 = vld [vmem:[%s12907_s3 + $0x28] sm:$0xff] }
 0x48b   : > { %v3976_v58 = vpop.permute.xlu1 %3975  ;;  %6920 = vmatpush1.bf16.msra.mxu1 %v6919_v37  ;;  %v6921_v3 = vpack.c.bf16 %v4861_v63, %v4859_v0  ;;  %v4869_v0 = vld [vmem:[%s12907_s3 + $0x78] sm:$0xff] }
 0x48c   : > { %v4129_v56 = vadd.f32 %v10505_v31, %v4090_v51  ;;  %v4059_v33 = vadd.f32 %v3976_v58, %v10375_v32  ;;  %4426 = vrot.lane.b32.xlu0 %v10588_v9, %s7524_s24  ;;  %v4858_v32 = vld [vmem:[%s12907_s3 + $0x20] sm:$0xff] }
 0x48d   : > { %v6923_v13 = vpack.c.bf16 %v4860_v22, %v4858_v32  ;;  %6922 = vmatprep.subr.bf16.mxu1 %v6921_v3  ;;  %v4868_v32 = vld [vmem:[%s12907_s3 + $0x70] sm:$0xff]  ;;  %v4871_v22 = vld [vmem:[%s12907_s3 + $0x88] sm:$0xff] }
 0x48e   : > { %v10607_v2 = vmax.f32 %v4129_v56, 0.0  ;;  %v4091_v4 = vadd.f32 %v4059_v33, %v10467_v41  ;;  %v4863_v41 = vld [vmem:[%s12907_s3 + $0x48] sm:$0xff] }
 0x48f   : > { %v3978_v7 = vpop.permute.xlu0 %3977  ;;  %6924 = vmatpush1.bf16.msra.mxu1 %v6923_v13  ;;  %v6925_v30 = vpack.c.bf16 %v4865_v26, %v4863_v41 }
 0x490   : > { %v4130_v29 = vadd.f32 %v10505_v31, %v4091_v4  ;;  %v4060_v24 = vadd.f32 %v3978_v7, %v10379_v10  ;;  %4428 = vrot.lane.b32.xlu0 %v10607_v2, %s7524_s24  ;;  %v4862_v10 = vld [vmem:[%s12907_s3 + $0x40] sm:$0xff] }
 0x491   : > { %v6927_v37 = vpack.c.bf16 %v4864_v53, %v4862_v10  ;;  %6926 = vmatprep.subr.bf16.mxu1 %v6925_v30  ;;  %v4875_v30 = vld [vmem:[%s12907_s3 + $0xa8] sm:$0xff]  ;;  %v4877_v10 = vld [vmem:[%s12907_s3 + $0xb8] sm:$0xff] }
 0x492   : > { %v10626_v51 = vmax.f32 %v4130_v29, 0.0  ;;  %v4092_v61 = vadd.f32 %v4060_v24, %v10473_v6  ;;  %v4867_v6 = vld [vmem:[%s12907_s3 + $0x68] sm:$0xff]  ;;  %v4873_v29 = vld [vmem:[%s12907_s3 + $0x98] sm:$0xff]  ;;  %v4872_v24 = vld [vmem:[%s12907_s3 + $0x90] sm:$0xff] }
 0x493   : > { %v3980_v58 = vpop.permute.xlu1 %3979  ;;  %6928 = vmatpush1.bf16.msra.mxu1 %v6927_v37  ;;  %v6929_v3 = vpack.c.bf16 %v4869_v0, %v4867_v6  ;;  %v4879_v0 = vld [vmem:[%s12907_s3 + $0xc8] sm:$0xff] }
 0x494   : > { %v4131_v56 = vadd.f32 %v10505_v31, %v4092_v61  ;;  %v4061_v33 = vadd.f32 %v3980_v58, %v10383_v21  ;;  %4430 = vrot.lane.b32.xlu0 %v10626_v51, %s7524_s24  ;;  %v4866_v21 = vld [vmem:[%s12907_s3 + $0x60] sm:$0xff]  ;;  %v6933_v61 = vpack.c.bf16 %v4873_v29, %v4871_v22 }
 0x495   : > { %v6931_v13 = vpack.c.bf16 %v4868_v32, %v4866_v21  ;;  %6930 = vmatprep.subr.bf16.mxu1 %v6929_v3 }
 0x496   : > { %v10645_v63 = vmax.f32 %v4131_v56, 0.0  ;;  %v4093_v4 = vadd.f32 %v4061_v33, %v10479_v57  ;;  %v4870_v57 = vld [vmem:[%s12907_s3 + $0x80] sm:$0xff]  ;;  %v4876_v33 = vld [vmem:[%s12907_s3 + $0xb0] sm:$0xff] }
 0x497   : > { %v3982_v7 = vpop.permute.xlu0 %3981  ;;  %6932 = vmatpush1.bf16.msra.mxu1 %v6931_v13  ;;  %v6935_v53 = vpack.c.bf16 %v4872_v24, %v4870_v57  ;;  %v4874_v56 = vld [vmem:[%s12907_s3 + $0xa0] sm:$0xff]  ;;  %v4883_v57 = vld [vmem:[%s12907_s3 + $0xe8] sm:$0xff] }
 0x498   : > { %v4132_v41 = vadd.f32 %v10505_v31, %v4093_v4  ;;  %v4062_v26 = vadd.f32 %v3982_v7, %v10387_v28  ;;  %4432 = vrot.lane.b32.xlu0 %v10645_v63, %s7524_s24  ;;  %6934 = vmatprep.subr.bf16.mxu1 %v6933_v61  ;;  %v6937_v28 = vpack.c.bf16 %v4877_v10, %v4875_v30  ;;  %v4881_v4 = vld [vmem:[%s12907_s3 + $0xd8] sm:$0xff]  ;;  %v4878_v13 = vld [vmem:[%s12907_s3 + $0xc0] sm:$0xff]  ;;  %v4884_v10 = vld [vmem:[%s12907_s3 + $0xf0] sm:$0xff] }
 0x499   : > { %v6939_v21 = vpack.c.bf16 %v4876_v33, %v4874_v56  ;;  %v6941_v7 = vpack.c.bf16 %v4881_v4, %v4879_v0  ;;  %v4882_v30 = vld [vmem:[%s12907_s3 + $0xe0] sm:$0xff]  ;;  %v4888_v0 = vld [vmem:[%s12907_s3 + $0x110] sm:$0xff] }
 0x49a   : > { %v10676_v58 = vmax.f32 %v4132_v41, 0.0  ;;  %v4094_v37 = vadd.f32 %v4062_v26, %v10485_v43 }
 0x49b   : > { %v3984_v6 = vpop.permute.xlu1 %3983  ;;  %6936 = vmatpush1.bf16.msra.mxu1 %v6935_v53 }
 0x49c   : > { %v4133_v43 = vadd.f32 %v10505_v31, %v4094_v37  ;;  %v4063_v3 = vadd.f32 %v3984_v6, %v10391_v18  ;;  %4434 = vrot.lane.b32.xlu0 %v10676_v58, %s7524_s24  ;;  %6938 = vmatprep.subr.bf16.mxu1 %v6937_v28  ;;  %v4880_v18 = vld [vmem:[%s12907_s3 + $0xd0] sm:$0xff]  ;;  %v6947_v28 = vpack.c.bf16 %v4884_v10, %v4882_v30  ;;  %v4886_v6 = vld [vmem:[%s12907_s3 + $0x100] sm:$0xff] }
 0x49d   : > { %v6943_v41 = vpack.c.bf16 %v4880_v18, %v4878_v13  ;;  %v4890_v13 = vld [vmem:[%s12907_s3 + $0x120] sm:$0xff]  ;;  %v4892_v18 = vld [vmem:[%s12907_s3 + $0x130] sm:$0xff] }
 0x49e   : > { %v10695_v32 = vmax.f32 %v4133_v43, 0.0  ;;  %v10698_v22 = vadd.f32 %v4063_v3, %v10488_v35  ;;  %v4885_v35 = vld [vmem:[%s12907_s3 + $0xf8] sm:$0xff]  ;;  %v6951_v3 = vpack.c.bf16 %v4888_v0, %v4886_v6  ;;  %v4896_v30 = vld [vmem:[%s12907_s3 + $0x150] sm:$0xff] }
 0x49f   : > { %v3986_v29 = vpop.permute.xlu1 %3985  ;;  %6940 = vmatpush1.bf16.msra.mxu1 %v6939_v21  ;;  %v6945_v61 = vpack.c.bf16 %v4885_v35, %v4883_v57  ;;  %v6955_v35 = vpack.c.bf16 %v4892_v18, %v4890_v13 }
 0x4a0   : > { %v4064_v24 = vadd.f32 %v3986_v29, %v10397_v15  ;;  %4436 = vrot.lane.b32.xlu0 %v10695_v32, %s7524_s24  ;;  %6942 = vmatprep.subr.bf16.mxu1 %v6941_v7  ;;  %v4887_v15 = vld [vmem:[%s12907_s3 + $0x108] sm:$0xff] }
 0x4a2   : > { %v10716_v26 = vadd.f32 %v4064_v24, %v10491_v25  ;;  %v4889_v25 = vld [vmem:[%s12907_s3 + $0x118] sm:$0xff] }
 0x4a3   : > { %v3988_v53 = vpop.permute.xlu1 %3987  ;;  %6944 = vmatpush1.bf16.msra.mxu1 %v6943_v41  ;;  %v6949_v33 = vpack.c.bf16 %v4889_v25, %v4887_v15 }
 0x4a4   : > { %v4065_v37 = vadd.f32 %v3988_v53, %v10403_v38  ;;  %6946 = vmatprep.subr.bf16.mxu1 %v6945_v61  ;;  %v4891_v38 = vld [vmem:[%s12907_s3 + $0x128] sm:$0xff]  ;;  %v4894_v61 = vld [vmem:[%s12907_s3 + $0x140] sm:$0xff] }
 0x4a5   : > { %v6959_v15 = vpack.c.bf16 %v4896_v30, %v4894_v61  ;;  %v4910_v61 = vld [vmem:[%s12907_s3 + $0x1c0] sm:$0xff]  ;;  %v4912_v30 = vld [vmem:[%s12907_s3 + $0x1d0] sm:$0xff] }
 0x4a6   : > { %v10732_v56 = vadd.f32 %v4065_v37, %v10494_v54  ;;  %v4893_v54 = vld [vmem:[%s12907_s3 + $0x138] sm:$0xff] }
 0x4a7   : > { %v3990_v4 = vpop.permute.xlu1 %3989  ;;  %6948 = vmatpush1.bf16.msra.mxu1 %v6947_v28  ;;  %v6953_v7 = vpack.c.bf16 %v4893_v54, %v4891_v38  ;;  %v4898_v28 = vld [vmem:[%s12907_s3 + $0x160] sm:$0xff] }
 0x4a8   : > { %v4066_v43 = vadd.f32 %v3990_v4, %v10409_v44  ;;  %6950 = vmatprep.subr.bf16.mxu1 %v6949_v33  ;;  %v4895_v44 = vld [vmem:[%s12907_s3 + $0x148] sm:$0xff]  ;;  %v4900_v33 = vld [vmem:[%s12907_s3 + $0x170] sm:$0xff] }
 0x4a9   : > { %v6963_v4 = vpack.c.bf16 %v4900_v33, %v4898_v28  ;;  %v4214_v33 = vrot.slane %v10512_v20, 7 }
 0x4aa   : > { %v10748_v21 = vadd.f32 %v4066_v43, %v10497_v52  ;;  %v4897_v52 = vld [vmem:[%s12907_s3 + $0x158] sm:$0xff]  ;;  %v4902_v43 = vld [vmem:[%s12907_s3 + $0x180] sm:$0xff] }
 0x4ab   : > { %v3992_v29 = vpop.permute.xlu1 %3991  ;;  %6952 = vmatpush1.bf16.msra.mxu1 %v6951_v3  ;;  %v6957_v41 = vpack.c.bf16 %v4897_v52, %v4895_v44  ;;  %v4904_v3 = vld [vmem:[%s12907_s3 + $0x190] sm:$0xff]  ;;  %v4906_v52 = vld [vmem:[%s12907_s3 + $0x1a0] sm:$0xff] }
 0x4ac   : > { %v4067_v57 = vadd.f32 %v3992_v29, %v10415_v45  ;;  %6954 = vmatprep.subr.bf16.mxu1 %v6953_v7  ;;  %v4899_v45 = vld [vmem:[%s12907_s3 + $0x168] sm:$0xff]  ;;  %v6967_v18 = vpack.c.bf16 %v4904_v3, %v4902_v43  ;;  %v4135_v43 = vadd.f32 %v10505_v31, %v10716_v26 }
 0x4ae   : > { %v10764_v24 = vadd.f32 %v4067_v57, %v10500_v16  ;;  %v4901_v16 = vld [vmem:[%s12907_s3 + $0x178] sm:$0xff]  ;;  %v4908_v57 = vld [vmem:[%s12907_s3 + $0x1b0] sm:$0xff] }
 0x4af   : > { %v3994_v10 = vpop.permute.xlu1 %3993  ;;  %6956 = vmatpush1.bf16.msra.mxu1 %v6955_v35  ;;  %v6961_v37 = vpack.c.bf16 %v4901_v16, %v4899_v45  ;;  %v4911_v35 = vld [vmem:[%s12907_s3 + $0x1c8] sm:$0xff]  ;;  %v4917_v45 = vld [vmem:[%s12907_s3 + $0x1f8] sm:$0xff]  ;;  %v6975_v16 = vpack.c.bf16 %v4912_v30, %v4910_v61  ;;  %v4218_v61 = vrot.slane %v10542_v5, 7 }
 0x4b0   : > { %v4068_v53 = vadd.f32 %v3994_v10, %v10421_v62  ;;  %6958 = vmatprep.subr.bf16.mxu1 %v6957_v41  ;;  %v4903_v62 = vld [vmem:[%s12907_s3 + $0x188] sm:$0xff] }
 0x4b1   : > { %v4915_v10 = vld [vmem:[%s12907_s3 + $0x1e8] sm:$0xff] }
 0x4b2   : > { %v10780_v25 = vadd.f32 %v4068_v53, %v10509_v17  ;;  %v4905_v17 = vld [vmem:[%s12907_s3 + $0x198] sm:$0xff]  ;;  %v6977_v53 = vpack.c.bf16 %v4917_v45, %v4915_v10 }
 0x4b3   : > { %v3996_v6 = vpop.permute.xlu1 %3995  ;;  %6960 = vmatpush1.bf16.msra.mxu1 %v6959_v15  ;;  %v6965_v54 = vpack.c.bf16 %v4905_v17, %v4903_v62  ;;  %v4914_v15 = vld [vmem:[%s12907_s3 + $0x1e0] sm:$0xff]  ;;  %v4278_v62 = vsel %vm2065_vm0, 0.0, %v4214_v33 }
 0x4b4   : > { %v4069_v0 = vadd.f32 %v3996_v6, %v10427_v1  ;;  %6962 = vmatprep.subr.bf16.mxu1 %v6961_v37  ;;  %v4907_v1 = vld [vmem:[%s12907_s3 + $0x1a8] sm:$0xff]  ;;  %v4916_v37 = vld [vmem:[%s12907_s3 + $0x1f0] sm:$0xff]  ;;  %v4134_v6 = vadd.f32 %v10505_v31, %v10698_v22  ;;  %v4216_v22 = vrot.slane %v10530_v48, 7 }
 0x4b5   : > { %v6979_v28 = vpack.c.bf16 %v4916_v37, %v4914_v15  ;;  %v4219_v15 = vrot.slane %v10548_v19, 7 }
 0x4b6   : > { %v10796_v38 = vadd.f32 %v4069_v0, %v10516_v60  ;;  %v4909_v60 = vld [vmem:[%s12907_s3 + $0x1b8] sm:$0xff]  ;;  %v4215_v0 = vrot.slane %v10521_v8, 7  ;;  %v4280_v26 = vsel %vm2065_vm0, 0.0, %v4216_v22 }
 0x4b7   : > { %v3998_v7 = vpop.permute.xlu1 %3997  ;;  %6964 = vmatpush1.bf16.msra.mxu1 %v6963_v4  ;;  %v6969_v44 = vpack.c.bf16 %v4909_v60, %v4907_v1  ;;  %v10867_v60 = vmax.f32 %v4135_v43, 0.0 }
 0x4b8   : > { %v4070_v13 = vadd.f32 %v3998_v7, %v10433_v47  ;;  %6966 = vmatprep.subr.bf16.mxu1 %v6965_v54  ;;  %v4913_v47 = vld [vmem:[%s12907_s3 + $0x1d8] sm:$0xff]  ;;  %v10854_v54 = vmax.f32 %v4134_v6, 0.0  ;;  %v4279_v3 = vsel %vm2065_vm0, 0.0, %v4215_v0  ;;  %v4220_v0 = vrot.slane %v10554_v11, 7 }
 0x4b9   : > { %v6973_v41 = vpack.c.bf16 %v4913_v47, %v4911_v35  ;;  %13315 = vst [vmem:[#allocation22_spill] sm:$0xff] %v10867_v60 }
 0x4ba   : > { %v10812_v29 = vadd.f32 %v4070_v13, %v10525_v46  ;;  %v6971_v46 = vpack.c.bf16 %v4908_v57, %v4906_v52  ;;  %v4136_v13 = vadd.f32 %v10505_v31, %v10732_v56 }
 0x4bb   : > { %6968 = vmatpush1.bf16.msra.mxu1 %v6967_v18  ;;  %v4000_v35 = vpop.permute.xlu1 %3999 }
 0x4bc   : > { %6970 = vmatprep.subr.bf16.mxu1 %v6969_v44  ;;  %v4217_v44 = vrot.slane %v10536_v40, 7  ;;  %v10878_v47 = vmax.f32 %v4136_v13, 0.0  ;;  %v4140_v13 = vadd.f32 %v10505_v31, %v10796_v38 }
 0x4bf   : > { %6972 = vmatpush1.bf16.msra.mxu1 %v6971_v46  ;;  %v4137_v46 = vadd.f32 %v10505_v31, %v10748_v21  ;;  %v4282_v21 = vsel %vm2065_vm0, 0.0, %v4218_v61  ;;  %v4002_v37 = vpop.permute.xlu1 %4001 }
 0x4c0   : > { %6974 = vmatprep.subr.bf16.mxu1 %v6973_v41  ;;  %v4281_v41 = vsel %vm2065_vm0, 0.0, %v4217_v44 }
 0x4c1   : > { %v10890_v45 = vmax.f32 %v4137_v46, 0.0 }
 0x4c3   : > { %6976 = vmatpush1.bf16.msra.mxu1 %v6975_v16  ;;  %v4138_v16 = vadd.f32 %v10505_v31, %v10764_v24  ;;  %v4283_v24 = vsel %vm2065_vm0, 0.0, %v4219_v15 }
 0x4c4   : > { %6978 = vmatprep.subr.bf16.mxu1 %v6977_v53 }
 0x4c5   : > { %v10902_v6 = vmax.f32 %v4138_v16, 0.0 }
 0x4c7   : > { %6980 = vmatpush1.bf16.msra.mxu1 %v6979_v28 }
 0x4d4   : > { %v4407_v17 = vpop.permute.xlu0 %4406 }
 0x4d5   : > { %v10850_v4 = vsel %vm2616_vm7, %v4278_v62, %v4407_v17  ;;  %v4139_v62 = vadd.f32 %v10505_v31, %v10780_v25  ;;  %v4284_v25 = vsel %vm2065_vm0, 0.0, %v4220_v0  ;;  %v4224_v0 = vrot.slane %v10588_v9, 7 }
 0x4d6   : > { %4598 = vrot.lane.b32.xlu1 %v10850_v4, %s7524_s24 }
 0x4d7   : > { %v10914_v22 = vmax.f32 %v4139_v62, 0.0 }
 0x4d8   : > { %v4409_v7 = vpop.permute.xlu0 %4408 }
 0x4d9   : > { %v10861_v1 = vsel %vm2616_vm7, %v4279_v3, %v4409_v7  ;;  %v4004_v7 = vpop.permute.xlu1 %4003 }
 0x4da   : > { %13314 = vst [vmem:[#allocation29_spill] sm:$0xff] %v10861_v1  ;;  %4602 = vrot.lane.b32.xlu0 %v10861_v1, %s7524_s24  ;;  %4438 = vrot.lane.b32.xlu1 %v10854_v54, %s7524_s24 }
 0x4dc   : > { %v4411_v18 = vpop.permute.xlu0 %4410 }
 0x4dd   : > { %v10874_v52 = vsel %vm2616_vm7, %v4280_v26, %v4411_v18  ;;  %v4221_v18 = vrot.slane %v10560_v49, 7  ;;  %v4006_v61 = vpop.permute.xlu1 %4005 }
 0x4de   : > { %13316 = vst [vmem:[#allocation34_spill] sm:$0xff] %v10874_v52  ;;  %v7423_v57 = vpack.i.bf16 %v10867_v60, %v10874_v52 }
 0x4df   : > { %v4285_v38 = vsel %vm2065_vm0, 0.0, %v4221_v18 }
 0x4e0   : > { %v4413_v56 = vpop.permute.xlu0 %4412  ;;  %7424 = vrot.lane.b32.xlu0 %v7423_v57, %s7524_s24  ;;  %v4141_v57 = vadd.f32 %v10505_v31, %v10812_v29 }
 0x4e1   : > { %v10886_v30 = vsel %vm2616_vm7, %v4281_v41, %v4413_v56  ;;  %v10928_v41 = vmax.f32 %v4140_v13, 0.0 }
 0x4e2   : > { %13317 = vst [vmem:[#allocation33_spill] sm:$0xff] %v10886_v30  ;;  %v7428_v10 = vpack.i.bf16 %v10878_v47, %v10886_v30  ;;  %v10935_v16 = vmax.f32 %v4141_v57, 0.0  ;;  %v4288_v57 = vsel %vm2065_vm0, 0.0, %v4224_v0 }
 0x4e4   : > { %v4415_v53 = vpop.permute.xlu0 %4414  ;;  %7429 = vrot.lane.b32.xlu1 %v7428_v10, %s7524_s24 }
 0x4e5   : > { %v10898_v28 = vsel %vm2616_vm7, %v4282_v21, %v4415_v53  ;;  %v4071_v21 = vadd.f32 %v4000_v35, %v10439_v42  ;;  %v4222_v53 = vrot.slane %v10568_v36, 7  ;;  %v4008_v42 = vpop.permute.xlu1 %4007 }
 0x4e6   : > { %13318 = vst [vmem:[#allocation19_spill] sm:$0xff] %v10898_v28  ;;  %v7433_v33 = vpack.i.bf16 %v10890_v45, %v10898_v28 }
 0x4e7   : > { %v4142_v15 = vadd.f32 %v10505_v31, %v4071_v21 }
 0x4e8   : > { %v4417_v17 = vpop.permute.xlu0 %4416  ;;  %7434 = vrot.lane.b32.xlu0 %v7433_v33, %s7524_s24  ;;  %v4072_v33 = vadd.f32 %v4002_v37, %v10445_v59  ;;  %v4073_v59 = vadd.f32 %v4004_v7, %v10451_v34  ;;  %v4074_v34 = vadd.f32 %v4006_v61, %v10457_v12 }
 0x4e9   : > { %v10910_v43 = vsel %vm2616_vm7, %v4283_v24, %v4417_v17  ;;  %v4286_v24 = vsel %vm2065_vm0, 0.0, %v4222_v53  ;;  %v4223_v17 = vrot.slane %v10575_v39, 7  ;;  %v4010_v18 = vpop.permute.xlu1 %4009  ;;  %v4226_v53 = vrot.slane %v10626_v51, 7 }
 0x4ea   : > { %13319 = vst [vmem:[#allocation36_spill] sm:$0xff] %v10910_v43  ;;  %v7438_v3 = vpack.i.bf16 %v10902_v6, %v10910_v43  ;;  %v4143_v13 = vadd.f32 %v10505_v31, %v4072_v33  ;;  %v4145_v33 = vadd.f32 %v10505_v31, %v4074_v34 }
 0x4ec   : > { %v4419_v26 = vpop.permute.xlu0 %4418  ;;  %7439 = vrot.lane.b32.xlu1 %v7438_v3, %s7524_s24  ;;  %v10954_v3 = vmax.f32 %v4142_v15, 0.0 }
 0x4ed   : > { %v10922_v44 = vsel %vm2616_vm7, %v4284_v25, %v4419_v26  ;;  %v4287_v25 = vsel %vm2065_vm0, 0.0, %v4223_v17  ;;  %v4012_v61 = vpop.permute.xlu1 %4011 }
 0x4ee   : > { %v7443_v46 = vpack.i.bf16 %v10914_v22, %v10922_v44 }
 0x4f0   : > { %v4421_v56 = vpop.permute.xlu0 %4420  ;;  %7444 = vrot.lane.b32.xlu0 %v7443_v46, %s7524_s24  ;;  %v10967_v46 = vmax.f32 %v4143_v13, 0.0  ;;  %v4290_v13 = vsel %vm2065_vm0, 0.0, %v4226_v53 }
 0x4f1   : > { %v10933_v10 = vsel %vm2616_vm7, %v4285_v38, %v4421_v56  ;;  %v4144_v56 = vadd.f32 %v10505_v31, %v4073_v59  ;;  %v4225_v38 = vrot.slane %v10607_v2, 7  ;;  %v4227_v59 = vrot.slane %v10645_v63, 7 }
 0x4f2   : > { %13320 = vst [vmem:[#allocation23_spill] sm:$0xff] %v10933_v10  ;;  %v7448_v29 = vpack.i.bf16 %v10928_v41, %v10933_v10 }
 0x4f3   : > { %v10978_v15 = vmax.f32 %v4144_v56, 0.0  ;;  %v4289_v12 = vsel %vm2065_vm0, 0.0, %v4225_v38  ;;  %v4291_v53 = vsel %vm2065_vm0, 0.0, %v4227_v59 }
 0x4f4   : > { %7449 = vrot.lane.b32.xlu1 %v7448_v29, %s7524_s24  ;;  %4452 = vrot.lane.b32.xlu0 %v10935_v16, %s7524_s24 }
 0x4f6   : > { %v4423_v62 = vpop.permute.xlu0 %4422 }
 0x4f7   : > { %v10949_v35 = vsel %vm2616_vm7, %v4286_v24, %v4423_v62  ;;  %v4075_v62 = vadd.f32 %v4008_v42, %v10463_v23  ;;  %v4919_v23 = vld [vmem:[%s12907_s3 + $0x208] sm:$0xff]  ;;  %v4921_v42 = vld [vmem:[%s12907_s3 + $0x218] sm:$0xff] }
 0x4f8   : > { %4630 = vrot.lane.b32.xlu1 %v10949_v35, %s7524_s24  ;;  %v6981_v34 = vpack.c.bf16 %v4921_v42, %v4919_v23 }
 0x4fa   : > { %v4425_v37 = vpop.permute.xlu0 %4424  ;;  %6982 = vmatprep.subr.bf16.mxu1 %v6981_v34 }
 0x4fb   : > { %v10960_v26 = vsel %vm2616_vm7, %v4287_v25, %v4425_v37  ;;  %v10997_v37 = vmax.f32 %v4145_v33, 0.0  ;;  %v4146_v25 = vadd.f32 %v10505_v31, %v4075_v62 }
 0x4fc   : > { %13321 = vst [vmem:[#allocation37_spill] sm:$0xff] %v10960_v26  ;;  %4454 = vrot.lane.b32.xlu1 %v10954_v3, %s7524_s24  ;;  %4634 = vrot.lane.b32.xlu0 %v10960_v26, %s7524_s24 }
 0x4fd   : > { %v11008_v33 = vmax.f32 %v4146_v25, 0.0 }
 0x4fe   : > { %v4427_v7 = vpop.permute.xlu0 %4426 }
 0x4ff   : > { %v10973_v21 = vsel %vm2616_vm7, %v4288_v57, %v4427_v7  ;;  %v4076_v57 = vadd.f32 %v4010_v18, %v10469_v14  ;;  %v4077_v14 = vadd.f32 %v4012_v61, %v10475_v55  ;;  %v4229_v61 = vrot.slane %v10695_v32, 7 }
 0x500   : > { %13322 = vst [vmem:[#allocation20_spill] sm:$0xff] %v10973_v21  ;;  %v7453_v29 = vpack.i.bf16 %v10967_v46, %v10973_v21 }
 0x501   : > { %v4147_v62 = vadd.f32 %v10505_v31, %v4076_v57  ;;  %v4148_v23 = vadd.f32 %v10505_v31, %v4077_v14  ;;  %v4920_v14 = vld [vmem:[%s12907_s3 + $0x210] sm:$0xff] }
 0x502   : > { %v4429_v24 = vpop.permute.xlu0 %4428  ;;  %7454 = vrot.lane.b32.xlu0 %v7453_v29, %s7524_s24  ;;  %v4014_v29 = vpop.permute.xlu1 %4013 }
 0x503   : > { %v10985_v17 = vsel %vm2616_vm7, %v4289_v12, %v4429_v24  ;;  %v4228_v24 = vrot.slane %v10676_v58, 7  ;;  %v11020_v59 = vmax.f32 %v4147_v62, 0.0 }
 0x504   : > { %13323 = vst [vmem:[#allocation3_spill] sm:$0xff] %v10985_v17  ;;  %v7458_v0 = vpack.i.bf16 %v10978_v15, %v10985_v17 }
 0x505   : > { %v4292_v55 = vsel %vm2065_vm0, 0.0, %v4228_v24  ;;  %v4925_v24 = vld [vmem:[%s12907_s3 + $0x238] sm:$0xff] }
 0x506   : > { %v4431_v56 = vpop.permute.xlu0 %4430  ;;  %7459 = vrot.lane.b32.xlu1 %v7458_v0, %s7524_s24  ;;  %v4078_v0 = vadd.f32 %v4014_v29, %v10481_v50 }
 0x507   : > { %v11003_v7 = vsel %vm2616_vm7, %v4290_v13, %v4431_v56  ;;  %v11032_v56 = vmax.f32 %v4148_v23, 0.0  ;;  %v4230_v23 = vrot.slane %v10854_v54, 7 }
 0x508   : > { %v7463_v38 = vpack.i.bf16 %v10997_v37, %v11003_v7  ;;  %v4149_v57 = vadd.f32 %v10505_v31, %v4078_v0  ;;  %v4918_v31 = vld [vmem:[%s12907_s3 + $0x200] sm:$0xff] }
 0x509   : > { %v6983_v0 = vpack.c.bf16 %v4920_v14, %v4918_v31 }
 0x50a   : > { %v4433_v18 = vpop.permute.xlu0 %4432  ;;  %7464 = vrot.lane.b32.xlu0 %v7463_v38, %s7524_s24  ;;  %v4293_v38 = vsel %vm2065_vm0, 0.0, %v4229_v61 }
 0x50b   : > { %v11015_v12 = vsel %vm2616_vm7, %v4291_v53, %v4433_v18  ;;  %v11039_v53 = vmax.f32 %v4149_v57, 0.0  ;;  %v4923_v18 = vld [vmem:[%s12907_s3 + $0x228] sm:$0xff]  ;;  %v4922_v57 = vld [vmem:[%s12907_s3 + $0x220] sm:$0xff] }
 0x50c   : > { %v7468_v13 = vpack.i.bf16 %v11008_v33, %v11015_v12 }
 0x50e   : > { %v4435_v42 = vpop.permute.xlu0 %4434  ;;  %7469 = vrot.lane.b32.xlu1 %v7468_v13, %s7524_s24 }
 0x50f   : > { %v11027_v25 = vsel %vm2616_vm7, %v4292_v55, %v4435_v42  ;;  %v4310_v42 = vrot.slane %v10512_v20, 1  ;;  %v6985_v55 = vpack.c.bf16 %v4925_v24, %v4923_v18  ;;  %v4929_v20 = vld [vmem:[%s12907_s3 + $0x258] sm:$0xff] }
 0x510   : > { %v7473_v50 = vpack.i.bf16 %v11020_v59, %v11027_v25 }
 0x511   : > { %v11082_v14 = vsel %vm2263_vm6, %v4310_v42, 0.0  ;;  %v4931_v42 = vld [vmem:[%s12907_s3 + $0x268] sm:$0xff] }
 0x512   : > { %v4437_v34 = vpop.permute.xlu0 %4436  ;;  %7474 = vrot.lane.b32.xlu0 %v7473_v50, %s7524_s24  ;;  %v4924_v50 = vld [vmem:[%s12907_s3 + $0x230] sm:$0xff] }
 0x513   : > { %v11037_v29 = vsel %vm2616_vm7, %v4293_v38, %v4437_v34  ;;  %v4927_v34 = vld [vmem:[%s12907_s3 + $0x248] sm:$0xff]  ;;  %v6987_v18 = vpack.c.bf16 %v4924_v50, %v4922_v57  ;;  %v4311_v57 = vrot.slane %v10521_v8, 1  ;;  %v4231_v50 = vrot.slane %v10867_v60, 7 }
 0x514   : > { %13324 = vst [vmem:[#allocation27_spill] sm:$0xff] %v11037_v29  ;;  %v7478_v62 = vpack.i.bf16 %v11032_v56, %v11037_v29  ;;  %v6989_v10 = vpack.c.bf16 %v4929_v20, %v4927_v34  ;;  %v4930_v20 = vld [vmem:[%s12907_s3 + $0x260] sm:$0xff]  ;;  %v4935_v8 = vld [vmem:[%s12907_s3 + $0x288] sm:$0xff] }
 0x516   : > { %7479 = vrot.lane.b32.xlu1 %v7478_v62, %s7524_s24  ;;  %4468 = vrot.lane.b32.xlu0 %v11039_v53, %s7524_s24  ;;  %v4294_v62 = vsel %vm2065_vm0, 0.0, %v4230_v23  ;;  %v4928_v23 = vld [vmem:[%s12907_s3 + $0x250] sm:$0xff] }
 0x548   : > { %v11058_v13 = vpop.permute.xlu1 %4598 }
 0x549   : > { %13325 = vst [vmem:[#allocation35_spill] sm:$0xff] %v11058_v13  ;;  %6733 = vmatprep.mubr.msk.f32.mxu1 %vm9371_vm8, %v11058_v13 }
 0x54a   : > { %5119 = vmatmul.mubr.f32.vlgmr.msra.gmra.mrb[0].mxu1 %v13240_v27 }
 0x54b   : > { %6984 = vmatpush1.bf16.msra.mxu1 %v6983_v0  ;;  %v4926_v0 = vld [vmem:[%s12907_s3 + $0x240] sm:$0xff] }
 0x54c   : > { %v11078_v38 = vpop.permute.xlu0 %4602  ;;  %v4439_v31 = vpop.permute.xlu1 %4438  ;;  %6986 = vmatprep.subr.bf16.mxu1 %v6985_v55  ;;  %v4933_v55 = vld [vmem:[%s12907_s3 + $0x278] sm:$0xff]  ;;  %v6991_v34 = vpack.c.bf16 %v4928_v23, %v4926_v0  ;;  %v11124_v0 = vsel %vm2263_vm6, %v4311_v57, 0.0  ;;  %v4295_v23 = vsel %vm2065_vm0, 0.0, %v4231_v50  ;;  %v4934_v57 = vld [vmem:[%s12907_s3 + $0x280] sm:$0xff] }
 0x54d   : > { %13327 = vst [vmem:[#allocation39_spill] sm:$0xff] %v11078_v38  ;;  %v11085_v24 = vsel %vm2616_vm7, %v4294_v62, %v4439_v31  ;;  %v4823_v29 = vsel %vm2616_vm7, %v11082_v14, %v11078_v38  ;;  %v4932_v62 = vld [vmem:[%s12907_s3 + $0x270] sm:$0xff] }
 0x54e   : > { %13328 = vst [vmem:[#allocation25_spill] sm:$0xff] %v11085_v24  ;;  %5123 = vmatprep.mubr.f32.mxu1 %v4823_v29  ;;  %4662 = vrot.lane.b32.xlu1 %v11085_v24, %s7524_s24  ;;  %v6993_v29 = vpack.c.bf16 %v4933_v55, %v4931_v42  ;;  %v4232_v42 = vrot.slane %v10878_v47, 7  ;;  %v4312_v55 = vrot.slane %v10530_v48, 1  ;;  %v6995_v38 = vpack.c.bf16 %v4932_v62, %v4930_v20  ;;  %v4936_v48 = vld [vmem:[%s12907_s3 + $0x290] sm:$0xff] }
 0x54f   : > { %5124 = vmatmul.mubr.f32.gmra.mrb[2].mxu1 %v10850_v4  ;;  %v4937_v4 = vld [vmem:[%s12907_s3 + $0x298] sm:$0xff] }
 0x550   : > { %6988 = vmatpush1.bf16.msra.mxu1 %v6987_v18  ;;  %v6997_v60 = vpack.c.bf16 %v4937_v4, %v4935_v8  ;;  %v4296_v8 = vsel %vm2065_vm0, 0.0, %v4232_v42  ;;  %v11158_v4 = vsel %vm2263_vm6, %v4312_v55, 0.0  ;;  %v4940_v42 = vld [vmem:[%s12907_s3 + $0x2b0] sm:$0xff]  ;;  %v4943_v55 = vld [vmem:[%s12907_s3 + $0x2c8] sm:$0xff] }
 0x551   : > { %6990 = vmatprep.subr.bf16.mxu1 %v6989_v10 }
 0x552   : > { %v11113_v31 = vpop.permute.xlu0 %7424 }
 0x553   : > { %13329 = vst [vmem:[#allocation40_spill] sm:$0xff] %v11113_v31  ;;  %v7427_v10 = vunpack.i.h.bf16 %v11113_v31  ;;  %v13036_v18 = vunpack.i.l.bf16 %v11113_v31 }
 0x554   : > { %6992 = vmatpush1.bf16.msra.mxu1 %v6991_v34  ;;  %v4939_v34 = vld [vmem:[%s12907_s3 + $0x2a8] sm:$0xff] }
 0x555   : > { %v4824_v13 = vsel %vm2616_vm7, %v11124_v0, %v13036_v18  ;;  %v11134_v24 = vsel %vm2616_vm7, %v4295_v23, %v7427_v10  ;;  %6994 = vmatprep.subr.bf16.mxu1 %v6993_v29  ;;  %v4941_v29 = vld [vmem:[%s12907_s3 + $0x2b8] sm:$0xff]  ;;  %v4233_v10 = vrot.slane %v10890_v45, 7  ;;  %v6999_v23 = vpack.c.bf16 %v4936_v48, %v4934_v57 }
 0x556   : > { %5128 = vmatprep.mubr.f32.mxu1 %v4824_v13  ;;  %v11142_v50 = vpop.permute.xlu1 %7429  ;;  %4666 = vrot.lane.b32.xlu0 %v11134_v24, %s7524_s24  ;;  %v4313_v13 = vrot.slane %v10536_v40, 1  ;;  %v4938_v40 = vld [vmem:[%s12907_s3 + $0x2a0] sm:$0xff] }
 0x557   : > { %13330 = vst [vmem:[#allocation28_spill] sm:$0xff] %v11142_v50  ;;  %v7432_v20 = vunpack.i.h.bf16 %v11142_v50  ;;  %v13039_v62 = vunpack.i.l.bf16 %v11142_v50  ;;  %5129 = vmatmul.mubr.f32.gmra.mrb[4].mxu1 %v10861_v1  ;;  %v7001_v1 = vpack.c.bf16 %v4941_v29, %v4939_v34  ;;  %v4297_v29 = vsel %vm2065_vm0, 0.0, %v4233_v10 }
 0x558   : > { %6996 = vmatpush1.bf16.msra.mxu1 %v6995_v38  ;;  %v11188_v34 = vsel %vm2263_vm6, %v4313_v13, 0.0  ;;  %v4942_v13 = vld [vmem:[%s12907_s3 + $0x2c0] sm:$0xff] }
 0x559   : > { %v11162_v18 = vsel %vm2616_vm7, %v4296_v8, %v7432_v20  ;;  %v4825_v31 = vsel %vm2616_vm7, %v11158_v4, %v13039_v62  ;;  %6998 = vmatprep.subr.bf16.mxu1 %v6997_v60  ;;  %v4945_v60 = vld [vmem:[%s12907_s3 + $0x2d8] sm:$0xff]  ;;  %v4314_v20 = vrot.slane %v10542_v5, 1  ;;  %v7003_v8 = vpack.c.bf16 %v4940_v42, %v4938_v40  ;;  %v4944_v5 = vld [vmem:[%s12907_s3 + $0x2d0] sm:$0xff] }
 0x55a   : > { %v11174_v38 = vpop.permute.xlu0 %7434  ;;  %4670 = vrot.lane.b32.xlu1 %v11162_v18, %s7524_s24  ;;  %5133 = vmatprep.mubr.f32.mxu1 %v4825_v31  ;;  %v4234_v31 = vrot.slane %v10902_v6, 7 }
 0x55b   : > { %13331 = vst [vmem:[#allocation2_spill] sm:$0xff] %v11174_v38  ;;  %v7437_v57 = vunpack.i.h.bf16 %v11174_v38  ;;  %v13042_v48 = vunpack.i.l.bf16 %v11174_v38  ;;  %5134 = vmatmul.mubr.f32.gmra.mrb[6].mxu1 %v10874_v52  ;;  %v7005_v52 = vpack.c.bf16 %v4945_v60, %v4943_v55  ;;  %v4315_v55 = vrot.slane %v10548_v19, 1  ;;  %v4946_v19 = vld [vmem:[%s12907_s3 + $0x2e0] sm:$0xff] }
 0x55c   : > { %7000 = vmatpush1.bf16.msra.mxu1 %v6999_v23  ;;  %v4947_v23 = vld [vmem:[%s12907_s3 + $0x2e8] sm:$0xff]  ;;  %v11222_v60 = vsel %vm2263_vm6, %v4314_v20, 0.0 }
 0x55d   : > { %v4826_v62 = vsel %vm2616_vm7, %v11188_v34, %v13042_v48  ;;  %v11198_v50 = vsel %vm2616_vm7, %v4297_v29, %v7437_v57  ;;  %7002 = vmatprep.subr.bf16.mxu1 %v7001_v1  ;;  %v4949_v1 = vld [vmem:[%s12907_s3 + $0x2f8] sm:$0xff]  ;;  %v4235_v57 = vrot.slane %v10914_v22, 7  ;;  %v7007_v29 = vpack.c.bf16 %v4944_v5, %v4942_v13 }
 0x55e   : > { %v11206_v10 = vpop.permute.xlu1 %7439  ;;  %5138 = vmatprep.mubr.f32.mxu1 %v4826_v62  ;;  %4674 = vrot.lane.b32.xlu0 %v11198_v50, %s7524_s24  ;;  %v4298_v62 = vsel %vm2065_vm0, 0.0, %v4234_v31  ;;  %v4948_v31 = vld [vmem:[%s12907_s3 + $0x2f0] sm:$0xff] }
 0x55f   : > { %13332 = vst [vmem:[#allocation26_spill] sm:$0xff] %v11206_v10  ;;  %v7442_v40 = vunpack.i.h.bf16 %v11206_v10  ;;  %v13045_v42 = vunpack.i.l.bf16 %v11206_v10  ;;  %5139 = vmatmul.mubr.f32.gmra.mrb[8].mxu1 %v10886_v30  ;;  %v7009_v30 = vpack.c.bf16 %v4949_v1, %v4947_v23  ;;  %v11252_v23 = vsel %vm2263_vm6, %v4315_v55, 0.0 }
 0x560   : > { %7004 = vmatpush1.bf16.msra.mxu1 %v7003_v8  ;;  %v4951_v8 = vld [vmem:[%s12907_s3 + $0x308] sm:$0xff]  ;;  %v4299_v1 = vsel %vm2065_vm0, 0.0, %v4235_v57  ;;  %v4950_v57 = vld [vmem:[%s12907_s3 + $0x300] sm:$0xff] }
 0x561   : > { %v11226_v48 = vsel %vm2616_vm7, %v4298_v62, %v7442_v40  ;;  %v4827_v38 = vsel %vm2616_vm7, %v11222_v60, %v13045_v42  ;;  %7006 = vmatprep.subr.bf16.mxu1 %v7005_v52  ;;  %v4953_v52 = vld [vmem:[%s12907_s3 + $0x318] sm:$0xff]  ;;  %v4316_v40 = vrot.slane %v10554_v11, 1  ;;  %v7011_v62 = vpack.c.bf16 %v4948_v31, %v4946_v19  ;;  %v4952_v11 = vld [vmem:[%s12907_s3 + $0x310] sm:$0xff]  ;;  %v4955_v19 = vld [vmem:[%s12907_s3 + $0x328] sm:$0xff] }
 0x562   : > { %13333 = vst [vmem:[#allocation7_spill] sm:$0xff] %v11226_v48  ;;  %v11238_v20 = vpop.permute.xlu0 %7444  ;;  %4678 = vrot.lane.b32.xlu1 %v11226_v48, %s7524_s24  ;;  %5143 = vmatprep.mubr.f32.mxu1 %v4827_v38  ;;  %v4236_v38 = vrot.slane %v10928_v41, 7  ;;  %v7013_v55 = vpack.c.bf16 %v4953_v52, %v4951_v8 }
 0x563   : > { %13334 = vst [vmem:[#allocation31_spill] sm:$0xff] %v11238_v20  ;;  %v7447_v13 = vunpack.i.h.bf16 %v11238_v20  ;;  %v13048_v5 = vunpack.i.l.bf16 %v11238_v20  ;;  %5144 = vmatmul.mubr.f32.gmra.mrb[10].mxu1 %v10898_v28  ;;  %v4237_v28 = vrot.slane %v10935_v16, 7 }
 0x564   : > { %7008 = vmatpush1.bf16.msra.mxu1 %v7007_v29 }
 0x565   : > { %v4828_v42 = vsel %vm2616_vm7, %v11252_v23, %v13048_v5  ;;  %v11262_v10 = vsel %vm2616_vm7, %v4299_v1, %v7447_v13  ;;  %7010 = vmatprep.subr.bf16.mxu1 %v7009_v30  ;;  %v4957_v30 = vld [vmem:[%s12907_s3 + $0x338] sm:$0xff]  ;;  %v11286_v13 = vsel %vm2263_vm6, %v4316_v40, 0.0  ;;  %v7015_v1 = vpack.c.bf16 %v4952_v11, %v4950_v57 }
 0x566   : > { %13335 = vst [vmem:[#allocation4_spill] sm:$0xff] %v11262_v10  ;;  %v11271_v29 = vpop.permute.xlu1 %7449  ;;  %5148 = vmatprep.mubr.f32.mxu1 %v4828_v42  ;;  %4682 = vrot.lane.b32.xlu0 %v11262_v10, %s7524_s24  ;;  %v4453_v52 = vpop.permute.xlu0 %4452  ;;  %v4300_v42 = vsel %vm2065_vm0, 0.0, %v4236_v38  ;;  %v4301_v5 = vsel %vm2065_vm0, 0.0, %v4237_v28  ;;  %v7017_v48 = vpack.c.bf16 %v4957_v30, %v4955_v19  ;;  %v4238_v28 = vrot.slane %v10954_v3, 7 }
 0x567   : > { %v7452_v31 = vunpack.i.h.bf16 %v11271_v29  ;;  %v13055_v8 = vunpack.i.l.bf16 %v11271_v29  ;;  %5149 = vmatmul.mubr.f32.gmra.mrb[12].mxu1 %v10910_v43  ;;  %v11297_v43 = vsel %vm2616_vm7, %v4301_v5, %v4453_v52  ;;  %v4318_v40 = vrot.slane %v10568_v36, 1  ;;  %v4961_v36 = vld [vmem:[%s12907_s3 + $0x358] sm:$0xff]  ;;  %v4958_v52 = vld [vmem:[%s12907_s3 + $0x340] sm:$0xff] }
 0x568   : > { %7012 = vmatpush1.bf16.msra.mxu1 %v7011_v62  ;;  %13336 = vst [vmem:[#allocation41_spill] sm:$0xff] %v11297_v43  ;;  %v4954_v62 = vld [vmem:[%s12907_s3 + $0x320] sm:$0xff]  ;;  %v4302_v57 = vsel %vm2065_vm0, 0.0, %v4238_v28  ;;  %v4963_v28 = vld [vmem:[%s12907_s3 + $0x368] sm:$0xff] }
 0x569   : > { %v11290_v20 = vsel %vm2616_vm7, %v4300_v42, %v7452_v31  ;;  %v4829_v10 = vsel %vm2616_vm7, %v11286_v13, %v13055_v8  ;;  %7014 = vmatprep.subr.bf16.mxu1 %v7013_v55  ;;  %v4956_v55 = vld [vmem:[%s12907_s3 + $0x330] sm:$0xff]  ;;  %v11327_v30 = vsel %vm2263_vm6, %v4318_v40, 0.0  ;;  %v4965_v40 = vld [vmem:[%s12907_s3 + $0x378] sm:$0xff] }
 0x56a   : > { %v11299_v38 = vpop.permute.xlu1 %4630  ;;  %4686 = vrot.lane.b32.xlu1 %v11290_v20, %s7524_s24  ;;  %5153 = vmatprep.mubr.f32.mxu1 %v4829_v10  ;;  %v4959_v10 = vld [vmem:[%s12907_s3 + $0x348] sm:$0xff]  ;;  %v7019_v5 = vpack.c.bf16 %v4956_v55, %v4954_v62  ;;  %v4960_v42 = vld [vmem:[%s12907_s3 + $0x350] sm:$0xff]  ;;  %v4319_v62 = vrot.slane %v10575_v39, 1 }
 0x56b   : > { %13337 = vst [vmem:[#allocation5_spill] sm:$0xff] %v11299_v38  ;;  %4690 = vrot.lane.b32.xlu0 %v11297_v43, %s7524_s24  ;;  %5154 = vmatmul.mubr.f32.gmra.mrb[14].mxu1 %v10922_v44  ;;  %v7021_v31 = vpack.c.bf16 %v4961_v36, %v4959_v10  ;;  %v7023_v55 = vpack.c.bf16 %v4960_v42, %v4958_v52  ;;  %v4239_v10 = vrot.slane %v10967_v46, 7  ;;  %v4967_v39 = vld [vmem:[%s12907_s3 + $0x388] sm:$0xff] }
 0x56c   : > { %6735 = vmatprep.mubr.msk.f32.mxu1 %vm9371_vm8, %v11299_v38  ;;  %7016 = vmatpush1.bf16.msra.mxu1 %v7015_v1  ;;  %v7025_v36 = vpack.c.bf16 %v4965_v40, %v4963_v28  ;;  %v11370_v52 = vsel %vm2263_vm6, %v4319_v62, 0.0  ;;  %v4320_v28 = vrot.slane %v10588_v9, 1  ;;  %v4966_v62 = vld [vmem:[%s12907_s3 + $0x380] sm:$0xff] }
 0x56d   : > { %7018 = vmatprep.subr.bf16.mxu1 %v7017_v48  ;;  %v4303_v42 = vsel %vm2065_vm0, 0.0, %v4239_v10  ;;  %v4971_v10 = vld [vmem:[%s12907_s3 + $0x3a8] sm:$0xff] }
 0x56e   : > { %v4455_v11 = vpop.permute.xlu1 %4454  ;;  %v11324_v19 = vpop.permute.xlu0 %4634 }
 0x56f   : > { %13338 = vst [vmem:[#allocation32_spill] sm:$0xff] %v11324_v19  ;;  %v11336_v48 = vsel %vm2616_vm7, %v4302_v57, %v4455_v11  ;;  %5159 = vmatmul.mubr.f32.gmra.mrb[16].mxu1 %v13240_v27  ;;  %v4831_v1 = vsel %vm2616_vm7, %v11327_v30, %v11324_v19  ;;  %v4962_v57 = vld [vmem:[%s12907_s3 + $0x360] sm:$0xff]  ;;  %v4964_v11 = vld [vmem:[%s12907_s3 + $0x370] sm:$0xff] }
 0x570   : > { %4694 = vrot.lane.b32.xlu1 %v11336_v48, %s7524_s24  ;;  %5164 = vmatprep.mubr.f32.mxu1 %v4831_v1  ;;  %v4240_v1 = vrot.slane %v10978_v15, 7  ;;  %v7027_v40 = vpack.c.bf16 %v4964_v11, %v4962_v57 }
 0x571   : > { %7020 = vmatpush1.bf16.msra.mxu1 %v7019_v5  ;;  %v4969_v5 = vld [vmem:[%s12907_s3 + $0x398] sm:$0xff] }
 0x572   : > { %7022 = vmatprep.subr.bf16.mxu1 %v7021_v31  ;;  %v7029_v38 = vpack.c.bf16 %v4969_v5, %v4967_v39  ;;  %v4321_v39 = vrot.slane %v10607_v2, 1  ;;  %v11404_v5 = vsel %vm2263_vm6, %v4320_v28, 0.0  ;;  %v4970_v2 = vld [vmem:[%s12907_s3 + $0x3a0] sm:$0xff] }
 0x573   : > { %5165 = vmatmul.mubr.f32.gmra.mrb[18].mxu1 %v10949_v35 }
 0x574   : > { %v11359_v8 = vpop.permute.xlu0 %7454 }
 0x575   : > { %13339 = vst [vmem:[#allocation8_spill] sm:$0xff] %v11359_v8  ;;  %v7457_v35 = vunpack.i.h.bf16 %v11359_v8  ;;  %v13059_v31 = vunpack.i.l.bf16 %v11359_v8  ;;  %7024 = vmatpush1.bf16.msra.mxu1 %v7023_v55  ;;  %v4968_v55 = vld [vmem:[%s12907_s3 + $0x390] sm:$0xff] }
 0x576   : > { %7026 = vmatprep.subr.bf16.mxu1 %v7025_v36  ;;  %v4973_v36 = vld [vmem:[%s12907_s3 + $0x3b8] sm:$0xff] }
 0x577   : > { %v4832_v43 = vsel %vm2616_vm7, %v11370_v52, %v13059_v31  ;;  %v11380_v19 = vsel %vm2616_vm7, %v4303_v42, %v7457_v35  ;;  %v4241_v35 = vrot.slane %v10997_v37, 7  ;;  %v7031_v42 = vpack.c.bf16 %v4968_v55, %v4966_v62 }
 0x578   : > { %v11388_v9 = vpop.permute.xlu1 %7459  ;;  %5170 = vmatprep.mubr.f32.mxu1 %v4832_v43  ;;  %4698 = vrot.lane.b32.xlu0 %v11380_v19, %s7524_s24  ;;  %v4304_v43 = vsel %vm2065_vm0, 0.0, %v4240_v1  ;;  %v4972_v1 = vld [vmem:[%s12907_s3 + $0x3b0] sm:$0xff] }
 0x579   : > { %13340 = vst [vmem:[#allocation38_spill] sm:$0xff] %v11388_v9  ;;  %v7462_v57 = vunpack.i.h.bf16 %v11388_v9  ;;  %v13062_v11 = vunpack.i.l.bf16 %v11388_v9  ;;  %5171 = vmatmul.mubr.f32.gmra.mrb[20].mxu1 %v10960_v26  ;;  %v7033_v26 = vpack.c.bf16 %v4973_v36, %v4971_v10  ;;  %v11434_v10 = vsel %vm2263_vm6, %v4321_v39, 0.0  ;;  %v4974_v39 = vld [vmem:[%s12907_s3 + $0x3c0] sm:$0xff] }
 0x57a   : > { %7028 = vmatpush1.bf16.msra.mxu1 %v7027_v40  ;;  %v4975_v40 = vld [vmem:[%s12907_s3 + $0x3c8] sm:$0xff]  ;;  %13342 = vst [vmem:[#allocation10_spill] sm:$0xff] %v11434_v10  ;;  %v4305_v36 = vsel %vm2065_vm0, 0.0, %v4241_v35 }
 0x57b   : > { %v11408_v31 = vsel %vm2616_vm7, %v4304_v43, %v7462_v57  ;;  %v4833_v8 = vsel %vm2616_vm7, %v11404_v5, %v13062_v11  ;;  %7030 = vmatprep.subr.bf16.mxu1 %v7029_v38  ;;  %v4977_v38 = vld [vmem:[%s12907_s3 + $0x3d8] sm:$0xff]  ;;  %v4322_v57 = vrot.slane %v10626_v51, 1  ;;  %v7035_v43 = vpack.c.bf16 %v4972_v1, %v4970_v2  ;;  %v4976_v51 = vld [vmem:[%s12907_s3 + $0x3d0] sm:$0xff] }
 0x57c   : > { %4702 = vrot.lane.b32.xlu1 %v11408_v31, %s7524_s24  ;;  %v11422_v28 = vpop.permute.xlu0 %7464  ;;  %5176 = vmatprep.mubr.f32.mxu1 %v4833_v8  ;;  %v4242_v8 = vrot.slane %v11008_v33, 7 }
 0x57d   : > { %13341 = vst [vmem:[#allocation9_spill] sm:$0xff] %v11422_v28  ;;  %v7467_v62 = vunpack.i.h.bf16 %v11422_v28  ;;  %v13065_v55 = vunpack.i.l.bf16 %v11422_v28  ;;  %5177 = vmatmul.mubr.f32.gmra.mrb[22].mxu1 %v10973_v21  ;;  %v7037_v21 = vpack.c.bf16 %v4977_v38, %v4975_v40  ;;  %v4323_v40 = vrot.slane %v10645_v63, 1  ;;  %v4978_v63 = vld [vmem:[%s12907_s3 + $0x3e0] sm:$0xff] }
 0x57e   : > { %7032 = vmatpush1.bf16.msra.mxu1 %v7031_v42  ;;  %v4979_v42 = vld [vmem:[%s12907_s3 + $0x3e8] sm:$0xff]  ;;  %v11468_v38 = vsel %vm2263_vm6, %v4322_v57, 0.0 }
 0x57f   : > { %v4834_v11 = vsel %vm2616_vm7, %v11434_v10, %v13065_v55  ;;  %v11444_v9 = vsel %vm2616_vm7, %v4305_v36, %v7467_v62  ;;  %7034 = vmatprep.subr.bf16.mxu1 %v7033_v26  ;;  %v4981_v26 = vld [vmem:[%s12907_s3 + $0x3f8] sm:$0xff]  ;;  %13343 = vst [vmem:[#allocation13_spill] sm:$0xff] %v11468_v38  ;;  %v4243_v62 = vrot.slane %v11020_v59, 7  ;;  %v7039_v36 = vpack.c.bf16 %v4976_v51, %v4974_v39 }
 0x580   : > { %v11452_v35 = vpop.permute.xlu1 %7469  ;;  %5182 = vmatprep.mubr.f32.mxu1 %v4834_v11  ;;  %4706 = vrot.lane.b32.xlu0 %v11444_v9, %s7524_s24  ;;  %v4306_v11 = vsel %vm2065_vm0, 0.0, %v4242_v8  ;;  %v4980_v8 = vld [vmem:[%s12907_s3 + $0x3f0] sm:$0xff] }
 0x581   : > { %v7472_v2 = vunpack.i.h.bf16 %v11452_v35  ;;  %v13068_v1 = vunpack.i.l.bf16 %v11452_v35  ;;  %5183 = vmatmul.mubr.f32.gmra.mrb[24].mxu1 %v10985_v17  ;;  %v7041_v17 = vpack.c.bf16 %v4981_v26, %v4979_v42  ;;  %v4307_v51 = vsel %vm2065_vm0, 0.0, %v4243_v62 }
 0x582   : > { %7036 = vmatpush1.bf16.msra.mxu1 %v7035_v43  ;;  %v4244_v42 = vrot.slane %v11032_v56, 7  ;;  %v4324_v26 = vrot.slane %v10676_v58, 1  ;;  %v4985_v58 = vld [vmem:[%s12907_s3 + $0x418] sm:$0xff] }
 0x583   : > { %v11472_v55 = vsel %vm2616_vm7, %v4306_v11, %v7472_v2  ;;  %v4835_v28 = vsel %vm2616_vm7, %v11468_v38, %v13068_v1  ;;  %7038 = vmatprep.subr.bf16.mxu1 %v7037_v21  ;;  %v11492_v21 = vsel %vm2263_vm6, %v4323_v40, 0.0  ;;  %v7043_v2 = vpack.c.bf16 %v4980_v8, %v4978_v63  ;;  %v4983_v40 = vld [vmem:[%s12907_s3 + $0x408] sm:$0xff] }
 0x584   : > { %4710 = vrot.lane.b32.xlu1 %v11472_v55, %s7524_s24  ;;  %v11486_v57 = vpop.permute.xlu0 %7474  ;;  %5188 = vmatprep.mubr.f32.mxu1 %v4835_v28  ;;  %13344 = vst [vmem:[#allocation15_spill] sm:$0xff] %v11492_v21  ;;  %v4245_v11 = vrot.slane %v11039_v53, 7 }
 0x585   : > { %v7477_v43 = vunpack.i.h.bf16 %v11486_v57  ;;  %v13069_v39 = vunpack.i.l.bf16 %v11486_v57  ;;  %5189 = vmatmul.mubr.f32.gmra.mrb[26].mxu1 %v11003_v7 }
 0x586   : > { %7040 = vmatpush1.bf16.msra.mxu1 %v7039_v36  ;;  %v7045_v36 = vpack.c.bf16 %v4985_v58, %v4983_v40 }
 0x587   : > { %v4836_v28 = vsel %vm2616_vm7, %v11492_v21, %v13069_v39  ;;  %v11503_v1 = vsel %vm2616_vm7, %v4307_v51, %v7477_v43  ;;  %7042 = vmatprep.subr.bf16.mxu1 %v7041_v17  ;;  %v4308_v43 = vsel %vm2065_vm0, 0.0, %v4244_v42  ;;  %v11520_v51 = vsel %vm2263_vm6, %v4324_v26, 0.0  ;;  %v13347_v26 = vld [vmem:[#allocation22_spill] sm:$0xff] }
 0x588   : > { %v11511_v62 = vpop.permute.xlu1 %7479  ;;  %5194 = vmatprep.mubr.f32.mxu1 %v4836_v28  ;;  %4714 = vrot.lane.b32.xlu0 %v11503_v1, %s7524_s24  ;;  %v4469_v17 = vpop.permute.xlu0 %4468  ;;  %13345 = vst [vmem:[#allocation16_spill] sm:$0xff] %v11520_v51  ;;  %v4309_v39 = vsel %vm2065_vm0, 0.0, %v4245_v11  ;;  %v4326_v42 = vrot.slane %v10854_v54, 1  ;;  %v4329_v54 = vrot.slane %v10890_v45, 1 }
 0x589   : > { %v7482_v63 = vunpack.i.h.bf16 %v11511_v62  ;;  %v13070_v8 = vunpack.i.l.bf16 %v11511_v62  ;;  %5195 = vmatmul.mubr.f32.gmra.mrb[28].mxu1 %v11015_v12  ;;  %v11531_v58 = vsel %vm2616_vm7, %v4309_v39, %v4469_v17  ;;  %v4317_v39 = vrot.slane %v10560_v49, 1 }
 0x58a   : > { %7044 = vmatpush1.bf16.msra.mxu1 %v7043_v2  ;;  %v4325_v49 = vrot.slane %v10695_v32, 1  ;;  %v4327_v2 = vrot.slane %v13347_v26, 1  ;;  %v4390_v11 = vsel %vm2263_vm6, %v4326_v42, 0.0  ;;  %v4328_v32 = vrot.slane %v10878_v47, 1 }
 0x58b   : > { %v11524_v28 = vsel %vm2616_vm7, %v4308_v43, %v7482_v63  ;;  %v4837_v40 = vsel %vm2616_vm7, %v11520_v51, %v13070_v8  ;;  %7046 = vmatprep.subr.bf16.mxu1 %v7045_v36  ;;  %v4330_v17 = vrot.slane %v10902_v6, 1  ;;  %v11596_v47 = vsel %vm2263_vm6, %v4329_v54, 0.0 }
 0x58c   : > { %4718 = vrot.lane.b32.xlu1 %v11524_v28, %s7524_s24  ;;  %5200 = vmatprep.mubr.f32.mxu1 %v4837_v40  ;;  %v11584_v36 = vsel %vm2263_vm6, %v4327_v2, 0.0  ;;  %v11590_v63 = vsel %vm2263_vm6, %v4328_v32, 0.0  ;;  %13350 = vst [vmem:[#allocation11_spill] sm:$0xff] %v11596_v47  ;;  %v4331_v43 = vrot.slane %v10914_v22, 1  ;;  %v4332_v40 = vrot.slane %v10928_v41, 1 }
 0x58d   : > { %4722 = vrot.lane.b32.xlu0 %v11531_v58, %s7524_s24  ;;  %5201 = vmatmul.mubr.f32.gmra.mrb[30].mxu1 %v11027_v25  ;;  %13348 = vst [vmem:[#allocation42_spill] sm:$0xff] %v11584_v36  ;;  %13349 = vst [vmem:[#allocation18_spill] sm:$0xff] %v11590_v63  ;;  %v11602_v45 = vsel %vm2263_vm6, %v4330_v17, 0.0  ;;  %v4335_v42 = vrot.slane %v10967_v46, 1  ;;  %v4336_v26 = vrot.slane %v10978_v15, 1  ;;  %v4337_v32 = vrot.slane %v10997_v37, 1 }
 0x58e   : > { %13351 = vst [vmem:[#allocation14_spill] sm:$0xff] %v11602_v45  ;;  %v11608_v6 = vsel %vm2263_vm6, %v4331_v43, 0.0  ;;  %v11614_v22 = vsel %vm2263_vm6, %v4332_v40, 0.0  ;;  %v4338_v15 = vrot.slane %v11008_v33, 1  ;;  %v4339_v37 = vrot.slane %v11020_v59, 1 }
 0x58f   : > { %13352 = vst [vmem:[#allocation17_spill] sm:$0xff] %v11608_v6  ;;  %13353 = vst [vmem:[#allocation21_spill] sm:$0xff] %v11614_v22  ;;  %v11641_v46 = vsel %vm2263_vm6, %v4336_v26, 0.0  ;;  %v11647_v54 = vsel %vm2263_vm6, %v4337_v32, 0.0  ;;  %v4340_v43 = vrot.slane %v11032_v56, 1 }
 0x590   : > { %4600 = vrot.lane.b32.xlu1 %v11082_v14, %s7524_s24  ;;  %v11554_v14 = vsel %vm2263_vm6, %v4317_v39, 0.0  ;;  %v4333_v39 = vrot.slane %v10935_v16, 1  ;;  %13356 = vst [vmem:[#allocation30_spill] sm:$0xff] %v11641_v46  ;;  %13357 = vst [vmem:[#allocation22_spill] sm:$0xff] %v11647_v54  ;;  %v11653_v17 = vsel %vm2263_vm6, %v4338_v15, 0.0  ;;  %v11661_v40 = vsel %vm2263_vm6, %v4339_v37, 0.0 }
 0x591   : > { %4604 = vrot.lane.b32.xlu0 %v11124_v0, %s7524_s24  ;;  %13358 = vst [vmem:[#allocation43_spill] sm:$0xff] %v11653_v17  ;;  %13359 = vst [vmem:[#allocation44_spill] sm:$0xff] %v11661_v40  ;;  %v11670_v56 = vsel %vm2263_vm6, %v4340_v43, 0.0 }
 0x592   : > { %v11620_v41 = vsel %vm2263_vm6, %v4333_v39, 0.0  ;;  %v4341_v39 = vrot.slane %v11039_v53, 1 }
 0x593   : > { %13354 = vst [vmem:[#allocation24_spill] sm:$0xff] %v11620_v41 }
 0x594   : > { %4608 = vrot.lane.b32.xlu1 %v11158_v4, %s7524_s24  ;;  %v11677_v26 = vsel %vm2263_vm6, %v4341_v39, 0.0 }
 0x595   : > { %4612 = vrot.lane.b32.xlu0 %v11188_v34, %s7524_s24  ;;  %13362 = vst [vmem:[#allocation45_spill] sm:$0xff] %v11677_v26 }
 0x598   : > { %4616 = vrot.lane.b32.xlu1 %v11222_v60, %s7524_s24 }
 0x599   : > { %4620 = vrot.lane.b32.xlu0 %v11252_v23, %s7524_s24 }
 0x59c   : > { %4624 = vrot.lane.b32.xlu1 %v11286_v13, %s7524_s24 }
 0x59d   : > { %4628 = vrot.lane.b32.xlu0 %v11554_v14, %s7524_s24 }
 0x5a0   : > { %4632 = vrot.lane.b32.xlu1 %v11327_v30, %s7524_s24  ;;  %v11575_v30 = vsel %vm2263_vm6, %v4325_v49, 0.0  ;;  %v4334_v49 = vrot.slane %v10954_v3, 1  ;;  %v11631_v3 = vsel %vm2263_vm6, %v4335_v42, 0.0 }
 0x5a1   : > { %4636 = vrot.lane.b32.xlu0 %v11370_v52, %s7524_s24  ;;  %13346 = vst [vmem:[#allocation6_spill] sm:$0xff] %v11575_v30  ;;  %13355 = vst [vmem:[#allocation12_spill] sm:$0xff] %v11631_v3 }
 0x5a2   : > { %v4398_v16 = vsel %vm2263_vm6, %v4334_v49, 0.0  ;;  %v13360_v49 = vld [vmem:[#allocation25_spill] sm:$0xff] }
 0x5a3   : > { %13361 = vst [vmem:[#allocation25_spill] sm:$0xff] %v11670_v56 }
 0x5a4   : > { %4640 = vrot.lane.b32.xlu1 %v11404_v5, %s7524_s24 }
 0x5a5   : > { %4644 = vrot.lane.b32.xlu0 %v11434_v10, %s7524_s24 }
 0x5a8   : > { %4648 = vrot.lane.b32.xlu1 %v11468_v38, %s7524_s24 }
 0x5a9   : > { %4652 = vrot.lane.b32.xlu0 %v11492_v21, %s7524_s24 }
 0x5ac   : > { %4656 = vrot.lane.b32.xlu1 %v11520_v51, %s7524_s24  ;;  %v13368_v51 = vld [vmem:[#allocation39_spill] sm:$0xff] }
 0x5ad   : > { %4660 = vrot.lane.b32.xlu0 %v11575_v30, %s7524_s24  ;;  %v4991_v30 = vld [vmem:[%s12907_s3 + $0x448] sm:$0xff] }
 0x5b0   : > { %4664 = vrot.lane.b32.xlu1 %v4390_v11, %s7524_s24 }
 0x5b1   : > { %4668 = vrot.lane.b32.xlu0 %v11584_v36, %s7524_s24 }
 0x5b4   : > { %4672 = vrot.lane.b32.xlu1 %v11590_v63, %s7524_s24 }
 0x5b5   : > { %4676 = vrot.lane.b32.xlu0 %v11596_v47, %s7524_s24 }
 0x5b8   : > { %4680 = vrot.lane.b32.xlu1 %v11602_v45, %s7524_s24 }
 0x5b9   : > { %4684 = vrot.lane.b32.xlu0 %v11608_v6, %s7524_s24 }
 0x5bc   : > { %4688 = vrot.lane.b32.xlu1 %v11614_v22, %s7524_s24 }
 0x5bd   : > { %4692 = vrot.lane.b32.xlu0 %v11620_v41, %s7524_s24 }
 0x5c0   : > { %v11627_v2 = vpop.permute.xlu1 %4662  ;;  %4696 = vrot.lane.b32.xlu1 %v4398_v16, %s7524_s24 }
 0x5c1   : > { %4700 = vrot.lane.b32.xlu0 %v11631_v3, %s7524_s24  ;;  %6737 = vmatprep.mubr.msk.f32.mxu1 %vm9371_vm8, %v11627_v2 }
 0x5c2   : > { %5207 = vmatmul.mubr.f32.gmra.mrb[32].mxu1 %v13240_v27 }
 0x5c4   : > { %4704 = vrot.lane.b32.xlu1 %v11641_v46, %s7524_s24 }
 0x5c5   : > { %4708 = vrot.lane.b32.xlu0 %v11647_v54, %s7524_s24 }
 0x5c8   : > { %4712 = vrot.lane.b32.xlu1 %v11653_v17, %s7524_s24  ;;  %v11658_v33 = vpop.permute.xlu0 %4666 }
 0x5c9   : > { %4716 = vrot.lane.b32.xlu0 %v11661_v40, %s7524_s24  ;;  %v4839_v59 = vsel %vm2616_vm7, %v4390_v11, %v11658_v33 }
 0x5ca   : > { %5212 = vmatprep.mubr.f32.mxu1 %v4839_v59  ;;  %v13363_v59 = vld [vmem:[#allocation7_spill] sm:$0xff] }
 0x5cb   : > { %5213 = vmatmul.mubr.f32.gmra.mrb[34].mxu1 %v13360_v49 }
 0x5cc   : > { %4720 = vrot.lane.b32.xlu1 %v11670_v56, %s7524_s24  ;;  %v11674_v42 = vpop.permute.xlu1 %4670 }
 0x5cd   : > { %4724 = vrot.lane.b32.xlu0 %v11677_v26, %s7524_s24  ;;  %v4840_v53 = vsel %vm2616_vm7, %v11584_v36, %v11674_v42 }
 0x5ce   : > { %5218 = vmatprep.mubr.f32.mxu1 %v4840_v53 }
 0x5cf   : > { %5219 = vmatmul.mubr.f32.gmra.mrb[36].mxu1 %v11134_v24 }
 0x5d0   : > { %v11685_v11 = vpop.permute.xlu0 %4674 }
 0x5d1   : > { %v4841_v32 = vsel %vm2616_vm7, %v11590_v63, %v11685_v11  ;;  %v13366_v63 = vld [vmem:[#allocation35_spill] sm:$0xff] }
 0x5d2   : > { %5224 = vmatprep.mubr.f32.mxu1 %v4841_v32 }
 0x5d3   : > { %5225 = vmatmul.mubr.f32.gmra.mrb[38].mxu1 %v11162_v18 }
 0x5d4   : > { %v11691_v15 = vpop.permute.xlu1 %4678 }
 0x5d5   : > { %v4842_v37 = vsel %vm2616_vm7, %v11596_v47, %v11691_v15  ;;  %v4988_v47 = vld [vmem:[%s12907_s3 + $0x430] sm:$0xff] }
 0x5d6   : > { %5230 = vmatprep.mubr.f32.mxu1 %v4842_v37  ;;  %v13364_v37 = vld [vmem:[#allocation4_spill] sm:$0xff] }
 0x5d7   : > { %5231 = vmatmul.mubr.f32.gmra.mrb[40].mxu1 %v11198_v50 }
 0x5d8   : > { %v11697_v43 = vpop.permute.xlu0 %4682 }
 0x5d9   : > { %v4843_v39 = vsel %vm2616_vm7, %v11602_v45, %v11697_v43  ;;  %v4986_v45 = vld [vmem:[%s12907_s3 + $0x420] sm:$0xff] }
 0x5da   : > { %5236 = vmatprep.mubr.f32.mxu1 %v4843_v39 }
 0x5db   : > { %5237 = vmatmul.mubr.f32.gmra.mrb[42].mxu1 %v13363_v59 }
 0x5dc   : > { %v11703_v49 = vpop.permute.xlu1 %4686 }
 0x5dd   : > { %v11705_v53 = vpop.permute.xlu0 %4690  ;;  %v4844_v32 = vsel %vm2616_vm7, %v11608_v6, %v11703_v49 }
 0x5de   : > { %5242 = vmatprep.mubr.f32.mxu1 %v4844_v32  ;;  %v4845_v8 = vsel %vm2616_vm7, %v11614_v22, %v11705_v53 }
 0x5df   : > { %5243 = vmatmul.mubr.f32.gmra.mrb[44].mxu1 %v13364_v37 }
 0x5e0   : > { %5248 = vmatprep.mubr.f32.mxu1 %v4845_v8 }
 0x5e2   : > { %v11714_v26 = vpop.permute.xlu1 %4694 }
 0x5e3   : > { %5249 = vmatmul.mubr.f32.gmra.mrb[46].mxu1 %v11290_v20 }
 0x5e4   : > { %6739 = vmatprep.mubr.msk.f32.mxu1 %vm9371_vm8, %v11714_v26 }
 0x5e7   : > { %5255 = vmatmul.mubr.f32.gmra.mrb[48].mxu1 %v13240_v27 }
 0x5ea   : > { %v11721_v39 = vpop.permute.xlu0 %4698 }
 0x5eb   : > { %v4847_v32 = vsel %vm2616_vm7, %v4398_v16, %v11721_v39 }
 0x5ec   : > { %5260 = vmatprep.mubr.f32.mxu1 %v4847_v32 }
 0x5ed   : > { %5261 = vmatmul.mubr.f32.gmra.mrb[50].mxu1 %v11336_v48 }
 0x5ee   : > { %v11726_v41 = vpop.permute.xlu1 %4702 }
 0x5ef   : > { %v4848_v8 = vsel %vm2616_vm7, %v11631_v3, %v11726_v41 }
 0x5f0   : > { %5266 = vmatprep.mubr.f32.mxu1 %v4848_v8 }
 0x5f1   : > { %5267 = vmatmul.mubr.f32.gmra.mrb[52].mxu1 %v11380_v19 }
 0x5f2   : > { %v11732_v61 = vpop.permute.xlu0 %4706 }
 0x5f3   : > { %v4849_v22 = vsel %vm2616_vm7, %v11641_v46, %v11732_v61 }
 0x5f4   : > { %5272 = vmatprep.mubr.f32.mxu1 %v4849_v22 }
 0x5f5   : > { %5273 = vmatmul.mubr.f32.gmra.mrb[54].mxu1 %v11408_v31 }
 0x5f6   : > { %v11738_v16 = vpop.permute.xlu1 %4710 }
 0x5f7   : > { %v4850_v48 = vsel %vm2616_vm7, %v11647_v54, %v11738_v16 }
 0x5f8   : > { %5278 = vmatprep.mubr.f32.mxu1 %v4850_v48 }
 0x5f9   : > { %5279 = vmatmul.mubr.f32.gmra.mrb[56].mxu1 %v11444_v9 }
 0x5fa   : > { %v11744_v32 = vpop.permute.xlu0 %4714 }
 0x5fb   : > { %v4851_v8 = vsel %vm2616_vm7, %v11653_v17, %v11744_v32  ;;  %v4984_v17 = vld [vmem:[%s12907_s3 + $0x410] sm:$0xff] }
 0x5fc   : > { %5284 = vmatprep.mubr.f32.mxu1 %v4851_v8  ;;  %v4982_v8 = vld [vmem:[%s12907_s3 + $0x400] sm:$0xff] }
 0x5fd   : > { %5285 = vmatmul.mubr.f32.gmra.mrb[58].mxu1 %v11472_v55 }
 0x5fe   : > { %v11750_v22 = vpop.permute.xlu1 %4718 }
 0x5ff   : > { %v11752_v46 = vpop.permute.xlu0 %4722  ;;  %v4852_v54 = vsel %vm2616_vm7, %v11661_v40, %v11750_v22  ;;  %v4987_v40 = vld [vmem:[%s12907_s3 + $0x428] sm:$0xff] }
 0x600   : > { %5290 = vmatprep.mubr.f32.mxu1 %v4852_v54  ;;  %v4853_v48 = vsel %vm2616_vm7, %v11670_v56, %v11752_v46  ;;  %v4989_v54 = vld [vmem:[%s12907_s3 + $0x438] sm:$0xff]  ;;  %v7047_v56 = vpack.c.bf16 %v4984_v17, %v4982_v8  ;;  %v13367_v8 = vld [vmem:[#allocation34_spill] sm:$0xff] }
 0x601   : > { %5291 = vmatmul.mubr.f32.gmra.mrb[60].mxu1 %v11503_v1  ;;  %v7049_v6 = vpack.c.bf16 %v4989_v54, %v4987_v40  ;;  %v4993_v17 = vld [vmem:[%s12907_s3 + $0x458] sm:$0xff]  ;;  %v7051_v54 = vpack.c.bf16 %v4988_v47, %v4986_v45 }
 0x602   : > { %5296 = vmatprep.mubr.f32.mxu1 %v4853_v48  ;;  %v4601_v3 = vpop.permute.xlu1 %4600  ;;  %v13365_v48 = vld [vmem:[#allocation29_spill] sm:$0xff] }
 0x603   : > { %v4726_v36 = vsel %vm2616_vm7, %v13366_v63, %v4601_v3  ;;  %v4605_v40 = vpop.permute.xlu0 %4604  ;;  %v4990_v63 = vld [vmem:[%s12907_s3 + $0x440] sm:$0xff]  ;;  %v4992_v3 = vld [vmem:[%s12907_s3 + $0x450] sm:$0xff]  ;;  %v4997_v47 = vld [vmem:[%s12907_s3 + $0x478] sm:$0xff] }
 0x604   : > { %v4727_v21 = vsel %vm2616_vm7, %v13368_v51, %v4605_v40  ;;  %v13369_v45 = vld [vmem:[#allocation33_spill] sm:$0xff]  ;;  %v4994_v51 = vld [vmem:[%s12907_s3 + $0x460] sm:$0xff]  ;;  %v13370_v40 = vld [vmem:[#allocation40_spill] sm:$0xff] }
 0x605   : > { %5297 = vmatmul.mubr.f32.gmra.mrb[62].mxu1 %v11524_v28 }
 0x606   : > { %5367 = vmatprep.mubr.f32.mxu1 %v13365_v48  ;;  %v7053_v48 = vpack.c.bf16 %v4993_v17, %v4991_v30  ;;  %v4609_v30 = vpop.permute.xlu1 %4608  ;;  %v4996_v17 = vld [vmem:[%s12907_s3 + $0x470] sm:$0xff] }
 0x607   : > { %v4613_v10 = vpop.permute.xlu0 %4612 }
 0x609   : > { %5368 = vmatmul.mubr.f32.vlgmr.msra.gmra.mrb[0].mxu1 %v4726_v36  ;;  %v4995_v36 = vld [vmem:[%s12907_s3 + $0x468] sm:$0xff] }
 0x60a   : > { %7048 = vmatpush1.bf16.msra.mxu1 %v7047_v56  ;;  %5372 = vmatprep.mubr.f32.mxu1 %v13367_v8  ;;  %v7057_v56 = vpack.c.bf16 %v4997_v47, %v4995_v36  ;;  %v13371_v8 = vunpack.i.l.bf16 %v13370_v40  ;;  %v4617_v36 = vpop.permute.xlu1 %4616  ;;  %v13375_v47 = vld [vmem:[#allocation36_spill] sm:$0xff] }
 0x60b   : > { %7050 = vmatprep.subr.bf16.mxu1 %v7049_v6  ;;  %v7055_v6 = vpack.c.bf16 %v4992_v3, %v4990_v63 }
 0x60c   : > { %v4728_v38 = vsel %vm2616_vm7, %v13371_v8, %v4609_v30  ;;  %v4621_v8 = vpop.permute.xlu0 %4620 }
 0x60d   : > { %5373 = vmatmul.mubr.f32.gmra.mrb[2].mxu1 %v4727_v21  ;;  %v13372_v21 = vld [vmem:[#allocation19_spill] sm:$0xff] }
 0x60e   : > { %5377 = vmatprep.mubr.f32.mxu1 %v13369_v45  ;;  %7052 = vmatpush1.bf16.msra.mxu1 %v7051_v54  ;;  %v7059_v54 = vpack.c.bf16 %v4996_v17, %v4994_v51  ;;  %v13376_v45 = vld [vmem:[#allocation2_spill] sm:$0xff]  ;;  %v4625_v51 = vpop.permute.xlu1 %4624  ;;  %v13381_v17 = vld [vmem:[#allocation31_spill] sm:$0xff] }
 0x60f   : > { %7054 = vmatprep.subr.bf16.mxu1 %v7053_v48  ;;  %v13373_v48 = vld [vmem:[#allocation28_spill] sm:$0xff]  ;;  %v13377_v40 = vunpack.i.l.bf16 %v13376_v45 }
 0x610   : > { %v13374_v63 = vunpack.i.l.bf16 %v13373_v48  ;;  %v4629_v48 = vpop.permute.xlu0 %4628 }
 0x611   : > { %5378 = vmatmul.mubr.f32.gmra.mrb[4].mxu1 %v4728_v38  ;;  %v4730_v30 = vsel %vm2616_vm7, %v13377_v40, %v4617_v36  ;;  %v13378_v38 = vld [vmem:[#allocation26_spill] sm:$0xff]  ;;  %v13384_v36 = vld [vmem:[#allocation37_spill] sm:$0xff] }
 0x612   : > { %5382 = vmatprep.mubr.f32.mxu1 %v13372_v21  ;;  %7056 = vmatpush1.bf16.msra.mxu1 %v7055_v6  ;;  %v4729_v3 = vsel %vm2616_vm7, %v13374_v63, %v4613_v10  ;;  %v13379_v6 = vunpack.i.l.bf16 %v13378_v38  ;;  %v13380_v10 = vld [vmem:[#allocation23_spill] sm:$0xff]  ;;  %v13382_v21 = vunpack.i.l.bf16 %v13381_v17  ;;  %v13383_v63 = vunpack.i.l.bf16 %v11271_v29  ;;  %v13389_v29 = vld [vmem:[#allocation8_spill] sm:$0xff] }
 0x613   : > { %7058 = vmatprep.subr.bf16.mxu1 %v7057_v56 }
 0x614   : > { %v4731_v56 = vsel %vm2616_vm7, %v13379_v6, %v4621_v8  ;;  %v4637_v40 = vpop.permute.xlu0 %4636  ;;  %v13387_v8 = vld [vmem:[#allocation32_spill] sm:$0xff] }
 0x615   : > { %5383 = vmatmul.mubr.f32.gmra.mrb[6].mxu1 %v4729_v3  ;;  %v4633_v3 = vpop.permute.xlu1 %4632  ;;  %v4735_v38 = vsel %vm2616_vm7, %v13387_v8, %v4637_v40  ;;  %v13397_v8 = vunpack.i.l.bf16 %v11486_v57 }
 0x616   : > { %5387 = vmatprep.mubr.f32.mxu1 %v13375_v47  ;;  %7060 = vmatpush1.bf16.msra.mxu1 %v7059_v54  ;;  %v4732_v54 = vsel %vm2616_vm7, %v13382_v21, %v4625_v51  ;;  %v13385_v47 = vld [vmem:[#allocation5_spill] sm:$0xff]  ;;  %v13390_v51 = vunpack.i.l.bf16 %v13389_v29  ;;  %v13391_v21 = vld [vmem:[#allocation38_spill] sm:$0xff] }
 0x617   : > { %v4734_v45 = vsel %vm2616_vm7, %v13385_v47, %v4633_v3 }
 0x618   : > { %v4645_v17 = vpop.permute.xlu0 %4644 }
 0x619   : > { %5388 = vmatmul.mubr.f32.gmra.mrb[8].mxu1 %v4730_v30  ;;  %v13386_v30 = vld [vmem:[#allocation20_spill] sm:$0xff]  ;;  %v4641_v6 = vpop.permute.xlu1 %4640 }
 0x61a   : > { %5392 = vmatprep.mubr.f32.mxu1 %v10922_v44  ;;  %v4733_v44 = vsel %vm2616_vm7, %v13383_v63, %v4629_v48 }
 0x61c   : > { %v4653_v47 = vpop.permute.xlu0 %4652 }
 0x61d   : > { %5393 = vmatmul.mubr.f32.gmra.mrb[10].mxu1 %v4731_v56  ;;  %v13388_v56 = vld [vmem:[#allocation3_spill] sm:$0xff]  ;;  %v4649_v63 = vpop.permute.xlu1 %4648 }
 0x61e   : > { %5397 = vmatprep.mubr.f32.mxu1 %v13380_v10  ;;  %v4736_v10 = vsel %vm2616_vm7, %v13390_v51, %v4641_v6  ;;  %v13398_v6 = vunpack.i.l.bf16 %v11511_v62 }
 0x621   : > { %5398 = vmatmul.mubr.f32.gmra.mrb[12].mxu1 %v4732_v54  ;;  %v13392_v54 = vunpack.i.l.bf16 %v13391_v21  ;;  %v4657_v40 = vpop.permute.xlu1 %4656 }
 0x622   : > { %5402 = vmatprep.mubr.f32.mxu1 %v13240_v27 }
 0x623   : > { %v4737_v48 = vsel %vm2616_vm7, %v13392_v54, %v4645_v17 }
 0x625   : > { %5403 = vmatmul.mubr.f32.gmra.mrb[14].mxu1 %v4733_v44  ;;  %v13393_v44 = vld [vmem:[#allocation9_spill] sm:$0xff] }
 0x626   : > { %5407 = vmatprep.mubr.f32.mxu1 %v13384_v36  ;;  %v13394_v3 = vunpack.i.l.bf16 %v13393_v44  ;;  %v13417_v44 = vld [vmem:[#allocation25_spill] sm:$0xff] }
 0x628   : > { %v4738_v36 = vsel %vm2616_vm7, %v13394_v3, %v4649_v63  ;;  %v13416_v63 = vld [vmem:[#allocation44_spill] sm:$0xff]  ;;  %v13418_v3 = vld [vmem:[#allocation45_spill] sm:$0xff] }
 0x629   : > { %5408 = vmatmul.mubr.f32.gmra.mrb[16].mxu1 %v4734_v45  ;;  %v13395_v45 = vunpack.i.l.bf16 %v11452_v35 }
 0x62a   : > { %5413 = vmatprep.mubr.f32.mxu1 %v13386_v30  ;;  %v13396_v30 = vld [vmem:[#allocation27_spill] sm:$0xff] }
 0x62d   : > { %5414 = vmatmul.mubr.f32.gmra.mrb[18].mxu1 %v4735_v38  ;;  %v4661_v38 = vpop.permute.xlu0 %4660 }
 0x62e   : > { %5419 = vmatprep.mubr.f32.mxu1 %v13388_v56  ;;  %v4665_v56 = vpop.permute.xlu1 %4664 }
 0x62f   : > { %v4742_v35 = vsel %vm2616_vm7, %v11627_v2, %v4665_v56 }
 0x631   : > { %5420 = vmatmul.mubr.f32.gmra.mrb[20].mxu1 %v4736_v10  ;;  %v4669_v29 = vpop.permute.xlu0 %4668 }
 0x632   : > { %5425 = vmatprep.mubr.f32.mxu1 %v11003_v7  ;;  %v4739_v7 = vsel %vm2616_vm7, %v13395_v45, %v4653_v47  ;;  %v4743_v57 = vsel %vm2616_vm7, %v11658_v33, %v4669_v29  ;;  %v4673_v51 = vpop.permute.xlu1 %4672 }
 0x633   : > { %v4744_v62 = vsel %vm2616_vm7, %v11674_v42, %v4673_v51 }
 0x635   : > { %5426 = vmatmul.mubr.f32.gmra.mrb[22].mxu1 %v4737_v48  ;;  %v4677_v10 = vpop.permute.xlu0 %4676  ;;  %v13415_v48 = vld [vmem:[#allocation43_spill] sm:$0xff] }
 0x636   : > { %5431 = vmatprep.mubr.f32.mxu1 %v11015_v12  ;;  %v4740_v12 = vsel %vm2616_vm7, %v13397_v8, %v4657_v40  ;;  %v4681_v2 = vpop.permute.xlu1 %4680 }
 0x639   : > { %5432 = vmatmul.mubr.f32.gmra.mrb[24].mxu1 %v4738_v36  ;;  %v4685_v33 = vpop.permute.xlu0 %4684 }
 0x63a   : > { %5437 = vmatprep.mubr.f32.mxu1 %v11027_v25  ;;  %v4741_v25 = vsel %vm2616_vm7, %v13398_v6, %v4661_v38  ;;  %v4689_v42 = vpop.permute.xlu1 %4688 }
 0x63d   : > { %5438 = vmatmul.mubr.f32.gmra.mrb[26].mxu1 %v4739_v7  ;;  %v4693_v17 = vpop.permute.xlu0 %4692 }
 0x63e   : > { %5443 = vmatprep.mubr.f32.mxu1 %v13396_v30 }
 0x641   : > { %5444 = vmatmul.mubr.f32.gmra.mrb[28].mxu1 %v4740_v12 }
 0x642   : > { %5449 = vmatprep.mubr.f32.mxu1 %v13240_v27 }
 0x645   : > { %5450 = vmatmul.mubr.f32.gmra.mrb[30].mxu1 %v4741_v25 }
 0x646   : > { %5455 = vmatprep.mubr.f32.mxu1 %v11134_v24  ;;  %v4745_v24 = vsel %vm2616_vm7, %v11685_v11, %v4677_v10  ;;  %v4748_v11 = vsel %vm2616_vm7, %v11703_v49, %v4689_v42 }
 0x649   : > { %5456 = vmatmul.mubr.f32.gmra.mrb[32].mxu1 %v4742_v35 }
 0x64a   : > { %5461 = vmatprep.mubr.f32.mxu1 %v11162_v18  ;;  %v4746_v18 = vsel %vm2616_vm7, %v11691_v15, %v4681_v2  ;;  %v4749_v15 = vsel %vm2616_vm7, %v11705_v53, %v4693_v17 }
 0x64d   : > { %5462 = vmatmul.mubr.f32.gmra.mrb[34].mxu1 %v4743_v57 }
 0x64e   : > { %5467 = vmatprep.mubr.f32.mxu1 %v11198_v50  ;;  %v4747_v50 = vsel %vm2616_vm7, %v11697_v43, %v4685_v33  ;;  %v4701_v43 = vpop.permute.xlu0 %4700 }
 0x64f   : > { %v4751_v49 = vsel %vm2616_vm7, %v11721_v39, %v4701_v43 }
 0x651   : > { %5468 = vmatmul.mubr.f32.gmra.mrb[36].mxu1 %v4744_v62 }
 0x652   : > { %5473 = vmatprep.mubr.f32.mxu1 %v13363_v59  ;;  %v13399_v59 = vld [vmem:[#allocation41_spill] sm:$0xff]  ;;  %v4709_v54 = vpop.permute.xlu0 %4708 }
 0x655   : > { %5474 = vmatmul.mubr.f32.gmra.mrb[38].mxu1 %v4745_v24 }
 0x656   : > { %5479 = vmatprep.mubr.f32.mxu1 %v13364_v37  ;;  %v4697_v37 = vpop.permute.xlu1 %4696  ;;  %v4717_v39 = vpop.permute.xlu0 %4716 }
 0x659   : > { %5480 = vmatmul.mubr.f32.gmra.mrb[40].mxu1 %v4746_v18 }
 0x65a   : > { %5485 = vmatprep.mubr.f32.mxu1 %v11290_v20  ;;  %v4750_v20 = vsel %vm2616_vm7, %v11714_v26, %v4697_v37  ;;  %v4705_v21 = vpop.permute.xlu1 %4704 }
 0x65b   : > { %v4752_v53 = vsel %vm2616_vm7, %v11726_v41, %v4705_v21 }
 0x65d   : > { %5486 = vmatmul.mubr.f32.gmra.mrb[42].mxu1 %v4747_v50 }
 0x65e   : > { %5491 = vmatprep.mubr.f32.mxu1 %v13399_v59  ;;  %v4713_v26 = vpop.permute.xlu1 %4712 }
 0x661   : > { %5492 = vmatmul.mubr.f32.gmra.mrb[44].mxu1 %v4748_v11 }
 0x662   : > { %5497 = vmatprep.mubr.f32.mxu1 %v13240_v27  ;;  %v4721_v41 = vpop.permute.xlu1 %4720 }
 0x665   : > { %5498 = vmatmul.mubr.f32.gmra.mrb[46].mxu1 %v4749_v15 }
 0x666   : > { %5503 = vmatprep.mubr.f32.mxu1 %v11380_v19  ;;  %v4753_v19 = vsel %vm2616_vm7, %v11732_v61, %v4709_v54  ;;  %v4725_v61 = vpop.permute.xlu0 %4724 }
 0x669   : > { %5504 = vmatmul.mubr.f32.gmra.mrb[48].mxu1 %v4750_v20 }
 0x66a   : > { %5509 = vmatprep.mubr.f32.mxu1 %v11408_v31  ;;  %v4754_v31 = vsel %vm2616_vm7, %v11738_v16, %v4713_v26  ;;  %v13412_v16 = vld [vmem:[#allocation12_spill] sm:$0xff] }
 0x66d   : > { %5510 = vmatmul.mubr.f32.gmra.mrb[50].mxu1 %v4751_v49 }
 0x66e   : > { %5515 = vmatprep.mubr.f32.mxu1 %v11444_v9  ;;  %v4755_v9 = vsel %vm2616_vm7, %v11744_v32, %v4717_v39  ;;  %v13413_v32 = vld [vmem:[#allocation30_spill] sm:$0xff] }
 0x671   : > { %5516 = vmatmul.mubr.f32.gmra.mrb[52].mxu1 %v4752_v53 }
 0x672   : > { %5521 = vmatprep.mubr.f32.mxu1 %v11472_v55  ;;  %v4756_v55 = vsel %vm2616_vm7, %v11750_v22, %v4721_v41  ;;  %v13414_v22 = vld [vmem:[#allocation22_spill] sm:$0xff] }
 0x675   : > { %5522 = vmatmul.mubr.f32.gmra.mrb[54].mxu1 %v4753_v19 }
 0x676   : > { %5527 = vmatprep.mubr.f32.mxu1 %v11503_v1  ;;  %v4757_v1 = vsel %vm2616_vm7, %v11752_v46, %v4725_v61  ;;  %v13411_v46 = vld [vmem:[#allocation24_spill] sm:$0xff] }
 0x679   : > { %5528 = vmatmul.mubr.f32.gmra.mrb[56].mxu1 %v4754_v31 }
 0x67a   : > { %5533 = vmatprep.mubr.f32.mxu1 %v11524_v28  ;;  %v13408_v28 = vld [vmem:[#allocation14_spill] sm:$0xff] }
 0x67d   : > { %5534 = vmatmul.mubr.f32.gmra.mrb[58].mxu1 %v4755_v9 }
 0x67e   : > { %5539 = vmatprep.mubr.f32.mxu1 %v11531_v58  ;;  %v13409_v58 = vld [vmem:[#allocation17_spill] sm:$0xff] }
 0x681   : > { %5540 = vmatmul.mubr.f32.gmra.mrb[60].mxu1 %v4756_v55 }
 0x682   : > { %5545 = vmatprep.mubr.f32.mxu1 %v13240_v27 }
 0x685   : > { %5546 = vmatmul.mubr.f32.gmra.mrb[62].mxu1 %v4757_v1 }
 0x686   : > { %5616 = vmatprep.mubr.f32.mxu1 %v13240_v27 }
 0x689   : > { %6740 = vmatmul.mubr.msk.f32.vlgmr.msra.gmra.mrb[0].mxu1 %vm2616_vm7, %v11124_v0  ;;  %v13400_v0 = vld [vmem:[#allocation10_spill] sm:$0xff] }
 0x68a   : > { %5621 = vmatprep.mubr.f32.mxu1 %v13240_v27 }
 0x68d   : > { %6741 = vmatmul.mubr.msk.f32.gmra.mrb[2].mxu1 %vm2616_vm7, %v11158_v4  ;;  %v13401_v4 = vld [vmem:[#allocation13_spill] sm:$0xff] }
 0x68e   : > { %5626 = vmatprep.mubr.f32.mxu1 %v13240_v27 }
 0x691   : > { %6742 = vmatmul.mubr.msk.f32.gmra.mrb[4].mxu1 %vm2616_vm7, %v11188_v34  ;;  %v13402_v34 = vld [vmem:[#allocation15_spill] sm:$0xff] }
 0x692   : > { %5631 = vmatprep.mubr.f32.mxu1 %v13240_v27 }
 0x695   : > { %6743 = vmatmul.mubr.msk.f32.gmra.mrb[6].mxu1 %vm2616_vm7, %v11222_v60  ;;  %v13403_v60 = vld [vmem:[#allocation16_spill] sm:$0xff] }
 0x696   : > { %5636 = vmatprep.mubr.f32.mxu1 %v13240_v27 }
 0x699   : > { %6744 = vmatmul.mubr.msk.f32.gmra.mrb[8].mxu1 %vm2616_vm7, %v11252_v23  ;;  %v13404_v23 = vld [vmem:[#allocation6_spill] sm:$0xff] }
 0x69a   : > { %5641 = vmatprep.mubr.f32.mxu1 %v13240_v27 }
 0x69d   : > { %6745 = vmatmul.mubr.msk.f32.gmra.mrb[10].mxu1 %vm2616_vm7, %v11286_v13  ;;  %v13405_v13 = vld [vmem:[#allocation42_spill] sm:$0xff] }
 0x69e   : > { %5646 = vmatprep.mubr.f32.mxu1 %v13240_v27 }
 0x6a1   : > { %6746 = vmatmul.mubr.msk.f32.gmra.mrb[12].mxu1 %vm2616_vm7, %v11554_v14  ;;  %v13410_v14 = vld [vmem:[#allocation21_spill] sm:$0xff] }
 0x6a2   : > { %5651 = vmatprep.mubr.f32.mxu1 %v13240_v27 }
 0x6a5   : > { %5652 = vmatmul.mubr.f32.gmra.mrb[14].mxu1 %v13240_v27 }
 0x6a6   : > { %5656 = vmatprep.mubr.f32.mxu1 %v13240_v27 }
 0x6a9   : > { %6747 = vmatmul.mubr.msk.f32.gmra.mrb[16].mxu1 %vm2616_vm7, %v11370_v52  ;;  %v13406_v52 = vld [vmem:[#allocation18_spill] sm:$0xff] }
 0x6aa   : > { %5662 = vmatprep.mubr.f32.mxu1 %v13240_v27 }
 0x6ad   : > { %6748 = vmatmul.mubr.msk.f32.gmra.mrb[18].mxu1 %vm2616_vm7, %v11404_v5  ;;  %v13407_v5 = vld [vmem:[#allocation11_spill] sm:$0xff] }
 0x6ae   : > { %5668 = vmatprep.mubr.f32.mxu1 %v13240_v27 }
 0x6b1   : > { %6749 = vmatmul.mubr.msk.f32.gmra.mrb[20].mxu1 %vm2616_vm7, %v13400_v0 }
 0x6b2   : > { %5674 = vmatprep.mubr.f32.mxu1 %v13240_v27 }
 0x6b5   : > { %6750 = vmatmul.mubr.msk.f32.gmra.mrb[22].mxu1 %vm2616_vm7, %v13401_v4 }
 0x6b6   : > { %5680 = vmatprep.mubr.f32.mxu1 %v13240_v27 }
 0x6b9   : > { %6751 = vmatmul.mubr.msk.f32.gmra.mrb[24].mxu1 %vm2616_vm7, %v13402_v34 }
 0x6ba   : > { %5686 = vmatprep.mubr.f32.mxu1 %v13240_v27 }
 0x6bd   : > { %6752 = vmatmul.mubr.msk.f32.gmra.mrb[26].mxu1 %vm2616_vm7, %v13403_v60 }
 0x6be   : > { %5692 = vmatprep.mubr.f32.mxu1 %v13240_v27 }
 0x6c1   : > { %6753 = vmatmul.mubr.msk.f32.gmra.mrb[28].mxu1 %vm2616_vm7, %v13404_v23 }
 0x6c2   : > { %5698 = vmatprep.mubr.f32.mxu1 %v13240_v27 }
 0x6c5   : > { %5699 = vmatmul.mubr.f32.gmra.mrb[30].mxu1 %v13240_v27 }
 0x6c6   : > { %5704 = vmatprep.mubr.f32.mxu1 %v13240_v27 }
 0x6c9   : > { %6754 = vmatmul.mubr.msk.f32.gmra.mrb[32].mxu1 %vm2616_vm7, %v13405_v13 }
 0x6ca   : > { %5710 = vmatprep.mubr.f32.mxu1 %v13240_v27 }
 0x6cd   : > { %6755 = vmatmul.mubr.msk.f32.gmra.mrb[34].mxu1 %vm2616_vm7, %v13406_v52 }
 0x6ce   : > { %5716 = vmatprep.mubr.f32.mxu1 %v13240_v27 }
 0x6d1   : > { %6756 = vmatmul.mubr.msk.f32.gmra.mrb[36].mxu1 %vm2616_vm7, %v13407_v5 }
 0x6d2   : > { %5722 = vmatprep.mubr.f32.mxu1 %v13240_v27 }
 0x6d5   : > { %6757 = vmatmul.mubr.msk.f32.gmra.mrb[38].mxu1 %vm2616_vm7, %v13408_v28 }
 0x6d6   : > { %5728 = vmatprep.mubr.f32.mxu1 %v13240_v27 }
 0x6d9   : > { %6758 = vmatmul.mubr.msk.f32.gmra.mrb[40].mxu1 %vm2616_vm7, %v13409_v58 }
 0x6da   : > { %5734 = vmatprep.mubr.f32.mxu1 %v13240_v27 }
 0x6dd   : > { %6759 = vmatmul.mubr.msk.f32.gmra.mrb[42].mxu1 %vm2616_vm7, %v13410_v14 }
 0x6de   : > { %5740 = vmatprep.mubr.f32.mxu1 %v13240_v27 }
 0x6e1   : > { %6760 = vmatmul.mubr.msk.f32.gmra.mrb[44].mxu1 %vm2616_vm7, %v13411_v46 }
 0x6e2   : > { %5746 = vmatprep.mubr.f32.mxu1 %v13240_v27 }
 0x6e5   : > { %5747 = vmatmul.mubr.f32.gmra.mrb[46].mxu1 %v13240_v27 }
 0x6e6   : > { %5752 = vmatprep.mubr.f32.mxu1 %v13240_v27 }
 0x6e9   : > { %6761 = vmatmul.mubr.msk.f32.gmra.mrb[48].mxu1 %vm2616_vm7, %v13412_v16 }
 0x6ea   : > { %5758 = vmatprep.mubr.f32.mxu1 %v13240_v27 }
 0x6ed   : > { %6762 = vmatmul.mubr.msk.f32.gmra.mrb[50].mxu1 %vm2616_vm7, %v13413_v32  ;;  %v12150_v32 = vld [vmem:[%s12908_s4] ss:$0 sm:$0xff] }
 0x6ee   : > { %5764 = vmatprep.mubr.f32.mxu1 %v13240_v27 }
 0x6f1   : > { %6763 = vmatmul.mubr.msk.f32.gmra.mrb[52].mxu1 %vm2616_vm7, %v13414_v22 }
 0x6f2   : > { %5770 = vmatprep.mubr.f32.mxu1 %v13240_v27 }
 0x6f5   : > { %6764 = vmatmul.mubr.msk.f32.gmra.mrb[54].mxu1 %vm2616_vm7, %v13415_v48 }
 0x6f6   : > { %5776 = vmatprep.mubr.f32.mxu1 %v13240_v27 }
 0x6f9   : > { %6765 = vmatmul.mubr.msk.f32.gmra.mrb[56].mxu1 %vm2616_vm7, %v13416_v63 }
 0x6fa   : > { %5782 = vmatprep.mubr.f32.mxu1 %v13240_v27 }
 0x6fd   : > { %6766 = vmatmul.mubr.msk.f32.gmra.mrb[58].mxu1 %vm2616_vm7, %v13417_v44 }
 0x6fe   : > { %5788 = vmatprep.mubr.f32.mxu1 %v13240_v27 }
 0x701   : > { %6767 = vmatmul.mubr.msk.f32.gmra.mrb[60].mxu1 %vm2616_vm7, %v13418_v3 }
 0x702   : > { %5794 = vmatprep.mubr.f32.mxu1 %v13240_v27 }
 0x705   : > { %5795 = vmatmul.mubr.f32.gmra.mrb[62].mxu1 %v13240_v27 }
 0x75c   : > { %v12004_v36 = vpop.f32.mrb[0].mxu1 }
 0x75d   : > { %5833 = vrot.lane.b32.xlu1 %v12004_v36, %s7524_s24  ;;  %v5620_v47 = vpop.f32.mrb[1].mxu1 }
 0x760   : > { %v12008_v45 = vpop.f32.mrb[2].mxu1 }
 0x761   : > { %5835 = vrot.lane.b32.xlu0 %v12008_v45, %s7524_s24  ;;  %v5625_v7 = vpop.f32.mrb[3].mxu1 }
 0x764   : > { %v12012_v40 = vpop.f32.mrb[4].mxu1 }
 0x765   : > { %5837 = vrot.lane.b32.xlu1 %v12012_v40, %s7524_s24  ;;  %v5630_v30 = vpop.f32.mrb[5].mxu1 }
 0x768   : > { %v12016_v8 = vpop.f32.mrb[6].mxu1 }
 0x769   : > { %5839 = vrot.lane.b32.xlu1 %v12016_v8, %s7524_s24  ;;  %v5635_v27 = vpop.f32.mrb[7].mxu1 }
 0x76c   : > { %v12020_v12 = vpop.f32.mrb[8].mxu1 }
 0x76d   : > { %5841 = vrot.lane.b32.xlu1 %v12020_v12, %s7524_s24  ;;  %v5640_v38 = vpop.f32.mrb[9].mxu1 }
 0x770   : > { %v12024_v6 = vpop.f32.mrb[10].mxu1 }
 0x771   : > { %5843 = vrot.lane.b32.xlu1 %v12024_v6, %s7524_s24  ;;  %v5645_v25 = vpop.f32.mrb[11].mxu1 }
 0x774   : > { %v12028_v56 = vpop.f32.mrb[12].mxu1 }
 0x775   : > { %v5650_v35 = vpop.f32.mrb[13].mxu1 }
 0x778   : > { %v12030_v29 = vpop.f32.mrb[14].mxu1 }
 0x779   : > { %v5655_v57 = vpop.f32.mrb[15].mxu1 }
 0x77c   : > { %v12032_v51 = vpop.f32.mrb[16].mxu1 }
 0x77d   : > { %5849 = vrot.lane.b32.xlu1 %v12032_v51, %s7524_s24  ;;  %v12036_v62 = vpop.f32.mrb[17].mxu1 }
 0x780   : > { %v12038_v10 = vpop.f32.mrb[18].mxu1 }
 0x781   : > { %5851 = vrot.lane.b32.xlu0 %v12038_v10, %s7524_s24  ;;  %v12042_v24 = vpop.f32.mrb[19].mxu1 }
 0x784   : > { %v12044_v2 = vpop.f32.mrb[20].mxu1 }
 0x785   : > { %5853 = vrot.lane.b32.xlu1 %v12044_v2, %s7524_s24  ;;  %v12048_v18 = vpop.f32.mrb[21].mxu1 }
 0x788   : > { %v12050_v33 = vpop.f32.mrb[22].mxu1 }
 0x789   : > { %5855 = vrot.lane.b32.xlu1 %v12050_v33, %s7524_s24  ;;  %v12054_v50 = vpop.f32.mrb[23].mxu1 }
 0x78c   : > { %v12056_v42 = vpop.f32.mrb[24].mxu1 }
 0x78d   : > { %5857 = vrot.lane.b32.xlu0 %v12056_v42, %s7524_s24  ;;  %v12060_v59 = vpop.f32.mrb[25].mxu1 }
 0x790   : > { %v12062_v11 = vpop.f32.mrb[26].mxu1 }
 0x791   : > { %5859 = vrot.lane.b32.xlu0 %v12062_v11, %s7524_s24  ;;  %v12066_v17 = vpop.f32.mrb[27].mxu1 }
 0x794   : > { %v12068_v15 = vpop.f32.mrb[28].mxu1 }
 0x795   : > { %5861 = vrot.lane.b32.xlu0 %v12068_v15, %s7524_s24  ;;  %v12072_v37 = vpop.f32.mrb[29].mxu1 }
 0x796   : > { %13419 = vst [vmem:[#allocation7_spill] sm:$0xff] %v12072_v37 }
 0x798   : > { %v12074_v20 = vpop.f32.mrb[30].mxu1 }
 0x799   : > { %5863 = vrot.lane.b32.xlu0 %v12074_v20, %s7524_s24  ;;  %v12078_v43 = vpop.f32.mrb[31].mxu1 }
 0x79a   : > { %13420 = vst [vmem:[#allocation4_spill] sm:$0xff] %v12078_v43 }
 0x79c   : > { %v12080_v49 = vpop.f32.mrb[32].mxu1 }
 0x79d   : > { %13421 = vst [vmem:[#allocation29_spill] sm:$0xff] %v12080_v49  ;;  %5865 = vrot.lane.b32.xlu1 %v12080_v49, %s7524_s24  ;;  %v12084_v21 = vpop.f32.mrb[33].mxu1 }
 0x7a0   : > { %v12086_v53 = vpop.f32.mrb[34].mxu1 }
 0x7a1   : > { %13422 = vst [vmem:[#allocation35_spill] sm:$0xff] %v12086_v53  ;;  %5867 = vrot.lane.b32.xlu0 %v12086_v53, %s7524_s24  ;;  %v12090_v54 = vpop.f32.mrb[35].mxu1 }
 0x7a4   : > { %v12092_v19 = vpop.f32.mrb[36].mxu1 }
 0x7a5   : > { %13423 = vst [vmem:[#allocation34_spill] sm:$0xff] %v12092_v19  ;;  %5869 = vrot.lane.b32.xlu0 %v12092_v19, %s7524_s24  ;;  %v12096_v26 = vpop.f32.mrb[37].mxu1 }
 0x7a8   : > { %v12098_v31 = vpop.f32.mrb[38].mxu1 }
 0x7a9   : > { %13424 = vst [vmem:[#allocation39_spill] sm:$0xff] %v12098_v31  ;;  %5871 = vrot.lane.b32.xlu0 %v12098_v31, %s7524_s24  ;;  %v12102_v39 = vpop.f32.mrb[39].mxu1 }
 0x7ac   : > { %v12104_v9 = vpop.f32.mrb[40].mxu1 }
 0x7ad   : > { %13425 = vst [vmem:[#allocation33_spill] sm:$0xff] %v12104_v9  ;;  %5873 = vrot.lane.b32.xlu1 %v12104_v9, %s7524_s24  ;;  %v12108_v41 = vpop.f32.mrb[41].mxu1 }
 0x7b0   : > { %v12110_v55 = vpop.f32.mrb[42].mxu1 }
 0x7b1   : > { %13426 = vst [vmem:[#allocation40_spill] sm:$0xff] %v12110_v55  ;;  %5875 = vrot.lane.b32.xlu1 %v12110_v55, %s7524_s24  ;;  %v12114_v61 = vpop.f32.mrb[43].mxu1 }
 0x7b4   : > { %v12116_v1 = vpop.f32.mrb[44].mxu1 }
 0x7b5   : > { %13427 = vst [vmem:[#allocation19_spill] sm:$0xff] %v12116_v1  ;;  %5877 = vrot.lane.b32.xlu1 %v12116_v1, %s7524_s24  ;;  %v12120_v0 = vpop.f32.mrb[45].mxu1 }
 0x7b8   : > { %v12122_v4 = vpop.f32.mrb[46].mxu1 }
 0x7b9   : > { %13428 = vst [vmem:[#allocation28_spill] sm:$0xff] %v12122_v4  ;;  %5879 = vrot.lane.b32.xlu1 %v12122_v4, %s7524_s24  ;;  %v12126_v34 = vpop.f32.mrb[47].mxu1 }
 0x7bc   : > { %v5754_v60 = vpop.f32.mrb[48].mxu1 }
 0x7bd   : > { %5881 = vrot.lane.b32.xlu1 %v5754_v60, %s7524_s24  ;;  %v12129_v23 = vpop.f32.mrb[49].mxu1 }
 0x7c0   : > { %v5760_v13 = vpop.f32.mrb[50].mxu1 }
 0x7c1   : > { %5845 = vrot.lane.b32.xlu1 %v12028_v56, %s7524_s24  ;;  %5883 = vrot.lane.b32.xlu0 %v5760_v13, %s7524_s24  ;;  %v12134_v52 = vpop.f32.mrb[51].mxu1 }
 0x7c4   : > { %v5766_v5 = vpop.f32.mrb[52].mxu1 }
 0x7c5   : > { %5847 = vrot.lane.b32.xlu1 %v12030_v29, %s7524_s24  ;;  %5885 = vrot.lane.b32.xlu0 %v5766_v5, %s7524_s24  ;;  %v12139_v28 = vpop.f32.mrb[53].mxu1 }
 0x7c8   : > { %v5772_v58 = vpop.f32.mrb[54].mxu1 }
 0x7c9   : > { %5887 = vrot.lane.b32.xlu0 %v5772_v58, %s7524_s24  ;;  %v12142_v14 = vpop.f32.mrb[55].mxu1 }
 0x7cc   : > { %v5778_v46 = vpop.f32.mrb[56].mxu1 }
 0x7cd   : > { %5889 = vrot.lane.b32.xlu0 %v5778_v46, %s7524_s24  ;;  %v12145_v16 = vpop.f32.mrb[57].mxu1 }
 0x7cf   : > { %v5834_v22 = vpop.permute.xlu1 %5833 }
 0x7d0   : > { %v5961_v48 = vadd.f32 %v5834_v22, %v12036_v62  ;;  %v5784_v63 = vpop.f32.mrb[58].mxu1 }
 0x7d1   : > { %5891 = vrot.lane.b32.xlu0 %v5784_v63, %s7524_s24  ;;  %v12154_v44 = vpop.f32.mrb[59].mxu1 }
 0x7d2   : > { %v6000_v3 = vadd.f32 %v12150_v32, %v5961_v48 }
 0x7d3   : > { %v5836_v47 = vpop.permute.xlu0 %5835 }
 0x7d4   : > { %v5962_v7 = vadd.f32 %v5836_v47, %v12042_v24  ;;  %v5790_v30 = vpop.f32.mrb[60].mxu1  ;;  %v6515_v25 = vrot.slane %v6000_v3, 7  ;;  %v6131_v35 = vrot.slane %v6000_v3, 1  ;;  %v6259_v57 = vrot.slane %v6000_v3, 3 }
 0x7d5   : > { %5893 = vrot.lane.b32.xlu0 %v5790_v30, %s7524_s24  ;;  %v12159_v27 = vpop.f32.mrb[61].mxu1  ;;  %v6387_v60 = vrot.slane %v6000_v3, 5  ;;  %v6455_v13 = vrot.slane %v6000_v3, 6  ;;  %v6199_v5 = vrot.slane %v6000_v3, 2  ;;  %v6327_v58 = vrot.slane %v6000_v3, 4 }
 0x7d6   : > { %v6001_v38 = vadd.f32 %v12150_v32, %v5962_v7 }
 0x7d7   : > { %v5838_v62 = vpop.permute.xlu1 %5837 }
 0x7d8   : > { %v5963_v24 = vadd.f32 %v5838_v62, %v12048_v18  ;;  %v5796_v46 = vpop.f32.mrb[62].mxu1  ;;  %v6516_v22 = vrot.slane %v6001_v38, 6  ;;  %v6132_v48 = vsel %vm6065_vm9, %v6001_v38, %v6131_v35  ;;  %v6260_v63 = vrot.slane %v6001_v38, 2 }
 0x7d9   : > { %5895 = vrot.lane.b32.xlu0 %v5796_v46, %s7524_s24  ;;  %v12165_v47 = vpop.f32.mrb[63].mxu1  ;;  %v6388_v7 = vrot.slane %v6001_v38, 4  ;;  %v6456_v30 = vrot.slane %v6001_v38, 5  ;;  %v6064_v4 = vrot.slane %v6001_v38, 7  ;;  %v6200_v1 = vrot.slane %v6001_v38, 1 }
 0x7da   : > { %v12168_v55 = vadd.f32 %v12150_v32, %v5963_v24  ;;  %v6517_v9 = vsel %vm6065_vm9, %v6516_v22, %v6515_v25  ;;  %v6261_v18 = vsel %vm6065_vm9, %v6260_v63, %v6259_v57  ;;  %v6328_v62 = vrot.slane %v6001_v38, 3 }
 0x7db   : > { %v5840_v31 = vpop.permute.xlu1 %5839  ;;  %v6389_v35 = vsel %vm6065_vm9, %v6388_v7, %v6387_v60  ;;  %v6457_v19 = vsel %vm6065_vm9, %v6456_v30, %v6455_v13  ;;  %v6066_v46 = vsel %vm6065_vm9, %v6064_v4, %v6000_v3  ;;  %v6201_v43 = vsel %vm6065_vm9, %v6200_v1, %v6199_v5 }
 0x7dc   : > { %v5964_v53 = vadd.f32 %v5840_v31, %v12054_v50  ;;  %v6518_v37 = vrot.slane %v12168_v55, 5  ;;  %v6133_v24 = vrot.slane %v12168_v55, 7  ;;  %v6262_v25 = vrot.slane %v12168_v55, 1 }
 0x7dd   : > { %v6390_v38 = vrot.slane %v12168_v55, 3  ;;  %v6458_v57 = vrot.slane %v12168_v55, 4  ;;  %v6067_v60 = vrot.slane %v12168_v55, 6  ;;  %v6202_v4 = vsel %vm6068_vm10, %v12168_v55, %v6201_v43 }
 0x7de   : > { %v6003_v1 = vadd.f32 %v12150_v32, %v5964_v53  ;;  %v6519_v50 = vsel %vm6068_vm10, %v6518_v37, %v6517_v9  ;;  %v6134_v31 = vsel %vm6068_vm10, %v6133_v24, %v6132_v48  ;;  %v6263_v3 = vsel %vm6068_vm10, %v6262_v25, %v6261_v18 }
 0x7df   : > { %v5842_v13 = vpop.permute.xlu1 %5841  ;;  %v6391_v5 = vsel %vm6068_vm10, %v6390_v38, %v6389_v35  ;;  %v6459_v22 = vsel %vm6068_vm10, %v6458_v57, %v6457_v19  ;;  %v6069_v63 = vsel %vm6068_vm10, %v6067_v60, %v6066_v46  ;;  %v6329_v7 = vsel %vm6065_vm9, %v6328_v62, %v6327_v58 }
 0x7e0   : > { %v5965_v30 = vadd.f32 %v5842_v13, %v12060_v59  ;;  %v6520_v43 = vrot.slane %v6003_v1, 4  ;;  %v6135_v49 = vrot.slane %v6003_v1, 6  ;;  %v6264_v53 = vsel %vm6071_vm11, %v6003_v1, %v6263_v3 }
 0x7e1   : > { %v6392_v37 = vrot.slane %v6003_v1, 2  ;;  %v6460_v9 = vrot.slane %v6003_v1, 3  ;;  %v6070_v48 = vrot.slane %v6003_v1, 5  ;;  %v6203_v24 = vrot.slane %v6003_v1, 7 }
 0x7e2   : > { %v6004_v18 = vadd.f32 %v12150_v32, %v5965_v30  ;;  %v6521_v35 = vsel %vm6071_vm11, %v6520_v43, %v6519_v50  ;;  %v6136_v19 = vsel %vm6071_vm11, %v6135_v49, %v6134_v31  ;;  %v6330_v46 = vrot.slane %v12168_v55, 2 }
 0x7e3   : > { %v5844_v25 = vpop.permute.xlu1 %5843  ;;  %v6393_v58 = vsel %vm6071_vm11, %v6392_v37, %v6391_v5  ;;  %v6461_v59 = vsel %vm6071_vm11, %v6460_v9, %v6459_v22  ;;  %v6072_v62 = vsel %vm6071_vm11, %v6070_v48, %v6069_v63  ;;  %v6204_v38 = vsel %vm6071_vm11, %v6203_v24, %v6202_v4 }
 0x7e4   : > { %v5966_v57 = vadd.f32 %v5844_v25, %v12066_v17  ;;  %v6522_v60 = vrot.slane %v6004_v18, 3  ;;  %v6137_v3 = vrot.slane %v6004_v18, 5  ;;  %v6265_v13 = vrot.slane %v6004_v18, 7 }
 0x7e5   : > { %v6394_v30 = vrot.slane %v6004_v18, 1  ;;  %v6462_v50 = vrot.slane %v6004_v18, 2  ;;  %v6073_v43 = vrot.slane %v6004_v18, 4  ;;  %v6205_v49 = vrot.slane %v6004_v18, 6 }
 0x7e6   : > { %v6005_v55 = vadd.f32 %v12150_v32, %v5966_v57  ;;  %v6523_v31 = vsel %vm6074_vm12, %v6522_v60, %v6521_v35  ;;  %v6138_v5 = vsel %vm6074_vm12, %v6137_v3, %v6136_v19  ;;  %v6266_v22 = vsel %vm6074_vm12, %v6265_v13, %v6264_v53 }
 0x7e7   : > { %v6395_v63 = vsel %vm6074_vm12, %v6394_v30, %v6393_v58  ;;  %v6463_v4 = vsel %vm6074_vm12, %v6462_v50, %v6461_v59  ;;  %v6075_v17 = vsel %vm6074_vm12, %v6073_v43, %v6072_v62  ;;  %v6206_v37 = vsel %vm6074_vm12, %v6205_v49, %v6204_v38 }
 0x7e8   : > { %v6524_v9 = vrot.slane %v6005_v55, 2  ;;  %v6139_v48 = vrot.slane %v6005_v55, 4  ;;  %v6267_v24 = vrot.slane %v6005_v55, 6  ;;  %v12213_v25 = vsel %vm6077_vm13, %v6005_v55, %v6395_v63 }
 0x7e9   : > { %v6464_v57 = vrot.slane %v6005_v55, 1  ;;  %v6076_v35 = vrot.slane %v6005_v55, 3  ;;  %v6207_v60 = vrot.slane %v6005_v55, 5  ;;  %v6331_v19 = vsel %vm6068_vm10, %v6330_v46, %v6329_v7 }
 0x7ea   : > { %v12217_v53 = vsel %vm6077_vm13, %v6524_v9, %v6523_v31  ;;  %v12220_v58 = vsel %vm6077_vm13, %v6139_v48, %v6138_v5  ;;  %v12223_v59 = vsel %vm6077_vm13, %v6267_v24, %v6266_v22  ;;  %v6332_v62 = vrot.slane %v6003_v1, 1 }
 0x7eb   : > { %v12226_v38 = vsel %vm6077_vm13, %v6464_v57, %v6463_v4  ;;  %v12229_v3 = vsel %vm6077_vm13, %v6076_v35, %v6075_v17  ;;  %v12232_v13 = vsel %vm6077_vm13, %v6207_v60, %v6206_v37  ;;  %v6335_v7 = vrot.slane %v6005_v55, 7 }
 0x7ec   : > { %v6333_v46 = vsel %vm6071_vm11, %v6332_v62, %v6331_v19 }
 0x7ed   : > { %v6334_v30 = vsel %vm6074_vm12, %v6004_v18, %v6333_v46 }
 0x7ee   : > { %v12237_v50 = vsel %vm6077_vm13, %v6335_v7, %v6334_v30 }
 0x7ef   : > { %v5850_v43 = vpop.permute.xlu1 %5849 }
 0x7f0   : > { %v5937_v1 = vadd.f32 %v5850_v43, %v12004_v36 }
 0x7f2   : > { %v5969_v49 = vadd.f32 %v5937_v1, %v12084_v21 }
 0x7f3   : > { %v5852_v31 = vpop.permute.xlu0 %5851 }
 0x7f4   : > { %v12242_v5 = vadd.f32 %v12150_v32, %v5969_v49  ;;  %v5938_v22 = vadd.f32 %v5852_v31, %v12008_v45 }
 0x7f6   : > { %v5970_v55 = vadd.f32 %v5938_v22, %v12090_v54  ;;  %v6529_v4 = vrot.slane %v12242_v5, 7  ;;  %v6145_v36 = vrot.slane %v12242_v5, 1  ;;  %v6273_v21 = vrot.slane %v12242_v5, 3 }
 0x7f7   : > { %v5854_v63 = vpop.permute.xlu1 %5853  ;;  %v6401_v37 = vrot.slane %v12242_v5, 5  ;;  %v6469_v9 = vrot.slane %v12242_v5, 6  ;;  %v6213_v45 = vrot.slane %v12242_v5, 2  ;;  %v6341_v54 = vrot.slane %v12242_v5, 4 }
 0x7f8   : > { %v12248_v18 = vadd.f32 %v12150_v32, %v5970_v55  ;;  %v5939_v17 = vadd.f32 %v5854_v63, %v12012_v40 }
 0x7fa   : > { %v5971_v48 = vadd.f32 %v5939_v17, %v12096_v26  ;;  %v6530_v24 = vrot.slane %v12248_v18, 6  ;;  %v6146_v57 = vsel %vm6065_vm9, %v12248_v18, %v6145_v36  ;;  %v6274_v40 = vrot.slane %v12248_v18, 2 }
 0x7fb   : > { %v5856_v35 = vpop.permute.xlu1 %5855  ;;  %v6402_v60 = vrot.slane %v12248_v18, 4  ;;  %v6470_v19 = vrot.slane %v12248_v18, 5  ;;  %v6085_v62 = vrot.slane %v12248_v18, 7  ;;  %v6214_v7 = vrot.slane %v12248_v18, 1 }
 0x7fc   : > { %v12267_v46 = vadd.f32 %v12150_v32, %v5971_v48  ;;  %v5940_v26 = vadd.f32 %v5856_v35, %v12016_v8  ;;  %v6531_v30 = vsel %vm6065_vm9, %v6530_v24, %v6529_v4  ;;  %v6275_v43 = vsel %vm6065_vm9, %v6274_v40, %v6273_v21 }
 0x7fd   : > { %v6403_v1 = vsel %vm6065_vm9, %v6402_v60, %v6401_v37  ;;  %v6471_v49 = vsel %vm6065_vm9, %v6470_v19, %v6469_v9  ;;  %v6086_v31 = vsel %vm6065_vm9, %v6085_v62, %v12242_v5  ;;  %v6215_v22 = vsel %vm6065_vm9, %v6214_v7, %v6213_v45 }
 0x7fe   : > { %v5972_v55 = vadd.f32 %v5940_v26, %v12102_v39  ;;  %v6532_v63 = vrot.slane %v12267_v46, 5  ;;  %v6147_v17 = vrot.slane %v12267_v46, 7  ;;  %v6276_v8 = vrot.slane %v12267_v46, 1 }
 0x7ff   : > { %v5858_v4 = vpop.permute.xlu0 %5857  ;;  %v6404_v36 = vrot.slane %v12267_v46, 3  ;;  %v6472_v21 = vrot.slane %v12267_v46, 4  ;;  %v6087_v37 = vrot.slane %v12267_v46, 6  ;;  %v6216_v9 = vsel %vm6068_vm10, %v12267_v46, %v6215_v22 }
 0x800   : > { %v12287_v45 = vadd.f32 %v12150_v32, %v5972_v55  ;;  %v5941_v39 = vadd.f32 %v5858_v4, %v12020_v12  ;;  %v6533_v48 = vsel %vm6068_vm10, %v6532_v63, %v6531_v30  ;;  %v6148_v24 = vsel %vm6068_vm10, %v6147_v17, %v6146_v57 }
 0x801   : > { %v6277_v40 = vsel %vm6068_vm10, %v6276_v8, %v6275_v43  ;;  %v6405_v35 = vsel %vm6068_vm10, %v6404_v36, %v6403_v1  ;;  %v6473_v60 = vsel %vm6068_vm10, %v6472_v21, %v6471_v49  ;;  %v6088_v19 = vsel %vm6068_vm10, %v6087_v37, %v6086_v31 }
 0x802   : > { %v5973_v62 = vadd.f32 %v5941_v39, %v12108_v41  ;;  %v6534_v7 = vrot.slane %v12287_v45, 4  ;;  %v6149_v26 = vrot.slane %v12287_v45, 6  ;;  %v6278_v12 = vsel %vm6071_vm11, %v12287_v45, %v6277_v40 }
 0x803   : > { %v5860_v30 = vpop.permute.xlu0 %5859  ;;  %v6406_v57 = vrot.slane %v12287_v45, 2  ;;  %v6474_v43 = vrot.slane %v12287_v45, 3  ;;  %v6089_v1 = vrot.slane %v12287_v45, 5  ;;  %v6217_v49 = vrot.slane %v12287_v45, 7 }
 0x804   : > { %v12306_v31 = vadd.f32 %v12150_v32, %v5973_v62  ;;  %v5942_v41 = vadd.f32 %v5860_v30, %v12024_v6  ;;  %v6535_v22 = vsel %vm6071_vm11, %v6534_v7, %v6533_v48  ;;  %v6150_v55 = vsel %vm6071_vm11, %v6149_v26, %v6148_v24 }
 0x805   : > { %v6407_v63 = vsel %vm6071_vm11, %v6406_v57, %v6405_v35  ;;  %v6475_v17 = vsel %vm6071_vm11, %v6474_v43, %v6473_v60  ;;  %v6090_v8 = vsel %vm6071_vm11, %v6089_v1, %v6088_v19  ;;  %v6218_v4 = vsel %vm6071_vm11, %v6217_v49, %v6216_v9 }
 0x806   : > { %v5974_v36 = vadd.f32 %v5942_v41, %v12114_v61  ;;  %v6536_v21 = vrot.slane %v12306_v31, 3  ;;  %v6151_v37 = vrot.slane %v12306_v31, 5  ;;  %v6279_v6 = vrot.slane %v12306_v31, 7 }
 0x807   : > { %v5862_v39 = vpop.permute.xlu0 %5861  ;;  %v6408_v48 = vrot.slane %v12306_v31, 1  ;;  %v6476_v24 = vrot.slane %v12306_v31, 2  ;;  %v6091_v40 = vrot.slane %v12306_v31, 4  ;;  %v6219_v35 = vrot.slane %v12306_v31, 6 }
 0x808   : > { %v12324_v9 = vadd.f32 %v12150_v32, %v5974_v36  ;;  %v5943_v61 = vadd.f32 %v5862_v39, %v12028_v56  ;;  %v6537_v60 = vsel %vm6074_vm12, %v6536_v21, %v6535_v22  ;;  %v6152_v19 = vsel %vm6074_vm12, %v6151_v37, %v6150_v55 }
 0x809   : > { %v6280_v62 = vsel %vm6074_vm12, %v6279_v6, %v6278_v12  ;;  %v6409_v7 = vsel %vm6074_vm12, %v6408_v48, %v6407_v63  ;;  %v6477_v26 = vsel %vm6074_vm12, %v6476_v24, %v6475_v17  ;;  %v6092_v30 = vsel %vm6074_vm12, %v6091_v40, %v6090_v8 }
 0x80a   : > { %v5975_v57 = vadd.f32 %v5943_v61, %v12120_v0  ;;  %v6538_v43 = vrot.slane %v12324_v9, 2  ;;  %v6153_v1 = vrot.slane %v12324_v9, 4  ;;  %v6281_v56 = vrot.slane %v12324_v9, 6 }
 0x80b   : > { %v5864_v49 = vpop.permute.xlu0 %5863  ;;  %v6410_v41 = vsel %vm6077_vm13, %v12324_v9, %v6409_v7  ;;  %v6478_v12 = vrot.slane %v12324_v9, 1  ;;  %v6093_v22 = vrot.slane %v12324_v9, 3  ;;  %v6220_v55 = vsel %vm6074_vm12, %v6219_v35, %v6218_v4 }
 0x80c   : > { %v12343_v63 = vadd.f32 %v12150_v32, %v5975_v57  ;;  %v5944_v0 = vadd.f32 %v5864_v49, %v12030_v29  ;;  %v6539_v17 = vsel %vm6077_vm13, %v6538_v43, %v6537_v60  ;;  %v6154_v8 = vsel %vm6077_vm13, %v6153_v1, %v6152_v19 }
 0x80d   : > { %v6282_v36 = vsel %vm6077_vm13, %v6281_v56, %v6280_v62  ;;  %v6479_v21 = vsel %vm6077_vm13, %v6478_v12, %v6477_v26  ;;  %v6094_v37 = vsel %vm6077_vm13, %v6093_v22, %v6092_v30  ;;  %v6221_v6 = vrot.slane %v12324_v9, 5 }
 0x80e   : > { %v5976_v39 = vadd.f32 %v5944_v0, %v12126_v34  ;;  %v6540_v4 = vrot.slane %v12343_v63, 1  ;;  %v6155_v48 = vrot.slane %v12343_v63, 3  ;;  %v6283_v29 = vrot.slane %v12343_v63, 5 }
 0x80f   : > { %v5866_v24 = vpop.permute.xlu1 %5865  ;;  %v6411_v40 = vrot.slane %v12343_v63, 7  ;;  %v6480_v35 = vsel %vm6080_vm14, %v12343_v63, %v6479_v21  ;;  %v6095_v61 = vrot.slane %v12343_v63, 2  ;;  %v6222_v60 = vsel %vm6077_vm13, %v6221_v6, %v6220_v55 }
 0x810   : > { %v12362_v19 = vadd.f32 %v12150_v32, %v5976_v39  ;;  %v5945_v34 = vadd.f32 %v5866_v24, %v12032_v51  ;;  %v6541_v62 = vsel %vm6080_vm14, %v6540_v4, %v6539_v17  ;;  %v6156_v7 = vsel %vm6080_vm14, %v6155_v48, %v6154_v8 }
 0x811   : > { %v6284_v26 = vsel %vm6080_vm14, %v6283_v29, %v6282_v36  ;;  %v6412_v30 = vsel %vm6080_vm14, %v6411_v40, %v6410_v41  ;;  %v6096_v57 = vsel %vm6080_vm14, %v6095_v61, %v6094_v37  ;;  %v6223_v43 = vrot.slane %v12343_v63, 4 }
 0x812   : > { %v5977_v1 = vadd.f32 %v5945_v34, %v12129_v23  ;;  %v6542_v56 = vsel %vm6083_vm15, %v12362_v19, %v6541_v62  ;;  %v6157_v49 = vrot.slane %v12362_v19, 2  ;;  %v6285_v51 = vrot.slane %v12362_v19, 4 }
 0x813   : > { %v5868_v12 = vpop.permute.xlu0 %5867  ;;  %6573 = vrot.lane.b32.xlu0 %v6542_v56, %s7524_s24  ;;  %v6413_v22 = vrot.slane %v12362_v19, 6  ;;  %v6481_v41 = vrot.slane %v12362_v19, 7  ;;  %v6097_v55 = vrot.slane %v12362_v19, 1  ;;  %v6224_v0 = vsel %vm6080_vm14, %v6223_v43, %v6222_v60 }
 0x814   : > { %v12382_v23 = vadd.f32 %v12150_v32, %v5977_v1  ;;  %v5946_v17 = vadd.f32 %v5868_v12, %v12038_v10  ;;  %v6158_v8 = vsel %vm6083_vm15, %v6157_v49, %v6156_v7  ;;  %v6286_v36 = vsel %vm6083_vm15, %v6285_v51, %v6284_v26 }
 0x815   : > { %v6414_v21 = vsel %vm6083_vm15, %v6413_v22, %v6412_v30  ;;  %v12389_v37 = vsel %vm6083_vm15, %v6481_v41, %v6480_v35  ;;  %v12392_v6 = vsel %vm6083_vm15, %v6097_v55, %v6096_v57  ;;  %v6225_v39 = vrot.slane %v12362_v19, 3 }
 0x816   : > { %v5978_v4 = vadd.f32 %v5946_v17, %v12134_v52  ;;  %v6159_v48 = vrot.slane %v12382_v23, 1  ;;  %v6287_v10 = vrot.slane %v12382_v23, 3  ;;  %v6415_v29 = vrot.slane %v12382_v23, 5 }
 0x817   : > { %v5870_v24 = vpop.permute.xlu0 %5869  ;;  %6189 = vrot.lane.b32.xlu0 %v6158_v8, %s7524_s24  ;;  %v6543_v40 = vrot.slane %v12382_v23, 7  ;;  %v12402_v35 = vsel %vm6083_vm15, %v6225_v39, %v6224_v0  ;;  %v6342_v61 = vrot.slane %v12248_v18, 3  ;;  %v6344_v60 = vrot.slane %v12267_v46, 2 }
 0x818   : > { %v12407_v52 = vadd.f32 %v12150_v32, %v5978_v4  ;;  %v5947_v34 = vadd.f32 %v5870_v24, %v12044_v2  ;;  %v6346_v62 = vrot.slane %v12287_v45, 1  ;;  %v6349_v7 = vrot.slane %v12324_v9, 7 }
 0x819   : > { %v6343_v26 = vsel %vm6065_vm9, %v6342_v61, %v6341_v54  ;;  %v6351_v30 = vrot.slane %v12343_v63, 6  ;;  %v6353_v57 = vrot.slane %v12362_v19, 5  ;;  %v6227_v18 = vrot.slane %v12382_v23, 2 }
 0x81a   : > { %v5979_v46 = vadd.f32 %v5947_v34, %v12139_v28  ;;  %v6160_v43 = vsel %vm6065_vm9, %v12407_v52, %v6159_v48  ;;  %v6288_v2 = vrot.slane %v12407_v52, 2  ;;  %v6416_v45 = vrot.slane %v12407_v52, 4 }
 0x81b   : > { %v5872_v9 = vpop.permute.xlu0 %5871  ;;  %6317 = vrot.lane.b32.xlu0 %v6286_v36, %s7524_s24  ;;  %v6544_v5 = vrot.slane %v12407_v52, 6  ;;  %v6345_v54 = vsel %vm6068_vm10, %v6344_v60, %v6343_v26  ;;  %v6099_v63 = vrot.slane %v12407_v52, 7  ;;  %v6228_v19 = vrot.slane %v12407_v52, 1 }
 0x81c   : > { %v12429_v28 = vadd.f32 %v12150_v32, %v5979_v46  ;;  %v5948_v1 = vadd.f32 %v5872_v9, %v12050_v33  ;;  %v6289_v56 = vsel %vm6065_vm9, %v6288_v2, %v6287_v10  ;;  %v6417_v49 = vsel %vm6065_vm9, %v6416_v45, %v6415_v29 }
 0x81d   : > { %v6545_v51 = vsel %vm6065_vm9, %v6544_v5, %v6543_v40  ;;  %v6347_v12 = vsel %vm6071_vm11, %v6346_v62, %v6345_v54  ;;  %v6100_v22 = vsel %vm6065_vm9, %v6099_v63, %v12382_v23  ;;  %v6229_v41 = vsel %vm6065_vm9, %v6228_v19, %v6227_v18 }
 0x81e   : > { %v5980_v55 = vadd.f32 %v5948_v1, %v12142_v14  ;;  %v6161_v0 = vrot.slane %v12429_v28, 7  ;;  %v6290_v17 = vrot.slane %v12429_v28, 1  ;;  %v6418_v33 = vrot.slane %v12429_v28, 3 }
 0x81f   : > { %v5874_v8 = vpop.permute.xlu1 %5873  ;;  %6445 = vrot.lane.b32.xlu0 %v6414_v21, %s7524_s24  ;;  %v6546_v36 = vrot.slane %v12429_v28, 5  ;;  %v6348_v39 = vsel %vm6074_vm12, %v12306_v31, %v6347_v12  ;;  %v6101_v4 = vrot.slane %v12429_v28, 6  ;;  %v6230_v48 = vsel %vm6068_vm10, %v12429_v28, %v6229_v41 }
 0x820   : > { %v12451_v14 = vadd.f32 %v12150_v32, %v5980_v55  ;;  %v5949_v10 = vadd.f32 %v5874_v8, %v12056_v42  ;;  %v6162_v29 = vsel %vm6068_vm10, %v6161_v0, %v6160_v43  ;;  %v6291_v24 = vsel %vm6068_vm10, %v6290_v17, %v6289_v56 }
 0x821   : > { %v6419_v21 = vsel %vm6068_vm10, %v6418_v33, %v6417_v49  ;;  %v6547_v40 = vsel %vm6068_vm10, %v6546_v36, %v6545_v51  ;;  %v6350_v31 = vsel %vm6077_vm13, %v6349_v7, %v6348_v39  ;;  %v6102_v61 = vsel %vm6068_vm10, %v6101_v4, %v6100_v22 }
 0x822   : > { %v5981_v60 = vadd.f32 %v5949_v10, %v12145_v16  ;;  %v6163_v34 = vrot.slane %v12451_v14, 6  ;;  %v6292_v62 = vsel %vm6071_vm11, %v12451_v14, %v6291_v24  ;;  %v6420_v42 = vrot.slane %v12451_v14, 2 }
 0x823   : > { %v5876_v26 = vpop.permute.xlu1 %5875  ;;  %v6548_v18 = vrot.slane %v12451_v14, 4  ;;  %v6352_v46 = vsel %vm6080_vm14, %v6351_v30, %v6350_v31  ;;  %v6103_v43 = vrot.slane %v12451_v14, 5  ;;  %v6231_v7 = vrot.slane %v12451_v14, 7 }
 0x824   : > { %v12470_v2 = vadd.f32 %v12150_v32, %v5981_v60  ;;  %v5950_v16 = vadd.f32 %v5876_v26, %v12062_v11  ;;  %v6164_v45 = vsel %vm6071_vm11, %v6163_v34, %v6162_v29  ;;  %v6421_v9 = vsel %vm6071_vm11, %v6420_v42, %v6419_v21 }
 0x825   : > { %v6549_v5 = vsel %vm6071_vm11, %v6548_v18, %v6547_v40  ;;  %v12477_v54 = vsel %vm6083_vm15, %v6353_v57, %v6352_v46  ;;  %v6104_v30 = vsel %vm6071_vm11, %v6103_v43, %v6102_v61  ;;  %v6232_v63 = vsel %vm6071_vm11, %v6231_v7, %v6230_v48 }
 0x826   : > { %v5982_v19 = vadd.f32 %v5950_v16, %v12154_v44  ;;  %v6165_v1 = vrot.slane %v12470_v2, 5  ;;  %v6293_v56 = vrot.slane %v12470_v2, 7  ;;  %v6422_v11 = vrot.slane %v12470_v2, 1 }
 0x827   : > { %v5878_v49 = vpop.permute.xlu1 %5877  ;;  %v6550_v51 = vrot.slane %v12470_v2, 3  ;;  %v6105_v12 = vrot.slane %v12470_v2, 4  ;;  %v6233_v57 = vrot.slane %v12470_v2, 6  ;;  %v6355_v22 = vrot.slane %v12382_v23, 4 }
 0x828   : > { %v12490_v41 = vadd.f32 %v12150_v32, %v5982_v19  ;;  %v5951_v44 = vadd.f32 %v5878_v49, %v12068_v15  ;;  %v6166_v55 = vsel %vm6074_vm12, %v6165_v1, %v6164_v45  ;;  %v6294_v0 = vsel %vm6074_vm12, %v6293_v56, %v6292_v62 }
 0x829   : > { %v6423_v17 = vsel %vm6074_vm12, %v6422_v11, %v6421_v9  ;;  %v6551_v33 = vsel %vm6074_vm12, %v6550_v51, %v6549_v5  ;;  %v6106_v8 = vsel %vm6074_vm12, %v6105_v12, %v6104_v30  ;;  %v6234_v36 = vsel %vm6074_vm12, %v6233_v57, %v6232_v63  ;;  %v13429_v63 = vld [vmem:[#allocation29_spill] sm:$0xff] }
 0x82a   : > { %v5983_v39 = vadd.f32 %v5951_v44, %v12159_v27  ;;  %v6167_v4 = vrot.slane %v12490_v41, 4  ;;  %v6295_v48 = vrot.slane %v12490_v41, 6  ;;  %v6424_v15 = vsel %vm6077_vm13, %v12490_v41, %v6423_v17 }
 0x82b   : > { %v5880_v10 = vpop.permute.xlu1 %5879  ;;  %v6552_v29 = vrot.slane %v12490_v41, 2  ;;  %v6107_v24 = vrot.slane %v12490_v41, 3  ;;  %v6235_v21 = vrot.slane %v12490_v41, 5  ;;  %v6356_v40 = vrot.slane %v12407_v52, 3 }
 0x82c   : > { %v12509_v31 = vadd.f32 %v12150_v32, %v5983_v39  ;;  %v5952_v27 = vadd.f32 %v5880_v10, %v12074_v20  ;;  %v6168_v61 = vsel %vm6077_vm13, %v6167_v4, %v6166_v55  ;;  %v6296_v60 = vsel %vm6077_vm13, %v6295_v48, %v6294_v0  ;;  %v13430_v39 = vld [vmem:[#allocation7_spill] sm:$0xff] }
 0x82d   : > { %v6553_v34 = vsel %vm6077_vm13, %v6552_v29, %v6551_v33  ;;  %v6108_v62 = vsel %vm6077_vm13, %v6107_v24, %v6106_v8  ;;  %v6236_v42 = vsel %vm6077_vm13, %v6235_v21, %v6234_v36  ;;  %v6357_v26 = vsel %vm6065_vm9, %v6356_v40, %v6355_v22  ;;  %v13431_v48 = vld [vmem:[#allocation35_spill] sm:$0xff] }
 0x82e   : > { %v5984_v18 = vadd.f32 %v5952_v27, %v12165_v47  ;;  %v6169_v46 = vrot.slane %v12509_v31, 3  ;;  %v6297_v43 = vrot.slane %v12509_v31, 5  ;;  %v6425_v20 = vrot.slane %v12509_v31, 7 }
 0x82f   : > { %v5882_v7 = vpop.permute.xlu1 %5881  ;;  %v6554_v16 = vrot.slane %v12509_v31, 1  ;;  %v6109_v45 = vrot.slane %v12509_v31, 2  ;;  %v6237_v9 = vrot.slane %v12509_v31, 4  ;;  %v6358_v5 = vrot.slane %v12429_v28, 2 }
 0x830   : > { %v12527_v30 = vadd.f32 %v12150_v32, %v5984_v18  ;;  %v5953_v47 = vadd.f32 %v5882_v7, %v13429_v63  ;;  %v6170_v19 = vsel %vm6080_vm14, %v6169_v46, %v6168_v61  ;;  %v6298_v1 = vsel %vm6080_vm14, %v6297_v43, %v6296_v60  ;;  %v13432_v7 = vld [vmem:[#allocation4_spill] sm:$0xff] }
 0x831   : > { %v6426_v56 = vsel %vm6080_vm14, %v6425_v20, %v6424_v15  ;;  %v6555_v11 = vsel %vm6080_vm14, %v6554_v16, %v6553_v34  ;;  %v6110_v49 = vsel %vm6080_vm14, %v6109_v45, %v6108_v62  ;;  %v6238_v51 = vsel %vm6080_vm14, %v6237_v9, %v6236_v42  ;;  %v13433_v45 = vld [vmem:[#allocation34_spill] sm:$0xff] }
 0x832   : > { %v12537_v12 = vadd.f32 %v12150_v32, %v5953_v47  ;;  %v6171_v57 = vrot.slane %v12527_v30, 2  ;;  %v6299_v22 = vrot.slane %v12527_v30, 4  ;;  %v6427_v44 = vrot.slane %v12527_v30, 6 }
 0x833   : > { %v5846_v55 = vpop.permute.xlu1 %5845  ;;  %v5884_v0 = vpop.permute.xlu0 %5883  ;;  %v12544_v17 = vsel %vm6083_vm15, %v12527_v30, %v6555_v11  ;;  %v6111_v33 = vrot.slane %v12527_v30, 1  ;;  %v6239_v8 = vrot.slane %v12527_v30, 3  ;;  %v12549_v36 = vsel %vm6068_vm10, %v6358_v5, %v6357_v26 }
 0x834   : > { %v5967_v4 = vadd.f32 %v5846_v55, %v13430_v39  ;;  %v5954_v15 = vadd.f32 %v5884_v0, %v13431_v48  ;;  %v12554_v10 = vsel %vm6083_vm15, %v6171_v57, %v6170_v19  ;;  %v12557_v29 = vsel %vm6083_vm15, %v6299_v22, %v6298_v1 }
 0x835   : > { %v6173_v24 = vrot.slane %v12537_v12, 1  ;;  %v12561_v21 = vsel %vm6083_vm15, %v6427_v44, %v6426_v56  ;;  %v6301_v40 = vrot.slane %v12537_v12, 3  ;;  %v6429_v27 = vrot.slane %v12537_v12, 5 }
 0x836   : > { %v12566_v61 = vadd.f32 %v12150_v32, %v5967_v4  ;;  %v12569_v60 = vadd.f32 %v12150_v32, %v5954_v15  ;;  %v6557_v34 = vrot.slane %v12537_v12, 7  ;;  %v12573_v62 = vsel %vm6083_vm15, %v6111_v33, %v6110_v49 }
 0x837   : > { %v5848_v42 = vpop.permute.xlu1 %5847  ;;  %v5886_v26 = vpop.permute.xlu0 %5885  ;;  %v12576_v18 = vsel %vm6083_vm15, %v6239_v8, %v6238_v51  ;;  %v6360_v46 = vrot.slane %v12451_v14, 1  ;;  %v6363_v43 = vrot.slane %v12490_v41, 7  ;;  %v6365_v20 = vrot.slane %v12509_v31, 6  ;;  %v13434_v8 = vld [vmem:[#allocation39_spill] sm:$0xff] }
 0x838   : > { %v5968_v16 = vadd.f32 %v5848_v42, %v13432_v7  ;;  %v5955_v9 = vadd.f32 %v5886_v26, %v13433_v45  ;;  %v6526_v5 = vrot.slane %v12566_v61, 1  ;;  %v6141_v63 = vrot.slane %v12566_v61, 3 }
 0x839   : > { %v6269_v47 = vrot.slane %v12566_v61, 5  ;;  %v6397_v19 = vrot.slane %v12566_v61, 7  ;;  %v6174_v1 = vsel %vm6065_vm9, %v12569_v60, %v6173_v24  ;;  %v6302_v56 = vrot.slane %v12569_v60, 2 }
 0x83a   : > { %v12591_v11 = vadd.f32 %v12150_v32, %v5968_v16  ;;  %v12594_v49 = vadd.f32 %v12150_v32, %v5955_v9  ;;  %v6527_v51 = vsel %vm6080_vm14, %v6526_v5, %v12217_v53  ;;  %v6142_v57 = vsel %vm6080_vm14, %v6141_v63, %v12220_v58  ;;  %v13435_v63 = vld [vmem:[#allocation33_spill] sm:$0xff] }
 0x83b   : > { %v5888_v22 = vpop.permute.xlu0 %5887  ;;  %v6270_v44 = vsel %vm6080_vm14, %v6269_v47, %v12223_v59  ;;  %v6398_v55 = vsel %vm6080_vm14, %v6397_v19, %v12213_v25  ;;  %v6303_v0 = vsel %vm6065_vm9, %v6302_v56, %v6301_v40  ;;  %v6430_v33 = vrot.slane %v12569_v60, 4 }
 0x83c   : > { %v5956_v39 = vadd.f32 %v5888_v22, %v13434_v8  ;;  %v6528_v4 = vsel %vm6083_vm15, %v12591_v11, %v6527_v51  ;;  %v6143_v53 = vrot.slane %v12591_v11, 2  ;;  %v6271_v58 = vrot.slane %v12591_v11, 4 }
 0x83d   : > { %6571 = vrot.lane.b32.xlu1 %v6528_v4, %s7524_s24  ;;  %v6399_v59 = vrot.slane %v12591_v11, 6  ;;  %v6175_v48 = vrot.slane %v12594_v49, 7  ;;  %v6304_v25 = vrot.slane %v12594_v49, 1  ;;  %v6431_v15 = vsel %vm6065_vm9, %v6430_v33, %v6429_v27 }
 0x83e   : > { %v12617_v24 = vadd.f32 %v12150_v32, %v5956_v39  ;;  %v6144_v40 = vsel %vm6083_vm15, %v6143_v53, %v6142_v57  ;;  %v6272_v42 = vsel %vm6083_vm15, %v6271_v58, %v6270_v44  ;;  %v6432_v26 = vrot.slane %v12594_v49, 3  ;;  %v13436_v58 = vld [vmem:[#allocation40_spill] sm:$0xff] }
 0x83f   : > { %v5890_v7 = vpop.permute.xlu0 %5889  ;;  %v6400_v16 = vsel %vm6083_vm15, %v6399_v59, %v6398_v55  ;;  %v6176_v45 = vsel %vm6068_vm10, %v6175_v48, %v6174_v1  ;;  %v6305_v9 = vsel %vm6068_vm10, %v6304_v25, %v6303_v0  ;;  %v6558_v5 = vrot.slane %v12569_v60, 6 }
 0x840   : > { %v5957_v27 = vadd.f32 %v5890_v7, %v13435_v63  ;;  %v6177_v47 = vrot.slane %v12617_v24, 6  ;;  %v6306_v19 = vsel %vm6071_vm11, %v12617_v24, %v6305_v9  ;;  %v6433_v56 = vsel %vm6068_vm10, %v6432_v26, %v6431_v15 }
 0x841   : > { %6187 = vrot.lane.b32.xlu1 %v6144_v40, %s7524_s24  ;;  %v6434_v51 = vrot.slane %v12617_v24, 2  ;;  %v6559_v57 = vsel %vm6065_vm9, %v6558_v5, %v6557_v34  ;;  %v6560_v1 = vrot.slane %v12594_v49, 5  ;;  %v6562_v22 = vrot.slane %v12617_v24, 4 }
 0x842   : > { %v12637_v44 = vadd.f32 %v12150_v32, %v5957_v27  ;;  %v6178_v55 = vsel %vm6071_vm11, %v6177_v47, %v6176_v45  ;;  %v6466_v0 = vsel %vm6080_vm14, %v12566_v61, %v12226_v38  ;;  %v6467_v33 = vrot.slane %v12591_v11, 7 }
 0x843   : > { %v5892_v8 = vpop.permute.xlu0 %5891  ;;  %v6435_v39 = vsel %vm6071_vm11, %v6434_v51, %v6433_v56  ;;  %v6561_v34 = vsel %vm6068_vm10, %v6560_v1, %v6559_v57  ;;  %v6079_v4 = vrot.slane %v12566_v61, 2  ;;  %v6082_v53 = vrot.slane %v12591_v11, 1 }
 0x844   : > { %v5958_v59 = vadd.f32 %v5892_v8, %v13436_v58  ;;  %v6179_v48 = vrot.slane %v12637_v44, 5  ;;  %v6307_v25 = vrot.slane %v12637_v44, 7  ;;  %v6436_v15 = vrot.slane %v12637_v44, 1 }
 0x845   : > { %6315 = vrot.lane.b32.xlu1 %v6272_v42, %s7524_s24  ;;  %v6563_v38 = vsel %vm6071_vm11, %v6562_v22, %v6561_v34  ;;  %v6564_v40 = vrot.slane %v12637_v44, 3  ;;  %v12656_v26 = vsel %vm6083_vm15, %v6467_v33, %v6466_v0  ;;  %v6081_v7 = vsel %vm6080_vm14, %v6079_v4, %v12229_v3  ;;  %v13437_v3 = vld [vmem:[#allocation19_spill] sm:$0xff] }
 0x846   : > { %v12661_v45 = vadd.f32 %v12150_v32, %v5958_v59  ;;  %v6180_v9 = vsel %vm6074_vm12, %v6179_v48, %v6178_v55  ;;  %v6308_v5 = vsel %vm6074_vm12, %v6307_v25, %v6306_v19  ;;  %v6437_v63 = vsel %vm6074_vm12, %v6436_v15, %v6435_v39  ;;  %v13438_v59 = vld [vmem:[#allocation28_spill] sm:$0xff] }
 0x847   : > { %v5894_v42 = vpop.permute.xlu0 %5893  ;;  %v6565_v27 = vsel %vm6074_vm12, %v6564_v40, %v6563_v38  ;;  %v12668_v47 = vsel %vm6083_vm15, %v6082_v53, %v6081_v7  ;;  %v6209_v56 = vrot.slane %v12566_v61, 4  ;;  %v6211_v51 = vrot.slane %v12591_v11, 3 }
 0x848   : > { %v5959_v57 = vadd.f32 %v5894_v42, %v13437_v3  ;;  %v6181_v1 = vrot.slane %v12661_v45, 4  ;;  %v6309_v22 = vrot.slane %v12661_v45, 6  ;;  %v6438_v19 = vsel %vm6077_vm13, %v12661_v45, %v6437_v63 }
 0x849   : > { %6443 = vrot.lane.b32.xlu1 %v6400_v16, %s7524_s24  ;;  %v6566_v55 = vrot.slane %v12661_v45, 2  ;;  %v6210_v0 = vsel %vm6080_vm14, %v6209_v56, %v12232_v13  ;;  %v6337_v33 = vrot.slane %v12566_v61, 6  ;;  %v6339_v8 = vrot.slane %v12591_v11, 5 }
 0x84a   : > { %v12684_v39 = vadd.f32 %v12150_v32, %v5959_v57  ;;  %v6182_v34 = vsel %vm6077_vm13, %v6181_v1, %v6180_v9  ;;  %v6310_v4 = vsel %vm6077_vm13, %v6309_v22, %v6308_v5  ;;  %v12689_v53 = vsel %vm6083_vm15, %v6211_v51, %v6210_v0 }
 0x84b   : > { %v5896_v16 = vpop.permute.xlu0 %5895  ;;  %v6567_v58 = vsel %vm6077_vm13, %v6566_v55, %v6565_v27  ;;  %v6338_v13 = vsel %vm6080_vm14, %v6337_v33, %v12237_v50  ;;  %v6113_v61 = vrot.slane %v12569_v60, 7  ;;  %v6115_v11 = vrot.slane %v12594_v49, 6 }
 0x84c   : > { %v5960_v48 = vadd.f32 %v5896_v16, %v13438_v59  ;;  %v6183_v25 = vrot.slane %v12684_v39, 3  ;;  %v6311_v15 = vrot.slane %v12684_v39, 5  ;;  %v6439_v38 = vrot.slane %v12684_v39, 7 }
 0x84d   : > { %6191 = vrot.lane.b32.xlu1 %v12554_v10, %s7524_s24  ;;  %v6568_v40 = vrot.slane %v12684_v39, 1  ;;  %v12704_v7 = vsel %vm6083_vm15, %v6339_v8, %v6338_v13  ;;  %v6114_v50 = vsel %vm6065_vm9, %v6113_v61, %v12537_v12  ;;  %v6117_v9 = vrot.slane %v12617_v24, 5 }
 0x84e   : > { %v12710_v5 = vadd.f32 %v12150_v32, %v5960_v48  ;;  %v6184_v63 = vsel %vm6080_vm14, %v6183_v25, %v6182_v34  ;;  %v6312_v42 = vsel %vm6080_vm14, %v6311_v15, %v6310_v4  ;;  %v6440_v27 = vsel %vm6080_vm14, %v6439_v38, %v6438_v19 }
 0x84f   : > { %v6569_v10 = vsel %vm6080_vm14, %v6568_v40, %v6567_v58  ;;  %v6116_v56 = vsel %vm6068_vm10, %v6115_v11, %v6114_v50  ;;  %v6119_v51 = vrot.slane %v12637_v44, 4  ;;  %v6121_v3 = vrot.slane %v12661_v45, 3 }
 0x850   : > { %v6185_v57 = vrot.slane %v12710_v5, 2  ;;  %v6313_v1 = vrot.slane %v12710_v5, 4  ;;  %v6441_v32 = vrot.slane %v12710_v5, 6  ;;  %v6570_v22 = vsel %vm6083_vm15, %v12710_v5, %v6569_v10 }
 0x851   : > { %6319 = vrot.lane.b32.xlu1 %v12557_v29, %s7524_s24  ;;  %v6118_v19 = vsel %vm6071_vm11, %v6117_v9, %v6116_v56  ;;  %v6123_v55 = vrot.slane %v12684_v39, 2  ;;  %v6125_v0 = vrot.slane %v12710_v5, 1  ;;  %v6361_v33 = vsel %vm6071_vm11, %v6360_v46, %v12549_v36 }
 0x852   : > { %v6186_v8 = vsel %vm6083_vm15, %v6185_v57, %v6184_v63  ;;  %v6314_v34 = vsel %vm6083_vm15, %v6313_v1, %v6312_v42  ;;  %v6442_v4 = vsel %vm6083_vm15, %v6441_v32, %v6440_v27  ;;  %v6120_v16 = vsel %vm6074_vm12, %v6119_v51, %v6118_v19 }
 0x853   : > { %6193 = vrot.lane.b32.xlu0 %v6186_v8, %s7524_s24  ;;  %v6122_v29 = vsel %vm6077_vm13, %v6121_v3, %v6120_v16  ;;  %v6362_v58 = vsel %vm6074_vm12, %v12470_v2, %v6361_v33  ;;  %v6367_v13 = vrot.slane %v12527_v30, 5  ;;  %v6241_v61 = vrot.slane %v12537_v12, 2 }
 0x854   : > { %v6124_v36 = vsel %vm6080_vm14, %v6123_v55, %v6122_v29  ;;  %v6364_v46 = vsel %vm6077_vm13, %v6363_v43, %v6362_v58  ;;  %v6242_v11 = vrot.slane %v12569_v60, 1  ;;  %v6245_v59 = vrot.slane %v12617_v24, 7 }
 0x855   : > { %6447 = vrot.lane.b32.xlu1 %v12561_v21, %s7524_s24  ;;  %v12752_v48 = vsel %vm6083_vm15, %v6125_v0, %v6124_v36  ;;  %v6366_v25 = vsel %vm6080_vm14, %v6365_v20, %v6364_v46  ;;  %v6247_v15 = vrot.slane %v12637_v44, 6  ;;  %v6249_v38 = vrot.slane %v12661_v45, 5 }
 0x856   : > { %v12760_v43 = vsel %vm6083_vm15, %v6367_v13, %v6366_v25  ;;  %v6243_v40 = vsel %vm6065_vm9, %v6242_v11, %v6241_v61  ;;  %v6251_v50 = vrot.slane %v12684_v39, 4  ;;  %v6253_v21 = vrot.slane %v12710_v5, 3 }
 0x857   : > { %6321 = vrot.lane.b32.xlu0 %v6314_v34, %s7524_s24  ;;  %v6244_v9 = vsel %vm6068_vm10, %v12594_v49, %v6243_v40  ;;  %v6483_v20 = vrot.slane %v12382_v23, 6  ;;  %v6484_v63 = vrot.slane %v12407_v52, 5  ;;  %v6486_v42 = vrot.slane %v12429_v28, 4 }
 0x858   : > { %v6246_v27 = vsel %vm6071_vm11, %v6245_v59, %v6244_v9  ;;  %v6488_v10 = vrot.slane %v12451_v14, 3  ;;  %v6490_v56 = vrot.slane %v12470_v2, 2  ;;  %v6492_v51 = vrot.slane %v12490_v41, 1 }
 0x859   : > { %6575 = vrot.lane.b32.xlu1 %v12544_v17, %s7524_s24  ;;  %v6248_v3 = vsel %vm6074_vm12, %v6247_v15, %v6246_v27  ;;  %v6485_v57 = vsel %vm6065_vm9, %v6484_v63, %v6483_v20  ;;  %v6495_v23 = vrot.slane %v12527_v30, 7  ;;  %v6369_v52 = vrot.slane %v12537_v12, 4  ;;  %v7500_v63 = vld [vmem:[%s7572_s23 + $0x20] sm:$0xff] }
 0x85a   : > { %v6250_v28 = vsel %vm6077_vm13, %v6249_v38, %v6248_v3  ;;  %v6487_v1 = vsel %vm6068_vm10, %v6486_v42, %v6485_v57  ;;  %v6370_v14 = vrot.slane %v12569_v60, 3  ;;  %v6372_v2 = vrot.slane %v12594_v49, 2 }
 0x85b   : > { %6449 = vrot.lane.b32.xlu0 %v6442_v4, %s7524_s24  ;;  %v6252_v41 = vsel %vm6080_vm14, %v6251_v50, %v6250_v28  ;;  %v6489_v17 = vsel %vm6071_vm11, %v6488_v10, %v6487_v1  ;;  %v6374_v32 = vrot.slane %v12617_v24, 1  ;;  %v6377_v30 = vrot.slane %v12661_v45, 7 }
 0x85c   : > { %v12791_v19 = vsel %vm6083_vm15, %v6253_v21, %v6252_v41  ;;  %v6491_v55 = vsel %vm6074_vm12, %v6490_v56, %v6489_v17  ;;  %v6371_v0 = vsel %vm6065_vm9, %v6370_v14, %v6369_v52  ;;  %v6379_v33 = vrot.slane %v12684_v39, 6  ;;  %v7499_v21 = vld [vmem:[%s7572_s23 + $0x38] sm:$0xff] }
 0x85d   : > { %v6493_v8 = vsel %vm6077_vm13, %v6492_v51, %v6491_v55  ;;  %v6373_v34 = vsel %vm6068_vm10, %v6372_v2, %v6371_v0  ;;  %v6381_v4 = vrot.slane %v12710_v5, 5  ;;  %v6497_v16 = vrot.slane %v12537_v12, 6 }
 0x85e   : > { %v6494_v29 = vsel %vm6080_vm14, %v12509_v31, %v6493_v8  ;;  %v6375_v58 = vsel %vm6071_vm11, %v6374_v32, %v6373_v34  ;;  %v6498_v13 = vrot.slane %v12569_v60, 5  ;;  %v6500_v61 = vrot.slane %v12594_v49, 4 }
 0x85f   : > { %6577 = vrot.lane.b32.xlu0 %v6570_v22, %s7524_s24  ;;  %v12807_v36 = vsel %vm6083_vm15, %v6495_v23, %v6494_v29  ;;  %v6376_v46 = vsel %vm6074_vm12, %v12637_v44, %v6375_v58  ;;  %v6502_v12 = vrot.slane %v12617_v24, 3  ;;  %v6504_v11 = vrot.slane %v12637_v44, 2 }
 0x860   : > { %v6378_v31 = vsel %vm6077_vm13, %v6377_v30, %v6376_v46  ;;  %v6499_v60 = vsel %vm6065_vm9, %v6498_v13, %v6497_v16  ;;  %v6506_v49 = vrot.slane %v12661_v45, 1  ;;  %v6509_v24 = vrot.slane %v12710_v5, 7 }
 0x861   : > { %v6380_v22 = vsel %vm6080_vm14, %v6379_v33, %v6378_v31  ;;  %v6501_v59 = vsel %vm6068_vm10, %v6500_v61, %v6499_v60 }
 0x862   : > { %v12819_v25 = vsel %vm6083_vm15, %v6381_v4, %v6380_v22  ;;  %v6503_v15 = vsel %vm6071_vm11, %v6502_v12, %v6501_v59 }
 0x863   : > { %v6505_v44 = vsel %vm6074_vm12, %v6504_v11, %v6503_v15 }
 0x864   : > { %v6507_v38 = vsel %vm6077_vm13, %v6506_v49, %v6505_v44 }
 0x865   : > { %v6508_v45 = vsel %vm6080_vm14, %v12684_v39, %v6507_v38  ;;  %v7513_v38 = vld [vmem:[%s7572_s23 + $0x70] sm:$0xff] }
 0x866   : > { %v12828_v40 = vsel %vm6083_vm15, %v6509_v24, %v6508_v45 }
 0x885   : > { %v6574_v50 = vpop.permute.xlu0 %6573 }
 0x886   : > { %v6596_v5 = vsel %vm2616_vm7, %v12389_v37, %v6574_v50  ;;  %v7501_v37 = vld [vmem:[%s7572_s23 + $0x28] sm:$0xff] }
 0x887   : > { %v6606_v9 = vadd.f32 %v7499_v21, %v6596_v5  ;;  %v7514_v5 = vld [vmem:[%s7572_s23 + $0x78] sm:$0xff] }
 0x889   : > { %6622 = vst [vmem:[%s12835_s26 + $0x38] sm:$0xff] %v6606_v9  ;;  %v6190_v39 = vpop.permute.xlu0 %6189 }
 0x88a   : > { %v6584_v20 = vsel %vm2616_vm7, %v12392_v6, %v6190_v39  ;;  %v7502_v6 = vld [vmem:[%s7572_s23 + $0x30] sm:$0xff] }
 0x88b   : > { %v6603_v42 = vadd.f32 %v7500_v63, %v6584_v20 }
 0x88d   : > { %6619 = vst [vmem:[%s12835_s26 + $0x20] sm:$0xff] %v6603_v42  ;;  %v6318_v27 = vpop.permute.xlu0 %6317 }
 0x88e   : > { %v6588_v10 = vsel %vm2616_vm7, %v12402_v35, %v6318_v27  ;;  %v7503_v35 = vld [vmem:[%s7572_s23 + $0x18] sm:$0xff] }
 0x88f   : > { %v6604_v56 = vadd.f32 %v7501_v37, %v6588_v10 }
 0x891   : > { %6620 = vst [vmem:[%s12835_s26 + $0x28] sm:$0xff] %v6604_v56  ;;  %v6446_v51 = vpop.permute.xlu0 %6445 }
 0x892   : > { %v6592_v3 = vsel %vm2616_vm7, %v12477_v54, %v6446_v51  ;;  %v7504_v54 = vld [vmem:[%s7572_s23] sm:$0xff] }
 0x893   : > { %v6605_v57 = vadd.f32 %v7502_v6, %v6592_v3 }
 0x895   : > { %6621 = vst [vmem:[%s12835_s26 + $0x30] sm:$0xff] %v6605_v57 }
 0x8af   : > { %v6572_v23 = vpop.permute.xlu1 %6571 }
 0x8b0   : > { %v6595_v52 = vsel %vm2616_vm7, %v12656_v26, %v6572_v23  ;;  %v7505_v26 = vld [vmem:[%s7572_s23 + $0x8] sm:$0xff] }
 0x8b1   : > { %v6602_v28 = vadd.f32 %v7503_v35, %v6595_v52 }
 0x8b3   : > { %6618 = vst [vmem:[%s12835_s26 + $0x18] sm:$0xff] %v6602_v28  ;;  %v6188_v1 = vpop.permute.xlu1 %6187 }
 0x8b4   : > { %v6583_v14 = vsel %vm2616_vm7, %v12668_v47, %v6188_v1  ;;  %v7506_v47 = vld [vmem:[%s7572_s23 + $0x10] sm:$0xff] }
 0x8b5   : > { %v6599_v2 = vadd.f32 %v7504_v54, %v6583_v14 }
 0x8b7   : > { %6615 = vst [vmem:[%s12835_s26] sm:$0xff] %v6599_v2  ;;  %v6316_v41 = vpop.permute.xlu1 %6315 }
 0x8b8   : > { %v6587_v17 = vsel %vm2616_vm7, %v12689_v53, %v6316_v41  ;;  %v7507_v53 = vld [vmem:[%s7572_s23 + $0x40] sm:$0xff] }
 0x8b9   : > { %v6600_v32 = vadd.f32 %v7505_v26, %v6587_v17 }
 0x8bb   : > { %6616 = vst [vmem:[%s12835_s26 + $0x8] sm:$0xff] %v6600_v32  ;;  %v6444_v30 = vpop.permute.xlu1 %6443 }
 0x8bc   : > { %v6591_v55 = vsel %vm2616_vm7, %v12704_v7, %v6444_v30  ;;  %v7508_v7 = vld [vmem:[%s7572_s23 + $0x48] sm:$0xff] }
 0x8bd   : > { %v6601_v0 = vadd.f32 %v7506_v47, %v6591_v55 }
 0x8bf   : > { %6617 = vst [vmem:[%s12835_s26 + $0x10] sm:$0xff] %v6601_v0  ;;  %v6192_v33 = vpop.permute.xlu1 %6191 }
 0x8c0   : > { %v6585_v8 = vsel %vm2616_vm7, %v12573_v62, %v6192_v33  ;;  %v7509_v62 = vld [vmem:[%s7572_s23 + $0x60] sm:$0xff] }
 0x8c1   : > { %v6607_v34 = vadd.f32 %v7507_v53, %v6585_v8 }
 0x8c3   : > { %6623 = vst [vmem:[%s12835_s26 + $0x40] sm:$0xff] %v6607_v34  ;;  %v6320_v4 = vpop.permute.xlu1 %6319 }
 0x8c4   : > { %v6589_v16 = vsel %vm2616_vm7, %v12576_v18, %v6320_v4  ;;  %v7510_v18 = vld [vmem:[%s7572_s23 + $0x50] sm:$0xff] }
 0x8c5   : > { %v6608_v29 = vadd.f32 %v7508_v7, %v6589_v16  ;;  %v6194_v58 = vpop.permute.xlu0 %6193 }
 0x8c6   : > { %v6586_v13 = vsel %vm2616_vm7, %v12752_v48, %v6194_v58  ;;  %v7511_v48 = vld [vmem:[%s7572_s23 + $0x68] sm:$0xff] }
 0x8c7   : > { %6624 = vst [vmem:[%s12835_s26 + $0x48] sm:$0xff] %v6608_v29  ;;  %v6611_v61 = vadd.f32 %v7509_v62, %v6586_v13  ;;  %v6448_v46 = vpop.permute.xlu1 %6447 }
 0x8c8   : > { %v6593_v12 = vsel %vm2616_vm7, %v12760_v43, %v6448_v46  ;;  %v7512_v43 = vld [vmem:[%s7572_s23 + $0x58] sm:$0xff] }
 0x8c9   : > { %6627 = vst [vmem:[%s12835_s26 + $0x60] sm:$0xff] %v6611_v61  ;;  %v6609_v11 = vadd.f32 %v7510_v18, %v6593_v12  ;;  %v6322_v31 = vpop.permute.xlu0 %6321 }
 0x8ca   : > { %v6590_v60 = vsel %vm2616_vm7, %v12791_v19, %v6322_v31 }
 0x8cb   : > { %6625 = vst [vmem:[%s12835_s26 + $0x50] sm:$0xff] %v6609_v11  ;;  %v6612_v49 = vadd.f32 %v7511_v48, %v6590_v60  ;;  %v6576_v22 = vpop.permute.xlu1 %6575 }
 0x8cc   : > { %v6597_v59 = vsel %vm2616_vm7, %v12807_v36, %v6576_v22 }
 0x8cd   : > { %6628 = vst [vmem:[%s12835_s26 + $0x68] sm:$0xff] %v6612_v49  ;;  %v6610_v15 = vadd.f32 %v7512_v43, %v6597_v59  ;;  %v6450_v24 = vpop.permute.xlu0 %6449 }
 0x8ce   : > { %v6594_v44 = vsel %vm2616_vm7, %v12819_v25, %v6450_v24 }
 0x8cf   : > { %6626 = vst [vmem:[%s12835_s26 + $0x58] sm:$0xff] %v6610_v15  ;;  %v6613_v45 = vadd.f32 %v7513_v38, %v6594_v44 }
 0x8d1   : > { %6629 = vst [vmem:[%s12835_s26 + $0x70] sm:$0xff] %v6613_v45  ;;  %v6578_v19 = vpop.permute.xlu0 %6577 }
 0x8d2   : > { %v6598_v50 = vsel %vm2616_vm7, %v12828_v40, %v6578_v19 }
 0x8d3   : > { %v6614_v21 = vadd.f32 %v7514_v5, %v6598_v50 }
 0x8d5   : > { %6630 = vst [vmem:[%s12835_s26 + $0x78] sm:$0xff] %v6614_v21 }
 0x8d6 PF: > { %s15_s18 = sadd.s32 1, %s7521_s18  }
 0x8d7   : > { %p12_p4 = scmp.ge.s32.totalorder %s15_s18, 4  }
 0x8d9   :  { %14 = sbr.rel (!%p12_p4) target bundleno = 1 (0x1), region = 70 }

</bundles_post_ra>
